<compile_context>
chip_gen: v7x
topology: tpu7x:2x2x1
jax: 0.10.0
libtpu: 0.0.40
codegen_flags: <defaults>
</compile_context>

<pallas_src>
import functools

import jax
import jax.numpy as jnp
from jax.experimental import pallas as pl
from jax.experimental.pallas import tpu as pltpu


def _round_up(x, m):
    return (x + m - 1) // m * m


def _tap_offsets():
    # Order must match weight packing and mask construction: t = 3*(dy+1)+(dx+1).
    return [(dy, dx) for dy in (-1, 0, 1) for dx in (-1, 0, 1)]


# ----------------------------------------------------------------------------
# Fused kernel: one grid step == the full unrolled primal-dual forward for one
# batch element (iteration loop is statically unrolled inside the kernel).
# ----------------------------------------------------------------------------
def _primal_dual_kernel(
    # inputs -------------------------------------------------------------------
    alphas_ref,   # SMEM (4*n_iter,) f32: [dual_a1, dual_a2, primal_a1, primal_a2]*it
    x0_ref,       # VMEM (1, H*W) f32   initial image, lane-dense
    g_ref,        # VMEM (1, A*D) f32   measured sinogram, lane-dense
    fp_ref,       # VMEM (A*D, H*W) bf16   dense forward projection operator
    pmask_ref,    # VMEM (9, H*W) f32   image-domain 3x3 tap validity masks
    dmask_ref,    # VMEM (9, A*D) f32   sinogram-domain tap validity masks
    dw1_ref, db1_ref, dw2_ref, db2_ref, dw3_ref, db3_ref,   # dual conv stacks
    pw1_ref, pb1_ref, pw2_ref, pb2_ref, pw3_ref, pb3_ref,   # primal conv stacks
    # output -------------------------------------------------------------------
    out_ref,      # VMEM (1, H*W) f32   primal channel 0, lane-dense
    # scratch ------------------------------------------------------------------
    patch_d,      # VMEM (9*Cmax, A*D) f32  im2col patches, sinogram domain
    patch_p,      # VMEM (9*Cmax, H*W) f32  im2col patches, image domain
    *,
    n_iter, n_primal, n_dual, H, W, A, D, cin_d_pad, cin_p_pad,
):
    HW = H * W
    AD = A * D

    taps = _tap_offsets()
    # roll semantics match jnp.roll: out[p] = x[(p - shift) % N]; we want
    # out[p] = x[p + dy*cols + dx]  ->  shift = -(dy*cols + dx) mod N.
    shifts_p = [(-(dy * W + dx)) % HW for dy, dx in taps]
    shifts_d = [(-(dy * D + dx)) % AD for dy, dx in taps]

    def conv3x3(x, w, b, mask_ref, shifts, patch_ref, alpha):
        # x: (cin, N) f32 value (cin a multiple of 8); w: (cout, 9*cin) bf16;
        # b: (cout, 1) f32; patch_ref: f32 VMEM scratch with >= 9*cin rows.
        cin, _ = x.shape
        for t, s in enumerate(shifts):
            if s == 0:
                tap = x                                    # centre tap, mask == 1
            else:
                tap = pltpu.roll(x, s, axis=1) * mask_ref[t:t + 1, :]
            patch_ref[t * cin:(t + 1) * cin, :] = tap      # 8-aligned, full lanes
        patches = patch_ref[0:9 * cin, :].astype(jnp.bfloat16)
        acc = jnp.dot(w, patches, preferred_element_type=jnp.float32)   # (cout, N)
        acc = acc + b
        if alpha is not None:
            acc = jnp.where(acc > 0, acc, alpha * acc)                  # PReLU
        return acc

    fp = fp_ref[...]                                       # (AD, HW) bf16
    g = g_ref[...]                                         # (1, AD)  f32
    primal = jnp.broadcast_to(x0_ref[...], (n_primal, HW))  # channel-major state
    dual = jnp.zeros((n_dual, AD), jnp.float32)

    zpad_d = (jnp.zeros((cin_d_pad - (n_dual + 2), AD), jnp.float32)
              if cin_d_pad > n_dual + 2 else None)
    zpad_p = (jnp.zeros((cin_p_pad - (n_primal + 1), HW), jnp.float32)
              if cin_p_pad > n_primal + 1 else None)

    for i in range(n_iter):                                # static unroll
        a_d1 = alphas_ref[4 * i + 0]
        a_d2 = alphas_ref[4 * i + 1]
        a_p1 = alphas_ref[4 * i + 2]
        a_p2 = alphas_ref[4 * i + 3]

        # ---------------- dual update ------------------------------------------
        # evalop = fp(primal[1]) : sino_row = x1_row @ fp^T  (rhs-transposed).
        x1 = primal[1:2, :].astype(jnp.bfloat16)                         # (1, HW)
        sino = jax.lax.dot_general(x1, fp, (((1,), (1,)), ((), ())),
                                   preferred_element_type=jnp.float32)   # (1, AD)
        parts = [dual, sino, g] + ([zpad_d] if zpad_d is not None else [])
        upd = jnp.concatenate(parts, axis=0)                             # (cin_d_pad, AD)
        h = conv3x3(upd, dw1_ref[i], db1_ref[i], dmask_ref, shifts_d, patch_d, a_d1)
        h = conv3x3(h, dw2_ref[i], db2_ref[i], dmask_ref, shifts_d, patch_d, a_d2)
        dual = conv3x3(h, dw3_ref[i], db3_ref[i], dmask_ref, shifts_d, patch_d, None)

        # ---------------- primal update -----------------------------------------
        # evalop = bp(dual[0]) = fp^T y0 : img_row = y0_row @ fp (standard).
        y0 = dual[0:1, :].astype(jnp.bfloat16)                           # (1, AD)
        img = jax.lax.dot_general(y0, fp, (((1,), (0,)), ((), ())),
                                  preferred_element_type=jnp.float32)    # (1, HW)
        parts = [primal, img] + ([zpad_p] if zpad_p is not None else [])
        upd = jnp.concatenate(parts, axis=0)                             # (cin_p_pad, HW)
        h = conv3x3(upd, pw1_ref[i], pb1_ref[i], pmask_ref, shifts_p, patch_p, a_p1)
        h = conv3x3(h, pw2_ref[i], pb2_ref[i], pmask_ref, shifts_p, patch_p, a_p2)
        primal = primal + conv3x3(h, pw3_ref[i], pb3_ref[i], pmask_ref, shifts_p,
                                  patch_p, None)

    out_ref[...] = primal[0:1, :]                          # single lane-dense store


# ----------------------------------------------------------------------------
# Host-side packing helpers
# ----------------------------------------------------------------------------
def _pack_conv_w(w_hwio, cin_pad):
    """(3,3,Cin,Cout) HWIO -> (Cout, 9*cin_pad) bf16, tap-major, Cin zero-padded."""
    kh, kw, cin, cout = w_hwio.shape
    wp = jnp.zeros((kh, kw, cin_pad, cout), jnp.float32)
    wp = wp.at[:, :, :cin, :].set(w_hwio.astype(jnp.float32))
    return jnp.transpose(wp, (3, 0, 1, 2)).reshape(
        cout, kh * kw * cin_pad).astype(jnp.bfloat16)


def _pack_conv_b(b):
    return b.reshape(-1, 1).astype(jnp.float32)            # (Cout, 1)


def _tap_masks(nrows, ncols):
    """(9, nrows*ncols) f32: 1 where the 3x3 tap stays inside the image."""
    r = jnp.arange(nrows)[:, None]
    c = jnp.arange(ncols)[None, :]
    rows = []
    for dy, dx in _tap_offsets():
        valid = ((r + dy >= 0) & (r + dy < nrows) &
                 (c + dx >= 0) & (c + dx < ncols))
        rows.append(valid.reshape(1, nrows * ncols))
    return jnp.concatenate(rows, axis=0).astype(jnp.float32)


# ----------------------------------------------------------------------------
# Wrapper: NCHW boundary, weight stacking, single pallas_call with grid=(B,).
# ----------------------------------------------------------------------------
def primal_dual_forward(params, fp_mat, primal_in, proj, n_iter, n_primal, n_dual):
    """primal_in: (B,1,H,W), proj: (B,1,A,D)  ->  (B,1,H,W)."""
    B, _, H, W = primal_in.shape
    A, D = proj.shape[2], proj.shape[3]
    HW, AD = H * W, A * D
    hidden = params["dual"][0]["w2"].shape[2]               # 32
    cin_d_pad = _round_up(n_dual + 2, 8)
    cin_p_pad = _round_up(n_primal + 1, 8)
    cmax = max(hidden, cin_d_pad, cin_p_pad)

    x0 = primal_in.reshape(B, 1, HW).astype(jnp.float32)    # pixels on lanes
    g = proj.reshape(B, 1, AD).astype(jnp.float32)
    fp_b = fp_mat.astype(jnp.bfloat16)                       # (AD, HW)
    pmask = _tap_masks(H, W)                                 # (9, HW)
    dmask = _tap_masks(A, D)                                 # (9, AD)

    dl, pr = params["dual"], params["primal"]
    dw1 = jnp.stack([_pack_conv_w(l["w1"], cin_d_pad) for l in dl])
    db1 = jnp.stack([_pack_conv_b(l["b1"]) for l in dl])
    dw2 = jnp.stack([_pack_conv_w(l["w2"], hidden) for l in dl])
    db2 = jnp.stack([_pack_conv_b(l["b2"]) for l in dl])
    dw3 = jnp.stack([_pack_conv_w(l["w3"], hidden) for l in dl])
    db3 = jnp.stack([_pack_conv_b(l["b3"]) for l in dl])
    pw1 = jnp.stack([_pack_conv_w(l["w1"], cin_p_pad) for l in pr])
    pb1 = jnp.stack([_pack_conv_b(l["b1"]) for l in pr])
    pw2 = jnp.stack([_pack_conv_w(l["w2"], hidden) for l in pr])
    pb2 = jnp.stack([_pack_conv_b(l["b2"]) for l in pr])
    pw3 = jnp.stack([_pack_conv_w(l["w3"], hidden) for l in pr])
    pb3 = jnp.stack([_pack_conv_b(l["b3"]) for l in pr])
    alphas = jnp.concatenate(
        [jnp.stack([dl[i]["a1"], dl[i]["a2"], pr[i]["a1"], pr[i]["a2"]])
         for i in range(n_iter)]).astype(jnp.float32)        # flat (4*n_iter,)

    def resident(arr):
        nd = arr.ndim
        return pl.BlockSpec(arr.shape, lambda b: (0,) * nd)  # whole array, constant

    def per_batch(n):
        return pl.BlockSpec((None, 1, n), lambda b: (b, 0, 0))

    kernel = functools.partial(
        _primal_dual_kernel, n_iter=n_iter, n_primal=n_primal, n_dual=n_dual,
        H=H, W=W, A=A, D=D, cin_d_pad=cin_d_pad, cin_p_pad=cin_p_pad)

    out = pl.pallas_call(
        kernel,
        out_shape=jax.ShapeDtypeStruct((B, 1, HW), jnp.float32),
        grid=(B,),
        in_specs=[
            pl.BlockSpec(memory_space=pltpu.MemorySpace.SMEM),   # alphas
            per_batch(HW),                                        # x0
            per_batch(AD),                                        # sinogram
            resident(fp_b), resident(pmask), resident(dmask),
            resident(dw1), resident(db1), resident(dw2), resident(db2),
            resident(dw3), resident(db3),
            resident(pw1), resident(pb1), resident(pw2), resident(pb2),
            resident(pw3), resident(pb3),
        ],
        out_specs=pl.BlockSpec((None, 1, HW), lambda b: (b, 0, 0)),
        scratch_shapes=[
            pltpu.VMEM((9 * cmax, AD), jnp.float32),              # patch_d
            pltpu.VMEM((9 * cmax, HW), jnp.float32),              # patch_p
        ],
        compiler_params=pltpu.CompilerParams(
            dimension_semantics=("parallel",)),
    )(alphas, x0, g, fp_b, pmask, dmask,
      dw1, db1, dw2, db2, dw3, db3, pw1, pb1, pw2, pb2, pw3, pb3)

    return out.reshape(B, 1, H, W)


# ----------------------------------------------------------------------------
# Parameter / operator construction (deterministic, synthetic)
# ----------------------------------------------------------------------------
def _conv_init(key, cin, cout):
    k1, k2 = jax.random.split(key)
    bound = 1.0 / (cin * 9) ** 0.5
    w = jax.random.uniform(k1, (3, 3, cin, cout), jnp.float32, -bound, bound)
    b = jax.random.uniform(k2, (cout,), jnp.float32, -bound, bound)
    return w, b


def init_params(key, n_iter, n_primal, n_dual):
    params = {"dual": [], "primal": []}
    keys = jax.random.split(key, n_iter * 6)
    for i in range(n_iter):
        kd1, kd2, kd3, kp1, kp2, kp3 = keys[6 * i:6 * (i + 1)]
        w1, b1 = _conv_init(kd1, n_dual + 2, 32)
        w2, b2 = _conv_init(kd2, 32, 32)
        w3, b3 = _conv_init(kd3, 32, n_dual)
        params["dual"].append(dict(w1=w1, b1=b1, a1=jnp.float32(0.25),
                                   w2=w2, b2=b2, a2=jnp.float32(0.25),
                                   w3=w3, b3=b3))
        w1, b1 = _conv_init(kp1, n_primal + 1, 32)
        w2, b2 = _conv_init(kp2, 32, 32)
        w3, b3 = _conv_init(kp3, 32, n_primal)
        params["primal"].append(dict(w1=w1, b1=b1, a1=jnp.float32(0.25),
                                     w2=w2, b2=b2, a2=jnp.float32(0.25),
                                     w3=w3, b3=b3))
    return params


def make_forward_operator(A, D, H, W):
    # Deterministic stand-in for the CT geometry: fp = kron(pa, pd), bp = fp^T.
    ia = jnp.arange(A, dtype=jnp.float32)[:, None]
    ih = jnp.arange(H, dtype=jnp.float32)[None, :]
    pa = jnp.cos(0.37 * ia * ih + 0.11 * ia) / float(H)
    idd = jnp.arange(D, dtype=jnp.float32)[:, None]
    iw = jnp.arange(W, dtype=jnp.float32)[None, :]
    pd = jnp.sin(0.23 * idd * iw + 0.07 * iw) / float(W)
    return jnp.kron(pa, pd).astype(jnp.float32)              # (A*D, H*W)


# ----------------------------------------------------------------------------
# Pure-JAX reference (bf16 matmul inputs / f32 accumulation, matching the kernel)
# ----------------------------------------------------------------------------
def _conv_ref(x, w, b, alpha):
    y = jax.lax.conv_general_dilated(
        x.astype(jnp.bfloat16), w.astype(jnp.bfloat16), (1, 1), "SAME",
        dimension_numbers=("NHWC", "HWIO", "NHWC"),
        preferred_element_type=jnp.float32)
    y = y + b
    if alpha is None:
        return y
    return jnp.where(y > 0, y, alpha * y)


def forward_ref(params, fp_mat, primal_in, proj, n_iter, n_primal, n_dual):
    B, _, H, W = primal_in.shape
    A, D = proj.shape[2], proj.shape[3]
    fp_b = fp_mat.astype(jnp.bfloat16)

    def fp(x):     # (B, H, W) -> (B, A, D)
        xf = x.reshape(B, H * W).astype(jnp.bfloat16)
        s = jnp.einsum("km,bm->bk", fp_b, xf, preferred_element_type=jnp.float32)
        return s.reshape(B, A, D)

    def bp(y):     # (B, A, D) -> (B, H, W)   (adjoint: fp^T y)
        yf = y.reshape(B, A * D).astype(jnp.bfloat16)
        r = jnp.einsum("km,bk->bm", fp_b, yf, preferred_element_type=jnp.float32)
        return r.reshape(B, H, W)

    primal = jnp.concatenate(
        [jnp.transpose(primal_in, (0, 2, 3, 1))] * n_primal, axis=-1)   # (B,H,W,np)
    proj_hw = jnp.transpose(proj, (0, 2, 3, 1))                         # (B,A,D,1)
    dual = jnp.zeros(proj_hw.shape[:-1] + (n_dual,), jnp.float32)

    for i in range(n_iter):
        dp = params["dual"][i]
        pp = params["primal"][i]
        evalop = fp(primal[..., 1])[..., None]
        update = jnp.concatenate([dual, evalop, proj_hw], axis=-1)
        h = _conv_ref(update, dp["w1"], dp["b1"], dp["a1"])
        h = _conv_ref(h, dp["w2"], dp["b2"], dp["a2"])
        dual = _conv_ref(h, dp["w3"], dp["b3"], None)
        evalop = bp(dual[..., 0])[..., None]
        update = jnp.concatenate([primal, evalop], axis=-1)
        h = _conv_ref(update, pp["w1"], pp["b1"], pp["a1"])
        h = _conv_ref(h, pp["w2"], pp["b2"], pp["a2"])
        primal = primal + _conv_ref(h, pp["w3"], pp["b3"], None)
    return jnp.transpose(primal[..., 0:1], (0, 3, 1, 2))


# ----------------------------------------------------------------------------
if __name__ == "__main__":
    key = jax.random.PRNGKey(0)
    B, H, W = 2, 16, 16            # image space
    A, D = 16, 16                  # projection space (angles x detectors)
    n_iter, n_primal, n_dual = 2, 5, 5

    k_par, k_pr, k_pj = jax.random.split(key, 3)
    params = init_params(k_par, n_iter, n_primal, n_dual)
    fp_mat = make_forward_operator(A, D, H, W)

    primal_in = jax.random.normal(k_pr, (B, 1, H, W), jnp.float32)
    proj = jax.random.normal(k_pj, (B, 1, A, D), jnp.float32)

    out = primal_dual_forward(params, fp_mat, primal_in, proj,
                              n_iter, n_primal, n_dual)
    out = jax.block_until_ready(out)
    assert out.shape == (B, 1, H, W), out.shape

    ref = forward_ref(params, fp_mat, primal_in, proj, n_iter, n_primal, n_dual)
    max_err = float(jnp.max(jnp.abs(out - ref)))
    # Tolerance reflects bf16 MXU inputs (f32 accumulation) in both kernel and
    # reference; residual differences come only from accumulation ordering.
    if not bool(jnp.allclose(out, ref, rtol=1e-2, atol=1e-2)):
        raise AssertionError(f"Pallas vs reference mismatch, max abs err {max_err}")
    print("KERNEL_OK")
</pallas_src>

<mosaic_0001>
module attributes {stable_mosaic.version = 11 : i64} {
  func.func @_primal_dual_kernel(%arg0: i32, %arg1: memref<8xf32, #tpu.memory_space<smem>>, %arg2: memref<1x1x256xf32, #tpu.memory_space<vmem>>, %arg3: memref<1x1x256xf32, #tpu.memory_space<vmem>>, %arg4: memref<256x256xbf16, #tpu.memory_space<vmem>>, %arg5: memref<9x256xf32, #tpu.memory_space<vmem>>, %arg6: memref<9x256xf32, #tpu.memory_space<vmem>>, %arg7: memref<2x32x72xbf16, #tpu.memory_space<vmem>>, %arg8: memref<2x32x1xf32, #tpu.memory_space<vmem>>, %arg9: memref<2x32x288xbf16, #tpu.memory_space<vmem>>, %arg10: memref<2x32x1xf32, #tpu.memory_space<vmem>>, %arg11: memref<2x5x288xbf16, #tpu.memory_space<vmem>>, %arg12: memref<2x5x1xf32, #tpu.memory_space<vmem>>, %arg13: memref<2x32x72xbf16, #tpu.memory_space<vmem>>, %arg14: memref<2x32x1xf32, #tpu.memory_space<vmem>>, %arg15: memref<2x32x288xbf16, #tpu.memory_space<vmem>>, %arg16: memref<2x32x1xf32, #tpu.memory_space<vmem>>, %arg17: memref<2x5x288xbf16, #tpu.memory_space<vmem>>, %arg18: memref<2x5x1xf32, #tpu.memory_space<vmem>>, %arg19: memref<1x1x256xf32, #tpu.memory_space<vmem>>, %arg20: memref<288x256xf32, #tpu.memory_space<vmem>>, %arg21: memref<288x256xf32, #tpu.memory_space<vmem>>) attributes {dimension_semantics = [#tpu.dimension_semantics<parallel>], iteration_bounds = array<i64: 2>, scalar_prefetch = 0 : i64, scratch_operands = 2 : i64, tpu.core_type = #tpu.core_type<tc>, window_params = [{transform_indices = @transform_0, window_bounds = array<i64: 8>}, {transform_indices = @transform_1, window_bounds = array<i64: 1, 1, 256>}, {transform_indices = @transform_2, window_bounds = array<i64: 1, 1, 256>}, {pipeline_mode = #tpu.pipeline_mode<synchronous>, transform_indices = @transform_3, window_bounds = array<i64: 256, 256>}, {pipeline_mode = #tpu.pipeline_mode<synchronous>, transform_indices = @transform_4, window_bounds = array<i64: 9, 256>}, {pipeline_mode = #tpu.pipeline_mode<synchronous>, transform_indices = @transform_5, window_bounds = array<i64: 9, 256>}, {pipeline_mode = #tpu.pipeline_mode<synchronous>, transform_indices = @transform_6, window_bounds = array<i64: 2, 32, 72>}, {pipeline_mode = #tpu.pipeline_mode<synchronous>, transform_indices = @transform_7, window_bounds = array<i64: 2, 32, 1>}, {pipeline_mode = #tpu.pipeline_mode<synchronous>, transform_indices = @transform_8, window_bounds = array<i64: 2, 32, 288>}, {pipeline_mode = #tpu.pipeline_mode<synchronous>, transform_indices = @transform_9, window_bounds = array<i64: 2, 32, 1>}, {pipeline_mode = #tpu.pipeline_mode<synchronous>, transform_indices = @transform_10, window_bounds = array<i64: 2, 5, 288>}, {pipeline_mode = #tpu.pipeline_mode<synchronous>, transform_indices = @transform_11, window_bounds = array<i64: 2, 5, 1>}, {pipeline_mode = #tpu.pipeline_mode<synchronous>, transform_indices = @transform_12, window_bounds = array<i64: 2, 32, 72>}, {pipeline_mode = #tpu.pipeline_mode<synchronous>, transform_indices = @transform_13, window_bounds = array<i64: 2, 32, 1>}, {pipeline_mode = #tpu.pipeline_mode<synchronous>, transform_indices = @transform_14, window_bounds = array<i64: 2, 32, 288>}, {pipeline_mode = #tpu.pipeline_mode<synchronous>, transform_indices = @transform_15, window_bounds = array<i64: 2, 32, 1>}, {pipeline_mode = #tpu.pipeline_mode<synchronous>, transform_indices = @transform_16, window_bounds = array<i64: 2, 5, 288>}, {pipeline_mode = #tpu.pipeline_mode<synchronous>, transform_indices = @transform_17, window_bounds = array<i64: 2, 5, 1>}, {transform_indices = @transform_18, window_bounds = array<i64: 1, 1, 256>}]} {
    %c0 = arith.constant 0 : index
    %c0_0 = arith.constant 0 : index
    %0 = vector.load %arg4[%c0, %c0_0] : memref<256x256xbf16, #tpu.memory_space<vmem>>, vector<256x256xbf16>
    %c0_1 = arith.constant 0 : index
    %c0_2 = arith.constant 0 : index
    %c0_3 = arith.constant 0 : index
    %1 = vector.load %arg3[%c0_1, %c0_2, %c0_3] : memref<1x1x256xf32, #tpu.memory_space<vmem>>, vector<1x1x256xf32>
    %2 = vector.shape_cast %1 : vector<1x1x256xf32> to vector<1x256xf32>
    %c0_4 = arith.constant 0 : index
    %c0_5 = arith.constant 0 : index
    %c0_6 = arith.constant 0 : index
    %3 = vector.load %arg2[%c0_4, %c0_5, %c0_6] : memref<1x1x256xf32, #tpu.memory_space<vmem>>, vector<1x1x256xf32>
    %4 = vector.shape_cast %3 : vector<1x1x256xf32> to vector<1x256xf32>
    %5 = vector.shape_cast %4 : vector<1x256xf32> to vector<1x256xf32>
    %6 = vector.broadcast %5 : vector<1x256xf32> to vector<5x256xf32>
    %cst = arith.constant 0.000000e+00 : f32
    %7 = vector.broadcast %cst : f32 to vector<5x256xf32>
    %cst_7 = arith.constant 0.000000e+00 : f32
    %8 = vector.broadcast %cst_7 : f32 to vector<1x256xf32>
    %cst_8 = arith.constant 0.000000e+00 : f32
    %9 = vector.broadcast %cst_8 : f32 to vector<2x256xf32>
    %c0_9 = arith.constant 0 : index
    %10 = memref.load %arg1[%c0_9] : memref<8xf32, #tpu.memory_space<smem>>
    %c1 = arith.constant 1 : index
    %11 = memref.load %arg1[%c1] : memref<8xf32, #tpu.memory_space<smem>>
    %c2 = arith.constant 2 : index
    %12 = memref.load %arg1[%c2] : memref<8xf32, #tpu.memory_space<smem>>
    %c3 = arith.constant 3 : index
    %13 = memref.load %arg1[%c3] : memref<8xf32, #tpu.memory_space<smem>>
    %14 = vector.extract_strided_slice %6 {offsets = [1, 0], sizes = [1, 256], strides = [1, 1]} : vector<5x256xf32> to vector<1x256xf32>
    %15 = arith.truncf %14 : vector<1x256xf32> to vector<1x256xbf16>
    %cst_10 = arith.constant dense<0.000000e+00> : vector<1x256xf32>
    %16 = tpu.matmul %15, %0, %cst_10 {dimension_numbers = #tpu.dot_dimension_numbers<[1], [1], [0], [0], [0, 0, 1, 0], [], []>} : vector<1x256xbf16>, vector<256x256xbf16>, vector<1x256xf32> -> vector<1x256xf32>
    %17 = tpu.concatenate %7, %16, %2, %8 in 0 : vector<5x256xf32>, vector<1x256xf32>, vector<1x256xf32>, vector<1x256xf32> -> vector<8x256xf32>
    %c0_11 = arith.constant 0 : index
    %c0_12 = arith.constant 0 : index
    %c0_13 = arith.constant 0 : index
    %18 = vector.load %arg7[%c0_11, %c0_12, %c0_13] : memref<2x32x72xbf16, #tpu.memory_space<vmem>>, vector<1x32x72xbf16>
    %19 = vector.shape_cast %18 : vector<1x32x72xbf16> to vector<32x72xbf16>
    %c0_14 = arith.constant 0 : index
    %c0_15 = arith.constant 0 : index
    %c0_16 = arith.constant 0 : index
    %20 = vector.load %arg8[%c0_14, %c0_15, %c0_16] : memref<2x32x1xf32, #tpu.memory_space<vmem>>, vector<1x32x1xf32>
    %21 = vector.shape_cast %20 : vector<1x32x1xf32> to vector<32x1xf32>
    %c17_i32 = arith.constant 17 : i32
    %22 = tpu.dynamic_rotate %17 by %c17_i32 dim 1 : vector<8x256xf32>, i32 -> vector<8x256xf32>
    %c0_17 = arith.constant 0 : index
    %c0_18 = arith.constant 0 : index
    %23 = vector.load %arg6[%c0_17, %c0_18] : memref<9x256xf32, #tpu.memory_space<vmem>>, vector<1x256xf32>
    %24 = vector.broadcast %23 : vector<1x256xf32> to vector<8x256xf32>
    %25 = arith.mulf %22, %24 : vector<8x256xf32>
    %c0_19 = arith.constant 0 : index
    %c0_20 = arith.constant 0 : index
    %26 = vector.load %arg20[%c0_19, %c0_20] : memref<288x256xf32, #tpu.memory_space<vmem>>, vector<8x256xf32>
    tpu.vector_store %arg20[%c0_19, %c0_20], %25 {strides = array<i32>} : memref<288x256xf32, #tpu.memory_space<vmem>>, vector<8x256xf32>,
    %c16_i32 = arith.constant 16 : i32
    %27 = tpu.dynamic_rotate %17 by %c16_i32 dim 1 : vector<8x256xf32>, i32 -> vector<8x256xf32>
    %c1_21 = arith.constant 1 : index
    %c0_22 = arith.constant 0 : index
    %28 = vector.load %arg6[%c1_21, %c0_22] : memref<9x256xf32, #tpu.memory_space<vmem>>, vector<1x256xf32>
    %29 = vector.broadcast %28 : vector<1x256xf32> to vector<8x256xf32>
    %30 = arith.mulf %27, %29 : vector<8x256xf32>
    %c8 = arith.constant 8 : index
    %c0_23 = arith.constant 0 : index
    %31 = vector.load %arg20[%c8, %c0_23] : memref<288x256xf32, #tpu.memory_space<vmem>>, vector<8x256xf32>
    tpu.vector_store %arg20[%c8, %c0_23], %30 {strides = array<i32>} : memref<288x256xf32, #tpu.memory_space<vmem>>, vector<8x256xf32>,
    %c15_i32 = arith.constant 15 : i32
    %32 = tpu.dynamic_rotate %17 by %c15_i32 dim 1 : vector<8x256xf32>, i32 -> vector<8x256xf32>
    %c2_24 = arith.constant 2 : index
    %c0_25 = arith.constant 0 : index
    %33 = vector.load %arg6[%c2_24, %c0_25] : memref<9x256xf32, #tpu.memory_space<vmem>>, vector<1x256xf32>
    %34 = vector.broadcast %33 : vector<1x256xf32> to vector<8x256xf32>
    %35 = arith.mulf %32, %34 : vector<8x256xf32>
    %c16 = arith.constant 16 : index
    %c0_26 = arith.constant 0 : index
    %36 = vector.load %arg20[%c16, %c0_26] : memref<288x256xf32, #tpu.memory_space<vmem>>, vector<8x256xf32>
    tpu.vector_store %arg20[%c16, %c0_26], %35 {strides = array<i32>} : memref<288x256xf32, #tpu.memory_space<vmem>>, vector<8x256xf32>,
    %c1_i32 = arith.constant 1 : i32
    %37 = tpu.dynamic_rotate %17 by %c1_i32 dim 1 : vector<8x256xf32>, i32 -> vector<8x256xf32>
    %c3_27 = arith.constant 3 : index
    %c0_28 = arith.constant 0 : index
    %38 = vector.load %arg6[%c3_27, %c0_28] : memref<9x256xf32, #tpu.memory_space<vmem>>, vector<1x256xf32>
    %39 = vector.broadcast %38 : vector<1x256xf32> to vector<8x256xf32>
    %40 = arith.mulf %37, %39 : vector<8x256xf32>
    %c24 = arith.constant 24 : index
    %c0_29 = arith.constant 0 : index
    %41 = vector.load %arg20[%c24, %c0_29] : memref<288x256xf32, #tpu.memory_space<vmem>>, vector<8x256xf32>
    tpu.vector_store %arg20[%c24, %c0_29], %40 {strides = array<i32>} : memref<288x256xf32, #tpu.memory_space<vmem>>, vector<8x256xf32>,
    %c32 = arith.constant 32 : index
    %c0_30 = arith.constant 0 : index
    %42 = vector.load %arg20[%c32, %c0_30] : memref<288x256xf32, #tpu.memory_space<vmem>>, vector<8x256xf32>
    tpu.vector_store %arg20[%c32, %c0_30], %17 {strides = array<i32>} : memref<288x256xf32, #tpu.memory_space<vmem>>, vector<8x256xf32>,
    %c255_i32 = arith.constant 255 : i32
    %43 = tpu.dynamic_rotate %17 by %c255_i32 dim 1 : vector<8x256xf32>, i32 -> vector<8x256xf32>
    %c5 = arith.constant 5 : index
    %c0_31 = arith.constant 0 : index
    %44 = vector.load %arg6[%c5, %c0_31] : memref<9x256xf32, #tpu.memory_space<vmem>>, vector<1x256xf32>
    %45 = vector.broadcast %44 : vector<1x256xf32> to vector<8x256xf32>
    %46 = arith.mulf %43, %45 : vector<8x256xf32>
    %c40 = arith.constant 40 : index
    %c0_32 = arith.constant 0 : index
    %47 = vector.load %arg20[%c40, %c0_32] : memref<288x256xf32, #tpu.memory_space<vmem>>, vector<8x256xf32>
    tpu.vector_store %arg20[%c40, %c0_32], %46 {strides = array<i32>} : memref<288x256xf32, #tpu.memory_space<vmem>>, vector<8x256xf32>,
    %c241_i32 = arith.constant 241 : i32
    %48 = tpu.dynamic_rotate %17 by %c241_i32 dim 1 : vector<8x256xf32>, i32 -> vector<8x256xf32>
    %c6 = arith.constant 6 : index
    %c0_33 = arith.constant 0 : index
    %49 = vector.load %arg6[%c6, %c0_33] : memref<9x256xf32, #tpu.memory_space<vmem>>, vector<1x256xf32>
    %50 = vector.broadcast %49 : vector<1x256xf32> to vector<8x256xf32>
    %51 = arith.mulf %48, %50 : vector<8x256xf32>
    %c48 = arith.constant 48 : index
    %c0_34 = arith.constant 0 : index
    %52 = vector.load %arg20[%c48, %c0_34] : memref<288x256xf32, #tpu.memory_space<vmem>>, vector<8x256xf32>
    tpu.vector_store %arg20[%c48, %c0_34], %51 {strides = array<i32>} : memref<288x256xf32, #tpu.memory_space<vmem>>, vector<8x256xf32>,
    %c240_i32 = arith.constant 240 : i32
    %53 = tpu.dynamic_rotate %17 by %c240_i32 dim 1 : vector<8x256xf32>, i32 -> vector<8x256xf32>
    %c7 = arith.constant 7 : index
    %c0_35 = arith.constant 0 : index
    %54 = vector.load %arg6[%c7, %c0_35] : memref<9x256xf32, #tpu.memory_space<vmem>>, vector<1x256xf32>
    %55 = vector.broadcast %54 : vector<1x256xf32> to vector<8x256xf32>
    %56 = arith.mulf %53, %55 : vector<8x256xf32>
    %c56 = arith.constant 56 : index
    %c0_36 = arith.constant 0 : index
    %57 = vector.load %arg20[%c56, %c0_36] : memref<288x256xf32, #tpu.memory_space<vmem>>, vector<8x256xf32>
    tpu.vector_store %arg20[%c56, %c0_36], %56 {strides = array<i32>} : memref<288x256xf32, #tpu.memory_space<vmem>>, vector<8x256xf32>,
    %c239_i32 = arith.constant 239 : i32
    %58 = tpu.dynamic_rotate %17 by %c239_i32 dim 1 : vector<8x256xf32>, i32 -> vector<8x256xf32>
    %c8_37 = arith.constant 8 : index
    %c0_38 = arith.constant 0 : index
    %59 = vector.load %arg6[%c8_37, %c0_38] : memref<9x256xf32, #tpu.memory_space<vmem>>, vector<1x256xf32>
    %60 = vector.broadcast %59 : vector<1x256xf32> to vector<8x256xf32>
    %61 = arith.mulf %58, %60 : vector<8x256xf32>
    %c64 = arith.constant 64 : index
    %c0_39 = arith.constant 0 : index
    %62 = vector.load %arg20[%c64, %c0_39] : memref<288x256xf32, #tpu.memory_space<vmem>>, vector<8x256xf32>
    tpu.vector_store %arg20[%c64, %c0_39], %61 {strides = array<i32>} : memref<288x256xf32, #tpu.memory_space<vmem>>, vector<8x256xf32>,
    %c0_40 = arith.constant 0 : index
    %c0_41 = arith.constant 0 : index
    %63 = vector.load %arg20[%c0_40, %c0_41] : memref<288x256xf32, #tpu.memory_space<vmem>>, vector<72x256xf32>
    %64 = arith.truncf %63 : vector<72x256xf32> to vector<72x256xbf16>
    %cst_42 = arith.constant dense<0.000000e+00> : vector<32x256xf32>
    %65 = tpu.matmul %19, %64, %cst_42 {dimension_numbers = #tpu.dot_dimension_numbers<[1], [0], [0], [1], [0, 0, 1, 1], [], []>} : vector<32x72xbf16>, vector<72x256xbf16>, vector<32x256xf32> -> vector<32x256xf32>
    %66 = vector.broadcast %21 : vector<32x1xf32> to vector<32x256xf32>
    %67 = arith.addf %65, %66 : vector<32x256xf32>
    %cst_43 = arith.constant 0.000000e+00 : f32
    %68 = vector.broadcast %cst_43 : f32 to vector<32x256xf32>
    %69 = arith.cmpf ogt, %67, %68 : vector<32x256xf32>
    %70 = vector.broadcast %10 : f32 to vector<32x256xf32>
    %71 = arith.mulf %70, %67 : vector<32x256xf32>
    %72 = arith.select %69, %67, %71 : vector<32x256xi1>, vector<32x256xf32>
    %c0_44 = arith.constant 0 : index
    %c0_45 = arith.constant 0 : index
    %c0_46 = arith.constant 0 : index
    %73 = vector.load %arg9[%c0_44, %c0_45, %c0_46] : memref<2x32x288xbf16, #tpu.memory_space<vmem>>, vector<1x32x288xbf16>
    %74 = vector.shape_cast %73 : vector<1x32x288xbf16> to vector<32x288xbf16>
    %c0_47 = arith.constant 0 : index
    %c0_48 = arith.constant 0 : index
    %c0_49 = arith.constant 0 : index
    %75 = vector.load %arg10[%c0_47, %c0_48, %c0_49] : memref<2x32x1xf32, #tpu.memory_space<vmem>>, vector<1x32x1xf32>
    %76 = vector.shape_cast %75 : vector<1x32x1xf32> to vector<32x1xf32>
    %c17_i32_50 = arith.constant 17 : i32
    %77 = tpu.dynamic_rotate %72 by %c17_i32_50 dim 1 : vector<32x256xf32>, i32 -> vector<32x256xf32>
    %c0_51 = arith.constant 0 : index
    %c0_52 = arith.constant 0 : index
    %78 = vector.load %arg6[%c0_51, %c0_52] : memref<9x256xf32, #tpu.memory_space<vmem>>, vector<1x256xf32>
    %79 = vector.broadcast %78 : vector<1x256xf32> to vector<32x256xf32>
    %80 = arith.mulf %77, %79 : vector<32x256xf32>
    %c0_53 = arith.constant 0 : index
    %c0_54 = arith.constant 0 : index
    %81 = vector.load %arg20[%c0_53, %c0_54] : memref<288x256xf32, #tpu.memory_space<vmem>>, vector<32x256xf32>
    tpu.vector_store %arg20[%c0_53, %c0_54], %80 {strides = array<i32>} : memref<288x256xf32, #tpu.memory_space<vmem>>, vector<32x256xf32>,
    %c16_i32_55 = arith.constant 16 : i32
    %82 = tpu.dynamic_rotate %72 by %c16_i32_55 dim 1 : vector<32x256xf32>, i32 -> vector<32x256xf32>
    %c1_56 = arith.constant 1 : index
    %c0_57 = arith.constant 0 : index
    %83 = vector.load %arg6[%c1_56, %c0_57] : memref<9x256xf32, #tpu.memory_space<vmem>>, vector<1x256xf32>
    %84 = vector.broadcast %83 : vector<1x256xf32> to vector<32x256xf32>
    %85 = arith.mulf %82, %84 : vector<32x256xf32>
    %c32_58 = arith.constant 32 : index
    %c0_59 = arith.constant 0 : index
    %86 = vector.load %arg20[%c32_58, %c0_59] : memref<288x256xf32, #tpu.memory_space<vmem>>, vector<32x256xf32>
    tpu.vector_store %arg20[%c32_58, %c0_59], %85 {strides = array<i32>} : memref<288x256xf32, #tpu.memory_space<vmem>>, vector<32x256xf32>,
    %c15_i32_60 = arith.constant 15 : i32
    %87 = tpu.dynamic_rotate %72 by %c15_i32_60 dim 1 : vector<32x256xf32>, i32 -> vector<32x256xf32>
    %c2_61 = arith.constant 2 : index
    %c0_62 = arith.constant 0 : index
    %88 = vector.load %arg6[%c2_61, %c0_62] : memref<9x256xf32, #tpu.memory_space<vmem>>, vector<1x256xf32>
    %89 = vector.broadcast %88 : vector<1x256xf32> to vector<32x256xf32>
    %90 = arith.mulf %87, %89 : vector<32x256xf32>
    %c64_63 = arith.constant 64 : index
    %c0_64 = arith.constant 0 : index
    %91 = vector.load %arg20[%c64_63, %c0_64] : memref<288x256xf32, #tpu.memory_space<vmem>>, vector<32x256xf32>
    tpu.vector_store %arg20[%c64_63, %c0_64], %90 {strides = array<i32>} : memref<288x256xf32, #tpu.memory_space<vmem>>, vector<32x256xf32>,
    %c1_i32_65 = arith.constant 1 : i32
    %92 = tpu.dynamic_rotate %72 by %c1_i32_65 dim 1 : vector<32x256xf32>, i32 -> vector<32x256xf32>
    %c3_66 = arith.constant 3 : index
    %c0_67 = arith.constant 0 : index
    %93 = vector.load %arg6[%c3_66, %c0_67] : memref<9x256xf32, #tpu.memory_space<vmem>>, vector<1x256xf32>
    %94 = vector.broadcast %93 : vector<1x256xf32> to vector<32x256xf32>
    %95 = arith.mulf %92, %94 : vector<32x256xf32>
    %c96 = arith.constant 96 : index
    %c0_68 = arith.constant 0 : index
    %96 = vector.load %arg20[%c96, %c0_68] : memref<288x256xf32, #tpu.memory_space<vmem>>, vector<32x256xf32>
    tpu.vector_store %arg20[%c96, %c0_68], %95 {strides = array<i32>} : memref<288x256xf32, #tpu.memory_space<vmem>>, vector<32x256xf32>,
    %c128 = arith.constant 128 : index
    %c0_69 = arith.constant 0 : index
    %97 = vector.load %arg20[%c128, %c0_69] : memref<288x256xf32, #tpu.memory_space<vmem>>, vector<32x256xf32>
    tpu.vector_store %arg20[%c128, %c0_69], %72 {strides = array<i32>} : memref<288x256xf32, #tpu.memory_space<vmem>>, vector<32x256xf32>,
    %c255_i32_70 = arith.constant 255 : i32
    %98 = tpu.dynamic_rotate %72 by %c255_i32_70 dim 1 : vector<32x256xf32>, i32 -> vector<32x256xf32>
    %c5_71 = arith.constant 5 : index
    %c0_72 = arith.constant 0 : index
    %99 = vector.load %arg6[%c5_71, %c0_72] : memref<9x256xf32, #tpu.memory_space<vmem>>, vector<1x256xf32>
    %100 = vector.broadcast %99 : vector<1x256xf32> to vector<32x256xf32>
    %101 = arith.mulf %98, %100 : vector<32x256xf32>
    %c160 = arith.constant 160 : index
    %c0_73 = arith.constant 0 : index
    %102 = vector.load %arg20[%c160, %c0_73] : memref<288x256xf32, #tpu.memory_space<vmem>>, vector<32x256xf32>
    tpu.vector_store %arg20[%c160, %c0_73], %101 {strides = array<i32>} : memref<288x256xf32, #tpu.memory_space<vmem>>, vector<32x256xf32>,
    %c241_i32_74 = arith.constant 241 : i32
    %103 = tpu.dynamic_rotate %72 by %c241_i32_74 dim 1 : vector<32x256xf32>, i32 -> vector<32x256xf32>
    %c6_75 = arith.constant 6 : index
    %c0_76 = arith.constant 0 : index
    %104 = vector.load %arg6[%c6_75, %c0_76] : memref<9x256xf32, #tpu.memory_space<vmem>>, vector<1x256xf32>
    %105 = vector.broadcast %104 : vector<1x256xf32> to vector<32x256xf32>
    %106 = arith.mulf %103, %105 : vector<32x256xf32>
    %c192 = arith.constant 192 : index
    %c0_77 = arith.constant 0 : index
    %107 = vector.load %arg20[%c192, %c0_77] : memref<288x256xf32, #tpu.memory_space<vmem>>, vector<32x256xf32>
    tpu.vector_store %arg20[%c192, %c0_77], %106 {strides = array<i32>} : memref<288x256xf32, #tpu.memory_space<vmem>>, vector<32x256xf32>,
    %c240_i32_78 = arith.constant 240 : i32
    %108 = tpu.dynamic_rotate %72 by %c240_i32_78 dim 1 : vector<32x256xf32>, i32 -> vector<32x256xf32>
    %c7_79 = arith.constant 7 : index
    %c0_80 = arith.constant 0 : index
    %109 = vector.load %arg6[%c7_79, %c0_80] : memref<9x256xf32, #tpu.memory_space<vmem>>, vector<1x256xf32>
    %110 = vector.broadcast %109 : vector<1x256xf32> to vector<32x256xf32>
    %111 = arith.mulf %108, %110 : vector<32x256xf32>
    %c224 = arith.constant 224 : index
    %c0_81 = arith.constant 0 : index
    %112 = vector.load %arg20[%c224, %c0_81] : memref<288x256xf32, #tpu.memory_space<vmem>>, vector<32x256xf32>
    tpu.vector_store %arg20[%c224, %c0_81], %111 {strides = array<i32>} : memref<288x256xf32, #tpu.memory_space<vmem>>, vector<32x256xf32>,
    %c239_i32_82 = arith.constant 239 : i32
    %113 = tpu.dynamic_rotate %72 by %c239_i32_82 dim 1 : vector<32x256xf32>, i32 -> vector<32x256xf32>
    %c8_83 = arith.constant 8 : index
    %c0_84 = arith.constant 0 : index
    %114 = vector.load %arg6[%c8_83, %c0_84] : memref<9x256xf32, #tpu.memory_space<vmem>>, vector<1x256xf32>
    %115 = vector.broadcast %114 : vector<1x256xf32> to vector<32x256xf32>
    %116 = arith.mulf %113, %115 : vector<32x256xf32>
    %c256 = arith.constant 256 : index
    %c0_85 = arith.constant 0 : index
    %117 = vector.load %arg20[%c256, %c0_85] : memref<288x256xf32, #tpu.memory_space<vmem>>, vector<32x256xf32>
    tpu.vector_store %arg20[%c256, %c0_85], %116 {strides = array<i32>} : memref<288x256xf32, #tpu.memory_space<vmem>>, vector<32x256xf32>,
    %c0_86 = arith.constant 0 : index
    %c0_87 = arith.constant 0 : index
    %118 = vector.load %arg20[%c0_86, %c0_87] : memref<288x256xf32, #tpu.memory_space<vmem>>, vector<288x256xf32>
    %119 = arith.truncf %118 : vector<288x256xf32> to vector<288x256xbf16>
    %cst_88 = arith.constant dense<0.000000e+00> : vector<32x256xf32>
    %120 = tpu.matmul %74, %119, %cst_88 {dimension_numbers = #tpu.dot_dimension_numbers<[1], [0], [0], [1], [0, 0, 1, 1], [], []>} : vector<32x288xbf16>, vector<288x256xbf16>, vector<32x256xf32> -> vector<32x256xf32>
    %121 = vector.broadcast %76 : vector<32x1xf32> to vector<32x256xf32>
    %122 = arith.addf %120, %121 : vector<32x256xf32>
    %cst_89 = arith.constant 0.000000e+00 : f32
    %123 = vector.broadcast %cst_89 : f32 to vector<32x256xf32>
    %124 = arith.cmpf ogt, %122, %123 : vector<32x256xf32>
    %125 = vector.broadcast %11 : f32 to vector<32x256xf32>
    %126 = arith.mulf %125, %122 : vector<32x256xf32>
    %127 = arith.select %124, %122, %126 : vector<32x256xi1>, vector<32x256xf32>
    %c0_90 = arith.constant 0 : index
    %c0_91 = arith.constant 0 : index
    %c0_92 = arith.constant 0 : index
    %128 = vector.load %arg11[%c0_90, %c0_91, %c0_92] : memref<2x5x288xbf16, #tpu.memory_space<vmem>>, vector<1x5x288xbf16>
    %129 = vector.shape_cast %128 : vector<1x5x288xbf16> to vector<5x288xbf16>
    %c0_93 = arith.constant 0 : index
    %c0_94 = arith.constant 0 : index
    %c0_95 = arith.constant 0 : index
    %130 = vector.load %arg12[%c0_93, %c0_94, %c0_95] : memref<2x5x1xf32, #tpu.memory_space<vmem>>, vector<1x5x1xf32>
    %131 = vector.shape_cast %130 : vector<1x5x1xf32> to vector<5x1xf32>
    %c17_i32_96 = arith.constant 17 : i32
    %132 = tpu.dynamic_rotate %127 by %c17_i32_96 dim 1 : vector<32x256xf32>, i32 -> vector<32x256xf32>
    %c0_97 = arith.constant 0 : index
    %c0_98 = arith.constant 0 : index
    %133 = vector.load %arg6[%c0_97, %c0_98] : memref<9x256xf32, #tpu.memory_space<vmem>>, vector<1x256xf32>
    %134 = vector.broadcast %133 : vector<1x256xf32> to vector<32x256xf32>
    %135 = arith.mulf %132, %134 : vector<32x256xf32>
    %c0_99 = arith.constant 0 : index
    %c0_100 = arith.constant 0 : index
    %136 = vector.load %arg20[%c0_99, %c0_100] : memref<288x256xf32, #tpu.memory_space<vmem>>, vector<32x256xf32>
    tpu.vector_store %arg20[%c0_99, %c0_100], %135 {strides = array<i32>} : memref<288x256xf32, #tpu.memory_space<vmem>>, vector<32x256xf32>,
    %c16_i32_101 = arith.constant 16 : i32
    %137 = tpu.dynamic_rotate %127 by %c16_i32_101 dim 1 : vector<32x256xf32>, i32 -> vector<32x256xf32>
    %c1_102 = arith.constant 1 : index
    %c0_103 = arith.constant 0 : index
    %138 = vector.load %arg6[%c1_102, %c0_103] : memref<9x256xf32, #tpu.memory_space<vmem>>, vector<1x256xf32>
    %139 = vector.broadcast %138 : vector<1x256xf32> to vector<32x256xf32>
    %140 = arith.mulf %137, %139 : vector<32x256xf32>
    %c32_104 = arith.constant 32 : index
    %c0_105 = arith.constant 0 : index
    %141 = vector.load %arg20[%c32_104, %c0_105] : memref<288x256xf32, #tpu.memory_space<vmem>>, vector<32x256xf32>
    tpu.vector_store %arg20[%c32_104, %c0_105], %140 {strides = array<i32>} : memref<288x256xf32, #tpu.memory_space<vmem>>, vector<32x256xf32>,
    %c15_i32_106 = arith.constant 15 : i32
    %142 = tpu.dynamic_rotate %127 by %c15_i32_106 dim 1 : vector<32x256xf32>, i32 -> vector<32x256xf32>
    %c2_107 = arith.constant 2 : index
    %c0_108 = arith.constant 0 : index
    %143 = vector.load %arg6[%c2_107, %c0_108] : memref<9x256xf32, #tpu.memory_space<vmem>>, vector<1x256xf32>
    %144 = vector.broadcast %143 : vector<1x256xf32> to vector<32x256xf32>
    %145 = arith.mulf %142, %144 : vector<32x256xf32>
    %c64_109 = arith.constant 64 : index
    %c0_110 = arith.constant 0 : index
    %146 = vector.load %arg20[%c64_109, %c0_110] : memref<288x256xf32, #tpu.memory_space<vmem>>, vector<32x256xf32>
    tpu.vector_store %arg20[%c64_109, %c0_110], %145 {strides = array<i32>} : memref<288x256xf32, #tpu.memory_space<vmem>>, vector<32x256xf32>,
    %c1_i32_111 = arith.constant 1 : i32
    %147 = tpu.dynamic_rotate %127 by %c1_i32_111 dim 1 : vector<32x256xf32>, i32 -> vector<32x256xf32>
    %c3_112 = arith.constant 3 : index
    %c0_113 = arith.constant 0 : index
    %148 = vector.load %arg6[%c3_112, %c0_113] : memref<9x256xf32, #tpu.memory_space<vmem>>, vector<1x256xf32>
    %149 = vector.broadcast %148 : vector<1x256xf32> to vector<32x256xf32>
    %150 = arith.mulf %147, %149 : vector<32x256xf32>
    %c96_114 = arith.constant 96 : index
    %c0_115 = arith.constant 0 : index
    %151 = vector.load %arg20[%c96_114, %c0_115] : memref<288x256xf32, #tpu.memory_space<vmem>>, vector<32x256xf32>
    tpu.vector_store %arg20[%c96_114, %c0_115], %150 {strides = array<i32>} : memref<288x256xf32, #tpu.memory_space<vmem>>, vector<32x256xf32>,
    %c128_116 = arith.constant 128 : index
    %c0_117 = arith.constant 0 : index
    %152 = vector.load %arg20[%c128_116, %c0_117] : memref<288x256xf32, #tpu.memory_space<vmem>>, vector<32x256xf32>
    tpu.vector_store %arg20[%c128_116, %c0_117], %127 {strides = array<i32>} : memref<288x256xf32, #tpu.memory_space<vmem>>, vector<32x256xf32>,
    %c255_i32_118 = arith.constant 255 : i32
    %153 = tpu.dynamic_rotate %127 by %c255_i32_118 dim 1 : vector<32x256xf32>, i32 -> vector<32x256xf32>
    %c5_119 = arith.constant 5 : index
    %c0_120 = arith.constant 0 : index
    %154 = vector.load %arg6[%c5_119, %c0_120] : memref<9x256xf32, #tpu.memory_space<vmem>>, vector<1x256xf32>
    %155 = vector.broadcast %154 : vector<1x256xf32> to vector<32x256xf32>
    %156 = arith.mulf %153, %155 : vector<32x256xf32>
    %c160_121 = arith.constant 160 : index
    %c0_122 = arith.constant 0 : index
    %157 = vector.load %arg20[%c160_121, %c0_122] : memref<288x256xf32, #tpu.memory_space<vmem>>, vector<32x256xf32>
    tpu.vector_store %arg20[%c160_121, %c0_122], %156 {strides = array<i32>} : memref<288x256xf32, #tpu.memory_space<vmem>>, vector<32x256xf32>,
    %c241_i32_123 = arith.constant 241 : i32
    %158 = tpu.dynamic_rotate %127 by %c241_i32_123 dim 1 : vector<32x256xf32>, i32 -> vector<32x256xf32>
    %c6_124 = arith.constant 6 : index
    %c0_125 = arith.constant 0 : index
    %159 = vector.load %arg6[%c6_124, %c0_125] : memref<9x256xf32, #tpu.memory_space<vmem>>, vector<1x256xf32>
    %160 = vector.broadcast %159 : vector<1x256xf32> to vector<32x256xf32>
    %161 = arith.mulf %158, %160 : vector<32x256xf32>
    %c192_126 = arith.constant 192 : index
    %c0_127 = arith.constant 0 : index
    %162 = vector.load %arg20[%c192_126, %c0_127] : memref<288x256xf32, #tpu.memory_space<vmem>>, vector<32x256xf32>
    tpu.vector_store %arg20[%c192_126, %c0_127], %161 {strides = array<i32>} : memref<288x256xf32, #tpu.memory_space<vmem>>, vector<32x256xf32>,
    %c240_i32_128 = arith.constant 240 : i32
    %163 = tpu.dynamic_rotate %127 by %c240_i32_128 dim 1 : vector<32x256xf32>, i32 -> vector<32x256xf32>
    %c7_129 = arith.constant 7 : index
    %c0_130 = arith.constant 0 : index
    %164 = vector.load %arg6[%c7_129, %c0_130] : memref<9x256xf32, #tpu.memory_space<vmem>>, vector<1x256xf32>
    %165 = vector.broadcast %164 : vector<1x256xf32> to vector<32x256xf32>
    %166 = arith.mulf %163, %165 : vector<32x256xf32>
    %c224_131 = arith.constant 224 : index
    %c0_132 = arith.constant 0 : index
    %167 = vector.load %arg20[%c224_131, %c0_132] : memref<288x256xf32, #tpu.memory_space<vmem>>, vector<32x256xf32>
    tpu.vector_store %arg20[%c224_131, %c0_132], %166 {strides = array<i32>} : memref<288x256xf32, #tpu.memory_space<vmem>>, vector<32x256xf32>,
    %c239_i32_133 = arith.constant 239 : i32
    %168 = tpu.dynamic_rotate %127 by %c239_i32_133 dim 1 : vector<32x256xf32>, i32 -> vector<32x256xf32>
    %c8_134 = arith.constant 8 : index
    %c0_135 = arith.constant 0 : index
    %169 = vector.load %arg6[%c8_134, %c0_135] : memref<9x256xf32, #tpu.memory_space<vmem>>, vector<1x256xf32>
    %170 = vector.broadcast %169 : vector<1x256xf32> to vector<32x256xf32>
    %171 = arith.mulf %168, %170 : vector<32x256xf32>
    %c256_136 = arith.constant 256 : index
    %c0_137 = arith.constant 0 : index
    %172 = vector.load %arg20[%c256_136, %c0_137] : memref<288x256xf32, #tpu.memory_space<vmem>>, vector<32x256xf32>
    tpu.vector_store %arg20[%c256_136, %c0_137], %171 {strides = array<i32>} : memref<288x256xf32, #tpu.memory_space<vmem>>, vector<32x256xf32>,
    %c0_138 = arith.constant 0 : index
    %c0_139 = arith.constant 0 : index
    %173 = vector.load %arg20[%c0_138, %c0_139] : memref<288x256xf32, #tpu.memory_space<vmem>>, vector<288x256xf32>
    %174 = arith.truncf %173 : vector<288x256xf32> to vector<288x256xbf16>
    %cst_140 = arith.constant dense<0.000000e+00> : vector<5x256xf32>
    %175 = tpu.matmul %129, %174, %cst_140 {dimension_numbers = #tpu.dot_dimension_numbers<[1], [0], [0], [1], [0, 0, 1, 1], [], []>} : vector<5x288xbf16>, vector<288x256xbf16>, vector<5x256xf32> -> vector<5x256xf32>
    %176 = vector.broadcast %131 : vector<5x1xf32> to vector<5x256xf32>
    %177 = arith.addf %175, %176 : vector<5x256xf32>
    %178 = vector.extract_strided_slice %177 {offsets = [0, 0], sizes = [1, 256], strides = [1, 1]} : vector<5x256xf32> to vector<1x256xf32>
    %179 = arith.truncf %178 : vector<1x256xf32> to vector<1x256xbf16>
    %cst_141 = arith.constant dense<0.000000e+00> : vector<1x256xf32>
    %180 = tpu.matmul %179, %0, %cst_141 {dimension_numbers = #tpu.dot_dimension_numbers<[1], [0], [0], [1], [0, 0, 1, 1], [], []>} : vector<1x256xbf16>, vector<256x256xbf16>, vector<1x256xf32> -> vector<1x256xf32>
    %181 = tpu.concatenate %6, %180, %9 in 0 : vector<5x256xf32>, vector<1x256xf32>, vector<2x256xf32> -> vector<8x256xf32>
    %c0_142 = arith.constant 0 : index
    %c0_143 = arith.constant 0 : index
    %c0_144 = arith.constant 0 : index
    %182 = vector.load %arg13[%c0_142, %c0_143, %c0_144] : memref<2x32x72xbf16, #tpu.memory_space<vmem>>, vector<1x32x72xbf16>
    %183 = vector.shape_cast %182 : vector<1x32x72xbf16> to vector<32x72xbf16>
    %c0_145 = arith.constant 0 : index
    %c0_146 = arith.constant 0 : index
    %c0_147 = arith.constant 0 : index
    %184 = vector.load %arg14[%c0_145, %c0_146, %c0_147] : memref<2x32x1xf32, #tpu.memory_space<vmem>>, vector<1x32x1xf32>
    %185 = vector.shape_cast %184 : vector<1x32x1xf32> to vector<32x1xf32>
    %c17_i32_148 = arith.constant 17 : i32
    %186 = tpu.dynamic_rotate %181 by %c17_i32_148 dim 1 : vector<8x256xf32>, i32 -> vector<8x256xf32>
    %c0_149 = arith.constant 0 : index
    %c0_150 = arith.constant 0 : index
    %187 = vector.load %arg5[%c0_149, %c0_150] : memref<9x256xf32, #tpu.memory_space<vmem>>, vector<1x256xf32>
    %188 = vector.broadcast %187 : vector<1x256xf32> to vector<8x256xf32>
    %189 = arith.mulf %186, %188 : vector<8x256xf32>
    %c0_151 = arith.constant 0 : index
    %c0_152 = arith.constant 0 : index
    %190 = vector.load %arg21[%c0_151, %c0_152] : memref<288x256xf32, #tpu.memory_space<vmem>>, vector<8x256xf32>
    tpu.vector_store %arg21[%c0_151, %c0_152], %189 {strides = array<i32>} : memref<288x256xf32, #tpu.memory_space<vmem>>, vector<8x256xf32>,
    %c16_i32_153 = arith.constant 16 : i32
    %191 = tpu.dynamic_rotate %181 by %c16_i32_153 dim 1 : vector<8x256xf32>, i32 -> vector<8x256xf32>
    %c1_154 = arith.constant 1 : index
    %c0_155 = arith.constant 0 : index
    %192 = vector.load %arg5[%c1_154, %c0_155] : memref<9x256xf32, #tpu.memory_space<vmem>>, vector<1x256xf32>
    %193 = vector.broadcast %192 : vector<1x256xf32> to vector<8x256xf32>
    %194 = arith.mulf %191, %193 : vector<8x256xf32>
    %c8_156 = arith.constant 8 : index
    %c0_157 = arith.constant 0 : index
    %195 = vector.load %arg21[%c8_156, %c0_157] : memref<288x256xf32, #tpu.memory_space<vmem>>, vector<8x256xf32>
    tpu.vector_store %arg21[%c8_156, %c0_157], %194 {strides = array<i32>} : memref<288x256xf32, #tpu.memory_space<vmem>>, vector<8x256xf32>,
    %c15_i32_158 = arith.constant 15 : i32
    %196 = tpu.dynamic_rotate %181 by %c15_i32_158 dim 1 : vector<8x256xf32>, i32 -> vector<8x256xf32>
    %c2_159 = arith.constant 2 : index
    %c0_160 = arith.constant 0 : index
    %197 = vector.load %arg5[%c2_159, %c0_160] : memref<9x256xf32, #tpu.memory_space<vmem>>, vector<1x256xf32>
    %198 = vector.broadcast %197 : vector<1x256xf32> to vector<8x256xf32>
    %199 = arith.mulf %196, %198 : vector<8x256xf32>
    %c16_161 = arith.constant 16 : index
    %c0_162 = arith.constant 0 : index
    %200 = vector.load %arg21[%c16_161, %c0_162] : memref<288x256xf32, #tpu.memory_space<vmem>>, vector<8x256xf32>
    tpu.vector_store %arg21[%c16_161, %c0_162], %199 {strides = array<i32>} : memref<288x256xf32, #tpu.memory_space<vmem>>, vector<8x256xf32>,
    %c1_i32_163 = arith.constant 1 : i32
    %201 = tpu.dynamic_rotate %181 by %c1_i32_163 dim 1 : vector<8x256xf32>, i32 -> vector<8x256xf32>
    %c3_164 = arith.constant 3 : index
    %c0_165 = arith.constant 0 : index
    %202 = vector.load %arg5[%c3_164, %c0_165] : memref<9x256xf32, #tpu.memory_space<vmem>>, vector<1x256xf32>
    %203 = vector.broadcast %202 : vector<1x256xf32> to vector<8x256xf32>
    %204 = arith.mulf %201, %203 : vector<8x256xf32>
    %c24_166 = arith.constant 24 : index
    %c0_167 = arith.constant 0 : index
    %205 = vector.load %arg21[%c24_166, %c0_167] : memref<288x256xf32, #tpu.memory_space<vmem>>, vector<8x256xf32>
    tpu.vector_store %arg21[%c24_166, %c0_167], %204 {strides = array<i32>} : memref<288x256xf32, #tpu.memory_space<vmem>>, vector<8x256xf32>,
    %c32_168 = arith.constant 32 : index
    %c0_169 = arith.constant 0 : index
    %206 = vector.load %arg21[%c32_168, %c0_169] : memref<288x256xf32, #tpu.memory_space<vmem>>, vector<8x256xf32>
    tpu.vector_store %arg21[%c32_168, %c0_169], %181 {strides = array<i32>} : memref<288x256xf32, #tpu.memory_space<vmem>>, vector<8x256xf32>,
    %c255_i32_170 = arith.constant 255 : i32
    %207 = tpu.dynamic_rotate %181 by %c255_i32_170 dim 1 : vector<8x256xf32>, i32 -> vector<8x256xf32>
    %c5_171 = arith.constant 5 : index
    %c0_172 = arith.constant 0 : index
    %208 = vector.load %arg5[%c5_171, %c0_172] : memref<9x256xf32, #tpu.memory_space<vmem>>, vector<1x256xf32>
    %209 = vector.broadcast %208 : vector<1x256xf32> to vector<8x256xf32>
    %210 = arith.mulf %207, %209 : vector<8x256xf32>
    %c40_173 = arith.constant 40 : index
    %c0_174 = arith.constant 0 : index
    %211 = vector.load %arg21[%c40_173, %c0_174] : memref<288x256xf32, #tpu.memory_space<vmem>>, vector<8x256xf32>
    tpu.vector_store %arg21[%c40_173, %c0_174], %210 {strides = array<i32>} : memref<288x256xf32, #tpu.memory_space<vmem>>, vector<8x256xf32>,
    %c241_i32_175 = arith.constant 241 : i32
    %212 = tpu.dynamic_rotate %181 by %c241_i32_175 dim 1 : vector<8x256xf32>, i32 -> vector<8x256xf32>
    %c6_176 = arith.constant 6 : index
    %c0_177 = arith.constant 0 : index
    %213 = vector.load %arg5[%c6_176, %c0_177] : memref<9x256xf32, #tpu.memory_space<vmem>>, vector<1x256xf32>
    %214 = vector.broadcast %213 : vector<1x256xf32> to vector<8x256xf32>
    %215 = arith.mulf %212, %214 : vector<8x256xf32>
    %c48_178 = arith.constant 48 : index
    %c0_179 = arith.constant 0 : index
    %216 = vector.load %arg21[%c48_178, %c0_179] : memref<288x256xf32, #tpu.memory_space<vmem>>, vector<8x256xf32>
    tpu.vector_store %arg21[%c48_178, %c0_179], %215 {strides = array<i32>} : memref<288x256xf32, #tpu.memory_space<vmem>>, vector<8x256xf32>,
    %c240_i32_180 = arith.constant 240 : i32
    %217 = tpu.dynamic_rotate %181 by %c240_i32_180 dim 1 : vector<8x256xf32>, i32 -> vector<8x256xf32>
    %c7_181 = arith.constant 7 : index
    %c0_182 = arith.constant 0 : index
    %218 = vector.load %arg5[%c7_181, %c0_182] : memref<9x256xf32, #tpu.memory_space<vmem>>, vector<1x256xf32>
    %219 = vector.broadcast %218 : vector<1x256xf32> to vector<8x256xf32>
    %220 = arith.mulf %217, %219 : vector<8x256xf32>
    %c56_183 = arith.constant 56 : index
    %c0_184 = arith.constant 0 : index
    %221 = vector.load %arg21[%c56_183, %c0_184] : memref<288x256xf32, #tpu.memory_space<vmem>>, vector<8x256xf32>
    tpu.vector_store %arg21[%c56_183, %c0_184], %220 {strides = array<i32>} : memref<288x256xf32, #tpu.memory_space<vmem>>, vector<8x256xf32>,
    %c239_i32_185 = arith.constant 239 : i32
    %222 = tpu.dynamic_rotate %181 by %c239_i32_185 dim 1 : vector<8x256xf32>, i32 -> vector<8x256xf32>
    %c8_186 = arith.constant 8 : index
    %c0_187 = arith.constant 0 : index
    %223 = vector.load %arg5[%c8_186, %c0_187] : memref<9x256xf32, #tpu.memory_space<vmem>>, vector<1x256xf32>
    %224 = vector.broadcast %223 : vector<1x256xf32> to vector<8x256xf32>
    %225 = arith.mulf %222, %224 : vector<8x256xf32>
    %c64_188 = arith.constant 64 : index
    %c0_189 = arith.constant 0 : index
    %226 = vector.load %arg21[%c64_188, %c0_189] : memref<288x256xf32, #tpu.memory_space<vmem>>, vector<8x256xf32>
    tpu.vector_store %arg21[%c64_188, %c0_189], %225 {strides = array<i32>} : memref<288x256xf32, #tpu.memory_space<vmem>>, vector<8x256xf32>,
    %c0_190 = arith.constant 0 : index
    %c0_191 = arith.constant 0 : index
    %227 = vector.load %arg21[%c0_190, %c0_191] : memref<288x256xf32, #tpu.memory_space<vmem>>, vector<72x256xf32>
    %228 = arith.truncf %227 : vector<72x256xf32> to vector<72x256xbf16>
    %cst_192 = arith.constant dense<0.000000e+00> : vector<32x256xf32>
    %229 = tpu.matmul %183, %228, %cst_192 {dimension_numbers = #tpu.dot_dimension_numbers<[1], [0], [0], [1], [0, 0, 1, 1], [], []>} : vector<32x72xbf16>, vector<72x256xbf16>, vector<32x256xf32> -> vector<32x256xf32>
    %230 = vector.broadcast %185 : vector<32x1xf32> to vector<32x256xf32>
    %231 = arith.addf %229, %230 : vector<32x256xf32>
    %cst_193 = arith.constant 0.000000e+00 : f32
    %232 = vector.broadcast %cst_193 : f32 to vector<32x256xf32>
    %233 = arith.cmpf ogt, %231, %232 : vector<32x256xf32>
    %234 = vector.broadcast %12 : f32 to vector<32x256xf32>
    %235 = arith.mulf %234, %231 : vector<32x256xf32>
    %236 = arith.select %233, %231, %235 : vector<32x256xi1>, vector<32x256xf32>
    %c0_194 = arith.constant 0 : index
    %c0_195 = arith.constant 0 : index
    %c0_196 = arith.constant 0 : index
    %237 = vector.load %arg15[%c0_194, %c0_195, %c0_196] : memref<2x32x288xbf16, #tpu.memory_space<vmem>>, vector<1x32x288xbf16>
    %238 = vector.shape_cast %237 : vector<1x32x288xbf16> to vector<32x288xbf16>
    %c0_197 = arith.constant 0 : index
    %c0_198 = arith.constant 0 : index
    %c0_199 = arith.constant 0 : index
    %239 = vector.load %arg16[%c0_197, %c0_198, %c0_199] : memref<2x32x1xf32, #tpu.memory_space<vmem>>, vector<1x32x1xf32>
    %240 = vector.shape_cast %239 : vector<1x32x1xf32> to vector<32x1xf32>
    %c17_i32_200 = arith.constant 17 : i32
    %241 = tpu.dynamic_rotate %236 by %c17_i32_200 dim 1 : vector<32x256xf32>, i32 -> vector<32x256xf32>
    %c0_201 = arith.constant 0 : index
    %c0_202 = arith.constant 0 : index
    %242 = vector.load %arg5[%c0_201, %c0_202] : memref<9x256xf32, #tpu.memory_space<vmem>>, vector<1x256xf32>
    %243 = vector.broadcast %242 : vector<1x256xf32> to vector<32x256xf32>
    %244 = arith.mulf %241, %243 : vector<32x256xf32>
    %c0_203 = arith.constant 0 : index
    %c0_204 = arith.constant 0 : index
    %245 = vector.load %arg21[%c0_203, %c0_204] : memref<288x256xf32, #tpu.memory_space<vmem>>, vector<32x256xf32>
    tpu.vector_store %arg21[%c0_203, %c0_204], %244 {strides = array<i32>} : memref<288x256xf32, #tpu.memory_space<vmem>>, vector<32x256xf32>,
    %c16_i32_205 = arith.constant 16 : i32
    %246 = tpu.dynamic_rotate %236 by %c16_i32_205 dim 1 : vector<32x256xf32>, i32 -> vector<32x256xf32>
    %c1_206 = arith.constant 1 : index
    %c0_207 = arith.constant 0 : index
    %247 = vector.load %arg5[%c1_206, %c0_207] : memref<9x256xf32, #tpu.memory_space<vmem>>, vector<1x256xf32>
    %248 = vector.broadcast %247 : vector<1x256xf32> to vector<32x256xf32>
    %249 = arith.mulf %246, %248 : vector<32x256xf32>
    %c32_208 = arith.constant 32 : index
    %c0_209 = arith.constant 0 : index
    %250 = vector.load %arg21[%c32_208, %c0_209] : memref<288x256xf32, #tpu.memory_space<vmem>>, vector<32x256xf32>
    tpu.vector_store %arg21[%c32_208, %c0_209], %249 {strides = array<i32>} : memref<288x256xf32, #tpu.memory_space<vmem>>, vector<32x256xf32>,
    %c15_i32_210 = arith.constant 15 : i32
    %251 = tpu.dynamic_rotate %236 by %c15_i32_210 dim 1 : vector<32x256xf32>, i32 -> vector<32x256xf32>
    %c2_211 = arith.constant 2 : index
    %c0_212 = arith.constant 0 : index
    %252 = vector.load %arg5[%c2_211, %c0_212] : memref<9x256xf32, #tpu.memory_space<vmem>>, vector<1x256xf32>
    %253 = vector.broadcast %252 : vector<1x256xf32> to vector<32x256xf32>
    %254 = arith.mulf %251, %253 : vector<32x256xf32>
    %c64_213 = arith.constant 64 : index
    %c0_214 = arith.constant 0 : index
    %255 = vector.load %arg21[%c64_213, %c0_214] : memref<288x256xf32, #tpu.memory_space<vmem>>, vector<32x256xf32>
    tpu.vector_store %arg21[%c64_213, %c0_214], %254 {strides = array<i32>} : memref<288x256xf32, #tpu.memory_space<vmem>>, vector<32x256xf32>,
    %c1_i32_215 = arith.constant 1 : i32
    %256 = tpu.dynamic_rotate %236 by %c1_i32_215 dim 1 : vector<32x256xf32>, i32 -> vector<32x256xf32>
    %c3_216 = arith.constant 3 : index
    %c0_217 = arith.constant 0 : index
    %257 = vector.load %arg5[%c3_216, %c0_217] : memref<9x256xf32, #tpu.memory_space<vmem>>, vector<1x256xf32>
    %258 = vector.broadcast %257 : vector<1x256xf32> to vector<32x256xf32>
    %259 = arith.mulf %256, %258 : vector<32x256xf32>
    %c96_218 = arith.constant 96 : index
    %c0_219 = arith.constant 0 : index
    %260 = vector.load %arg21[%c96_218, %c0_219] : memref<288x256xf32, #tpu.memory_space<vmem>>, vector<32x256xf32>
    tpu.vector_store %arg21[%c96_218, %c0_219], %259 {strides = array<i32>} : memref<288x256xf32, #tpu.memory_space<vmem>>, vector<32x256xf32>,
    %c128_220 = arith.constant 128 : index
    %c0_221 = arith.constant 0 : index
    %261 = vector.load %arg21[%c128_220, %c0_221] : memref<288x256xf32, #tpu.memory_space<vmem>>, vector<32x256xf32>
    tpu.vector_store %arg21[%c128_220, %c0_221], %236 {strides = array<i32>} : memref<288x256xf32, #tpu.memory_space<vmem>>, vector<32x256xf32>,
    %c255_i32_222 = arith.constant 255 : i32
    %262 = tpu.dynamic_rotate %236 by %c255_i32_222 dim 1 : vector<32x256xf32>, i32 -> vector<32x256xf32>
    %c5_223 = arith.constant 5 : index
    %c0_224 = arith.constant 0 : index
    %263 = vector.load %arg5[%c5_223, %c0_224] : memref<9x256xf32, #tpu.memory_space<vmem>>, vector<1x256xf32>
    %264 = vector.broadcast %263 : vector<1x256xf32> to vector<32x256xf32>
    %265 = arith.mulf %262, %264 : vector<32x256xf32>
    %c160_225 = arith.constant 160 : index
    %c0_226 = arith.constant 0 : index
    %266 = vector.load %arg21[%c160_225, %c0_226] : memref<288x256xf32, #tpu.memory_space<vmem>>, vector<32x256xf32>
    tpu.vector_store %arg21[%c160_225, %c0_226], %265 {strides = array<i32>} : memref<288x256xf32, #tpu.memory_space<vmem>>, vector<32x256xf32>,
    %c241_i32_227 = arith.constant 241 : i32
    %267 = tpu.dynamic_rotate %236 by %c241_i32_227 dim 1 : vector<32x256xf32>, i32 -> vector<32x256xf32>
    %c6_228 = arith.constant 6 : index
    %c0_229 = arith.constant 0 : index
    %268 = vector.load %arg5[%c6_228, %c0_229] : memref<9x256xf32, #tpu.memory_space<vmem>>, vector<1x256xf32>
    %269 = vector.broadcast %268 : vector<1x256xf32> to vector<32x256xf32>
    %270 = arith.mulf %267, %269 : vector<32x256xf32>
    %c192_230 = arith.constant 192 : index
    %c0_231 = arith.constant 0 : index
    %271 = vector.load %arg21[%c192_230, %c0_231] : memref<288x256xf32, #tpu.memory_space<vmem>>, vector<32x256xf32>
    tpu.vector_store %arg21[%c192_230, %c0_231], %270 {strides = array<i32>} : memref<288x256xf32, #tpu.memory_space<vmem>>, vector<32x256xf32>,
    %c240_i32_232 = arith.constant 240 : i32
    %272 = tpu.dynamic_rotate %236 by %c240_i32_232 dim 1 : vector<32x256xf32>, i32 -> vector<32x256xf32>
    %c7_233 = arith.constant 7 : index
    %c0_234 = arith.constant 0 : index
    %273 = vector.load %arg5[%c7_233, %c0_234] : memref<9x256xf32, #tpu.memory_space<vmem>>, vector<1x256xf32>
    %274 = vector.broadcast %273 : vector<1x256xf32> to vector<32x256xf32>
    %275 = arith.mulf %272, %274 : vector<32x256xf32>
    %c224_235 = arith.constant 224 : index
    %c0_236 = arith.constant 0 : index
    %276 = vector.load %arg21[%c224_235, %c0_236] : memref<288x256xf32, #tpu.memory_space<vmem>>, vector<32x256xf32>
    tpu.vector_store %arg21[%c224_235, %c0_236], %275 {strides = array<i32>} : memref<288x256xf32, #tpu.memory_space<vmem>>, vector<32x256xf32>,
    %c239_i32_237 = arith.constant 239 : i32
    %277 = tpu.dynamic_rotate %236 by %c239_i32_237 dim 1 : vector<32x256xf32>, i32 -> vector<32x256xf32>
    %c8_238 = arith.constant 8 : index
    %c0_239 = arith.constant 0 : index
    %278 = vector.load %arg5[%c8_238, %c0_239] : memref<9x256xf32, #tpu.memory_space<vmem>>, vector<1x256xf32>
    %279 = vector.broadcast %278 : vector<1x256xf32> to vector<32x256xf32>
    %280 = arith.mulf %277, %279 : vector<32x256xf32>
    %c256_240 = arith.constant 256 : index
    %c0_241 = arith.constant 0 : index
    %281 = vector.load %arg21[%c256_240, %c0_241] : memref<288x256xf32, #tpu.memory_space<vmem>>, vector<32x256xf32>
    tpu.vector_store %arg21[%c256_240, %c0_241], %280 {strides = array<i32>} : memref<288x256xf32, #tpu.memory_space<vmem>>, vector<32x256xf32>,
    %c0_242 = arith.constant 0 : index
    %c0_243 = arith.constant 0 : index
    %282 = vector.load %arg21[%c0_242, %c0_243] : memref<288x256xf32, #tpu.memory_space<vmem>>, vector<288x256xf32>
    %283 = arith.truncf %282 : vector<288x256xf32> to vector<288x256xbf16>
    %cst_244 = arith.constant dense<0.000000e+00> : vector<32x256xf32>
    %284 = tpu.matmul %238, %283, %cst_244 {dimension_numbers = #tpu.dot_dimension_numbers<[1], [0], [0], [1], [0, 0, 1, 1], [], []>} : vector<32x288xbf16>, vector<288x256xbf16>, vector<32x256xf32> -> vector<32x256xf32>
    %285 = vector.broadcast %240 : vector<32x1xf32> to vector<32x256xf32>
    %286 = arith.addf %284, %285 : vector<32x256xf32>
    %cst_245 = arith.constant 0.000000e+00 : f32
    %287 = vector.broadcast %cst_245 : f32 to vector<32x256xf32>
    %288 = arith.cmpf ogt, %286, %287 : vector<32x256xf32>
    %289 = vector.broadcast %13 : f32 to vector<32x256xf32>
    %290 = arith.mulf %289, %286 : vector<32x256xf32>
    %291 = arith.select %288, %286, %290 : vector<32x256xi1>, vector<32x256xf32>
    %c0_246 = arith.constant 0 : index
    %c0_247 = arith.constant 0 : index
    %c0_248 = arith.constant 0 : index
    %292 = vector.load %arg17[%c0_246, %c0_247, %c0_248] : memref<2x5x288xbf16, #tpu.memory_space<vmem>>, vector<1x5x288xbf16>
    %293 = vector.shape_cast %292 : vector<1x5x288xbf16> to vector<5x288xbf16>
    %c0_249 = arith.constant 0 : index
    %c0_250 = arith.constant 0 : index
    %c0_251 = arith.constant 0 : index
    %294 = vector.load %arg18[%c0_249, %c0_250, %c0_251] : memref<2x5x1xf32, #tpu.memory_space<vmem>>, vector<1x5x1xf32>
    %295 = vector.shape_cast %294 : vector<1x5x1xf32> to vector<5x1xf32>
    %c17_i32_252 = arith.constant 17 : i32
    %296 = tpu.dynamic_rotate %291 by %c17_i32_252 dim 1 : vector<32x256xf32>, i32 -> vector<32x256xf32>
    %c0_253 = arith.constant 0 : index
    %c0_254 = arith.constant 0 : index
    %297 = vector.load %arg5[%c0_253, %c0_254] : memref<9x256xf32, #tpu.memory_space<vmem>>, vector<1x256xf32>
    %298 = vector.broadcast %297 : vector<1x256xf32> to vector<32x256xf32>
    %299 = arith.mulf %296, %298 : vector<32x256xf32>
    %c0_255 = arith.constant 0 : index
    %c0_256 = arith.constant 0 : index
    %300 = vector.load %arg21[%c0_255, %c0_256] : memref<288x256xf32, #tpu.memory_space<vmem>>, vector<32x256xf32>
    tpu.vector_store %arg21[%c0_255, %c0_256], %299 {strides = array<i32>} : memref<288x256xf32, #tpu.memory_space<vmem>>, vector<32x256xf32>,
    %c16_i32_257 = arith.constant 16 : i32
    %301 = tpu.dynamic_rotate %291 by %c16_i32_257 dim 1 : vector<32x256xf32>, i32 -> vector<32x256xf32>
    %c1_258 = arith.constant 1 : index
    %c0_259 = arith.constant 0 : index
    %302 = vector.load %arg5[%c1_258, %c0_259] : memref<9x256xf32, #tpu.memory_space<vmem>>, vector<1x256xf32>
    %303 = vector.broadcast %302 : vector<1x256xf32> to vector<32x256xf32>
    %304 = arith.mulf %301, %303 : vector<32x256xf32>
    %c32_260 = arith.constant 32 : index
    %c0_261 = arith.constant 0 : index
    %305 = vector.load %arg21[%c32_260, %c0_261] : memref<288x256xf32, #tpu.memory_space<vmem>>, vector<32x256xf32>
    tpu.vector_store %arg21[%c32_260, %c0_261], %304 {strides = array<i32>} : memref<288x256xf32, #tpu.memory_space<vmem>>, vector<32x256xf32>,
    %c15_i32_262 = arith.constant 15 : i32
    %306 = tpu.dynamic_rotate %291 by %c15_i32_262 dim 1 : vector<32x256xf32>, i32 -> vector<32x256xf32>
    %c2_263 = arith.constant 2 : index
    %c0_264 = arith.constant 0 : index
    %307 = vector.load %arg5[%c2_263, %c0_264] : memref<9x256xf32, #tpu.memory_space<vmem>>, vector<1x256xf32>
    %308 = vector.broadcast %307 : vector<1x256xf32> to vector<32x256xf32>
    %309 = arith.mulf %306, %308 : vector<32x256xf32>
    %c64_265 = arith.constant 64 : index
    %c0_266 = arith.constant 0 : index
    %310 = vector.load %arg21[%c64_265, %c0_266] : memref<288x256xf32, #tpu.memory_space<vmem>>, vector<32x256xf32>
    tpu.vector_store %arg21[%c64_265, %c0_266], %309 {strides = array<i32>} : memref<288x256xf32, #tpu.memory_space<vmem>>, vector<32x256xf32>,
    %c1_i32_267 = arith.constant 1 : i32
    %311 = tpu.dynamic_rotate %291 by %c1_i32_267 dim 1 : vector<32x256xf32>, i32 -> vector<32x256xf32>
    %c3_268 = arith.constant 3 : index
    %c0_269 = arith.constant 0 : index
    %312 = vector.load %arg5[%c3_268, %c0_269] : memref<9x256xf32, #tpu.memory_space<vmem>>, vector<1x256xf32>
    %313 = vector.broadcast %312 : vector<1x256xf32> to vector<32x256xf32>
    %314 = arith.mulf %311, %313 : vector<32x256xf32>
    %c96_270 = arith.constant 96 : index
    %c0_271 = arith.constant 0 : index
    %315 = vector.load %arg21[%c96_270, %c0_271] : memref<288x256xf32, #tpu.memory_space<vmem>>, vector<32x256xf32>
    tpu.vector_store %arg21[%c96_270, %c0_271], %314 {strides = array<i32>} : memref<288x256xf32, #tpu.memory_space<vmem>>, vector<32x256xf32>,
    %c128_272 = arith.constant 128 : index
    %c0_273 = arith.constant 0 : index
    %316 = vector.load %arg21[%c128_272, %c0_273] : memref<288x256xf32, #tpu.memory_space<vmem>>, vector<32x256xf32>
    tpu.vector_store %arg21[%c128_272, %c0_273], %291 {strides = array<i32>} : memref<288x256xf32, #tpu.memory_space<vmem>>, vector<32x256xf32>,
    %c255_i32_274 = arith.constant 255 : i32
    %317 = tpu.dynamic_rotate %291 by %c255_i32_274 dim 1 : vector<32x256xf32>, i32 -> vector<32x256xf32>
    %c5_275 = arith.constant 5 : index
    %c0_276 = arith.constant 0 : index
    %318 = vector.load %arg5[%c5_275, %c0_276] : memref<9x256xf32, #tpu.memory_space<vmem>>, vector<1x256xf32>
    %319 = vector.broadcast %318 : vector<1x256xf32> to vector<32x256xf32>
    %320 = arith.mulf %317, %319 : vector<32x256xf32>
    %c160_277 = arith.constant 160 : index
    %c0_278 = arith.constant 0 : index
    %321 = vector.load %arg21[%c160_277, %c0_278] : memref<288x256xf32, #tpu.memory_space<vmem>>, vector<32x256xf32>
    tpu.vector_store %arg21[%c160_277, %c0_278], %320 {strides = array<i32>} : memref<288x256xf32, #tpu.memory_space<vmem>>, vector<32x256xf32>,
    %c241_i32_279 = arith.constant 241 : i32
    %322 = tpu.dynamic_rotate %291 by %c241_i32_279 dim 1 : vector<32x256xf32>, i32 -> vector<32x256xf32>
    %c6_280 = arith.constant 6 : index
    %c0_281 = arith.constant 0 : index
    %323 = vector.load %arg5[%c6_280, %c0_281] : memref<9x256xf32, #tpu.memory_space<vmem>>, vector<1x256xf32>
    %324 = vector.broadcast %323 : vector<1x256xf32> to vector<32x256xf32>
    %325 = arith.mulf %322, %324 : vector<32x256xf32>
    %c192_282 = arith.constant 192 : index
    %c0_283 = arith.constant 0 : index
    %326 = vector.load %arg21[%c192_282, %c0_283] : memref<288x256xf32, #tpu.memory_space<vmem>>, vector<32x256xf32>
    tpu.vector_store %arg21[%c192_282, %c0_283], %325 {strides = array<i32>} : memref<288x256xf32, #tpu.memory_space<vmem>>, vector<32x256xf32>,
    %c240_i32_284 = arith.constant 240 : i32
    %327 = tpu.dynamic_rotate %291 by %c240_i32_284 dim 1 : vector<32x256xf32>, i32 -> vector<32x256xf32>
    %c7_285 = arith.constant 7 : index
    %c0_286 = arith.constant 0 : index
    %328 = vector.load %arg5[%c7_285, %c0_286] : memref<9x256xf32, #tpu.memory_space<vmem>>, vector<1x256xf32>
    %329 = vector.broadcast %328 : vector<1x256xf32> to vector<32x256xf32>
    %330 = arith.mulf %327, %329 : vector<32x256xf32>
    %c224_287 = arith.constant 224 : index
    %c0_288 = arith.constant 0 : index
    %331 = vector.load %arg21[%c224_287, %c0_288] : memref<288x256xf32, #tpu.memory_space<vmem>>, vector<32x256xf32>
    tpu.vector_store %arg21[%c224_287, %c0_288], %330 {strides = array<i32>} : memref<288x256xf32, #tpu.memory_space<vmem>>, vector<32x256xf32>,
    %c239_i32_289 = arith.constant 239 : i32
    %332 = tpu.dynamic_rotate %291 by %c239_i32_289 dim 1 : vector<32x256xf32>, i32 -> vector<32x256xf32>
    %c8_290 = arith.constant 8 : index
    %c0_291 = arith.constant 0 : index
    %333 = vector.load %arg5[%c8_290, %c0_291] : memref<9x256xf32, #tpu.memory_space<vmem>>, vector<1x256xf32>
    %334 = vector.broadcast %333 : vector<1x256xf32> to vector<32x256xf32>
    %335 = arith.mulf %332, %334 : vector<32x256xf32>
    %c256_292 = arith.constant 256 : index
    %c0_293 = arith.constant 0 : index
    %336 = vector.load %arg21[%c256_292, %c0_293] : memref<288x256xf32, #tpu.memory_space<vmem>>, vector<32x256xf32>
    tpu.vector_store %arg21[%c256_292, %c0_293], %335 {strides = array<i32>} : memref<288x256xf32, #tpu.memory_space<vmem>>, vector<32x256xf32>,
    %c0_294 = arith.constant 0 : index
    %c0_295 = arith.constant 0 : index
    %337 = vector.load %arg21[%c0_294, %c0_295] : memref<288x256xf32, #tpu.memory_space<vmem>>, vector<288x256xf32>
    %338 = arith.truncf %337 : vector<288x256xf32> to vector<288x256xbf16>
    %cst_296 = arith.constant dense<0.000000e+00> : vector<5x256xf32>
    %339 = tpu.matmul %293, %338, %cst_296 {dimension_numbers = #tpu.dot_dimension_numbers<[1], [0], [0], [1], [0, 0, 1, 1], [], []>} : vector<5x288xbf16>, vector<288x256xbf16>, vector<5x256xf32> -> vector<5x256xf32>
    %340 = vector.broadcast %295 : vector<5x1xf32> to vector<5x256xf32>
    %341 = arith.addf %339, %340 : vector<5x256xf32>
    %342 = arith.addf %6, %341 : vector<5x256xf32>
    %c4 = arith.constant 4 : index
    %343 = memref.load %arg1[%c4] : memref<8xf32, #tpu.memory_space<smem>>
    %c5_297 = arith.constant 5 : index
    %344 = memref.load %arg1[%c5_297] : memref<8xf32, #tpu.memory_space<smem>>
    %c6_298 = arith.constant 6 : index
    %345 = memref.load %arg1[%c6_298] : memref<8xf32, #tpu.memory_space<smem>>
    %c7_299 = arith.constant 7 : index
    %346 = memref.load %arg1[%c7_299] : memref<8xf32, #tpu.memory_space<smem>>
    %347 = vector.extract_strided_slice %342 {offsets = [1, 0], sizes = [1, 256], strides = [1, 1]} : vector<5x256xf32> to vector<1x256xf32>
    %348 = arith.truncf %347 : vector<1x256xf32> to vector<1x256xbf16>
    %cst_300 = arith.constant dense<0.000000e+00> : vector<1x256xf32>
    %349 = tpu.matmul %348, %0, %cst_300 {dimension_numbers = #tpu.dot_dimension_numbers<[1], [1], [0], [0], [0, 0, 1, 0], [], []>} : vector<1x256xbf16>, vector<256x256xbf16>, vector<1x256xf32> -> vector<1x256xf32>
    %350 = tpu.concatenate %177, %349, %2, %8 in 0 : vector<5x256xf32>, vector<1x256xf32>, vector<1x256xf32>, vector<1x256xf32> -> vector<8x256xf32>
    %c1_301 = arith.constant 1 : index
    %c0_302 = arith.constant 0 : index
    %c0_303 = arith.constant 0 : index
    %351 = vector.load %arg7[%c1_301, %c0_302, %c0_303] : memref<2x32x72xbf16, #tpu.memory_space<vmem>>, vector<1x32x72xbf16>
    %352 = vector.shape_cast %351 : vector<1x32x72xbf16> to vector<32x72xbf16>
    %c1_304 = arith.constant 1 : index
    %c0_305 = arith.constant 0 : index
    %c0_306 = arith.constant 0 : index
    %353 = vector.load %arg8[%c1_304, %c0_305, %c0_306] : memref<2x32x1xf32, #tpu.memory_space<vmem>>, vector<1x32x1xf32>
    %354 = vector.shape_cast %353 : vector<1x32x1xf32> to vector<32x1xf32>
    %c17_i32_307 = arith.constant 17 : i32
    %355 = tpu.dynamic_rotate %350 by %c17_i32_307 dim 1 : vector<8x256xf32>, i32 -> vector<8x256xf32>
    %c0_308 = arith.constant 0 : index
    %c0_309 = arith.constant 0 : index
    %356 = vector.load %arg6[%c0_308, %c0_309] : memref<9x256xf32, #tpu.memory_space<vmem>>, vector<1x256xf32>
    %357 = vector.broadcast %356 : vector<1x256xf32> to vector<8x256xf32>
    %358 = arith.mulf %355, %357 : vector<8x256xf32>
    %c0_310 = arith.constant 0 : index
    %c0_311 = arith.constant 0 : index
    %359 = vector.load %arg20[%c0_310, %c0_311] : memref<288x256xf32, #tpu.memory_space<vmem>>, vector<8x256xf32>
    tpu.vector_store %arg20[%c0_310, %c0_311], %358 {strides = array<i32>} : memref<288x256xf32, #tpu.memory_space<vmem>>, vector<8x256xf32>,
    %c16_i32_312 = arith.constant 16 : i32
    %360 = tpu.dynamic_rotate %350 by %c16_i32_312 dim 1 : vector<8x256xf32>, i32 -> vector<8x256xf32>
    %c1_313 = arith.constant 1 : index
    %c0_314 = arith.constant 0 : index
    %361 = vector.load %arg6[%c1_313, %c0_314] : memref<9x256xf32, #tpu.memory_space<vmem>>, vector<1x256xf32>
    %362 = vector.broadcast %361 : vector<1x256xf32> to vector<8x256xf32>
    %363 = arith.mulf %360, %362 : vector<8x256xf32>
    %c8_315 = arith.constant 8 : index
    %c0_316 = arith.constant 0 : index
    %364 = vector.load %arg20[%c8_315, %c0_316] : memref<288x256xf32, #tpu.memory_space<vmem>>, vector<8x256xf32>
    tpu.vector_store %arg20[%c8_315, %c0_316], %363 {strides = array<i32>} : memref<288x256xf32, #tpu.memory_space<vmem>>, vector<8x256xf32>,
    %c15_i32_317 = arith.constant 15 : i32
    %365 = tpu.dynamic_rotate %350 by %c15_i32_317 dim 1 : vector<8x256xf32>, i32 -> vector<8x256xf32>
    %c2_318 = arith.constant 2 : index
    %c0_319 = arith.constant 0 : index
    %366 = vector.load %arg6[%c2_318, %c0_319] : memref<9x256xf32, #tpu.memory_space<vmem>>, vector<1x256xf32>
    %367 = vector.broadcast %366 : vector<1x256xf32> to vector<8x256xf32>
    %368 = arith.mulf %365, %367 : vector<8x256xf32>
    %c16_320 = arith.constant 16 : index
    %c0_321 = arith.constant 0 : index
    %369 = vector.load %arg20[%c16_320, %c0_321] : memref<288x256xf32, #tpu.memory_space<vmem>>, vector<8x256xf32>
    tpu.vector_store %arg20[%c16_320, %c0_321], %368 {strides = array<i32>} : memref<288x256xf32, #tpu.memory_space<vmem>>, vector<8x256xf32>,
    %c1_i32_322 = arith.constant 1 : i32
    %370 = tpu.dynamic_rotate %350 by %c1_i32_322 dim 1 : vector<8x256xf32>, i32 -> vector<8x256xf32>
    %c3_323 = arith.constant 3 : index
    %c0_324 = arith.constant 0 : index
    %371 = vector.load %arg6[%c3_323, %c0_324] : memref<9x256xf32, #tpu.memory_space<vmem>>, vector<1x256xf32>
    %372 = vector.broadcast %371 : vector<1x256xf32> to vector<8x256xf32>
    %373 = arith.mulf %370, %372 : vector<8x256xf32>
    %c24_325 = arith.constant 24 : index
    %c0_326 = arith.constant 0 : index
    %374 = vector.load %arg20[%c24_325, %c0_326] : memref<288x256xf32, #tpu.memory_space<vmem>>, vector<8x256xf32>
    tpu.vector_store %arg20[%c24_325, %c0_326], %373 {strides = array<i32>} : memref<288x256xf32, #tpu.memory_space<vmem>>, vector<8x256xf32>,
    %c32_327 = arith.constant 32 : index
    %c0_328 = arith.constant 0 : index
    %375 = vector.load %arg20[%c32_327, %c0_328] : memref<288x256xf32, #tpu.memory_space<vmem>>, vector<8x256xf32>
    tpu.vector_store %arg20[%c32_327, %c0_328], %350 {strides = array<i32>} : memref<288x256xf32, #tpu.memory_space<vmem>>, vector<8x256xf32>,
    %c255_i32_329 = arith.constant 255 : i32
    %376 = tpu.dynamic_rotate %350 by %c255_i32_329 dim 1 : vector<8x256xf32>, i32 -> vector<8x256xf32>
    %c5_330 = arith.constant 5 : index
    %c0_331 = arith.constant 0 : index
    %377 = vector.load %arg6[%c5_330, %c0_331] : memref<9x256xf32, #tpu.memory_space<vmem>>, vector<1x256xf32>
    %378 = vector.broadcast %377 : vector<1x256xf32> to vector<8x256xf32>
    %379 = arith.mulf %376, %378 : vector<8x256xf32>
    %c40_332 = arith.constant 40 : index
    %c0_333 = arith.constant 0 : index
    %380 = vector.load %arg20[%c40_332, %c0_333] : memref<288x256xf32, #tpu.memory_space<vmem>>, vector<8x256xf32>
    tpu.vector_store %arg20[%c40_332, %c0_333], %379 {strides = array<i32>} : memref<288x256xf32, #tpu.memory_space<vmem>>, vector<8x256xf32>,
    %c241_i32_334 = arith.constant 241 : i32
    %381 = tpu.dynamic_rotate %350 by %c241_i32_334 dim 1 : vector<8x256xf32>, i32 -> vector<8x256xf32>
    %c6_335 = arith.constant 6 : index
    %c0_336 = arith.constant 0 : index
    %382 = vector.load %arg6[%c6_335, %c0_336] : memref<9x256xf32, #tpu.memory_space<vmem>>, vector<1x256xf32>
    %383 = vector.broadcast %382 : vector<1x256xf32> to vector<8x256xf32>
    %384 = arith.mulf %381, %383 : vector<8x256xf32>
    %c48_337 = arith.constant 48 : index
    %c0_338 = arith.constant 0 : index
    %385 = vector.load %arg20[%c48_337, %c0_338] : memref<288x256xf32, #tpu.memory_space<vmem>>, vector<8x256xf32>
    tpu.vector_store %arg20[%c48_337, %c0_338], %384 {strides = array<i32>} : memref<288x256xf32, #tpu.memory_space<vmem>>, vector<8x256xf32>,
    %c240_i32_339 = arith.constant 240 : i32
    %386 = tpu.dynamic_rotate %350 by %c240_i32_339 dim 1 : vector<8x256xf32>, i32 -> vector<8x256xf32>
    %c7_340 = arith.constant 7 : index
    %c0_341 = arith.constant 0 : index
    %387 = vector.load %arg6[%c7_340, %c0_341] : memref<9x256xf32, #tpu.memory_space<vmem>>, vector<1x256xf32>
    %388 = vector.broadcast %387 : vector<1x256xf32> to vector<8x256xf32>
    %389 = arith.mulf %386, %388 : vector<8x256xf32>
    %c56_342 = arith.constant 56 : index
    %c0_343 = arith.constant 0 : index
    %390 = vector.load %arg20[%c56_342, %c0_343] : memref<288x256xf32, #tpu.memory_space<vmem>>, vector<8x256xf32>
    tpu.vector_store %arg20[%c56_342, %c0_343], %389 {strides = array<i32>} : memref<288x256xf32, #tpu.memory_space<vmem>>, vector<8x256xf32>,
    %c239_i32_344 = arith.constant 239 : i32
    %391 = tpu.dynamic_rotate %350 by %c239_i32_344 dim 1 : vector<8x256xf32>, i32 -> vector<8x256xf32>
    %c8_345 = arith.constant 8 : index
    %c0_346 = arith.constant 0 : index
    %392 = vector.load %arg6[%c8_345, %c0_346] : memref<9x256xf32, #tpu.memory_space<vmem>>, vector<1x256xf32>
    %393 = vector.broadcast %392 : vector<1x256xf32> to vector<8x256xf32>
    %394 = arith.mulf %391, %393 : vector<8x256xf32>
    %c64_347 = arith.constant 64 : index
    %c0_348 = arith.constant 0 : index
    %395 = vector.load %arg20[%c64_347, %c0_348] : memref<288x256xf32, #tpu.memory_space<vmem>>, vector<8x256xf32>
    tpu.vector_store %arg20[%c64_347, %c0_348], %394 {strides = array<i32>} : memref<288x256xf32, #tpu.memory_space<vmem>>, vector<8x256xf32>,
    %c0_349 = arith.constant 0 : index
    %c0_350 = arith.constant 0 : index
    %396 = vector.load %arg20[%c0_349, %c0_350] : memref<288x256xf32, #tpu.memory_space<vmem>>, vector<72x256xf32>
    %397 = arith.truncf %396 : vector<72x256xf32> to vector<72x256xbf16>
    %cst_351 = arith.constant dense<0.000000e+00> : vector<32x256xf32>
    %398 = tpu.matmul %352, %397, %cst_351 {dimension_numbers = #tpu.dot_dimension_numbers<[1], [0], [0], [1], [0, 0, 1, 1], [], []>} : vector<32x72xbf16>, vector<72x256xbf16>, vector<32x256xf32> -> vector<32x256xf32>
    %399 = vector.broadcast %354 : vector<32x1xf32> to vector<32x256xf32>
    %400 = arith.addf %398, %399 : vector<32x256xf32>
    %cst_352 = arith.constant 0.000000e+00 : f32
    %401 = vector.broadcast %cst_352 : f32 to vector<32x256xf32>
    %402 = arith.cmpf ogt, %400, %401 : vector<32x256xf32>
    %403 = vector.broadcast %343 : f32 to vector<32x256xf32>
    %404 = arith.mulf %403, %400 : vector<32x256xf32>
    %405 = arith.select %402, %400, %404 : vector<32x256xi1>, vector<32x256xf32>
    %c1_353 = arith.constant 1 : index
    %c0_354 = arith.constant 0 : index
    %c0_355 = arith.constant 0 : index
    %406 = vector.load %arg9[%c1_353, %c0_354, %c0_355] : memref<2x32x288xbf16, #tpu.memory_space<vmem>>, vector<1x32x288xbf16>
    %407 = vector.shape_cast %406 : vector<1x32x288xbf16> to vector<32x288xbf16>
    %c1_356 = arith.constant 1 : index
    %c0_357 = arith.constant 0 : index
    %c0_358 = arith.constant 0 : index
    %408 = vector.load %arg10[%c1_356, %c0_357, %c0_358] : memref<2x32x1xf32, #tpu.memory_space<vmem>>, vector<1x32x1xf32>
    %409 = vector.shape_cast %408 : vector<1x32x1xf32> to vector<32x1xf32>
    %c17_i32_359 = arith.constant 17 : i32
    %410 = tpu.dynamic_rotate %405 by %c17_i32_359 dim 1 : vector<32x256xf32>, i32 -> vector<32x256xf32>
    %c0_360 = arith.constant 0 : index
    %c0_361 = arith.constant 0 : index
    %411 = vector.load %arg6[%c0_360, %c0_361] : memref<9x256xf32, #tpu.memory_space<vmem>>, vector<1x256xf32>
    %412 = vector.broadcast %411 : vector<1x256xf32> to vector<32x256xf32>
    %413 = arith.mulf %410, %412 : vector<32x256xf32>
    %c0_362 = arith.constant 0 : index
    %c0_363 = arith.constant 0 : index
    %414 = vector.load %arg20[%c0_362, %c0_363] : memref<288x256xf32, #tpu.memory_space<vmem>>, vector<32x256xf32>
    tpu.vector_store %arg20[%c0_362, %c0_363], %413 {strides = array<i32>} : memref<288x256xf32, #tpu.memory_space<vmem>>, vector<32x256xf32>,
    %c16_i32_364 = arith.constant 16 : i32
    %415 = tpu.dynamic_rotate %405 by %c16_i32_364 dim 1 : vector<32x256xf32>, i32 -> vector<32x256xf32>
    %c1_365 = arith.constant 1 : index
    %c0_366 = arith.constant 0 : index
    %416 = vector.load %arg6[%c1_365, %c0_366] : memref<9x256xf32, #tpu.memory_space<vmem>>, vector<1x256xf32>
    %417 = vector.broadcast %416 : vector<1x256xf32> to vector<32x256xf32>
    %418 = arith.mulf %415, %417 : vector<32x256xf32>
    %c32_367 = arith.constant 32 : index
    %c0_368 = arith.constant 0 : index
    %419 = vector.load %arg20[%c32_367, %c0_368] : memref<288x256xf32, #tpu.memory_space<vmem>>, vector<32x256xf32>
    tpu.vector_store %arg20[%c32_367, %c0_368], %418 {strides = array<i32>} : memref<288x256xf32, #tpu.memory_space<vmem>>, vector<32x256xf32>,
    %c15_i32_369 = arith.constant 15 : i32
    %420 = tpu.dynamic_rotate %405 by %c15_i32_369 dim 1 : vector<32x256xf32>, i32 -> vector<32x256xf32>
    %c2_370 = arith.constant 2 : index
    %c0_371 = arith.constant 0 : index
    %421 = vector.load %arg6[%c2_370, %c0_371] : memref<9x256xf32, #tpu.memory_space<vmem>>, vector<1x256xf32>
    %422 = vector.broadcast %421 : vector<1x256xf32> to vector<32x256xf32>
    %423 = arith.mulf %420, %422 : vector<32x256xf32>
    %c64_372 = arith.constant 64 : index
    %c0_373 = arith.constant 0 : index
    %424 = vector.load %arg20[%c64_372, %c0_373] : memref<288x256xf32, #tpu.memory_space<vmem>>, vector<32x256xf32>
    tpu.vector_store %arg20[%c64_372, %c0_373], %423 {strides = array<i32>} : memref<288x256xf32, #tpu.memory_space<vmem>>, vector<32x256xf32>,
    %c1_i32_374 = arith.constant 1 : i32
    %425 = tpu.dynamic_rotate %405 by %c1_i32_374 dim 1 : vector<32x256xf32>, i32 -> vector<32x256xf32>
    %c3_375 = arith.constant 3 : index
    %c0_376 = arith.constant 0 : index
    %426 = vector.load %arg6[%c3_375, %c0_376] : memref<9x256xf32, #tpu.memory_space<vmem>>, vector<1x256xf32>
    %427 = vector.broadcast %426 : vector<1x256xf32> to vector<32x256xf32>
    %428 = arith.mulf %425, %427 : vector<32x256xf32>
    %c96_377 = arith.constant 96 : index
    %c0_378 = arith.constant 0 : index
    %429 = vector.load %arg20[%c96_377, %c0_378] : memref<288x256xf32, #tpu.memory_space<vmem>>, vector<32x256xf32>
    tpu.vector_store %arg20[%c96_377, %c0_378], %428 {strides = array<i32>} : memref<288x256xf32, #tpu.memory_space<vmem>>, vector<32x256xf32>,
    %c128_379 = arith.constant 128 : index
    %c0_380 = arith.constant 0 : index
    %430 = vector.load %arg20[%c128_379, %c0_380] : memref<288x256xf32, #tpu.memory_space<vmem>>, vector<32x256xf32>
    tpu.vector_store %arg20[%c128_379, %c0_380], %405 {strides = array<i32>} : memref<288x256xf32, #tpu.memory_space<vmem>>, vector<32x256xf32>,
    %c255_i32_381 = arith.constant 255 : i32
    %431 = tpu.dynamic_rotate %405 by %c255_i32_381 dim 1 : vector<32x256xf32>, i32 -> vector<32x256xf32>
    %c5_382 = arith.constant 5 : index
    %c0_383 = arith.constant 0 : index
    %432 = vector.load %arg6[%c5_382, %c0_383] : memref<9x256xf32, #tpu.memory_space<vmem>>, vector<1x256xf32>
    %433 = vector.broadcast %432 : vector<1x256xf32> to vector<32x256xf32>
    %434 = arith.mulf %431, %433 : vector<32x256xf32>
    %c160_384 = arith.constant 160 : index
    %c0_385 = arith.constant 0 : index
    %435 = vector.load %arg20[%c160_384, %c0_385] : memref<288x256xf32, #tpu.memory_space<vmem>>, vector<32x256xf32>
    tpu.vector_store %arg20[%c160_384, %c0_385], %434 {strides = array<i32>} : memref<288x256xf32, #tpu.memory_space<vmem>>, vector<32x256xf32>,
    %c241_i32_386 = arith.constant 241 : i32
    %436 = tpu.dynamic_rotate %405 by %c241_i32_386 dim 1 : vector<32x256xf32>, i32 -> vector<32x256xf32>
    %c6_387 = arith.constant 6 : index
    %c0_388 = arith.constant 0 : index
    %437 = vector.load %arg6[%c6_387, %c0_388] : memref<9x256xf32, #tpu.memory_space<vmem>>, vector<1x256xf32>
    %438 = vector.broadcast %437 : vector<1x256xf32> to vector<32x256xf32>
    %439 = arith.mulf %436, %438 : vector<32x256xf32>
    %c192_389 = arith.constant 192 : index
    %c0_390 = arith.constant 0 : index
    %440 = vector.load %arg20[%c192_389, %c0_390] : memref<288x256xf32, #tpu.memory_space<vmem>>, vector<32x256xf32>
    tpu.vector_store %arg20[%c192_389, %c0_390], %439 {strides = array<i32>} : memref<288x256xf32, #tpu.memory_space<vmem>>, vector<32x256xf32>,
    %c240_i32_391 = arith.constant 240 : i32
    %441 = tpu.dynamic_rotate %405 by %c240_i32_391 dim 1 : vector<32x256xf32>, i32 -> vector<32x256xf32>
    %c7_392 = arith.constant 7 : index
    %c0_393 = arith.constant 0 : index
    %442 = vector.load %arg6[%c7_392, %c0_393] : memref<9x256xf32, #tpu.memory_space<vmem>>, vector<1x256xf32>
    %443 = vector.broadcast %442 : vector<1x256xf32> to vector<32x256xf32>
    %444 = arith.mulf %441, %443 : vector<32x256xf32>
    %c224_394 = arith.constant 224 : index
    %c0_395 = arith.constant 0 : index
    %445 = vector.load %arg20[%c224_394, %c0_395] : memref<288x256xf32, #tpu.memory_space<vmem>>, vector<32x256xf32>
    tpu.vector_store %arg20[%c224_394, %c0_395], %444 {strides = array<i32>} : memref<288x256xf32, #tpu.memory_space<vmem>>, vector<32x256xf32>,
    %c239_i32_396 = arith.constant 239 : i32
    %446 = tpu.dynamic_rotate %405 by %c239_i32_396 dim 1 : vector<32x256xf32>, i32 -> vector<32x256xf32>
    %c8_397 = arith.constant 8 : index
    %c0_398 = arith.constant 0 : index
    %447 = vector.load %arg6[%c8_397, %c0_398] : memref<9x256xf32, #tpu.memory_space<vmem>>, vector<1x256xf32>
    %448 = vector.broadcast %447 : vector<1x256xf32> to vector<32x256xf32>
    %449 = arith.mulf %446, %448 : vector<32x256xf32>
    %c256_399 = arith.constant 256 : index
    %c0_400 = arith.constant 0 : index
    %450 = vector.load %arg20[%c256_399, %c0_400] : memref<288x256xf32, #tpu.memory_space<vmem>>, vector<32x256xf32>
    tpu.vector_store %arg20[%c256_399, %c0_400], %449 {strides = array<i32>} : memref<288x256xf32, #tpu.memory_space<vmem>>, vector<32x256xf32>,
    %c0_401 = arith.constant 0 : index
    %c0_402 = arith.constant 0 : index
    %451 = vector.load %arg20[%c0_401, %c0_402] : memref<288x256xf32, #tpu.memory_space<vmem>>, vector<288x256xf32>
    %452 = arith.truncf %451 : vector<288x256xf32> to vector<288x256xbf16>
    %cst_403 = arith.constant dense<0.000000e+00> : vector<32x256xf32>
    %453 = tpu.matmul %407, %452, %cst_403 {dimension_numbers = #tpu.dot_dimension_numbers<[1], [0], [0], [1], [0, 0, 1, 1], [], []>} : vector<32x288xbf16>, vector<288x256xbf16>, vector<32x256xf32> -> vector<32x256xf32>
    %454 = vector.broadcast %409 : vector<32x1xf32> to vector<32x256xf32>
    %455 = arith.addf %453, %454 : vector<32x256xf32>
    %cst_404 = arith.constant 0.000000e+00 : f32
    %456 = vector.broadcast %cst_404 : f32 to vector<32x256xf32>
    %457 = arith.cmpf ogt, %455, %456 : vector<32x256xf32>
    %458 = vector.broadcast %344 : f32 to vector<32x256xf32>
    %459 = arith.mulf %458, %455 : vector<32x256xf32>
    %460 = arith.select %457, %455, %459 : vector<32x256xi1>, vector<32x256xf32>
    %c1_405 = arith.constant 1 : index
    %c0_406 = arith.constant 0 : index
    %c0_407 = arith.constant 0 : index
    %461 = vector.load %arg11[%c1_405, %c0_406, %c0_407] : memref<2x5x288xbf16, #tpu.memory_space<vmem>>, vector<1x5x288xbf16>
    %462 = vector.shape_cast %461 : vector<1x5x288xbf16> to vector<5x288xbf16>
    %c1_408 = arith.constant 1 : index
    %c0_409 = arith.constant 0 : index
    %c0_410 = arith.constant 0 : index
    %463 = vector.load %arg12[%c1_408, %c0_409, %c0_410] : memref<2x5x1xf32, #tpu.memory_space<vmem>>, vector<1x5x1xf32>
    %464 = vector.shape_cast %463 : vector<1x5x1xf32> to vector<5x1xf32>
    %c17_i32_411 = arith.constant 17 : i32
    %465 = tpu.dynamic_rotate %460 by %c17_i32_411 dim 1 : vector<32x256xf32>, i32 -> vector<32x256xf32>
    %c0_412 = arith.constant 0 : index
    %c0_413 = arith.constant 0 : index
    %466 = vector.load %arg6[%c0_412, %c0_413] : memref<9x256xf32, #tpu.memory_space<vmem>>, vector<1x256xf32>
    %467 = vector.broadcast %466 : vector<1x256xf32> to vector<32x256xf32>
    %468 = arith.mulf %465, %467 : vector<32x256xf32>
    %c0_414 = arith.constant 0 : index
    %c0_415 = arith.constant 0 : index
    %469 = vector.load %arg20[%c0_414, %c0_415] : memref<288x256xf32, #tpu.memory_space<vmem>>, vector<32x256xf32>
    tpu.vector_store %arg20[%c0_414, %c0_415], %468 {strides = array<i32>} : memref<288x256xf32, #tpu.memory_space<vmem>>, vector<32x256xf32>,
    %c16_i32_416 = arith.constant 16 : i32
    %470 = tpu.dynamic_rotate %460 by %c16_i32_416 dim 1 : vector<32x256xf32>, i32 -> vector<32x256xf32>
    %c1_417 = arith.constant 1 : index
    %c0_418 = arith.constant 0 : index
    %471 = vector.load %arg6[%c1_417, %c0_418] : memref<9x256xf32, #tpu.memory_space<vmem>>, vector<1x256xf32>
    %472 = vector.broadcast %471 : vector<1x256xf32> to vector<32x256xf32>
    %473 = arith.mulf %470, %472 : vector<32x256xf32>
    %c32_419 = arith.constant 32 : index
    %c0_420 = arith.constant 0 : index
    %474 = vector.load %arg20[%c32_419, %c0_420] : memref<288x256xf32, #tpu.memory_space<vmem>>, vector<32x256xf32>
    tpu.vector_store %arg20[%c32_419, %c0_420], %473 {strides = array<i32>} : memref<288x256xf32, #tpu.memory_space<vmem>>, vector<32x256xf32>,
    %c15_i32_421 = arith.constant 15 : i32
    %475 = tpu.dynamic_rotate %460 by %c15_i32_421 dim 1 : vector<32x256xf32>, i32 -> vector<32x256xf32>
    %c2_422 = arith.constant 2 : index
    %c0_423 = arith.constant 0 : index
    %476 = vector.load %arg6[%c2_422, %c0_423] : memref<9x256xf32, #tpu.memory_space<vmem>>, vector<1x256xf32>
    %477 = vector.broadcast %476 : vector<1x256xf32> to vector<32x256xf32>
    %478 = arith.mulf %475, %477 : vector<32x256xf32>
    %c64_424 = arith.constant 64 : index
    %c0_425 = arith.constant 0 : index
    %479 = vector.load %arg20[%c64_424, %c0_425] : memref<288x256xf32, #tpu.memory_space<vmem>>, vector<32x256xf32>
    tpu.vector_store %arg20[%c64_424, %c0_425], %478 {strides = array<i32>} : memref<288x256xf32, #tpu.memory_space<vmem>>, vector<32x256xf32>,
    %c1_i32_426 = arith.constant 1 : i32
    %480 = tpu.dynamic_rotate %460 by %c1_i32_426 dim 1 : vector<32x256xf32>, i32 -> vector<32x256xf32>
    %c3_427 = arith.constant 3 : index
    %c0_428 = arith.constant 0 : index
    %481 = vector.load %arg6[%c3_427, %c0_428] : memref<9x256xf32, #tpu.memory_space<vmem>>, vector<1x256xf32>
    %482 = vector.broadcast %481 : vector<1x256xf32> to vector<32x256xf32>
    %483 = arith.mulf %480, %482 : vector<32x256xf32>
    %c96_429 = arith.constant 96 : index
    %c0_430 = arith.constant 0 : index
    %484 = vector.load %arg20[%c96_429, %c0_430] : memref<288x256xf32, #tpu.memory_space<vmem>>, vector<32x256xf32>
    tpu.vector_store %arg20[%c96_429, %c0_430], %483 {strides = array<i32>} : memref<288x256xf32, #tpu.memory_space<vmem>>, vector<32x256xf32>,
    %c128_431 = arith.constant 128 : index
    %c0_432 = arith.constant 0 : index
    %485 = vector.load %arg20[%c128_431, %c0_432] : memref<288x256xf32, #tpu.memory_space<vmem>>, vector<32x256xf32>
    tpu.vector_store %arg20[%c128_431, %c0_432], %460 {strides = array<i32>} : memref<288x256xf32, #tpu.memory_space<vmem>>, vector<32x256xf32>,
    %c255_i32_433 = arith.constant 255 : i32
    %486 = tpu.dynamic_rotate %460 by %c255_i32_433 dim 1 : vector<32x256xf32>, i32 -> vector<32x256xf32>
    %c5_434 = arith.constant 5 : index
    %c0_435 = arith.constant 0 : index
    %487 = vector.load %arg6[%c5_434, %c0_435] : memref<9x256xf32, #tpu.memory_space<vmem>>, vector<1x256xf32>
    %488 = vector.broadcast %487 : vector<1x256xf32> to vector<32x256xf32>
    %489 = arith.mulf %486, %488 : vector<32x256xf32>
    %c160_436 = arith.constant 160 : index
    %c0_437 = arith.constant 0 : index
    %490 = vector.load %arg20[%c160_436, %c0_437] : memref<288x256xf32, #tpu.memory_space<vmem>>, vector<32x256xf32>
    tpu.vector_store %arg20[%c160_436, %c0_437], %489 {strides = array<i32>} : memref<288x256xf32, #tpu.memory_space<vmem>>, vector<32x256xf32>,
    %c241_i32_438 = arith.constant 241 : i32
    %491 = tpu.dynamic_rotate %460 by %c241_i32_438 dim 1 : vector<32x256xf32>, i32 -> vector<32x256xf32>
    %c6_439 = arith.constant 6 : index
    %c0_440 = arith.constant 0 : index
    %492 = vector.load %arg6[%c6_439, %c0_440] : memref<9x256xf32, #tpu.memory_space<vmem>>, vector<1x256xf32>
    %493 = vector.broadcast %492 : vector<1x256xf32> to vector<32x256xf32>
    %494 = arith.mulf %491, %493 : vector<32x256xf32>
    %c192_441 = arith.constant 192 : index
    %c0_442 = arith.constant 0 : index
    %495 = vector.load %arg20[%c192_441, %c0_442] : memref<288x256xf32, #tpu.memory_space<vmem>>, vector<32x256xf32>
    tpu.vector_store %arg20[%c192_441, %c0_442], %494 {strides = array<i32>} : memref<288x256xf32, #tpu.memory_space<vmem>>, vector<32x256xf32>,
    %c240_i32_443 = arith.constant 240 : i32
    %496 = tpu.dynamic_rotate %460 by %c240_i32_443 dim 1 : vector<32x256xf32>, i32 -> vector<32x256xf32>
    %c7_444 = arith.constant 7 : index
    %c0_445 = arith.constant 0 : index
    %497 = vector.load %arg6[%c7_444, %c0_445] : memref<9x256xf32, #tpu.memory_space<vmem>>, vector<1x256xf32>
    %498 = vector.broadcast %497 : vector<1x256xf32> to vector<32x256xf32>
    %499 = arith.mulf %496, %498 : vector<32x256xf32>
    %c224_446 = arith.constant 224 : index
    %c0_447 = arith.constant 0 : index
    %500 = vector.load %arg20[%c224_446, %c0_447] : memref<288x256xf32, #tpu.memory_space<vmem>>, vector<32x256xf32>
    tpu.vector_store %arg20[%c224_446, %c0_447], %499 {strides = array<i32>} : memref<288x256xf32, #tpu.memory_space<vmem>>, vector<32x256xf32>,
    %c239_i32_448 = arith.constant 239 : i32
    %501 = tpu.dynamic_rotate %460 by %c239_i32_448 dim 1 : vector<32x256xf32>, i32 -> vector<32x256xf32>
    %c8_449 = arith.constant 8 : index
    %c0_450 = arith.constant 0 : index
    %502 = vector.load %arg6[%c8_449, %c0_450] : memref<9x256xf32, #tpu.memory_space<vmem>>, vector<1x256xf32>
    %503 = vector.broadcast %502 : vector<1x256xf32> to vector<32x256xf32>
    %504 = arith.mulf %501, %503 : vector<32x256xf32>
    %c256_451 = arith.constant 256 : index
    %c0_452 = arith.constant 0 : index
    %505 = vector.load %arg20[%c256_451, %c0_452] : memref<288x256xf32, #tpu.memory_space<vmem>>, vector<32x256xf32>
    tpu.vector_store %arg20[%c256_451, %c0_452], %504 {strides = array<i32>} : memref<288x256xf32, #tpu.memory_space<vmem>>, vector<32x256xf32>,
    %c0_453 = arith.constant 0 : index
    %c0_454 = arith.constant 0 : index
    %506 = vector.load %arg20[%c0_453, %c0_454] : memref<288x256xf32, #tpu.memory_space<vmem>>, vector<288x256xf32>
    %507 = arith.truncf %506 : vector<288x256xf32> to vector<288x256xbf16>
    %cst_455 = arith.constant dense<0.000000e+00> : vector<5x256xf32>
    %508 = tpu.matmul %462, %507, %cst_455 {dimension_numbers = #tpu.dot_dimension_numbers<[1], [0], [0], [1], [0, 0, 1, 1], [], []>} : vector<5x288xbf16>, vector<288x256xbf16>, vector<5x256xf32> -> vector<5x256xf32>
    %509 = vector.broadcast %464 : vector<5x1xf32> to vector<5x256xf32>
    %510 = arith.addf %508, %509 : vector<5x256xf32>
    %511 = vector.extract_strided_slice %510 {offsets = [0, 0], sizes = [1, 256], strides = [1, 1]} : vector<5x256xf32> to vector<1x256xf32>
    %512 = arith.truncf %511 : vector<1x256xf32> to vector<1x256xbf16>
    %cst_456 = arith.constant dense<0.000000e+00> : vector<1x256xf32>
    %513 = tpu.matmul %512, %0, %cst_456 {dimension_numbers = #tpu.dot_dimension_numbers<[1], [0], [0], [1], [0, 0, 1, 1], [], []>} : vector<1x256xbf16>, vector<256x256xbf16>, vector<1x256xf32> -> vector<1x256xf32>
    %514 = tpu.concatenate %342, %513, %9 in 0 : vector<5x256xf32>, vector<1x256xf32>, vector<2x256xf32> -> vector<8x256xf32>
    %c1_457 = arith.constant 1 : index
    %c0_458 = arith.constant 0 : index
    %c0_459 = arith.constant 0 : index
    %515 = vector.load %arg13[%c1_457, %c0_458, %c0_459] : memref<2x32x72xbf16, #tpu.memory_space<vmem>>, vector<1x32x72xbf16>
    %516 = vector.shape_cast %515 : vector<1x32x72xbf16> to vector<32x72xbf16>
    %c1_460 = arith.constant 1 : index
    %c0_461 = arith.constant 0 : index
    %c0_462 = arith.constant 0 : index
    %517 = vector.load %arg14[%c1_460, %c0_461, %c0_462] : memref<2x32x1xf32, #tpu.memory_space<vmem>>, vector<1x32x1xf32>
    %518 = vector.shape_cast %517 : vector<1x32x1xf32> to vector<32x1xf32>
    %c17_i32_463 = arith.constant 17 : i32
    %519 = tpu.dynamic_rotate %514 by %c17_i32_463 dim 1 : vector<8x256xf32>, i32 -> vector<8x256xf32>
    %c0_464 = arith.constant 0 : index
    %c0_465 = arith.constant 0 : index
    %520 = vector.load %arg5[%c0_464, %c0_465] : memref<9x256xf32, #tpu.memory_space<vmem>>, vector<1x256xf32>
    %521 = vector.broadcast %520 : vector<1x256xf32> to vector<8x256xf32>
    %522 = arith.mulf %519, %521 : vector<8x256xf32>
    %c0_466 = arith.constant 0 : index
    %c0_467 = arith.constant 0 : index
    %523 = vector.load %arg21[%c0_466, %c0_467] : memref<288x256xf32, #tpu.memory_space<vmem>>, vector<8x256xf32>
    tpu.vector_store %arg21[%c0_466, %c0_467], %522 {strides = array<i32>} : memref<288x256xf32, #tpu.memory_space<vmem>>, vector<8x256xf32>,
    %c16_i32_468 = arith.constant 16 : i32
    %524 = tpu.dynamic_rotate %514 by %c16_i32_468 dim 1 : vector<8x256xf32>, i32 -> vector<8x256xf32>
    %c1_469 = arith.constant 1 : index
    %c0_470 = arith.constant 0 : index
    %525 = vector.load %arg5[%c1_469, %c0_470] : memref<9x256xf32, #tpu.memory_space<vmem>>, vector<1x256xf32>
    %526 = vector.broadcast %525 : vector<1x256xf32> to vector<8x256xf32>
    %527 = arith.mulf %524, %526 : vector<8x256xf32>
    %c8_471 = arith.constant 8 : index
    %c0_472 = arith.constant 0 : index
    %528 = vector.load %arg21[%c8_471, %c0_472] : memref<288x256xf32, #tpu.memory_space<vmem>>, vector<8x256xf32>
    tpu.vector_store %arg21[%c8_471, %c0_472], %527 {strides = array<i32>} : memref<288x256xf32, #tpu.memory_space<vmem>>, vector<8x256xf32>,
    %c15_i32_473 = arith.constant 15 : i32
    %529 = tpu.dynamic_rotate %514 by %c15_i32_473 dim 1 : vector<8x256xf32>, i32 -> vector<8x256xf32>
    %c2_474 = arith.constant 2 : index
    %c0_475 = arith.constant 0 : index
    %530 = vector.load %arg5[%c2_474, %c0_475] : memref<9x256xf32, #tpu.memory_space<vmem>>, vector<1x256xf32>
    %531 = vector.broadcast %530 : vector<1x256xf32> to vector<8x256xf32>
    %532 = arith.mulf %529, %531 : vector<8x256xf32>
    %c16_476 = arith.constant 16 : index
    %c0_477 = arith.constant 0 : index
    %533 = vector.load %arg21[%c16_476, %c0_477] : memref<288x256xf32, #tpu.memory_space<vmem>>, vector<8x256xf32>
    tpu.vector_store %arg21[%c16_476, %c0_477], %532 {strides = array<i32>} : memref<288x256xf32, #tpu.memory_space<vmem>>, vector<8x256xf32>,
    %c1_i32_478 = arith.constant 1 : i32
    %534 = tpu.dynamic_rotate %514 by %c1_i32_478 dim 1 : vector<8x256xf32>, i32 -> vector<8x256xf32>
    %c3_479 = arith.constant 3 : index
    %c0_480 = arith.constant 0 : index
    %535 = vector.load %arg5[%c3_479, %c0_480] : memref<9x256xf32, #tpu.memory_space<vmem>>, vector<1x256xf32>
    %536 = vector.broadcast %535 : vector<1x256xf32> to vector<8x256xf32>
    %537 = arith.mulf %534, %536 : vector<8x256xf32>
    %c24_481 = arith.constant 24 : index
    %c0_482 = arith.constant 0 : index
    %538 = vector.load %arg21[%c24_481, %c0_482] : memref<288x256xf32, #tpu.memory_space<vmem>>, vector<8x256xf32>
    tpu.vector_store %arg21[%c24_481, %c0_482], %537 {strides = array<i32>} : memref<288x256xf32, #tpu.memory_space<vmem>>, vector<8x256xf32>,
    %c32_483 = arith.constant 32 : index
    %c0_484 = arith.constant 0 : index
    %539 = vector.load %arg21[%c32_483, %c0_484] : memref<288x256xf32, #tpu.memory_space<vmem>>, vector<8x256xf32>
    tpu.vector_store %arg21[%c32_483, %c0_484], %514 {strides = array<i32>} : memref<288x256xf32, #tpu.memory_space<vmem>>, vector<8x256xf32>,
    %c255_i32_485 = arith.constant 255 : i32
    %540 = tpu.dynamic_rotate %514 by %c255_i32_485 dim 1 : vector<8x256xf32>, i32 -> vector<8x256xf32>
    %c5_486 = arith.constant 5 : index
    %c0_487 = arith.constant 0 : index
    %541 = vector.load %arg5[%c5_486, %c0_487] : memref<9x256xf32, #tpu.memory_space<vmem>>, vector<1x256xf32>
    %542 = vector.broadcast %541 : vector<1x256xf32> to vector<8x256xf32>
    %543 = arith.mulf %540, %542 : vector<8x256xf32>
    %c40_488 = arith.constant 40 : index
    %c0_489 = arith.constant 0 : index
    %544 = vector.load %arg21[%c40_488, %c0_489] : memref<288x256xf32, #tpu.memory_space<vmem>>, vector<8x256xf32>
    tpu.vector_store %arg21[%c40_488, %c0_489], %543 {strides = array<i32>} : memref<288x256xf32, #tpu.memory_space<vmem>>, vector<8x256xf32>,
    %c241_i32_490 = arith.constant 241 : i32
    %545 = tpu.dynamic_rotate %514 by %c241_i32_490 dim 1 : vector<8x256xf32>, i32 -> vector<8x256xf32>
    %c6_491 = arith.constant 6 : index
    %c0_492 = arith.constant 0 : index
    %546 = vector.load %arg5[%c6_491, %c0_492] : memref<9x256xf32, #tpu.memory_space<vmem>>, vector<1x256xf32>
    %547 = vector.broadcast %546 : vector<1x256xf32> to vector<8x256xf32>
    %548 = arith.mulf %545, %547 : vector<8x256xf32>
    %c48_493 = arith.constant 48 : index
    %c0_494 = arith.constant 0 : index
    %549 = vector.load %arg21[%c48_493, %c0_494] : memref<288x256xf32, #tpu.memory_space<vmem>>, vector<8x256xf32>
    tpu.vector_store %arg21[%c48_493, %c0_494], %548 {strides = array<i32>} : memref<288x256xf32, #tpu.memory_space<vmem>>, vector<8x256xf32>,
    %c240_i32_495 = arith.constant 240 : i32
    %550 = tpu.dynamic_rotate %514 by %c240_i32_495 dim 1 : vector<8x256xf32>, i32 -> vector<8x256xf32>
    %c7_496 = arith.constant 7 : index
    %c0_497 = arith.constant 0 : index
    %551 = vector.load %arg5[%c7_496, %c0_497] : memref<9x256xf32, #tpu.memory_space<vmem>>, vector<1x256xf32>
    %552 = vector.broadcast %551 : vector<1x256xf32> to vector<8x256xf32>
    %553 = arith.mulf %550, %552 : vector<8x256xf32>
    %c56_498 = arith.constant 56 : index
    %c0_499 = arith.constant 0 : index
    %554 = vector.load %arg21[%c56_498, %c0_499] : memref<288x256xf32, #tpu.memory_space<vmem>>, vector<8x256xf32>
    tpu.vector_store %arg21[%c56_498, %c0_499], %553 {strides = array<i32>} : memref<288x256xf32, #tpu.memory_space<vmem>>, vector<8x256xf32>,
    %c239_i32_500 = arith.constant 239 : i32
    %555 = tpu.dynamic_rotate %514 by %c239_i32_500 dim 1 : vector<8x256xf32>, i32 -> vector<8x256xf32>
    %c8_501 = arith.constant 8 : index
    %c0_502 = arith.constant 0 : index
    %556 = vector.load %arg5[%c8_501, %c0_502] : memref<9x256xf32, #tpu.memory_space<vmem>>, vector<1x256xf32>
    %557 = vector.broadcast %556 : vector<1x256xf32> to vector<8x256xf32>
    %558 = arith.mulf %555, %557 : vector<8x256xf32>
    %c64_503 = arith.constant 64 : index
    %c0_504 = arith.constant 0 : index
    %559 = vector.load %arg21[%c64_503, %c0_504] : memref<288x256xf32, #tpu.memory_space<vmem>>, vector<8x256xf32>
    tpu.vector_store %arg21[%c64_503, %c0_504], %558 {strides = array<i32>} : memref<288x256xf32, #tpu.memory_space<vmem>>, vector<8x256xf32>,
    %c0_505 = arith.constant 0 : index
    %c0_506 = arith.constant 0 : index
    %560 = vector.load %arg21[%c0_505, %c0_506] : memref<288x256xf32, #tpu.memory_space<vmem>>, vector<72x256xf32>
    %561 = arith.truncf %560 : vector<72x256xf32> to vector<72x256xbf16>
    %cst_507 = arith.constant dense<0.000000e+00> : vector<32x256xf32>
    %562 = tpu.matmul %516, %561, %cst_507 {dimension_numbers = #tpu.dot_dimension_numbers<[1], [0], [0], [1], [0, 0, 1, 1], [], []>} : vector<32x72xbf16>, vector<72x256xbf16>, vector<32x256xf32> -> vector<32x256xf32>
    %563 = vector.broadcast %518 : vector<32x1xf32> to vector<32x256xf32>
    %564 = arith.addf %562, %563 : vector<32x256xf32>
    %cst_508 = arith.constant 0.000000e+00 : f32
    %565 = vector.broadcast %cst_508 : f32 to vector<32x256xf32>
    %566 = arith.cmpf ogt, %564, %565 : vector<32x256xf32>
    %567 = vector.broadcast %345 : f32 to vector<32x256xf32>
    %568 = arith.mulf %567, %564 : vector<32x256xf32>
    %569 = arith.select %566, %564, %568 : vector<32x256xi1>, vector<32x256xf32>
    %c1_509 = arith.constant 1 : index
    %c0_510 = arith.constant 0 : index
    %c0_511 = arith.constant 0 : index
    %570 = vector.load %arg15[%c1_509, %c0_510, %c0_511] : memref<2x32x288xbf16, #tpu.memory_space<vmem>>, vector<1x32x288xbf16>
    %571 = vector.shape_cast %570 : vector<1x32x288xbf16> to vector<32x288xbf16>
    %c1_512 = arith.constant 1 : index
    %c0_513 = arith.constant 0 : index
    %c0_514 = arith.constant 0 : index
    %572 = vector.load %arg16[%c1_512, %c0_513, %c0_514] : memref<2x32x1xf32, #tpu.memory_space<vmem>>, vector<1x32x1xf32>
    %573 = vector.shape_cast %572 : vector<1x32x1xf32> to vector<32x1xf32>
    %c17_i32_515 = arith.constant 17 : i32
    %574 = tpu.dynamic_rotate %569 by %c17_i32_515 dim 1 : vector<32x256xf32>, i32 -> vector<32x256xf32>
    %c0_516 = arith.constant 0 : index
    %c0_517 = arith.constant 0 : index
    %575 = vector.load %arg5[%c0_516, %c0_517] : memref<9x256xf32, #tpu.memory_space<vmem>>, vector<1x256xf32>
    %576 = vector.broadcast %575 : vector<1x256xf32> to vector<32x256xf32>
    %577 = arith.mulf %574, %576 : vector<32x256xf32>
    %c0_518 = arith.constant 0 : index
    %c0_519 = arith.constant 0 : index
    %578 = vector.load %arg21[%c0_518, %c0_519] : memref<288x256xf32, #tpu.memory_space<vmem>>, vector<32x256xf32>
    tpu.vector_store %arg21[%c0_518, %c0_519], %577 {strides = array<i32>} : memref<288x256xf32, #tpu.memory_space<vmem>>, vector<32x256xf32>,
    %c16_i32_520 = arith.constant 16 : i32
    %579 = tpu.dynamic_rotate %569 by %c16_i32_520 dim 1 : vector<32x256xf32>, i32 -> vector<32x256xf32>
    %c1_521 = arith.constant 1 : index
    %c0_522 = arith.constant 0 : index
    %580 = vector.load %arg5[%c1_521, %c0_522] : memref<9x256xf32, #tpu.memory_space<vmem>>, vector<1x256xf32>
    %581 = vector.broadcast %580 : vector<1x256xf32> to vector<32x256xf32>
    %582 = arith.mulf %579, %581 : vector<32x256xf32>
    %c32_523 = arith.constant 32 : index
    %c0_524 = arith.constant 0 : index
    %583 = vector.load %arg21[%c32_523, %c0_524] : memref<288x256xf32, #tpu.memory_space<vmem>>, vector<32x256xf32>
    tpu.vector_store %arg21[%c32_523, %c0_524], %582 {strides = array<i32>} : memref<288x256xf32, #tpu.memory_space<vmem>>, vector<32x256xf32>,
    %c15_i32_525 = arith.constant 15 : i32
    %584 = tpu.dynamic_rotate %569 by %c15_i32_525 dim 1 : vector<32x256xf32>, i32 -> vector<32x256xf32>
    %c2_526 = arith.constant 2 : index
    %c0_527 = arith.constant 0 : index
    %585 = vector.load %arg5[%c2_526, %c0_527] : memref<9x256xf32, #tpu.memory_space<vmem>>, vector<1x256xf32>
    %586 = vector.broadcast %585 : vector<1x256xf32> to vector<32x256xf32>
    %587 = arith.mulf %584, %586 : vector<32x256xf32>
    %c64_528 = arith.constant 64 : index
    %c0_529 = arith.constant 0 : index
    %588 = vector.load %arg21[%c64_528, %c0_529] : memref<288x256xf32, #tpu.memory_space<vmem>>, vector<32x256xf32>
    tpu.vector_store %arg21[%c64_528, %c0_529], %587 {strides = array<i32>} : memref<288x256xf32, #tpu.memory_space<vmem>>, vector<32x256xf32>,
    %c1_i32_530 = arith.constant 1 : i32
    %589 = tpu.dynamic_rotate %569 by %c1_i32_530 dim 1 : vector<32x256xf32>, i32 -> vector<32x256xf32>
    %c3_531 = arith.constant 3 : index
    %c0_532 = arith.constant 0 : index
    %590 = vector.load %arg5[%c3_531, %c0_532] : memref<9x256xf32, #tpu.memory_space<vmem>>, vector<1x256xf32>
    %591 = vector.broadcast %590 : vector<1x256xf32> to vector<32x256xf32>
    %592 = arith.mulf %589, %591 : vector<32x256xf32>
    %c96_533 = arith.constant 96 : index
    %c0_534 = arith.constant 0 : index
    %593 = vector.load %arg21[%c96_533, %c0_534] : memref<288x256xf32, #tpu.memory_space<vmem>>, vector<32x256xf32>
    tpu.vector_store %arg21[%c96_533, %c0_534], %592 {strides = array<i32>} : memref<288x256xf32, #tpu.memory_space<vmem>>, vector<32x256xf32>,
    %c128_535 = arith.constant 128 : index
    %c0_536 = arith.constant 0 : index
    %594 = vector.load %arg21[%c128_535, %c0_536] : memref<288x256xf32, #tpu.memory_space<vmem>>, vector<32x256xf32>
    tpu.vector_store %arg21[%c128_535, %c0_536], %569 {strides = array<i32>} : memref<288x256xf32, #tpu.memory_space<vmem>>, vector<32x256xf32>,
    %c255_i32_537 = arith.constant 255 : i32
    %595 = tpu.dynamic_rotate %569 by %c255_i32_537 dim 1 : vector<32x256xf32>, i32 -> vector<32x256xf32>
    %c5_538 = arith.constant 5 : index
    %c0_539 = arith.constant 0 : index
    %596 = vector.load %arg5[%c5_538, %c0_539] : memref<9x256xf32, #tpu.memory_space<vmem>>, vector<1x256xf32>
    %597 = vector.broadcast %596 : vector<1x256xf32> to vector<32x256xf32>
    %598 = arith.mulf %595, %597 : vector<32x256xf32>
    %c160_540 = arith.constant 160 : index
    %c0_541 = arith.constant 0 : index
    %599 = vector.load %arg21[%c160_540, %c0_541] : memref<288x256xf32, #tpu.memory_space<vmem>>, vector<32x256xf32>
    tpu.vector_store %arg21[%c160_540, %c0_541], %598 {strides = array<i32>} : memref<288x256xf32, #tpu.memory_space<vmem>>, vector<32x256xf32>,
    %c241_i32_542 = arith.constant 241 : i32
    %600 = tpu.dynamic_rotate %569 by %c241_i32_542 dim 1 : vector<32x256xf32>, i32 -> vector<32x256xf32>
    %c6_543 = arith.constant 6 : index
    %c0_544 = arith.constant 0 : index
    %601 = vector.load %arg5[%c6_543, %c0_544] : memref<9x256xf32, #tpu.memory_space<vmem>>, vector<1x256xf32>
    %602 = vector.broadcast %601 : vector<1x256xf32> to vector<32x256xf32>
    %603 = arith.mulf %600, %602 : vector<32x256xf32>
    %c192_545 = arith.constant 192 : index
    %c0_546 = arith.constant 0 : index
    %604 = vector.load %arg21[%c192_545, %c0_546] : memref<288x256xf32, #tpu.memory_space<vmem>>, vector<32x256xf32>
    tpu.vector_store %arg21[%c192_545, %c0_546], %603 {strides = array<i32>} : memref<288x256xf32, #tpu.memory_space<vmem>>, vector<32x256xf32>,
    %c240_i32_547 = arith.constant 240 : i32
    %605 = tpu.dynamic_rotate %569 by %c240_i32_547 dim 1 : vector<32x256xf32>, i32 -> vector<32x256xf32>
    %c7_548 = arith.constant 7 : index
    %c0_549 = arith.constant 0 : index
    %606 = vector.load %arg5[%c7_548, %c0_549] : memref<9x256xf32, #tpu.memory_space<vmem>>, vector<1x256xf32>
    %607 = vector.broadcast %606 : vector<1x256xf32> to vector<32x256xf32>
    %608 = arith.mulf %605, %607 : vector<32x256xf32>
    %c224_550 = arith.constant 224 : index
    %c0_551 = arith.constant 0 : index
    %609 = vector.load %arg21[%c224_550, %c0_551] : memref<288x256xf32, #tpu.memory_space<vmem>>, vector<32x256xf32>
    tpu.vector_store %arg21[%c224_550, %c0_551], %608 {strides = array<i32>} : memref<288x256xf32, #tpu.memory_space<vmem>>, vector<32x256xf32>,
    %c239_i32_552 = arith.constant 239 : i32
    %610 = tpu.dynamic_rotate %569 by %c239_i32_552 dim 1 : vector<32x256xf32>, i32 -> vector<32x256xf32>
    %c8_553 = arith.constant 8 : index
    %c0_554 = arith.constant 0 : index
    %611 = vector.load %arg5[%c8_553, %c0_554] : memref<9x256xf32, #tpu.memory_space<vmem>>, vector<1x256xf32>
    %612 = vector.broadcast %611 : vector<1x256xf32> to vector<32x256xf32>
    %613 = arith.mulf %610, %612 : vector<32x256xf32>
    %c256_555 = arith.constant 256 : index
    %c0_556 = arith.constant 0 : index
    %614 = vector.load %arg21[%c256_555, %c0_556] : memref<288x256xf32, #tpu.memory_space<vmem>>, vector<32x256xf32>
    tpu.vector_store %arg21[%c256_555, %c0_556], %613 {strides = array<i32>} : memref<288x256xf32, #tpu.memory_space<vmem>>, vector<32x256xf32>,
    %c0_557 = arith.constant 0 : index
    %c0_558 = arith.constant 0 : index
    %615 = vector.load %arg21[%c0_557, %c0_558] : memref<288x256xf32, #tpu.memory_space<vmem>>, vector<288x256xf32>
    %616 = arith.truncf %615 : vector<288x256xf32> to vector<288x256xbf16>
    %cst_559 = arith.constant dense<0.000000e+00> : vector<32x256xf32>
    %617 = tpu.matmul %571, %616, %cst_559 {dimension_numbers = #tpu.dot_dimension_numbers<[1], [0], [0], [1], [0, 0, 1, 1], [], []>} : vector<32x288xbf16>, vector<288x256xbf16>, vector<32x256xf32> -> vector<32x256xf32>
    %618 = vector.broadcast %573 : vector<32x1xf32> to vector<32x256xf32>
    %619 = arith.addf %617, %618 : vector<32x256xf32>
    %cst_560 = arith.constant 0.000000e+00 : f32
    %620 = vector.broadcast %cst_560 : f32 to vector<32x256xf32>
    %621 = arith.cmpf ogt, %619, %620 : vector<32x256xf32>
    %622 = vector.broadcast %346 : f32 to vector<32x256xf32>
    %623 = arith.mulf %622, %619 : vector<32x256xf32>
    %624 = arith.select %621, %619, %623 : vector<32x256xi1>, vector<32x256xf32>
    %c1_561 = arith.constant 1 : index
    %c0_562 = arith.constant 0 : index
    %c0_563 = arith.constant 0 : index
    %625 = vector.load %arg17[%c1_561, %c0_562, %c0_563] : memref<2x5x288xbf16, #tpu.memory_space<vmem>>, vector<1x5x288xbf16>
    %626 = vector.shape_cast %625 : vector<1x5x288xbf16> to vector<5x288xbf16>
    %c1_564 = arith.constant 1 : index
    %c0_565 = arith.constant 0 : index
    %c0_566 = arith.constant 0 : index
    %627 = vector.load %arg18[%c1_564, %c0_565, %c0_566] : memref<2x5x1xf32, #tpu.memory_space<vmem>>, vector<1x5x1xf32>
    %628 = vector.shape_cast %627 : vector<1x5x1xf32> to vector<5x1xf32>
    %c17_i32_567 = arith.constant 17 : i32
    %629 = tpu.dynamic_rotate %624 by %c17_i32_567 dim 1 : vector<32x256xf32>, i32 -> vector<32x256xf32>
    %c0_568 = arith.constant 0 : index
    %c0_569 = arith.constant 0 : index
    %630 = vector.load %arg5[%c0_568, %c0_569] : memref<9x256xf32, #tpu.memory_space<vmem>>, vector<1x256xf32>
    %631 = vector.broadcast %630 : vector<1x256xf32> to vector<32x256xf32>
    %632 = arith.mulf %629, %631 : vector<32x256xf32>
    %c0_570 = arith.constant 0 : index
    %c0_571 = arith.constant 0 : index
    %633 = vector.load %arg21[%c0_570, %c0_571] : memref<288x256xf32, #tpu.memory_space<vmem>>, vector<32x256xf32>
    tpu.vector_store %arg21[%c0_570, %c0_571], %632 {strides = array<i32>} : memref<288x256xf32, #tpu.memory_space<vmem>>, vector<32x256xf32>,
    %c16_i32_572 = arith.constant 16 : i32
    %634 = tpu.dynamic_rotate %624 by %c16_i32_572 dim 1 : vector<32x256xf32>, i32 -> vector<32x256xf32>
    %c1_573 = arith.constant 1 : index
    %c0_574 = arith.constant 0 : index
    %635 = vector.load %arg5[%c1_573, %c0_574] : memref<9x256xf32, #tpu.memory_space<vmem>>, vector<1x256xf32>
    %636 = vector.broadcast %635 : vector<1x256xf32> to vector<32x256xf32>
    %637 = arith.mulf %634, %636 : vector<32x256xf32>
    %c32_575 = arith.constant 32 : index
    %c0_576 = arith.constant 0 : index
    %638 = vector.load %arg21[%c32_575, %c0_576] : memref<288x256xf32, #tpu.memory_space<vmem>>, vector<32x256xf32>
    tpu.vector_store %arg21[%c32_575, %c0_576], %637 {strides = array<i32>} : memref<288x256xf32, #tpu.memory_space<vmem>>, vector<32x256xf32>,
    %c15_i32_577 = arith.constant 15 : i32
    %639 = tpu.dynamic_rotate %624 by %c15_i32_577 dim 1 : vector<32x256xf32>, i32 -> vector<32x256xf32>
    %c2_578 = arith.constant 2 : index
    %c0_579 = arith.constant 0 : index
    %640 = vector.load %arg5[%c2_578, %c0_579] : memref<9x256xf32, #tpu.memory_space<vmem>>, vector<1x256xf32>
    %641 = vector.broadcast %640 : vector<1x256xf32> to vector<32x256xf32>
    %642 = arith.mulf %639, %641 : vector<32x256xf32>
    %c64_580 = arith.constant 64 : index
    %c0_581 = arith.constant 0 : index
    %643 = vector.load %arg21[%c64_580, %c0_581] : memref<288x256xf32, #tpu.memory_space<vmem>>, vector<32x256xf32>
    tpu.vector_store %arg21[%c64_580, %c0_581], %642 {strides = array<i32>} : memref<288x256xf32, #tpu.memory_space<vmem>>, vector<32x256xf32>,
    %c1_i32_582 = arith.constant 1 : i32
    %644 = tpu.dynamic_rotate %624 by %c1_i32_582 dim 1 : vector<32x256xf32>, i32 -> vector<32x256xf32>
    %c3_583 = arith.constant 3 : index
    %c0_584 = arith.constant 0 : index
    %645 = vector.load %arg5[%c3_583, %c0_584] : memref<9x256xf32, #tpu.memory_space<vmem>>, vector<1x256xf32>
    %646 = vector.broadcast %645 : vector<1x256xf32> to vector<32x256xf32>
    %647 = arith.mulf %644, %646 : vector<32x256xf32>
    %c96_585 = arith.constant 96 : index
    %c0_586 = arith.constant 0 : index
    %648 = vector.load %arg21[%c96_585, %c0_586] : memref<288x256xf32, #tpu.memory_space<vmem>>, vector<32x256xf32>
    tpu.vector_store %arg21[%c96_585, %c0_586], %647 {strides = array<i32>} : memref<288x256xf32, #tpu.memory_space<vmem>>, vector<32x256xf32>,
    %c128_587 = arith.constant 128 : index
    %c0_588 = arith.constant 0 : index
    %649 = vector.load %arg21[%c128_587, %c0_588] : memref<288x256xf32, #tpu.memory_space<vmem>>, vector<32x256xf32>
    tpu.vector_store %arg21[%c128_587, %c0_588], %624 {strides = array<i32>} : memref<288x256xf32, #tpu.memory_space<vmem>>, vector<32x256xf32>,
    %c255_i32_589 = arith.constant 255 : i32
    %650 = tpu.dynamic_rotate %624 by %c255_i32_589 dim 1 : vector<32x256xf32>, i32 -> vector<32x256xf32>
    %c5_590 = arith.constant 5 : index
    %c0_591 = arith.constant 0 : index
    %651 = vector.load %arg5[%c5_590, %c0_591] : memref<9x256xf32, #tpu.memory_space<vmem>>, vector<1x256xf32>
    %652 = vector.broadcast %651 : vector<1x256xf32> to vector<32x256xf32>
    %653 = arith.mulf %650, %652 : vector<32x256xf32>
    %c160_592 = arith.constant 160 : index
    %c0_593 = arith.constant 0 : index
    %654 = vector.load %arg21[%c160_592, %c0_593] : memref<288x256xf32, #tpu.memory_space<vmem>>, vector<32x256xf32>
    tpu.vector_store %arg21[%c160_592, %c0_593], %653 {strides = array<i32>} : memref<288x256xf32, #tpu.memory_space<vmem>>, vector<32x256xf32>,
    %c241_i32_594 = arith.constant 241 : i32
    %655 = tpu.dynamic_rotate %624 by %c241_i32_594 dim 1 : vector<32x256xf32>, i32 -> vector<32x256xf32>
    %c6_595 = arith.constant 6 : index
    %c0_596 = arith.constant 0 : index
    %656 = vector.load %arg5[%c6_595, %c0_596] : memref<9x256xf32, #tpu.memory_space<vmem>>, vector<1x256xf32>
    %657 = vector.broadcast %656 : vector<1x256xf32> to vector<32x256xf32>
    %658 = arith.mulf %655, %657 : vector<32x256xf32>
    %c192_597 = arith.constant 192 : index
    %c0_598 = arith.constant 0 : index
    %659 = vector.load %arg21[%c192_597, %c0_598] : memref<288x256xf32, #tpu.memory_space<vmem>>, vector<32x256xf32>
    tpu.vector_store %arg21[%c192_597, %c0_598], %658 {strides = array<i32>} : memref<288x256xf32, #tpu.memory_space<vmem>>, vector<32x256xf32>,
    %c240_i32_599 = arith.constant 240 : i32
    %660 = tpu.dynamic_rotate %624 by %c240_i32_599 dim 1 : vector<32x256xf32>, i32 -> vector<32x256xf32>
    %c7_600 = arith.constant 7 : index
    %c0_601 = arith.constant 0 : index
    %661 = vector.load %arg5[%c7_600, %c0_601] : memref<9x256xf32, #tpu.memory_space<vmem>>, vector<1x256xf32>
    %662 = vector.broadcast %661 : vector<1x256xf32> to vector<32x256xf32>
    %663 = arith.mulf %660, %662 : vector<32x256xf32>
    %c224_602 = arith.constant 224 : index
    %c0_603 = arith.constant 0 : index
    %664 = vector.load %arg21[%c224_602, %c0_603] : memref<288x256xf32, #tpu.memory_space<vmem>>, vector<32x256xf32>
    tpu.vector_store %arg21[%c224_602, %c0_603], %663 {strides = array<i32>} : memref<288x256xf32, #tpu.memory_space<vmem>>, vector<32x256xf32>,
    %c239_i32_604 = arith.constant 239 : i32
    %665 = tpu.dynamic_rotate %624 by %c239_i32_604 dim 1 : vector<32x256xf32>, i32 -> vector<32x256xf32>
    %c8_605 = arith.constant 8 : index
    %c0_606 = arith.constant 0 : index
    %666 = vector.load %arg5[%c8_605, %c0_606] : memref<9x256xf32, #tpu.memory_space<vmem>>, vector<1x256xf32>
    %667 = vector.broadcast %666 : vector<1x256xf32> to vector<32x256xf32>
    %668 = arith.mulf %665, %667 : vector<32x256xf32>
    %c256_607 = arith.constant 256 : index
    %c0_608 = arith.constant 0 : index
    %669 = vector.load %arg21[%c256_607, %c0_608] : memref<288x256xf32, #tpu.memory_space<vmem>>, vector<32x256xf32>
    tpu.vector_store %arg21[%c256_607, %c0_608], %668 {strides = array<i32>} : memref<288x256xf32, #tpu.memory_space<vmem>>, vector<32x256xf32>,
    %c0_609 = arith.constant 0 : index
    %c0_610 = arith.constant 0 : index
    %670 = vector.load %arg21[%c0_609, %c0_610] : memref<288x256xf32, #tpu.memory_space<vmem>>, vector<288x256xf32>
    %671 = arith.truncf %670 : vector<288x256xf32> to vector<288x256xbf16>
    %cst_611 = arith.constant dense<0.000000e+00> : vector<5x256xf32>
    %672 = tpu.matmul %626, %671, %cst_611 {dimension_numbers = #tpu.dot_dimension_numbers<[1], [0], [0], [1], [0, 0, 1, 1], [], []>} : vector<5x288xbf16>, vector<288x256xbf16>, vector<5x256xf32> -> vector<5x256xf32>
    %673 = vector.broadcast %628 : vector<5x1xf32> to vector<5x256xf32>
    %674 = arith.addf %672, %673 : vector<5x256xf32>
    %675 = arith.addf %342, %674 : vector<5x256xf32>
    %676 = vector.extract_strided_slice %675 {offsets = [0, 0], sizes = [1, 256], strides = [1, 1]} : vector<5x256xf32> to vector<1x256xf32>
    %c0_612 = arith.constant 0 : index
    %c0_613 = arith.constant 0 : index
    %c0_614 = arith.constant 0 : index
    %677 = vector.load %arg19[%c0_612, %c0_613, %c0_614] : memref<1x1x256xf32, #tpu.memory_space<vmem>>, vector<1x1x256xf32>
    %678 = vector.shape_cast %677 : vector<1x1x256xf32> to vector<1x256xf32>
    %679 = vector.shape_cast %676 : vector<1x256xf32> to vector<1x1x256xf32>
    tpu.vector_store %arg19[%c0_612, %c0_613, %c0_614], %679 {strides = array<i32>} : memref<1x1x256xf32, #tpu.memory_space<vmem>>, vector<1x1x256xf32>,
    return
  }
  func.func @transform_0(%arg0: i32) -> i32 {
    %c0_i32 = arith.constant 0 : i32
    %c0_i32_0 = arith.constant 0 : i32
    return %c0_i32 : i32
  }
  func.func @transform_1(%arg0: i32) -> (i32, i32, i32) {
    %c0_i32 = arith.constant 0 : i32
    %c0_i32_0 = arith.constant 0 : i32
    %c0_i32_1 = arith.constant 0 : i32
    return %arg0, %c0_i32, %c0_i32_0 : i32, i32, i32
  }
  func.func @transform_2(%arg0: i32) -> (i32, i32, i32) {
    %c0_i32 = arith.constant 0 : i32
    %c0_i32_0 = arith.constant 0 : i32
    %c0_i32_1 = arith.constant 0 : i32
    return %arg0, %c0_i32, %c0_i32_0 : i32, i32, i32
  }
  func.func @transform_3(%arg0: i32) -> (i32, i32) {
    %c0_i32 = arith.constant 0 : i32
    %c0_i32_0 = arith.constant 0 : i32
    %c0_i32_1 = arith.constant 0 : i32
    return %c0_i32, %c0_i32_0 : i32, i32
  }
  func.func @transform_4(%arg0: i32) -> (i32, i32) {
    %c0_i32 = arith.constant 0 : i32
    %c0_i32_0 = arith.constant 0 : i32
    %c0_i32_1 = arith.constant 0 : i32
    return %c0_i32, %c0_i32_0 : i32, i32
  }
  func.func @transform_5(%arg0: i32) -> (i32, i32) {
    %c0_i32 = arith.constant 0 : i32
    %c0_i32_0 = arith.constant 0 : i32
    %c0_i32_1 = arith.constant 0 : i32
    return %c0_i32, %c0_i32_0 : i32, i32
  }
  func.func @transform_6(%arg0: i32) -> (i32, i32, i32) {
    %c0_i32 = arith.constant 0 : i32
    %c0_i32_0 = arith.constant 0 : i32
    %c0_i32_1 = arith.constant 0 : i32
    %c0_i32_2 = arith.constant 0 : i32
    return %c0_i32, %c0_i32_0, %c0_i32_1 : i32, i32, i32
  }
  func.func @transform_7(%arg0: i32) -> (i32, i32, i32) {
    %c0_i32 = arith.constant 0 : i32
    %c0_i32_0 = arith.constant 0 : i32
    %c0_i32_1 = arith.constant 0 : i32
    %c0_i32_2 = arith.constant 0 : i32
    return %c0_i32, %c0_i32_0, %c0_i32_1 : i32, i32, i32
  }
  func.func @transform_8(%arg0: i32) -> (i32, i32, i32) {
    %c0_i32 = arith.constant 0 : i32
    %c0_i32_0 = arith.constant 0 : i32
    %c0_i32_1 = arith.constant 0 : i32
    %c0_i32_2 = arith.constant 0 : i32
    return %c0_i32, %c0_i32_0, %c0_i32_1 : i32, i32, i32
  }
  func.func @transform_9(%arg0: i32) -> (i32, i32, i32) {
    %c0_i32 = arith.constant 0 : i32
    %c0_i32_0 = arith.constant 0 : i32
    %c0_i32_1 = arith.constant 0 : i32
    %c0_i32_2 = arith.constant 0 : i32
    return %c0_i32, %c0_i32_0, %c0_i32_1 : i32, i32, i32
  }
  func.func @transform_10(%arg0: i32) -> (i32, i32, i32) {
    %c0_i32 = arith.constant 0 : i32
    %c0_i32_0 = arith.constant 0 : i32
    %c0_i32_1 = arith.constant 0 : i32
    %c0_i32_2 = arith.constant 0 : i32
    return %c0_i32, %c0_i32_0, %c0_i32_1 : i32, i32, i32
  }
  func.func @transform_11(%arg0: i32) -> (i32, i32, i32) {
    %c0_i32 = arith.constant 0 : i32
    %c0_i32_0 = arith.constant 0 : i32
    %c0_i32_1 = arith.constant 0 : i32
    %c0_i32_2 = arith.constant 0 : i32
    return %c0_i32, %c0_i32_0, %c0_i32_1 : i32, i32, i32
  }
  func.func @transform_12(%arg0: i32) -> (i32, i32, i32) {
    %c0_i32 = arith.constant 0 : i32
    %c0_i32_0 = arith.constant 0 : i32
    %c0_i32_1 = arith.constant 0 : i32
    %c0_i32_2 = arith.constant 0 : i32
    return %c0_i32, %c0_i32_0, %c0_i32_1 : i32, i32, i32
  }
  func.func @transform_13(%arg0: i32) -> (i32, i32, i32) {
    %c0_i32 = arith.constant 0 : i32
    %c0_i32_0 = arith.constant 0 : i32
    %c0_i32_1 = arith.constant 0 : i32
    %c0_i32_2 = arith.constant 0 : i32
    return %c0_i32, %c0_i32_0, %c0_i32_1 : i32, i32, i32
  }
  func.func @transform_14(%arg0: i32) -> (i32, i32, i32) {
    %c0_i32 = arith.constant 0 : i32
    %c0_i32_0 = arith.constant 0 : i32
    %c0_i32_1 = arith.constant 0 : i32
    %c0_i32_2 = arith.constant 0 : i32
    return %c0_i32, %c0_i32_0, %c0_i32_1 : i32, i32, i32
  }
  func.func @transform_15(%arg0: i32) -> (i32, i32, i32) {
    %c0_i32 = arith.constant 0 : i32
    %c0_i32_0 = arith.constant 0 : i32
    %c0_i32_1 = arith.constant 0 : i32
    %c0_i32_2 = arith.constant 0 : i32
    return %c0_i32, %c0_i32_0, %c0_i32_1 : i32, i32, i32
  }
  func.func @transform_16(%arg0: i32) -> (i32, i32, i32) {
    %c0_i32 = arith.constant 0 : i32
    %c0_i32_0 = arith.constant 0 : i32
    %c0_i32_1 = arith.constant 0 : i32
    %c0_i32_2 = arith.constant 0 : i32
    return %c0_i32, %c0_i32_0, %c0_i32_1 : i32, i32, i32
  }
  func.func @transform_17(%arg0: i32) -> (i32, i32, i32) {
    %c0_i32 = arith.constant 0 : i32
    %c0_i32_0 = arith.constant 0 : i32
    %c0_i32_1 = arith.constant 0 : i32
    %c0_i32_2 = arith.constant 0 : i32
    return %c0_i32, %c0_i32_0, %c0_i32_1 : i32, i32, i32
  }
  func.func @transform_18(%arg0: i32) -> (i32, i32, i32) {
    %c0_i32 = arith.constant 0 : i32
    %c0_i32_0 = arith.constant 0 : i32
    %c0_i32_1 = arith.constant 0 : i32
    return %arg0, %c0_i32, %c0_i32_0 : i32, i32, i32
  }
}

</mosaic_0001>

<bundles_post_ra>
// kernel: tpu_custom_call.1
= control target key start
LH: loop header
LB: loop body
LE: loop exit
PB: predicated region body
PF: predicated region fallthrough
CT: control target
= control target key end

     0   :  { %s13701_s0 = inlined_call_operand.vmem [shape: f32[8], index: 0, kind: input, shape index: {}]   ;;  %s13702_s1 = inlined_call_operand.hbm [shape: f32[2,1,256], index: 1, kind: input, shape index: {}]   ;;  %s13703_s2 = inlined_call_operand.hbm [shape: f32[2,1,256], index: 2, kind: input, shape index: {}]   ;;  %s13704_s3 = inlined_call_operand.vmem [shape: bf16[256,256], index: 3, kind: input, shape index: {}]   ;;  %s13705_s4 = inlined_call_operand.vmem [shape: f32[9,256], index: 4, kind: input, shape index: {}]   ;;  %s13706_s5 = inlined_call_operand.hbm [shape: f32[9,256], index: 5, kind: input, shape index: {}]   ;;  %s13707_s6 = inlined_call_operand.hbm [shape: bf16[2,32,72], index: 6, kind: input, shape index: {}]   ;;  %s13708_s7 = inlined_call_operand.vmem [shape: f32[2,32,1], index: 7, kind: input, shape index: {}]   ;;  %s13709_s8 = inlined_call_operand.vmem [shape: bf16[2,32,288], index: 8, kind: input, shape index: {}]   ;;  %s13710_s9 = inlined_call_operand.vmem [shape: f32[2,32,1], index: 9, kind: input, shape index: {}]   ;;  %s13711_s10 = inlined_call_operand.vmem [shape: bf16[2,5,288], index: 10, kind: input, shape index: {}]   ;;  %s13712_s11 = inlined_call_operand.vmem [shape: f32[2,5,1], index: 11, kind: input, shape index: {}]   ;;  %s13713_s12 = inlined_call_operand.vmem [shape: bf16[2,32,72], index: 12, kind: input, shape index: {}]   ;;  %s13714_s13 = inlined_call_operand.vmem [shape: f32[2,32,1], index: 13, kind: input, shape index: {}]   ;;  %s13715_s14 = inlined_call_operand.hbm [shape: bf16[2,32,288], index: 14, kind: input, shape index: {}]   ;;  %s13716_s15 = inlined_call_operand.vmem [shape: f32[2,32,1], index: 15, kind: input, shape index: {}]   ;;  %s13717_s16 = inlined_call_operand.vmem [shape: bf16[2,5,288], index: 16, kind: input, shape index: {}]   ;;  %s13718_s17 = inlined_call_operand.vmem [shape: f32[2,5,1], index: 17, kind: input, shape index: {}]   ;;  %s13719_s18 = inlined_call_operand.hbm [shape: f32[2,1,256], index: 18, kind: output, shape index: {}]  }
   0x1   :  { %13776 = sst [smem:[#allocation37_spill]] %s13701_s0 }
   0x2   :  { %13777 = sst [smem:[#allocation38_spill]] %s13702_s1 }
   0x3   :  { %13778 = sst [smem:[#allocation39_spill]] %s13703_s2 }
   0x4   :  { %13779 = sst [smem:[#allocation40_spill]] %s13705_s4 }
   0x5   :  { %13780 = sst [smem:[#allocation41_spill]] %s13706_s5 }
   0x6   :  { %13781 = sst [smem:[#allocation42_spill]] %s13707_s6 }
   0x7   :  { %13782 = sst [smem:[#allocation43_spill]] %s13713_s12 }
   0x8   :  { %13783 = sst [smem:[#allocation44_spill]] %s13714_s13 }
   0x9   :  { %13784 = sst [smem:[#allocation45_spill]] %s13715_s14 }
   0xa   :  { %13785 = sst [smem:[#allocation46_spill]] %s13716_s15 }
   0xb   :  { %13786 = sst [smem:[#allocation47_spill]] %s13717_s16 }
   0xc   :  { %13787 = sst [smem:[#allocation48_spill]] %s13718_s17 }
   0xd   :  { %13788 = sst [smem:[#allocation49_spill]] %s13719_s18 }
   0xe   :  { %23 = vsyncpa [#allocation7], 0 }
   0xf   :  { %24 = vsyncpa [#allocation5], 0 }
  0x10   :  { %26 = vsyncpa [#allocation5 + $0x1], 0 }
  0x11   :  { %27 = vsyncpa [#allocation10], 0 }
  0x12   :  { %29 = vsyncpa [#allocation10 + $0x1], 0 }
  0x13   :  { %30 = vsyncpa [#allocation13], 0 }
  0x14   :  { %31 = vsyncpa [#allocation6], 0 }
  0x15   :  { %33 = vsyncpa [#allocation6 + $0x1], 0  ;;  %s9070_s27 = smov 0   ;;  %s9072_s28 = smov 0  }
  0x16   :  { %s9074_s29 = smov 0   ;;  %s9076_s30 = smov 0  }
  0x17 LB: > { %13789 = sst [smem:[#allocation22_spill]] %s8937_s27  ;;  %s8951_s0 = smov [#allocation11]   ;;  %s8949_s30 = sphi %s9076_s30, %s13880_s30   ;;  %s8945_s29 = sphi %s9074_s29, %s13883_s29   ;;  %s8941_s28 = sphi %s9072_s28, %s13882_s28   ;;  %s8937_s27 = sphi %s9070_s27, %s13881_s27  }
  0x18   : > { %13790 = sst [smem:[#allocation23_spill]] %s8941_s28  ;;  %s487_s19 = sshll.u32 %s8951_s0, 4  ;;  %s9096_s19 = int_to_ptr.vmem [resolvable:$true] %s487_s19 }
  0x19   : > { %13791 = sst [smem:[#allocation24_spill]] %s8945_s29  ;;  %s9091_s1 = sadd.s32 4294967295, %s8949_s30  }
  0x1a   : > { %13792 = sst [smem:[#allocation25_spill]] %s8949_s30  ;;  %p8154_p0 = scmp.ge.s32.totalorder %s8949_s30, 1 }
  0x1b   : > { %p13729_p1 = scmp.eq.s32.totalorder %s9091_s1, 0  ;;  %p458_p2 = scmp.lt.s32.totalorder %s8949_s30, 3 }
  0x1c   : > { %s8952_s21 = smov [#allocation12]   ;;  %s13795_s25 = sld [smem:[#allocation37_spill]] }
  0x1d   : > { %p9098_p3 = pnand %p8154_p0, %p458_p2  ;;  %s500_s22 = sshll.u32 %s8952_s21, 4  ;;  %s9111_s22 = int_to_ptr.vmem [resolvable:$true] %s500_s22 }
  0x1e   : > { %s13796_s5 = sld [smem:[#allocation41_spill]] }
  0x1f   : > { %s13793_s20 = scalar_select %p9098_p3, 1, 0 }
  0x20   : > { %p8487_p5 = pneg %p9098_p3 }
  0x22   : > { %p9107_p6 = pnand %p8487_p5, %p13729_p1  ;;  %s471_s26 = sshll.u32 %s13795_s25, 4  ;;  %s9116_s26 = int_to_ptr.vmem [resolvable:$true] %s471_s26 }
  0x24   : > { %s8708_s17 = scalar_lea.hbm %s13796_s5, 512  ;;  %p9126_p8 = pneg %p9107_p6 }
  0x25   : > { %p8709_p7 = scmp.ne.s32.totalorder %s13796_s5, %s8708_s17  ;;  %p8715_p11 = scmp.lt.u32.totalorder %s8708_s17, %s13796_s5 }
  0x27   : > { %p8711_p9 = pnand %p9126_p8, %p8709_p7 }
  0x29   : > { %p8712_p10 = pneg %p8711_p9 }
  0x2b   : > { %p8717_p12 = pnand %p8715_p11, %p8712_p10 }
  0x2d   : > { %8720 = shalt.err (!%p8717_p12)
}
  0x2e   : > { %s8721_s16 = scalar_lea.vmem %s9096_s19, 512  ;;  %p8729_p5 = scmp.lt.s32.totalorder %s9096_s19, %s9096_s19 }
  0x2f   : > { %p8722_p13 = scmp.ne.s32.totalorder %s9096_s19, %s8721_s16  ;;  %p8730_p4 = scmp.lt.s32.totalorder %s8721_s16, %s8721_s16 }
  0x31   : > { %p8724_p0 = pnand %p8722_p13, %p9126_p8  ;;  %p8731_p7 = por %p8730_p4, %p8729_p5 }
  0x33   : > { %p8725_p2 = pneg %p8724_p0 }
  0x35   : > { %p8732_p9 = pnand %p8731_p7, %p8725_p2 }
  0x37   : > { %8735 = shalt.err (!%p8732_p9)
}
  0x38   : > { %s8953_s18 = smov 256   ;;  %s8954_s17 = smov 16  }
  0x39   : > { %8493 = dma.hbm_to_vmem [thread:$0]  (!%p9107_p6), %s13796_s5, 512, %s9096_s19, [#allocation10], %s8953_s18, %s8953_s18, %s8954_s17  }
  0x3a   : > { %s13798_s6 = sld [smem:[#allocation42_spill]] }
  0x40   : > { %s8736_s24 = scalar_lea.hbm %s13798_s6, 512 }
  0x41   : > { %p8737_p4 = scmp.ne.s32.totalorder %s13798_s6, %s8736_s24  ;;  %p8743_p12 = scmp.lt.u32.totalorder %s8736_s24, %s13798_s6 }
  0x43   : > { %p8739_p10 = pnand %p8737_p4, %p9126_p8 }
  0x45   : > { %p8740_p11 = pneg %p8739_p10 }
  0x47   : > { %p8745_p13 = pnand %p8743_p12, %p8740_p11 }
  0x49   : > { %8748 = shalt.err (!%p8745_p13)
}
  0x4a   : > { %s8749_s19 = scalar_lea.vmem %s9111_s22, 512  ;;  %p8757_p7 = scmp.lt.s32.totalorder %s9111_s22, %s9111_s22 }
  0x4b   : > { %p8750_p0 = scmp.ne.s32.totalorder %s9111_s22, %s8749_s19  ;;  %p8758_p9 = scmp.lt.s32.totalorder %s8749_s19, %s8749_s19 }
  0x4d   : > { %p8752_p2 = pnand %p8750_p0, %p9126_p8  ;;  %p8759_p4 = por %p8758_p9, %p8757_p7 }
  0x4f   : > { %p8753_p5 = pneg %p8752_p2 }
  0x51   : > { %p8760_p10 = pnand %p8759_p4, %p8753_p5 }
  0x53   : > { %8763 = shalt.err (!%p8760_p10)
}
  0x54   : > { %s8955_s4 = smov 64   ;;  %s8956_s12 = smov 4  }
  0x55   : > { %8496 = dma.hbm_to_vmem [thread:$0]  (!%p9107_p6), %s13798_s6, 512, %s9111_s22, [#allocation13], %s8955_s4, %s8955_s4, %s8956_s12  }
  0x56   : > { %s8764_s17 = scalar_lea.vmem %s9116_s26, 16  ;;  %p8772_p0 = scmp.lt.s32.totalorder %s9116_s26, %s9116_s26 }
  0x57   : > { %p8765_p11 = scmp.ne.s32.totalorder %s9116_s26, %s8764_s17  ;;  %p8773_p2 = scmp.lt.s32.totalorder %s8764_s17, %s8764_s17 }
  0x59   : > { %p8767_p12 = pnand %p8765_p11, %p9126_p8  ;;  %p8774_p5 = por %p8773_p2, %p8772_p0 }
  0x5b   : > { %p8768_p13 = pneg %p8767_p12 }
  0x5d   : > { %p8775_p7 = pnand %p8774_p5, %p8768_p13 }
  0x5f   : > { %8778 = shalt.err (!%p8775_p7)
}
  0x60   : > { %s8957_s25 = smov [#allocation4]   ;;  %s8958_s0 = smov [#allocation14]  }
  0x61   : > { %8490 = dma.vmem_to_smem (!%p9107_p6), %s9116_s26, 16, %s8957_s25, [#allocation7]  }
  0x62   : > { %s534_s21 = sshll.u32 %s8958_s0, 4  ;;  %s13799_s14 = sld [smem:[#allocation45_spill]]  ;;  %s535_s21 = int_to_ptr.vmem [resolvable:$true] %s534_s21 }
  0x68   : > { %s8779_s24 = scalar_lea.hbm %s13799_s14, 1536 }
  0x69   : > { %p8780_p9 = scmp.ne.s32.totalorder %s13799_s14, %s8779_s24  ;;  %p8786_p11 = scmp.lt.u32.totalorder %s8779_s24, %s13799_s14 }
  0x6b   : > { %p8782_p4 = pnand %p8780_p9, %p9126_p8 }
  0x6d   : > { %p8783_p10 = pneg %p8782_p4 }
  0x6f   : > { %p8788_p12 = pnand %p8786_p11, %p8783_p10 }
  0x71   : > { %8791 = shalt.err (!%p8788_p12)
}
  0x72   : > { %s8792_s26 = scalar_lea.vmem %s535_s21, 1536  ;;  %p8800_p5 = scmp.lt.s32.totalorder %s535_s21, %s535_s21 }
  0x73   : > { %p8793_p13 = scmp.ne.s32.totalorder %s535_s21, %s8792_s26  ;;  %p8801_p7 = scmp.lt.s32.totalorder %s8792_s26, %s8792_s26 }
  0x75   : > { %p8795_p0 = pnand %p8793_p13, %p9126_p8  ;;  %p8802_p1 = por %p8801_p7, %p8800_p5 }
  0x77   : > { %p8796_p2 = pneg %p8795_p0 }
  0x79   : > { %p8803_p3 = pnand %p8802_p1, %p8796_p2 }
  0x7b   : > { %8806 = shalt.err (!%p8803_p3)
}
  0x7c   : > { %s8959_s13 = smov 192   ;;  %s8960_s15 = smov 12  }
  0x7d   : > { %8499 = dma.hbm_to_vmem [thread:$0]  (!%p9107_p6), %s13799_s14, 1536, %s535_s21, [#allocation13], %s8959_s13, %s8959_s13, %s8960_s15  }
  0x7e   : > { %s8153_s25 = sadd.s32 4294967294, %s8949_s30   ;;  %s9199_s0 = sadd.s32 1, %s8949_s30  }
  0x7f   : > { %13800 = sst [smem:[#allocation26_spill]] %s9199_s0  ;;  %s64_s22 = ssub.s32 %s8949_s30, %s9199_s0 }
  0x80   : > { %s67_s23 = sadd.s32 1, %s8945_s29  ;;  %p65_p1 = scmp.eq.s32.totalorder %s64_s22, 0 }
  0x81   : > { %p74_p3 = scmp.ne.s32.totalorder %s8945_s29, %s8941_s28  ;;  %p75_p8 = scmp.eq.s32.totalorder %s8949_s30, 0 }
  0x82   : > { %p80_p9 = scmp.ne.s32.totalorder %s8941_s28, %s8937_s27  ;;  %p13803_p10 = scmp.eq.s32.totalorder %s9091_s1, 0 }
  0x83   : > { %s9210_s24 = scalar_select %p65_p1, %s8945_s29, %s67_s23  }
  0x84   : > { %p9212_p4 = por %p75_p8, %p74_p3  ;;  %p9218_p6 = por %p13803_p10, %p80_p9 }
  0x85   : > { %13801 = sst [smem:[#allocation27_spill]] %s9210_s24  ;;  %p445_p11 = scmp.eq.s32.totalorder %s9091_s1, 1 }
  0x86   : > { %s13804_s21 = scalar_select %p9218_p6, 1, 0 }
  0x87   : > { %p451_p12 = scmp.eq.s32.totalorder %s8153_s25, 1  ;;  %p8515_p13 = scmp.lt.s32.totalorder %s8949_s30, 2 }
  0x88   : > { %s557_s16 = sand.u32 1, %s8945_s29   ;;  %p9225_p0 = por %p445_p11, %p74_p3 }
  0x89   : > { %p9229_p2 = por %p451_p12, %p80_p9  ;;  %s9233_s12 = sshll.u32 %s557_s16, 1 }
  0x8a   : > { %s13805_s19 = scalar_select %p9225_p0, 1, 0 }
  0x8b   : > { %s13807_s4 = scalar_select %p9229_p2, 1, 0 }
  0x8c   : > { %13806 = sst [smem:[#allocation28_spill]] %s13805_s19  ;;  %s8362_s26 = sshll.u32 %s8949_s30, 5 }
  0x8d   : > { %13808 = sst [smem:[#allocation29_spill]] %s13807_s4  ;;  %s13809_s18 = sld [smem:[#allocation38_spill]] }
  0x8e   : > { %s561_s25 = scalar_lea.vmem [#allocation8], %s9233_s12  ;;  %p9246_p5 = pnand %p8515_p13, %p9212_p4 }
  0x8f   : > { %s569_s22 = sshll.u32 %s561_s25, 4  ;;  %s13811_s14 = sld [smem:[#allocation39_spill]]  ;;  %s9242_s22 = int_to_ptr.vmem [resolvable:$true] %s569_s22 }
  0x90   : > { %s576_s15 = sand.u32 1, %s8949_s30   ;;  %s558_s24 = scalar_lea.sflag [#allocation5], %s557_s16 }
  0x91   : > { %p8809_p1 = pneg %p9246_p5 }
  0x93   : > { %s9239_s17 = scalar_lea.hbm %s13809_s18, %s8362_s26  ;;  %s8812_s0 = scalar_lea.hbm %s13809_s18, 64 }
  0x94   : > { %s8807_s29 = scalar_lea.hbm %s9239_s17, 32  ;;  %p8813_p9 = scmp.lt.u32.totalorder %s9239_s17, %s13809_s18 }
  0x95   : > { %s9253_s13 = scalar_lea.hbm %s13811_s14, %s8362_s26  ;;  %p8808_p7 = scmp.ne.s32.totalorder %s9239_s17, %s8807_s29 }
  0x96   : > { %p8814_p4 = scmp.lt.u32.totalorder %s8812_s0, %s8807_s29  ;;  %p8816_p11 = scmp.lt.u32.totalorder %s8807_s29, %s9239_s17 }
  0x97   : > { %p8810_p3 = pnand %p8809_p1, %p8808_p7 }
  0x98   : > { %p8815_p10 = por %p8814_p4, %p8813_p9 }
  0x99   : > { %p8811_p8 = pneg %p8810_p3 }
  0x9a   : > { %p8817_p12 = por %p8816_p11, %p8815_p10 }
  0x9c   : > { %p8818_p13 = pnand %p8817_p12, %p8811_p8 }
  0x9e   : > { %8821 = shalt.err (!%p8818_p13)
}
  0x9f   : > { %s8822_s6 = scalar_lea.vmem %s9242_s22, 32  ;;  %s8961_s16 = smov [#allocation8]  }
  0xa0   : > { %p8823_p7 = scmp.ne.s32.totalorder %s9242_s22, %s8822_s6  ;;  %s8827_s26 = sshll.u32 %s8961_s16, 4  ;;  %s8828_s26 = int_to_ptr.vmem [resolvable:$false] %s8827_s26 }
  0xa1   : > { %s8829_s4 = scalar_lea.vmem %s8828_s26, 64  ;;  %p8830_p0 = scmp.lt.s32.totalorder %s9242_s22, %s8828_s26 }
  0xa2   : > { %p8825_p3 = pnand %p8823_p7, %p8809_p1  ;;  %p8831_p9 = scmp.lt.s32.totalorder %s8829_s4, %s8822_s6 }
  0xa4   : > { %p8826_p2 = pneg %p8825_p3  ;;  %p8832_p4 = por %p8831_p9, %p8830_p0 }
  0xa6   : > { %p8833_p10 = pnand %p8832_p4, %p8826_p2 }
  0xa8   : > { %8836 = shalt.err (!%p8833_p10)
}
  0xa9   : > { %8503 = dma.hbm_to_vmem [thread:$0]  (!%p9246_p5), %s9239_s17, 32, %s9242_s22, %s558_s24  }
  0xaa   : > { %s580_s29 = scalar_lea.vmem [#allocation9], %s9233_s12  ;;  %s577_s2 = scalar_lea.sflag [#allocation10], %s576_s15 }
  0xab   : > { %s588_s0 = sshll.u32 %s580_s29, 4  ;;  %s8837_s25 = scalar_lea.hbm %s9253_s13, 32  ;;  %s589_s0 = int_to_ptr.vmem [resolvable:$true] %s588_s0 }
  0xac   : > { %p8838_p0 = scmp.ne.s32.totalorder %s9253_s13, %s8837_s25  ;;  %s8842_s16 = scalar_lea.hbm %s13811_s14, 64 }
  0xad   : > { %p8843_p11 = scmp.lt.u32.totalorder %s9253_s13, %s13811_s14  ;;  %p8844_p12 = scmp.lt.u32.totalorder %s8842_s16, %s8837_s25 }
  0xae   : > { %p8840_p2 = pnand %p8838_p0, %p8809_p1  ;;  %p8846_p7 = scmp.lt.u32.totalorder %s8837_s25, %s9253_s13 }
  0xaf   : > { %p8845_p13 = por %p8844_p12, %p8843_p11 }
  0xb0   : > { %p8841_p8 = pneg %p8840_p2 }
  0xb1   : > { %p8847_p3 = por %p8846_p7, %p8845_p13 }
  0xb3   : > { %p8848_p9 = pnand %p8847_p3, %p8841_p8 }
  0xb5   : > { %8851 = shalt.err (!%p8848_p9)
}
  0xb6   : > { %s8852_s24 = scalar_lea.vmem %s589_s0, 32  ;;  %s8962_s12 = smov [#allocation9]  }
  0xb7   : > { %p8853_p4 = scmp.ne.s32.totalorder %s589_s0, %s8852_s24  ;;  %s8857_s17 = sshll.u32 %s8962_s12, 4  ;;  %s8858_s17 = int_to_ptr.vmem [resolvable:$false] %s8857_s17 }
  0xb8   : > { %s8859_s22 = scalar_lea.vmem %s8858_s17, 64  ;;  %p8860_p2 = scmp.lt.s32.totalorder %s589_s0, %s8858_s17 }
  0xb9   : > { %p8855_p10 = pnand %p8853_p4, %p8809_p1  ;;  %p8861_p6 = scmp.lt.s32.totalorder %s8859_s22, %s8852_s24 }
  0xbb   : > { %p8856_p0 = pneg %p8855_p10  ;;  %p8862_p11 = por %p8861_p6, %p8860_p2 }
  0xbd   : > { %p8863_p12 = pnand %p8862_p11, %p8856_p0 }
  0xbf   : > { %8866 = shalt.err (!%p8863_p12)
}
  0xc0   : > { %8506 = dma.hbm_to_vmem [thread:$0]  (!%p9246_p5), %s9253_s13, 32, %s589_s0, %s577_s2  }
  0xc1   : > { %p13812_p8 = scmp.ne.s32.totalorder %s13793_s20, 0 }
  0xc3   : > { %597 = sbr.rel (%p13812_p8) target bundleno = 6457 (0x1939), region = 92 }
  0xca   : > { %p13813_p13 = scmp.eq.s32.totalorder %s9091_s1, 0 }
  0xcc   : > { %8912 = dma.done.wait (%p13813_p13), [#allocation7], 16   ;;  %p13814_p1 = pmov %p13813_p13 }
  0xcd   : > { %s9310_s15 = sand.u32 1, %s8941_s28   ;;  %p13816_p6 = scmp.ne.s32.totalorder %s13804_s21, 0 }
  0xce   : > { %8914 = vsyncadd (%p13814_p1), [#allocation7], 4294967280  ;;  %13815 = sst [smem:[#allocation30_spill]] %s9310_s15  ;;  %s9313_s29 = sshll.u32 %s9310_s15, 1 }
  0xcf   : > { %s604_s23 = scalar_lea.sflag [#allocation5], %s9310_s15  ;;  %s607_s13 = scalar_lea.vmem [#allocation8], %s9313_s29 }
  0xd0   : > { %8916 = dma.done.wait (%p13816_p6), %s604_s23, 32  }
  0xd1   : > { %8918 = vsyncadd (%p13816_p6), %s604_s23, 4294967264  ;;  %s612_s20 = sand.u32 1, %s9091_s1   ;;  %s616_s2 = scalar_lea.vmem [#allocation9], %s9313_s29 }
  0xd2   : > { %s613_s0 = scalar_lea.sflag [#allocation10], %s612_s20 }
  0xd3   : > { %8920 = dma.done.wait (%p13816_p6), %s613_s0, 32  }
  0xd4   : > { %8922 = vsyncadd (%p13816_p6), %s613_s0, 4294967264  ;;  %p13817_p5 = pmov %p13814_p1 }
  0xd5   : > { %p13818_p7 = pmov %p13814_p1 }
  0xd6   : > { %8924 = dma.done.wait (%p13817_p5), [#allocation10], 512  }
  0xd7   : > { %8926 = vsyncadd (%p13818_p7), [#allocation10], 4294966784  ;;  %p13819_p3 = pmov %p13814_p1 }
  0xd8   : > { %p13820_p9 = pmov %p13814_p1 }
  0xd9   : > { %8928 = dma.done.wait (%p13819_p3), [#allocation13], 2048  }
  0xda   : > { %8930 = vsyncadd (%p13820_p9), [#allocation13], 4294965248 }
  0xdb   : > { %633 = sfence }
  0xdc   : > { %v9338_v0 = vld [vmem:[%s13704_s3 + $0x4] ss:$8 sps:$4 sm:$0xff]   ;;  %v9343_v1 = vld [vmem:[%s13704_s3] ss:$8 sps:$4 sm:$0xff]   ;;  %v9349_v2 = vld [vmem:[%s13704_s3 + $0x14] ss:$8 sps:$4 sm:$0xff]   ;;  %v13739_v5 = vlaneseq }
  0xdd   : > { %899 = vmatprep.subr.bf16.mxu0 %v9338_v0  ;;  %v9356_v3 = vld [vmem:[%s13704_s3 + $0x10] ss:$8 sps:$4 sm:$0xff]   ;;  %v9361_v4 = vld [vmem:[%s13704_s3 + $0x24] ss:$8 sps:$4 sm:$0xff]   ;;  %v9371_v7 = vld [vmem:[%s13704_s3 + $0x20] ss:$8 sps:$4 sm:$0xff]  }
  0xde   : > { %900 = vmatpush1.bf16.xpose.msra.mxu0 %v9343_v1  ;;  %v9366_v6 = vshrl.u32 %v13739_v5, 7  ;;  %v9376_v8 = vld [vmem:[%s13704_s3 + $0x34] ss:$8 sps:$4 sm:$0xff]   ;;  %v9386_v10 = vld [vmem:[%s13704_s3 + $0x30] ss:$8 sps:$4 sm:$0xff]   ;;  %vm957_vm0 = vcmask 1044480  }
  0xdf   : > { %901 = vmatprep.subr.bf16.mxu0 %v9349_v2  ;;  %v721_v11 = vld [vmem:[%s607_s13] sm:$0x3]  ;;  %v9393_v12 = vld [vmem:[%s13704_s3 + $0x44] ss:$8 sps:$4 sm:$0xff]   ;;  %v8591_v16 = vld [vmem:[%s13704_s3 + $0x54] ss:$8 sps:$4 sm:$0xff]  }
  0xe0   : > { %13821 = vst [vmem:[#allocation31_spill] sm:$0xff] %v9366_v6  ;;  %v9379_v9 = vsub.s32 1, %v9366_v6  ;;  %v8590_v15 = vld [vmem:[%s13704_s3 + $0x40] ss:$8 sps:$4 sm:$0xff]   ;;  %v8593_v17 = vld [vmem:[%s13704_s3 + $0x50] ss:$8 sps:$4 sm:$0xff]  }
  0xe1   : > { %v8594_v18 = vld [vmem:[%s13704_s3 + $0x64] ss:$8 sps:$4 sm:$0xff]   ;;  %v8596_v19 = vld [vmem:[%s13704_s3 + $0x60] ss:$8 sps:$4 sm:$0xff]   ;;  %v8597_v20 = vld [vmem:[%s13704_s3 + $0x74] ss:$8 sps:$4 sm:$0xff]  }
  0xe2   : > { %v9396_v13 = vrot.slane %v721_v11, %v9379_v9  ;;  %v8599_v21 = vld [vmem:[%s13704_s3 + $0x70] ss:$8 sps:$4 sm:$0xff]   ;;  %v8600_v22 = vld [vmem:[%s13704_s3 + $0x84] ss:$8 sps:$4 sm:$0xff]   ;;  %v8602_v23 = vld [vmem:[%s13704_s3 + $0x80] ss:$8 sps:$4 sm:$0xff]  }
  0xe3   : > { %v8603_v24 = vld [vmem:[%s13704_s3 + $0x94] ss:$8 sps:$4 sm:$0xff]   ;;  %v8605_v25 = vld [vmem:[%s13704_s3 + $0x90] ss:$8 sps:$4 sm:$0xff]   ;;  %v8606_v26 = vld [vmem:[%s13704_s3 + $0xa4] ss:$8 sps:$4 sm:$0xff]  }
  0xe4   : > { %v738_v14 = vpack.c.bf16 %v9396_v13, %v9396_v13  ;;  %v8608_v27 = vld [vmem:[%s13704_s3 + $0xa0] ss:$8 sps:$4 sm:$0xff]   ;;  %v8609_v28 = vld [vmem:[%s13704_s3 + $0xb4] ss:$8 sps:$4 sm:$0xff]   ;;  %v8611_v29 = vld [vmem:[%s13704_s3 + $0xb0] ss:$8 sps:$4 sm:$0xff]  }
  0xe5   : > { %v8612_v30 = vld [vmem:[%s13704_s3 + $0xc4] ss:$8 sps:$4 sm:$0xff]   ;;  %v8614_v31 = vld [vmem:[%s13704_s3 + $0xc0] ss:$8 sps:$4 sm:$0xff]   ;;  %v8615_v32 = vld [vmem:[%s13704_s3 + $0xd4] ss:$8 sps:$4 sm:$0xff]  }
  0xe6   : > { %902 = vmatpush1.bf16.xpose.msra.mxu0 %v9356_v3  ;;  %931 = vmatprep.mubr.bf16.mxu0 %v738_v14  ;;  %v8617_v33 = vld [vmem:[%s13704_s3 + $0xd0] ss:$8 sps:$4 sm:$0xff]   ;;  %v8618_v34 = vld [vmem:[%s13704_s3 + $0xe4] ss:$8 sps:$4 sm:$0xff]   ;;  %v8620_v35 = vld [vmem:[%s13704_s3 + $0xe0] ss:$8 sps:$4 sm:$0xff]  }
  0xe7   : > { %903 = vmatprep.subr.bf16.mxu0 %v9361_v4  ;;  %v8621_v36 = vld [vmem:[%s13704_s3 + $0xf4] ss:$8 sps:$4 sm:$0xff]   ;;  %v9469_v37 = vsub.s32 0, %v9366_v6  ;;  %v8623_v38 = vld [vmem:[%s13704_s3 + $0xf0] ss:$8 sps:$4 sm:$0xff]   ;;  %vm960_vm1 = vcmask 1045504  }
  0xe8   : > { %v720_v41 = vld [vmem:[%s616_s2] sm:$0x3]  ;;  %vm13737_vm2 = vcmask 1046528   ;;  %s13755_s2 = smov 16   ;;  %s13757_s26 = smov 17   ;;  %v13740_v56 = vmov 0  }
  0xe9   : > { %v9475_v39 = vrot.slane %v721_v11, %v9469_v37  ;;  %v9491_v43 = vrot.slane %v720_v41, %v9469_v37  ;;  %v9494_v47 = vrot.slane %v720_v41, %v9379_v9  ;;  %s13753_s13 = smov 15   ;;  %s13751_s4 = smov 1   ;;  %1273 = vmatprep.mubr.bf16.mxu1 %v13740_v56  ;;  %8575 = vset.pattern.permute.xlu1 %v13740_v56  ;;  %v971_v57 = vld [vmem:[%s13708_s7 + $0x8] sm:$0xff]  ;;  %v970_v58 = vld [vmem:[%s13708_s7] sm:$0xff]  ;;  %v972_v59 = vld [vmem:[%s13708_s7 + $0x10] sm:$0xff]  ;;  %v9542_v63 = vand.u32 127, %v13739_v5 }
  0xea   : > { %s13749_s24 = smov 127   ;;  %s13746_s12 = smov 113   ;;  %8574 = vset.pattern.permute.xlu0 %v13740_v56  ;;  %v973_v60 = vld [vmem:[%s13708_s7 + $0x18] sm:$0xff]  ;;  %vm8972_vm9 = vmmov 1   ;;  %vm13748_vm13 = vcmask 1043456   ;;  %vm13738_vm14 = vcmask 588800  }
  0xeb   : > { %v737_v40 = vpack.c.bf16 %v9475_v39, %v9475_v39  ;;  %13822 = vst [vmem:[#allocation32_spill] sm:$0xff] %v9494_v47  ;;  %s13742_s17 = smov 112   ;;  %s13744_s22 = smov 111   ;;  %vm1003_vm3 = vcmp.lt.s32.totalorder %v9542_v63, 16  ;;  %vm1027_vm4 = vcmp.lt.s32.totalorder %v9542_v63, 15  ;;  %vm1051_vm5 = vcmp.lt.s32.totalorder %v9542_v63, 1  ;;  %vm9584_vm10 = vmpackc.low %vm8972_vm9, %vm13737_vm2 }
  0xec   : > { %vm980_vm6 = vcmp.lt.s32.totalorder %v9542_v63, 17  ;;  %vm1077_vm7 = vcmp.lt.s32.totalorder %v9542_v63, 127  ;;  %vm1101_vm8 = vcmp.lt.s32.totalorder %v9542_v63, 113  ;;  %vm1125_vm11 = vcmp.lt.s32.totalorder %v9542_v63, 112  ;;  %s733_s23 = sld [smem:[#allocation4]]  ;;  %s8174_s21 = sld [smem:[#allocation4 + $0x1]] }
  0xed   : > { %vm1149_vm12 = vcmp.lt.s32.totalorder %v9542_v63, 111  ;;  %s13827_s6 = sld [smem:[#allocation44_spill]]  ;;  %s13832_s0 = sld [smem:[#allocation43_spill]] }
  0xee   : > { %904 = vmatpush1.bf16.xpose.msra.mxu0 %v9371_v7  ;;  %s8175_s16 = sld [smem:[#allocation4 + $0x2]]  ;;  %s13838_s25 = sld [smem:[#allocation46_spill]] }
  0xef   : > { %905 = vmatprep.subr.bf16.mxu0 %v9376_v8  ;;  %s13839_s20 = smov 16   ;;  %s13844_s5 = sld [smem:[#allocation48_spill]] }
  0xf0   : > { %s13850_s28 = smov 17   ;;  %s8264_s15 = sld [smem:[#allocation4 + $0x4]] }
  0xf1   : > { %s8265_s30 = sld [smem:[#allocation4 + $0x5]]  ;;  %s8266_s27 = sld [smem:[#allocation4 + $0x6]] }
  0xf2   : > { %s686_s18 = scalar_lea.vmem [#allocation15], %s9313_s29 }
  0xf6   : > { %906 = vmatpush1.bf16.xpose.msra.mxu0 %v9386_v10 }
  0xf7   : > { %907 = vmatprep.subr.bf16.mxu0 %v9393_v12 }
  0xfe   : > { %908 = vmatpush1.bf16.xpose.msra.mxu0 %v8590_v15 }
  0xff   : > { %909 = vmatprep.subr.bf16.mxu0 %v8591_v16 }
 0x106   : > { %910 = vmatpush1.bf16.xpose.msra.mxu0 %v8593_v17 }
 0x107   : > { %911 = vmatprep.subr.bf16.mxu0 %v8594_v18 }
 0x10e   : > { %912 = vmatpush1.bf16.xpose.msra.mxu0 %v8596_v19 }
 0x10f   : > { %913 = vmatprep.subr.bf16.mxu0 %v8597_v20 }
 0x116   : > { %914 = vmatpush1.bf16.xpose.msra.mxu0 %v8599_v21 }
 0x117   : > { %915 = vmatprep.subr.bf16.mxu0 %v8600_v22 }
 0x11e   : > { %916 = vmatpush1.bf16.xpose.msra.mxu0 %v8602_v23 }
 0x11f   : > { %917 = vmatprep.subr.bf16.mxu0 %v8603_v24 }
 0x126   : > { %918 = vmatpush1.bf16.xpose.msra.mxu0 %v8605_v25 }
 0x127   : > { %919 = vmatprep.subr.bf16.mxu0 %v8606_v26 }
 0x12e   : > { %920 = vmatpush1.bf16.xpose.msra.mxu0 %v8608_v27 }
 0x12f   : > { %921 = vmatprep.subr.bf16.mxu0 %v8609_v28 }
 0x136   : > { %922 = vmatpush1.bf16.xpose.msra.mxu0 %v8611_v29 }
 0x137   : > { %923 = vmatprep.subr.bf16.mxu0 %v8612_v30 }
 0x13e   : > { %924 = vmatpush1.bf16.xpose.msra.mxu0 %v8614_v31 }
 0x13f   : > { %925 = vmatprep.subr.bf16.mxu0 %v8615_v32 }
 0x146   : > { %926 = vmatpush1.bf16.xpose.msra.mxu0 %v8617_v33 }
 0x147   : > { %927 = vmatprep.subr.bf16.mxu0 %v8618_v34 }
 0x14e   : > { %928 = vmatpush1.bf16.xpose.msra.mxu0 %v8620_v35 }
 0x14f   : > { %929 = vmatprep.subr.bf16.mxu0 %v8621_v36 }
 0x156   : > { %930 = vmatpush1.bf16.xpose.msra.mxu0 %v8623_v38 }
 0x157   : > { %2688 = vmatprep.subr.bf16.mxu0 %v9338_v0 }
 0x15d   : > { %932 = vmatmul.mubr.bf16.vlgmr.msra.gmra.mrb[0].mxu0 %v737_v40 }
 0x15e   : > { %2689 = vmatpush1.bf16.msra.mxu0 %v9343_v1 }
 0x15f   : > { %2690 = vmatprep.subr.bf16.mxu0 %v9349_v2  ;;  %v1007_v2 = vld [vmem:[#allocation11 + $0x1] ss:$8 sm:$0x3] }
 0x160   : > { %v1016_v11 = vrot.slane %v1007_v2, %v9379_v9 }
 0x162   : > { %2691 = vmatpush1.bf16.msra.mxu0 %v9356_v3  ;;  %v1055_v3 = vld [vmem:[#allocation11 + $0x3] ss:$8 sm:$0x3] }
 0x163   : > { %2692 = vmatprep.subr.bf16.mxu0 %v9361_v4  ;;  %v983_v4 = vld [vmem:[#allocation11] ss:$8 sm:$0x3] }
 0x166   : > { %2693 = vmatpush1.bf16.msra.mxu0 %v9371_v7 }
 0x167   : > { %2694 = vmatprep.subr.bf16.mxu0 %v9376_v8  ;;  %v1031_v8 = vld [vmem:[#allocation11 + $0x2] ss:$8 sm:$0x3] }
 0x16a   : > { %2695 = vmatpush1.bf16.msra.mxu0 %v9386_v10 }
 0x16b   : > { %2696 = vmatprep.subr.bf16.mxu0 %v9393_v12  ;;  %v1012_v12 = vrot.slane %v1007_v2, %v9469_v37  ;;  %v1153_v2 = vld [vmem:[#allocation11 + $0x10] ss:$8 sm:$0x3] }
 0x16e   : > { %2697 = vmatpush1.bf16.msra.mxu0 %v8590_v15  ;;  %v1081_v15 = vld [vmem:[#allocation11 + $0x5] ss:$8 sm:$0x3] }
 0x16f   : > { %2698 = vmatprep.subr.bf16.mxu0 %v8591_v16 }
 0x172   : > { %2699 = vmatpush1.bf16.msra.mxu0 %v8593_v17  ;;  %v1064_v17 = vrot.slane %v1055_v3, %v9379_v9 }
 0x173   : > { %2700 = vmatprep.subr.bf16.mxu0 %v8594_v18  ;;  %v992_v18 = vrot.slane %v983_v4, %v9379_v9 }
 0x176   : > { %2701 = vmatpush1.bf16.msra.mxu0 %v8596_v19  ;;  %v988_v19 = vrot.slane %v983_v4, %v9469_v37 }
 0x177   : > { %2702 = vmatprep.subr.bf16.mxu0 %v8597_v20  ;;  %v1040_v20 = vrot.slane %v1031_v8, %v9379_v9 }
 0x17a   : > { %2703 = vmatpush1.bf16.msra.mxu0 %v8599_v21  ;;  %v1060_v21 = vrot.slane %v1055_v3, %v9469_v37 }
 0x17b   : > { %2704 = vmatprep.subr.bf16.mxu0 %v8600_v22 }
 0x17e   : > { %2705 = vmatpush1.bf16.msra.mxu0 %v8602_v23 }
 0x17f   : > { %2706 = vmatprep.subr.bf16.mxu0 %v8603_v24  ;;  %v1090_v24 = vrot.slane %v1081_v15, %v9379_v9 }
 0x182   : > { %2707 = vmatpush1.bf16.msra.mxu0 %v8605_v25 }
 0x183   : > { %2708 = vmatprep.subr.bf16.mxu0 %v8606_v26 }
 0x186   : > { %2709 = vmatpush1.bf16.msra.mxu0 %v8608_v27 }
 0x187   : > { %2710 = vmatprep.subr.bf16.mxu0 %v8609_v28 }
 0x18a   : > { %2711 = vmatpush1.bf16.msra.mxu0 %v8611_v29 }
 0x18b   : > { %2712 = vmatprep.subr.bf16.mxu0 %v8612_v30 }
 0x18e   : > { %2713 = vmatpush1.bf16.msra.mxu0 %v8614_v31 }
 0x18f   : > { %2714 = vmatprep.subr.bf16.mxu0 %v8615_v32 }
 0x192   : > { %2715 = vmatpush1.bf16.msra.mxu0 %v8617_v33 }
 0x193   : > { %2716 = vmatprep.subr.bf16.mxu0 %v8618_v34 }
 0x196   : > { %2717 = vmatpush1.bf16.msra.mxu0 %v8620_v35  ;;  %v1036_v35 = vrot.slane %v1031_v8, %v9469_v37 }
 0x197   : > { %2718 = vmatprep.subr.bf16.mxu0 %v8621_v36 }
 0x19a   : > { %2719 = vmatpush1.bf16.msra.mxu0 %v8623_v38 }
 0x230   : > { %v933_v42 = vpop.f32.mrb[0].mxu0 }
 0x231   : > { %v942_v44 = vrot.slane %v933_v42, 3  ;;  %v935_v45 = vpop.f32.mrb[1].mxu0 }
 0x232   : > { %v943_v46 = vrot.slane %v935_v45, 3  ;;  %v937_v48 = vpop.f32.mrb[2].mxu0 }
 0x233   : > { %v958_v49 = vsel %vm957_vm0, 0.0, %v942_v44  ;;  %v938_v50 = vpop.f32.mrb[3].mxu0 }
 0x234   : > { %v9499_v51 = vsel %vm960_vm1, %v958_v49, %v9491_v43  ;;  %v959_v52 = vsel %vm957_vm0, 0.0, %v943_v46  ;;  %v1086_v46 = vrot.slane %v1081_v15, %v9469_v37 }
 0x235   : > { %v964_v53 = vsel %vm13737_vm2, %v9499_v51, 0.0  ;;  %v9506_v54 = vsel %vm960_vm1, %v959_v52, %v9494_v47 }
 0x236   : > { %999 = vrot.lane.b32.xlu1 %v964_v53, %s13755_s2  ;;  %974 = vrot.lane.b32.xlu0 %v964_v53, %s13757_s26  ;;  %v965_v55 = vsel %vm13737_vm2, %v9506_v54, 0.0 }
 0x23a   : > { %1023 = vrot.lane.b32.xlu0 %v964_v53, %s13753_s13  ;;  %1001 = vrot.lane.b32.xlu1 %v965_v55, %s13755_s2 }
 0x23e   : > { %1047 = vrot.lane.b32.xlu0 %v964_v53, %s13751_s4  ;;  %1025 = vrot.lane.b32.xlu1 %v965_v55, %s13753_s13 }
 0x242   : > { %1049 = vrot.lane.b32.xlu1 %v965_v55, %s13751_s4  ;;  %976 = vrot.lane.b32.xlu0 %v965_v55, %s13757_s26 }
 0x246   : > { %1075 = vrot.lane.b32.xlu1 %v965_v55, %s13749_s24  ;;  %1073 = vrot.lane.b32.xlu0 %v964_v53, %s13749_s24 }
 0x24a   : > { %1099 = vrot.lane.b32.xlu1 %v965_v55, %s13746_s12  ;;  %1097 = vrot.lane.b32.xlu0 %v964_v53, %s13746_s12 }
 0x24e   : > { %1123 = vrot.lane.b32.xlu1 %v965_v55, %s13742_s17  ;;  %1121 = vrot.lane.b32.xlu0 %v964_v53, %s13742_s17 }
 0x252   : > { %1147 = vrot.lane.b32.xlu1 %v965_v55, %s13744_s22  ;;  %1145 = vrot.lane.b32.xlu0 %v964_v53, %s13744_s22  ;;  %v1105_v53 = vld [vmem:[#allocation11 + $0x6] ss:$8 sm:$0x3] }
 0x256   : > { %1204 = vperm.xlu1 %8575, %v971_v57   ;;  %1199 = vperm.xlu0 %8574, %v970_v58   ;;  %v1129_v57 = vld [vmem:[#allocation11 + $0x7] ss:$8 sm:$0x3] }
 0x257   : > { %v1134_v4 = vrot.slane %v1129_v57, %v9469_v37 }
 0x25a   : > { %1209 = vperm.xlu1 %8575, %v972_v59   ;;  %1214 = vperm.xlu0 %8574, %v973_v60  }
 0x2a8   : > { %v1000_v61 = vpop.permute.xlu1 %999  ;;  %v975_v62 = vpop.permute.xlu0 %974 }
 0x2ac   : > { %v1024_v0 = vpop.permute.xlu0 %1023  ;;  %v1002_v1 = vpop.permute.xlu1 %1001 }
 0x2ad   : > { %v1005_v14 = vsel %vm1003_vm3, %v1002_v1, %v1000_v61  ;;  %v1004_v16 = vsel %vm1003_vm3, %v1000_v61, %v1002_v1  ;;  %v1110_v61 = vrot.slane %v1105_v53, %v9469_v37  ;;  %v13823_v1 = vmov 0 }
 0x2ae   : > { %v1020_v25 = vmul.f32 %v1016_v11, %v1004_v16  ;;  %v1019_v26 = vmul.f32 %v1012_v12, %v1005_v14  ;;  %v13824_v1 = vsel %vm9584_vm10, 4294967295, %v13823_v1 }
 0x2af   : > { %13825 = vst [vmem:[#allocation33_spill] sm:$0xff] %v13824_v1 }
 0x2b0   : > { %v1048_v7 = vpop.permute.xlu0 %1047  ;;  %v1026_v10 = vpop.permute.xlu1 %1025 }
 0x2b1   : > { %v1028_v27 = vsel %vm1027_vm4, %v1024_v0, %v1026_v10  ;;  %v1029_v36 = vsel %vm1027_vm4, %v1026_v10, %v1024_v0 }
 0x2b2   : > { %v1044_v38 = vmul.f32 %v1040_v20, %v1028_v27  ;;  %v1043_v55 = vmul.f32 %v1036_v35, %v1029_v36  ;;  %v9617_v36 = vstv %s733_s23  ;;  %s8176_s23 = sld [smem:[#allocation4 + $0x3]] }
 0x2b4   : > { %v1050_v22 = vpop.permute.xlu1 %1049  ;;  %v977_v23 = vpop.permute.xlu0 %976 }
 0x2b5   : > { %v1052_v28 = vsel %vm1051_vm5, %v1048_v7, %v1050_v22  ;;  %v982_v29 = vsel %vm980_vm6, %v977_v23, %v975_v62  ;;  %v981_v30 = vsel %vm980_vm6, %v975_v62, %v977_v23  ;;  %v1053_v31 = vsel %vm1051_vm5, %v1050_v22, %v1048_v7 }
 0x2b6   : > { %v1068_v32 = vmul.f32 %v1064_v17, %v1052_v28  ;;  %v996_v33 = vmul.f32 %v992_v18, %v981_v30  ;;  %v995_v34 = vmul.f32 %v988_v19, %v982_v29  ;;  %v1067_v45 = vmul.f32 %v1060_v21, %v1053_v31 }
 0x2b7   : > { %v1114_v62 = vrot.slane %v1105_v53, %v9379_v9  ;;  %v1138_v7 = vrot.slane %v1129_v57, %v9379_v9  ;;  %v1158_v17 = vrot.slane %v1153_v2, %v9469_v37 }
 0x2b8   : > { %v1076_v40 = vpop.permute.xlu1 %1075  ;;  %v1074_v41 = vpop.permute.xlu0 %1073  ;;  %v1188_v42 = vpack.c.bf16 %v1020_v25, %v996_v33  ;;  %v1187_v44 = vpack.c.bf16 %v1019_v26, %v995_v34  ;;  %v1190_v52 = vpack.c.bf16 %v1068_v32, %v1044_v38  ;;  %v1189_v0 = vpack.c.bf16 %v1067_v45, %v1043_v55  ;;  %v8624_v32 = vld [vmem:[#allocation12] sm:$0xff]   ;;  %v8625_v33 = vld [vmem:[#allocation12 + $0x8] sm:$0xff]  }
 0x2b9   : > { %v1079_v48 = vsel %vm1077_vm7, %v1076_v40, %v1074_v41  ;;  %v1078_v49 = vsel %vm1077_vm7, %v1074_v41, %v1076_v40 }
 0x2ba   : > { %v1094_v50 = vmul.f32 %v1090_v24, %v1079_v48  ;;  %1241 = vmatprep.subr.bf16.mxu1 %v1188_v42  ;;  %v1093_v60 = vmul.f32 %v1086_v46, %v1078_v49 }
 0x2bb   : > { %1242 = vmatpush1.bf16.msra.mxu1 %v1187_v44 }
 0x2bc   : > { %v1100_v58 = vpop.permute.xlu1 %1099  ;;  %1243 = vmatprep.subr.bf16.mxu1 %v1190_v52  ;;  %v1098_v59 = vpop.permute.xlu0 %1097  ;;  %v8366_v3 = vpack.c.bf16 %v1094_v50, %v9506_v54  ;;  %v1162_v54 = vrot.slane %v1153_v2, %v9379_v9  ;;  %v8369_v14 = vpack.c.bf16 %v1093_v60, %v9499_v51 }
 0x2bd   : > { %v1102_v8 = vsel %vm1101_vm8, %v1098_v59, %v1100_v58  ;;  %v1103_v10 = vsel %vm1101_vm8, %v1100_v58, %v1098_v59 }
 0x2be   : > { %v1117_v18 = vmul.f32 %v1110_v61, %v1102_v8  ;;  %v1118_v19 = vmul.f32 %v1114_v62, %v1103_v10 }
 0x2bf   : > { %1244 = vmatpush1.bf16.msra.mxu1 %v1189_v0 }
 0x2c0   : > { %v1124_v11 = vpop.permute.xlu1 %1123  ;;  %8367 = vmatprep.subr.msk.bf16.mxu1 %vm9584_vm10, %v8366_v3  ;;  %v1122_v12 = vpop.permute.xlu0 %1121 }
 0x2c1   : > { %v1126_v15 = vsel %vm1125_vm11, %v1122_v12, %v1124_v11  ;;  %v1127_v16 = vsel %vm1125_vm11, %v1124_v11, %v1122_v12 }
 0x2c2   : > { %v1141_v20 = vmul.f32 %v1134_v4, %v1126_v15  ;;  %v1142_v21 = vmul.f32 %v1138_v7, %v1127_v16 }
 0x2c3   : > { %8370 = vmatpush1.bf16.msk.msra.mxu1 %vm9584_vm10, %v8369_v14 }
 0x2c4   : > { %v1148_v22 = vpop.permute.xlu1 %1147  ;;  %v1146_v23 = vpop.permute.xlu0 %1145  ;;  %v1194_v24 = vpack.c.bf16 %v1142_v21, %v1118_v19  ;;  %v1193_v25 = vpack.c.bf16 %v1141_v20, %v1117_v18  ;;  %v8628_v19 = vld [vmem:[%s13709_s8 + $0x4] ss:$12 sps:$4 sm:$0xff]  }
 0x2c5   : > { %v1150_v51 = vsel %vm1149_vm12, %v1146_v23, %v1148_v22  ;;  %v1151_v26 = vsel %vm1149_vm12, %v1148_v22, %v1146_v23 }
 0x2c6   : > { %v1166_v27 = vmul.f32 %v1162_v54, %v1151_v26  ;;  %1247 = vmatprep.subr.bf16.mxu1 %v1194_v24  ;;  %v1165_v28 = vmul.f32 %v1158_v17, %v1150_v51  ;;  %v1327_v51 = vld [vmem:[%s13710_s9] sm:$0xff] }
 0x2c7   : > { %1248 = vmatpush1.bf16.msra.mxu1 %v1193_v25 }
 0x2c8   : > { %v1196_v29 = vpack.c.bf16 %v1166_v27, %v1166_v27  ;;  %v1195_v30 = vpack.c.bf16 %v1165_v28, %v1165_v28  ;;  %v1328_v27 = vld [vmem:[%s13710_s9 + $0x8] sm:$0xff] }
 0x2ca   : > { %8211 = vmatprep.subr.msk.bf16.mxu1 %vm13748_vm13, %v1196_v29  ;;  %v1236_v31 = vsel %vm13748_vm13, %v1195_v30, 0  ;;  %v1329_v29 = vld [vmem:[%s13710_s9 + $0x10] sm:$0xff] }
 0x2cb   : > { %1250 = vmatpush1.bf16.msra.mxu1 %v1236_v31  ;;  %v1355_v31 = vld [vmem:[#allocation11] ss:$8 sm:$0x3] }
 0x2ce   : > { %8212 = vmatmul.mubr.msk.bf16.vlgmr.msra.gmra.mrb[0].mxu1 %vm13738_vm14, %v8624_v32  ;;  %v1330_v32 = vld [vmem:[%s13710_s9 + $0x18] sm:$0xff] }
 0x2cf   : > { %1283 = vmatprep.mubr.bf16.mxu1 %v13740_v56 }
 0x2d5   : > { %v1200_v34 = vpop.permute.xlu0 %1199  ;;  %v1205_v41 = vpop.permute.xlu1 %1204 }
 0x2d6   : > { %8213 = vmatmul.mubr.msk.bf16.gmra.mrb[4].mxu1 %vm13738_vm14, %v8625_v33 }
 0x2d7   : > { %1952 = vmatprep.mubr.bf16.mxu1 %v8628_v19 }
 0x2d9   : > { %v1210_v2 = vpop.permute.xlu1 %1209  ;;  %v1215_v4 = vpop.permute.xlu0 %1214 }
 0x3a1   : > { %v1275_v35 = vpop.f32.mrb[0].mxu1 }
 0x3a2   : > { %v1276_v38 = vadd.f32 %v1275_v35, %v1200_v34  ;;  %v1277_v40 = vpop.f32.mrb[1].mxu1  ;;  %v1364_v35 = vrot.slane %v1355_v31, %v9379_v9 }
 0x3a3   : > { %v1279_v42 = vpop.f32.mrb[2].mxu1  ;;  %v1278_v58 = vadd.f32 %v1277_v40, %v1200_v34  ;;  %v1360_v34 = vrot.slane %v1355_v31, %v9469_v37 }
 0x3a4   : > { %vm1294_vm15 = vcmp.gt.f32.partialorder %v1276_v38, 0.0  ;;  %v1303_v44 = vmul.f32 %v9617_v36, %v1276_v38  ;;  %v1280_v45 = vadd.f32 %v1279_v42, %v1205_v41  ;;  %v1281_v46 = vpop.f32.mrb[3].mxu1 }
 0x3a5   : > { %v1282_v59 = vadd.f32 %v1281_v46, %v1205_v41  ;;  %v1304_v60 = vmul.f32 %v9617_v36, %v1278_v58 }
 0x3a6   : > { %v9620_v48 = vsel %vm1294_vm15, %v1276_v38, %v1303_v44  ;;  %vm1296_vm2 = vcmp.gt.f32.partialorder %v1280_v45, 0.0  ;;  %v1305_v49 = vmul.f32 %v9617_v36, %v1280_v45 }
 0x3a7   : > { %1331 = vrot.lane.b32.xlu1 %v9620_v48, %s13757_s26  ;;  %v1306_v61 = vmul.f32 %v9617_v36, %v1282_v59  ;;  %vm1297_vm15 = vcmp.gt.f32.partialorder %v1282_v59, 0.0 }
 0x3a8   : > { %v9625_v50 = vsel %vm1296_vm2, %v1280_v45, %v1305_v49  ;;  %vm1295_vm2 = vcmp.gt.f32.partialorder %v1278_v58, 0.0 }
 0x3a9   : > { %v1285_v52 = vpop.f32.mrb[4].mxu1  ;;  %1333 = vrot.lane.b32.xlu0 %v9625_v50, %s13757_s26  ;;  %v9647_v62 = vsel %vm1295_vm2, %v1278_v58, %v1304_v60  ;;  %v9651_v0 = vsel %vm1297_vm15, %v1282_v59, %v1306_v61 }
 0x3aa   : > { %v1287_v53 = vpop.f32.mrb[5].mxu1  ;;  %v1286_v3 = vadd.f32 %v1285_v52, %v1210_v2 }
 0x3ab   : > { %v1289_v55 = vpop.f32.mrb[6].mxu1  ;;  %1383 = vrot.lane.b32.xlu1 %v9620_v48, %s13755_s2  ;;  %v1288_v54 = vadd.f32 %v1287_v53, %v1210_v2 }
 0x3ac   : > { %v1291_v57 = vpop.f32.mrb[7].mxu1  ;;  %v1290_v7 = vadd.f32 %v1289_v55, %v1215_v4  ;;  %v1307_v8 = vmul.f32 %v9617_v36, %v1286_v3  ;;  %vm1298_vm2 = vcmp.gt.f32.partialorder %v1286_v3, 0.0 }
 0x3ad   : > { %1385 = vrot.lane.b32.xlu0 %v9625_v50, %s13755_s2  ;;  %v1292_v14 = vadd.f32 %v1291_v57, %v1215_v4  ;;  %v1308_v15 = vmul.f32 %v9617_v36, %v1288_v54 }
 0x3ae   : > { %v1309_v10 = vmul.f32 %v9617_v36, %v1290_v7  ;;  %vm1300_vm15 = vcmp.gt.f32.partialorder %v1290_v7, 0.0  ;;  %v9669_v11 = vsel %vm1298_vm2, %v1286_v3, %v1307_v8  ;;  %vm1299_vm2 = vcmp.gt.f32.partialorder %v1288_v54, 0.0 }
 0x3af   : > { %1435 = vrot.lane.b32.xlu1 %v9620_v48, %s13753_s13  ;;  %v1310_v16 = vmul.f32 %v9617_v36, %v1292_v14  ;;  %v9691_v17 = vsel %vm1299_vm2, %v1288_v54, %v1308_v15  ;;  %v1407_v15 = vld [vmem:[#allocation11 + $0x1] ss:$8 sm:$0x3]  ;;  %vm1913_vm2 = vcmask 261120  }
 0x3b0   : > { %v9673_v12 = vsel %vm1300_vm15, %v1290_v7, %v1309_v10  ;;  %vm1301_vm15 = vcmp.gt.f32.partialorder %v1292_v14, 0.0 }
 0x3b1   : > { %1437 = vrot.lane.b32.xlu0 %v9625_v50, %s13753_s13  ;;  %v9695_v18 = vsel %vm1301_vm15, %v1292_v14, %v1310_v16 }
 0x3b3   : > { %1487 = vrot.lane.b32.xlu1 %v9620_v48, %s13751_s4 }
 0x3b5   : > { %1489 = vrot.lane.b32.xlu0 %v9625_v50, %s13751_s4 }
 0x3b7   : > { %1547 = vrot.lane.b32.xlu1 %v9620_v48, %s13749_s24 }
 0x3b9   : > { %1549 = vrot.lane.b32.xlu0 %v9625_v50, %s13749_s24 }
 0x3bb   : > { %1339 = vrot.lane.b32.xlu1 %v9647_v62, %s13757_s26 }
 0x3bd   : > { %1341 = vrot.lane.b32.xlu0 %v9651_v0, %s13757_s26 }
 0x3bf   : > { %1391 = vrot.lane.b32.xlu1 %v9647_v62, %s13755_s2 }
 0x3c1   : > { %1393 = vrot.lane.b32.xlu0 %v9651_v0, %s13755_s2 }
 0x3c3   : > { %1443 = vrot.lane.b32.xlu1 %v9647_v62, %s13753_s13 }
 0x3c5   : > { %1445 = vrot.lane.b32.xlu0 %v9651_v0, %s13753_s13 }
 0x3c7   : > { %1495 = vrot.lane.b32.xlu1 %v9647_v62, %s13751_s4 }
 0x3c9   : > { %1497 = vrot.lane.b32.xlu0 %v9651_v0, %s13751_s4 }
 0x3cb   : > { %1335 = vrot.lane.b32.xlu1 %v9669_v11, %s13757_s26 }
 0x3cd   : > { %1337 = vrot.lane.b32.xlu0 %v9673_v12, %s13757_s26 }
 0x3cf   : > { %1387 = vrot.lane.b32.xlu1 %v9669_v11, %s13755_s2 }
 0x3d1   : > { %1389 = vrot.lane.b32.xlu0 %v9673_v12, %s13755_s2 }
 0x3d3   : > { %1439 = vrot.lane.b32.xlu1 %v9669_v11, %s13753_s13 }
 0x3d5   : > { %1441 = vrot.lane.b32.xlu0 %v9673_v12, %s13753_s13 }
 0x3d7   : > { %1491 = vrot.lane.b32.xlu1 %v9669_v11, %s13751_s4 }
 0x3d9   : > { %1493 = vrot.lane.b32.xlu0 %v9673_v12, %s13751_s4 }
 0x3db   : > { %1343 = vrot.lane.b32.xlu1 %v9691_v17, %s13757_s26 }
 0x3dd   : > { %1345 = vrot.lane.b32.xlu0 %v9695_v18, %s13757_s26 }
 0x3df   : > { %1555 = vrot.lane.b32.xlu1 %v9647_v62, %s13749_s24 }
 0x3e1   : > { %1557 = vrot.lane.b32.xlu0 %v9651_v0, %s13749_s24 }
 0x3e3   : > { %1395 = vrot.lane.b32.xlu1 %v9691_v17, %s13755_s2 }
 0x3e5   : > { %1397 = vrot.lane.b32.xlu0 %v9695_v18, %s13755_s2 }
 0x3e7   : > { %1447 = vrot.lane.b32.xlu1 %v9691_v17, %s13753_s13 }
 0x3e9   : > { %1553 = vrot.lane.b32.xlu0 %v9673_v12, %s13749_s24 }
 0x3eb   : > { %1499 = vrot.lane.b32.xlu1 %v9691_v17, %s13751_s4 }
 0x3ed   : > { %1449 = vrot.lane.b32.xlu0 %v9695_v18, %s13753_s13 }
 0x3ef   : > { %1551 = vrot.lane.b32.xlu1 %v9669_v11, %s13749_s24 }
 0x3f1   : > { %1601 = vrot.lane.b32.xlu0 %v9625_v50, %s13746_s12 }
 0x3f3   : > { %1559 = vrot.lane.b32.xlu1 %v9691_v17, %s13749_s24 }
 0x3f5   : > { %1501 = vrot.lane.b32.xlu0 %v9695_v18, %s13751_s4 }
 0x3f7   : > { %1599 = vrot.lane.b32.xlu1 %v9620_v48, %s13746_s12 }
 0x3f9   : > { %1609 = vrot.lane.b32.xlu0 %v9651_v0, %s13746_s12 }
 0x3fb   : > { %1607 = vrot.lane.b32.xlu1 %v9647_v62, %s13746_s12 }
 0x3fd   : > { %1605 = vrot.lane.b32.xlu0 %v9673_v12, %s13746_s12 }
 0x3ff   : > { %1603 = vrot.lane.b32.xlu1 %v9669_v11, %s13746_s12 }
 0x401   : > { %1653 = vrot.lane.b32.xlu0 %v9625_v50, %s13742_s17 }
 0x403   : > { %1611 = vrot.lane.b32.xlu1 %v9691_v17, %s13746_s12 }
 0x405   : > { %1561 = vrot.lane.b32.xlu0 %v9695_v18, %s13749_s24 }
 0x407   : > { %1651 = vrot.lane.b32.xlu1 %v9620_v48, %s13742_s17 }
 0x409   : > { %1661 = vrot.lane.b32.xlu0 %v9651_v0, %s13742_s17 }
 0x40b   : > { %1659 = vrot.lane.b32.xlu1 %v9647_v62, %s13742_s17 }
 0x40d   : > { %1613 = vrot.lane.b32.xlu0 %v9695_v18, %s13746_s12 }
 0x40f   : > { %1655 = vrot.lane.b32.xlu1 %v9669_v11, %s13742_s17 }
 0x411   : > { %1657 = vrot.lane.b32.xlu0 %v9673_v12, %s13742_s17 }
 0x413   : > { %1663 = vrot.lane.b32.xlu1 %v9691_v17, %s13742_s17 }
 0x415   : > { %1665 = vrot.lane.b32.xlu0 %v9695_v18, %s13742_s17 }
 0x417   : > { %1703 = vrot.lane.b32.xlu1 %v9620_v48, %s13744_s22 }
 0x419   : > { %v1332_v20 = vpop.permute.xlu1 %1331  ;;  %1705 = vrot.lane.b32.xlu0 %v9625_v50, %s13744_s22 }
 0x41b   : > { %1711 = vrot.lane.b32.xlu1 %v9647_v62, %s13744_s22  ;;  %v1334_v21 = vpop.permute.xlu0 %1333 }
 0x41d   : > { %v9764_v22 = vpop.permute.xlu1 %1383  ;;  %1713 = vrot.lane.b32.xlu0 %v9651_v0, %s13744_s22 }
 0x41f   : > { %1707 = vrot.lane.b32.xlu1 %v9669_v11, %s13744_s22  ;;  %v1386_v23 = vpop.permute.xlu0 %1385 }
 0x421   : > { %v9770_v24 = vpop.permute.xlu1 %1435  ;;  %1709 = vrot.lane.b32.xlu0 %v9673_v12, %s13744_s22 }
 0x423   : > { %1715 = vrot.lane.b32.xlu1 %v9691_v17, %s13744_s22  ;;  %v9776_v25 = vpop.permute.xlu0 %1437 }
 0x425   : > { %v9781_v26 = vpop.permute.xlu1 %1487  ;;  %1717 = vrot.lane.b32.xlu0 %v9695_v18, %s13744_s22 }
 0x427   : > { %1865 = vperm.xlu1 %8575, %v1327_v51   ;;  %v9788_v28 = vpop.permute.xlu0 %1489 }
 0x429   : > { %v9793_v30 = vpop.permute.xlu1 %1547  ;;  %1870 = vperm.xlu0 %8574, %v1328_v27  }
 0x42b   : > { %1875 = vperm.xlu1 %8575, %v1329_v29   ;;  %v9798_v33 = vpop.permute.xlu0 %1549  ;;  %v1412_v29 = vrot.slane %v1407_v15, %v9469_v37 }
 0x42d   : > { %v1340_v36 = vpop.permute.xlu1 %1339  ;;  %1880 = vperm.xlu0 %8574, %v1330_v32  }
 0x42e   : > { %v1347_v38 = vsel %vm980_vm6, %v1332_v20, %v1340_v36  ;;  %v1351_v40 = vsel %vm980_vm6, %v1340_v36, %v1332_v20 }
 0x42f   : > { %v1342_v41 = vpop.permute.xlu0 %1341  ;;  %v1367_v45 = vmul.f32 %v1360_v34, %v1351_v40  ;;  %v1368_v46 = vmul.f32 %v1364_v35, %v1347_v38 }
 0x430   : > { %v1348_v42 = vsel %vm980_vm6, %v1334_v21, %v1342_v41  ;;  %v1352_v44 = vsel %vm980_vm6, %v1342_v41, %v1334_v21  ;;  %v1416_v21 = vrot.slane %v1407_v15, %v9379_v9 }
 0x431   : > { %v1369_v49 = vmul.f32 %v1360_v34, %v1352_v44  ;;  %v1370_v52 = vmul.f32 %v1364_v35, %v1348_v42  ;;  %v1392_v53 = vpop.permute.xlu1 %1391 }
 0x432   : > { %v1399_v31 = vsel %vm1003_vm3, %v9764_v22, %v1392_v53 }
 0x433   : > { %v1827_v55 = vpack.c.bf16 %v1369_v49, %v1367_v45  ;;  %v1394_v57 = vpop.permute.xlu0 %1393  ;;  %v1828_v58 = vpack.c.bf16 %v1370_v52, %v1368_v46  ;;  %v1403_v52 = vsel %vm1003_vm3, %v1392_v53, %v9764_v22 }
 0x434   : > { %v1400_v19 = vsel %vm1003_vm3, %v1386_v23, %v1394_v57  ;;  %v1404_v36 = vsel %vm1003_vm3, %v1394_v57, %v1386_v23  ;;  %v1459_v23 = vld [vmem:[#allocation11 + $0x2] ss:$8 sm:$0x3] }
 0x435   : > { %v9810_v59 = vpop.permute.xlu1 %1443  ;;  %1920 = vmatprep.subr.bf16.mxu1 %v1828_v58  ;;  %v1422_v38 = vmul.f32 %v1416_v21, %v1400_v19  ;;  %v1421_v58 = vmul.f32 %v1412_v29, %v1404_v36  ;;  %v1419_v19 = vmul.f32 %v1412_v29, %v1403_v52 }
 0x436   : > { %1921 = vmatpush1.bf16.msra.mxu1 %v1827_v55  ;;  %v1420_v55 = vmul.f32 %v1416_v21, %v1399_v31  ;;  %v1451_v31 = vsel %vm1027_vm4, %v9770_v24, %v9810_v59  ;;  %v1455_v52 = vsel %vm1027_vm4, %v9810_v59, %v9770_v24 }
 0x437   : > { %v1446_v60 = vpop.permute.xlu0 %1445 }
 0x438   : > { %v1456_v36 = vsel %vm1027_vm4, %v1446_v60, %v9776_v25 }
 0x439   : > { %v9812_v61 = vpop.permute.xlu1 %1495 }
 0x43b   : > { %v9814_v2 = vpop.permute.xlu0 %1497 }
 0x43d   : > { %v1336_v3 = vpop.permute.xlu1 %1335 }
 0x43f   : > { %v1338_v4 = vpop.permute.xlu0 %1337 }
 0x441   : > { %v1388_v7 = vpop.permute.xlu1 %1387 }
 0x443   : > { %v1390_v8 = vpop.permute.xlu0 %1389 }
 0x445   : > { %v9816_v10 = vpop.permute.xlu1 %1439 }
 0x447   : > { %v9818_v54 = vpop.permute.xlu0 %1441 }
 0x449   : > { %v9820_v14 = vpop.permute.xlu1 %1491 }
 0x44b   : > { %v9822_v16 = vpop.permute.xlu0 %1493 }
 0x44d   : > { %v1344_v20 = vpop.permute.xlu1 %1343 }
 0x44e   : > { %v1349_v51 = vsel %vm980_vm6, %v1336_v3, %v1344_v20  ;;  %v1353_v27 = vsel %vm980_vm6, %v1344_v20, %v1336_v3  ;;  %v1468_v20 = vrot.slane %v1459_v23, %v9379_v9 }
 0x44f   : > { %v1346_v32 = vpop.permute.xlu0 %1345  ;;  %v1371_v42 = vmul.f32 %v1360_v34, %v1353_v27  ;;  %v1372_v44 = vmul.f32 %v1364_v35, %v1349_v51  ;;  %v1831_v51 = vpack.c.bf16 %v1421_v58, %v1419_v19  ;;  %v1464_v27 = vrot.slane %v1459_v23, %v9469_v37 }
 0x450   : > { %v1350_v40 = vsel %vm980_vm6, %v1338_v4, %v1346_v32  ;;  %v1354_v41 = vsel %vm980_vm6, %v1346_v32, %v1338_v4  ;;  %v1452_v4 = vsel %vm1027_vm4, %v9776_v25, %v1446_v60  ;;  %v1511_v60 = vld [vmem:[#allocation11 + $0x3] ss:$8 sm:$0x3] }
 0x451   : > { %v1373_v45 = vmul.f32 %v1360_v34, %v1354_v41  ;;  %v1374_v46 = vmul.f32 %v1364_v35, %v1350_v40  ;;  %v9841_v49 = vpop.permute.xlu1 %1555  ;;  %v1832_v35 = vpack.c.bf16 %v1422_v38, %v1420_v55  ;;  %v1474_v38 = vmul.f32 %v1468_v20, %v1452_v4 }
 0x452   : > { %v1472_v55 = vmul.f32 %v1468_v20, %v1451_v31  ;;  %v1473_v25 = vmul.f32 %v1464_v27, %v1456_v36  ;;  %v1520_v19 = vrot.slane %v1511_v60, %v9379_v9 }
 0x453   : > { %v1829_v57 = vpack.c.bf16 %v1373_v45, %v1371_v42  ;;  %v9846_v3 = vpop.permute.xlu0 %1557  ;;  %v1830_v15 = vpack.c.bf16 %v1374_v46, %v1372_v44 }
 0x455   : > { %v1396_v34 = vpop.permute.xlu1 %1395  ;;  %1922 = vmatprep.subr.bf16.mxu1 %v1830_v15  ;;  %v1471_v15 = vmul.f32 %v1464_v27, %v1455_v52 }
 0x456   : > { %v1401_v22 = vsel %vm1003_vm3, %v1388_v7, %v1396_v34  ;;  %v1405_v53 = vsel %vm1003_vm3, %v1396_v34, %v1388_v7  ;;  %1923 = vmatpush1.bf16.msra.mxu1 %v1829_v57  ;;  %v1503_v34 = vsel %vm1051_vm5, %v9781_v26, %v9812_v61 }
 0x457   : > { %1924 = vmatprep.subr.bf16.mxu1 %v1832_v35  ;;  %v1398_v32 = vpop.permute.xlu0 %1397  ;;  %v1423_v41 = vmul.f32 %v1412_v29, %v1405_v53  ;;  %v1424_v42 = vmul.f32 %v1416_v21, %v1401_v22  ;;  %v1835_v4 = vpack.c.bf16 %v1473_v25, %v1471_v15  ;;  %v1508_v22 = vsel %vm1051_vm5, %v9814_v2, %v9788_v28 }
 0x458   : > { %v1402_v40 = vsel %vm1003_vm3, %v1390_v8, %v1398_v32  ;;  %v1406_v7 = vsel %vm1003_vm3, %v1398_v32, %v1390_v8  ;;  %v1504_v8 = vsel %vm1051_vm5, %v9788_v28, %v9814_v2  ;;  %v1507_v28 = vsel %vm1051_vm5, %v9812_v61, %v9781_v26 }
 0x459   : > { %v1425_v44 = vmul.f32 %v1412_v29, %v1406_v7  ;;  %v1426_v45 = vmul.f32 %v1416_v21, %v1402_v40  ;;  %v1448_v46 = vpop.permute.xlu1 %1447  ;;  %v1836_v29 = vpack.c.bf16 %v1474_v38, %v1472_v55  ;;  %v1526_v53 = vmul.f32 %v1520_v19, %v1504_v8 }
 0x45a   : > { %1925 = vmatpush1.bf16.msra.mxu1 %v1831_v51  ;;  %v1453_v24 = vsel %vm1027_vm4, %v9816_v10, %v1448_v46  ;;  %v1457_v59 = vsel %vm1027_vm4, %v1448_v46, %v9816_v10  ;;  %v1516_v7 = vrot.slane %v1511_v60, %v9469_v37  ;;  %v1524_v2 = vmul.f32 %v1520_v19, %v1503_v34 }
 0x45b   : > { %v1833_v58 = vpack.c.bf16 %v1425_v44, %v1423_v41  ;;  %v9872_v23 = vpop.permute.xlu0 %1553  ;;  %v1834_v57 = vpack.c.bf16 %v1426_v45, %v1424_v42  ;;  %v1475_v31 = vmul.f32 %v1464_v27, %v1457_v59  ;;  %v1476_v32 = vmul.f32 %v1468_v20, %v1453_v24  ;;  %v1571_v24 = vld [vmem:[#allocation11 + $0x5] ss:$8 sm:$0x3] }
 0x45c   : > { %v1525_v45 = vmul.f32 %v1516_v7, %v1508_v22  ;;  %v1840_v46 = vpack.c.bf16 %v1526_v53, %v1524_v2  ;;  %v1580_v34 = vrot.slane %v1571_v24, %v9379_v9  ;;  %v1576_v22 = vrot.slane %v1571_v24, %v9469_v37 }
 0x45d   : > { %v1500_v21 = vpop.permute.xlu1 %1499  ;;  %1926 = vmatprep.subr.bf16.mxu1 %v1834_v57 }
 0x45e   : > { %1927 = vmatpush1.bf16.msra.mxu1 %v1833_v58  ;;  %v1509_v52 = vsel %vm1051_vm5, %v1500_v21, %v9820_v14 }
 0x45f   : > { %1928 = vmatprep.subr.bf16.mxu1 %v1836_v29  ;;  %v1450_v35 = vpop.permute.xlu0 %1449  ;;  %v1527_v60 = vmul.f32 %v1516_v7, %v1509_v52 }
 0x460   : > { %v1454_v51 = vsel %vm1027_vm4, %v9818_v54, %v1450_v35  ;;  %v1458_v10 = vsel %vm1027_vm4, %v1450_v35, %v9818_v54  ;;  %v1567_v35 = vsel %vm1077_vm7, %v9841_v49, %v9793_v30 }
 0x461   : > { %v1477_v36 = vmul.f32 %v1464_v27, %v1458_v10  ;;  %v1478_v38 = vmul.f32 %v1468_v20, %v1454_v51  ;;  %v1552_v40 = vpop.permute.xlu1 %1551  ;;  %v1523_v27 = vmul.f32 %v1516_v7, %v1507_v28  ;;  %v1505_v20 = vsel %vm1051_vm5, %v9820_v14, %v1500_v21 }
 0x462   : > { %1929 = vmatpush1.bf16.msra.mxu1 %v1835_v4  ;;  %v1528_v58 = vmul.f32 %v1520_v19, %v1505_v20  ;;  %v1844_v4 = vpack.c.bf16 %v9651_v0, %v9647_v62  ;;  %v1564_v62 = vsel %vm1077_vm7, %v9798_v33, %v9846_v3  ;;  %v1843_v0 = vpack.c.bf16 %v9625_v50, %v9620_v48  ;;  %v1623_v50 = vld [vmem:[#allocation11 + $0x6] ss:$8 sm:$0x3] }
 0x463   : > { %v1837_v41 = vpack.c.bf16 %v1477_v36, %v1475_v31  ;;  %v9904_v42 = vpop.permute.xlu0 %1601  ;;  %v1838_v44 = vpack.c.bf16 %v1478_v38, %v1476_v32  ;;  %v1839_v61 = vpack.c.bf16 %v1525_v45, %v1523_v27  ;;  %v1846_v10 = vpack.c.bf16 %v9695_v18, %v9691_v17 }
 0x464   : > { %v1563_v31 = vsel %vm1077_vm7, %v9793_v30, %v9841_v49  ;;  %v1584_v32 = vmul.f32 %v1580_v34, %v1567_v35  ;;  %v1585_v36 = vmul.f32 %v1576_v22, %v1564_v62  ;;  %v1628_v2 = vrot.slane %v1623_v50, %v9469_v37 }
 0x465   : > { %v1560_v54 = vpop.permute.xlu1 %1559  ;;  %1930 = vmatprep.subr.bf16.mxu1 %v1838_v44  ;;  %v1583_v38 = vmul.f32 %v1576_v22, %v1563_v31 }
 0x466   : > { %1931 = vmatpush1.bf16.msra.mxu1 %v1837_v41  ;;  %v1565_v48 = vsel %vm1077_vm7, %v1552_v40, %v1560_v54  ;;  %v1569_v18 = vsel %vm1077_vm7, %v1560_v54, %v1552_v40  ;;  %v1632_v41 = vrot.slane %v1623_v50, %v9379_v9 }
 0x467   : > { %1932 = vmatprep.subr.bf16.mxu1 %v1840_v46  ;;  %v1502_v26 = vpop.permute.xlu0 %1501  ;;  %v1847_v49 = vpack.c.bf16 %v1585_v36, %v1583_v38  ;;  %v1587_v28 = vmul.f32 %v1576_v22, %v1565_v48  ;;  %v1588_v54 = vmul.f32 %v1580_v34, %v1569_v18 }
 0x468   : > { %v1506_v55 = vsel %vm1051_vm5, %v9822_v16, %v1502_v26  ;;  %v1510_v25 = vsel %vm1051_vm5, %v1502_v26, %v9822_v16  ;;  %v1568_v16 = vsel %vm1077_vm7, %v9846_v3, %v9798_v33  ;;  %v1845_v3 = vpack.c.bf16 %v9673_v12, %v9669_v11 }
 0x469   : > { %v1529_v57 = vmul.f32 %v1516_v7, %v1510_v25  ;;  %v1530_v15 = vmul.f32 %v1520_v19, %v1506_v55  ;;  %v1600_v8 = vpop.permute.xlu1 %1599  ;;  %v1586_v53 = vmul.f32 %v1580_v34, %v1568_v16 }
 0x46a   : > { %1933 = vmatpush1.bf16.msra.mxu1 %v1839_v61 }
 0x46b   : > { %v1841_v29 = vpack.c.bf16 %v1529_v57, %v1527_v60  ;;  %v1610_v14 = vpop.permute.xlu0 %1609  ;;  %v1842_v21 = vpack.c.bf16 %v1530_v15, %v1528_v58  ;;  %v1848_v17 = vpack.c.bf16 %v1586_v53, %v1584_v32  ;;  %v1675_v15 = vld [vmem:[#allocation11 + $0x7] ss:$8 sm:$0x3] }
 0x46c   : > { %v1620_v11 = vsel %vm1101_vm8, %v1610_v14, %v9904_v42  ;;  %v1616_v26 = vsel %vm1101_vm8, %v9904_v42, %v1610_v14  ;;  %v1680_v31 = vrot.slane %v1675_v15, %v9469_v37 }
 0x46d   : > { %v1608_v59 = vpop.permute.xlu1 %1607  ;;  %1934 = vmatprep.subr.bf16.mxu1 %v1842_v21  ;;  %v1638_v61 = vmul.f32 %v1632_v41, %v1620_v11 }
 0x46e   : > { %1935 = vmatpush1.bf16.msra.mxu1 %v1841_v29  ;;  %v1619_v30 = vsel %vm1101_vm8, %v1608_v59, %v1600_v8  ;;  %v1615_v12 = vsel %vm1101_vm8, %v1600_v8, %v1608_v59  ;;  %v1684_v59 = vrot.slane %v1675_v15, %v9379_v9 }
 0x46f   : > { %1936 = vmatprep.subr.bf16.mxu1 %v1844_v4  ;;  %v9925_v19 = vpop.permute.xlu0 %1605  ;;  %v1636_v46 = vmul.f32 %v1632_v41, %v1619_v30  ;;  %v1635_v55 = vmul.f32 %v1628_v2, %v1615_v12 }
 0x471   : > { %v1604_v51 = vpop.permute.xlu1 %1603  ;;  %v1852_v21 = vpack.c.bf16 %v1638_v61, %v1636_v46  ;;  %v8626_v61 = vld [vmem:[%s13709_s8] ss:$12 sps:$4 sm:$0xff]  }
 0x472   : > { %1937 = vmatpush1.bf16.msra.mxu1 %v1843_v0 }
 0x473   : > { %1938 = vmatprep.subr.bf16.mxu1 %v1846_v10  ;;  %v1654_v33 = vpop.permute.xlu0 %1653 }
 0x475   : > { %v1612_v7 = vpop.permute.xlu1 %1611 }
 0x476   : > { %1939 = vmatpush1.bf16.msra.mxu1 %v1845_v3  ;;  %v1617_v57 = vsel %vm1101_vm8, %v1604_v51, %v1612_v7  ;;  %v1621_v8 = vsel %vm1101_vm8, %v1612_v7, %v1604_v51 }
 0x477   : > { %1940 = vmatprep.subr.bf16.mxu1 %v1848_v17  ;;  %v1562_v44 = vpop.permute.xlu0 %1561  ;;  %v1639_v24 = vmul.f32 %v1628_v2, %v1617_v57  ;;  %v1640_v16 = vmul.f32 %v1632_v41, %v1621_v8 }
 0x478   : > { %v1566_v40 = vsel %vm1077_vm7, %v9872_v23, %v1562_v44  ;;  %v1570_v45 = vsel %vm1077_vm7, %v1562_v44, %v9872_v23  ;;  %v1637_v23 = vmul.f32 %v1628_v2, %v1616_v26 }
 0x479   : > { %v1589_v27 = vmul.f32 %v1576_v22, %v1566_v40  ;;  %v1590_v20 = vmul.f32 %v1580_v34, %v1570_v45  ;;  %v1652_v52 = vpop.permute.xlu1 %1651  ;;  %v1727_v45 = vld [vmem:[#allocation11 + $0x10] ss:$8 sm:$0x3] }
 0x47a   : > { %1941 = vmatpush1.bf16.msra.mxu1 %v1847_v49  ;;  %v1851_v14 = vpack.c.bf16 %v1637_v23, %v1635_v55 }
 0x47b   : > { %v1849_v25 = vpack.c.bf16 %v1589_v27, %v1587_v28  ;;  %v1662_v60 = vpop.permute.xlu0 %1661  ;;  %v1850_v58 = vpack.c.bf16 %v1590_v20, %v1588_v54  ;;  %v1732_v20 = vrot.slane %v1727_v45, %v9469_v37 }
 0x47c   : > { %v1672_v34 = vsel %vm1125_vm11, %v1662_v60, %v1654_v33  ;;  %v1668_v32 = vsel %vm1125_vm11, %v1654_v33, %v1662_v60  ;;  %v8629_v60 = vld [vmem:[%s13709_s8 + $0x1c] ss:$12 sps:$4 sm:$0xff]  }
 0x47d   : > { %v1660_v29 = vpop.permute.xlu1 %1659  ;;  %1942 = vmatprep.subr.bf16.mxu1 %v1850_v58  ;;  %v1690_v36 = vmul.f32 %v1684_v59, %v1672_v34  ;;  %v1689_v17 = vmul.f32 %v1680_v31, %v1668_v32 }
 0x47e   : > { %v1671_v42 = vsel %vm1125_vm11, %v1660_v29, %v1652_v52  ;;  %1943 = vmatpush1.bf16.msra.mxu1 %v1849_v25  ;;  %v1667_v0 = vsel %vm1125_vm11, %v1652_v52, %v1660_v29  ;;  %v1736_v52 = vrot.slane %v1727_v45, %v9379_v9 }
 0x47f   : > { %1944 = vmatprep.subr.bf16.mxu1 %v1852_v21  ;;  %v1614_v4 = vpop.permute.xlu0 %1613  ;;  %v1688_v22 = vmul.f32 %v1684_v59, %v1671_v42  ;;  %v1687_v38 = vmul.f32 %v1680_v31, %v1667_v0 }
 0x480   : > { %v1618_v35 = vsel %vm1101_vm8, %v9925_v19, %v1614_v4  ;;  %v1622_v62 = vsel %vm1101_vm8, %v1614_v4, %v9925_v19 }
 0x481   : > { %v1641_v53 = vmul.f32 %v1628_v2, %v1618_v35  ;;  %v1642_v51 = vmul.f32 %v1632_v41, %v1622_v62  ;;  %v1656_v10 = vpop.permute.xlu1 %1655  ;;  %v1856_v19 = vpack.c.bf16 %v1690_v36, %v1688_v22  ;;  %v1855_v28 = vpack.c.bf16 %v1689_v17, %v1687_v38 }
 0x482   : > { %1945 = vmatpush1.bf16.msra.mxu1 %v1851_v14 }
 0x483   : > { %v1853_v48 = vpack.c.bf16 %v1641_v53, %v1639_v24  ;;  %v1658_v50 = vpop.permute.xlu0 %1657  ;;  %v1854_v3 = vpack.c.bf16 %v1642_v51, %v1640_v16  ;;  %v8631_v16 = vld [vmem:[%s13709_s8 + $0x18] ss:$12 sps:$4 sm:$0xff]  }
 0x485   : > { %v1664_v7 = vpop.permute.xlu1 %1663  ;;  %1946 = vmatprep.subr.bf16.mxu1 %v1854_v3 }
 0x486   : > { %v1669_v18 = vsel %vm1125_vm11, %v1656_v10, %v1664_v7  ;;  %v1673_v30 = vsel %vm1125_vm11, %v1664_v7, %v1656_v10  ;;  %1947 = vmatpush1.bf16.msra.mxu1 %v1853_v48  ;;  %v8632_v48 = vld [vmem:[%s13709_s8 + $0x8] ss:$12 sps:$4 sm:$0xff]   ;;  %v10033_v7 = vstv %s8174_s21  ;;  %s13828_s21 = sld [smem:[#allocation40_spill]] }
 0x487   : > { %1948 = vmatprep.subr.bf16.mxu1 %v1856_v19  ;;  %v1666_v49 = vpop.permute.xlu0 %1665  ;;  %v1691_v41 = vmul.f32 %v1680_v31, %v1669_v18  ;;  %v1692_v44 = vmul.f32 %v1684_v59, %v1673_v30 }
 0x488   : > { %v1670_v33 = vsel %vm1125_vm11, %v1658_v50, %v1666_v49  ;;  %v1674_v2 = vsel %vm1125_vm11, %v1666_v49, %v1658_v50  ;;  %v8633_v50 = vld [vmem:[%s13709_s8 + $0x20] ss:$12 sps:$4 sm:$0xff]  }
 0x489   : > { %v1693_v11 = vmul.f32 %v1680_v31, %v1670_v33  ;;  %v1694_v12 = vmul.f32 %v1684_v59, %v1674_v2  ;;  %v1704_v40 = vpop.permute.xlu1 %1703 }
 0x48a   : > { %1949 = vmatpush1.bf16.msra.mxu1 %v1855_v28 }
 0x48b   : > { %v1857_v54 = vpack.c.bf16 %v1693_v11, %v1691_v41  ;;  %v1706_v46 = vpop.permute.xlu0 %1705  ;;  %v1858_v27 = vpack.c.bf16 %v1694_v12, %v1692_v44 }
 0x48d   : > { %v1712_v26 = vpop.permute.xlu1 %1711  ;;  %1950 = vmatprep.subr.bf16.mxu1 %v1858_v27 }
 0x48e   : > { %v1719_v55 = vsel %vm1149_vm12, %v1704_v40, %v1712_v26  ;;  %v1723_v25 = vsel %vm1149_vm12, %v1712_v26, %v1704_v40  ;;  %1951 = vmatpush1.bf16.msra.mxu1 %v1857_v54 }
 0x48f   : > { %v1714_v58 = vpop.permute.xlu0 %1713  ;;  %v1739_v23 = vmul.f32 %v1732_v20, %v1719_v55  ;;  %v1740_v8 = vmul.f32 %v1736_v52, %v1723_v25 }
 0x490   : > { %v1720_v57 = vsel %vm1149_vm12, %v1706_v46, %v1714_v58  ;;  %v1724_v15 = vsel %vm1149_vm12, %v1714_v58, %v1706_v46 }
 0x491   : > { %v1741_v29 = vmul.f32 %v1732_v20, %v1720_v57  ;;  %v1742_v21 = vmul.f32 %v1736_v52, %v1724_v15  ;;  %v1708_v42 = vpop.permute.xlu1 %1707  ;;  %1953 = vmatmul.mubr.bf16.vlgmr.msra.gmra.mrb[8].mxu1 %v8626_v61 }
 0x492   : > { %1962 = vmatprep.mubr.bf16.mxu1 %v8629_v60 }
 0x493   : > { %v1859_v14 = vpack.c.bf16 %v1741_v29, %v1739_v23  ;;  %v1710_v24 = vpop.permute.xlu0 %1709  ;;  %v1860_v59 = vpack.c.bf16 %v1742_v21, %v1740_v8 }
 0x495   : > { %v1716_v4 = vpop.permute.xlu1 %1715  ;;  %1973 = vmatprep.subr.bf16.mxu1 %v1860_v59  ;;  %v10170_v59 = vld [vmem:[%s13711_s10] sm:$0x77] }
 0x496   : > { %v1721_v34 = vsel %vm1149_vm12, %v1708_v42, %v1716_v4  ;;  %v1725_v35 = vsel %vm1149_vm12, %v1716_v4, %v1708_v42  ;;  %1974 = vmatpush1.bf16.msra.mxu1 %v1859_v14  ;;  %v8223_v4 = vcombine.high %v10170_v59, %v10170_v59 }
 0x497   : > { %v1718_v62 = vpop.permute.xlu0 %1717  ;;  %v1743_v53 = vmul.f32 %v1732_v20, %v1721_v34  ;;  %v1744_v51 = vmul.f32 %v1736_v52, %v1725_v35 }
 0x498   : > { %v1722_v0 = vsel %vm1149_vm12, %v1710_v24, %v1718_v62  ;;  %v1726_v22 = vsel %vm1149_vm12, %v1718_v62, %v1710_v24 }
 0x499   : > { %v1745_v10 = vmul.f32 %v1732_v20, %v1722_v0  ;;  %v1746_v31 = vmul.f32 %v1736_v52, %v1726_v22  ;;  %1963 = vmatmul.mubr.bf16.gmra.mrb[12].mxu1 %v8631_v16 }
 0x49a   : > { %2005 = vmatprep.mubr.bf16.mxu1 %v13740_v56 }
 0x49b   : > { %v1861_v32 = vpack.c.bf16 %v1745_v10, %v1743_v53  ;;  %v1862_v36 = vpack.c.bf16 %v1746_v31, %v1744_v51  ;;  %v2053_v53 = vld [vmem:[%s13712_s11] sm:$0x1f] }
 0x49d   : > { %1975 = vmatprep.subr.bf16.mxu1 %v1862_v36 }
 0x49e   : > { %1976 = vmatpush1.bf16.msra.mxu1 %v1861_v32  ;;  %v2078_v32 = vld [vmem:[#allocation11] ss:$8 sm:$0x3] }
 0x4a1   : > { %8220 = vmatmul.mubr.msk.bf16.vlgmr.msra.gmra.mrb[8].mxu1 %vm1913_vm2, %v8632_v48  ;;  %v2083_v48 = vrot.slane %v2078_v32, %v9469_v37 }
 0x4a2   : > { %2015 = vmatprep.mubr.bf16.mxu1 %v13740_v56 }
 0x4a6   : > { %v1866_v3 = vpop.permute.xlu1 %1865 }
 0x4a8   : > { %v1871_v18 = vpop.permute.xlu0 %1870 }
 0x4a9   : > { %8221 = vmatmul.mubr.msk.bf16.gmra.mrb[12].mxu1 %vm1913_vm2, %v8633_v50  ;;  %v2087_v50 = vrot.slane %v2078_v32, %v9379_v9 }
 0x4aa   : > { %v1876_v61 = vpop.permute.xlu1 %1875  ;;  %2636 = vmatprep.mubr.bf16.mxu1 %v8223_v4 }
 0x4ac   : > { %v1881_v25 = vpop.permute.xlu0 %1880 }
 0x574   : > { %v2007_v38 = vpop.f32.mrb[8].mxu1 }
 0x575   : > { %v8389_v19 = vadd.f32 %v2007_v38, %v1866_v3  ;;  %v2009_v17 = vpop.f32.mrb[9].mxu1 }
 0x576   : > { %v2011_v30 = vpop.f32.mrb[10].mxu1  ;;  %v8390_v54 = vadd.f32 %v2009_v17, %v1866_v3 }
 0x577   : > { %vm2026_vm15 = vcmp.gt.f32.partialorder %v8389_v19, 0.0  ;;  %v2035_v49 = vmul.f32 %v8389_v19, %v10033_v7  ;;  %v8391_v28 = vadd.f32 %v2011_v30, %v1871_v18  ;;  %v2013_v33 = vpop.f32.mrb[11].mxu1 }
 0x578   : > { %v8392_v46 = vadd.f32 %v2013_v33, %v1871_v18  ;;  %v2036_v27 = vmul.f32 %v8390_v54, %v10033_v7 }
 0x579   : > { %v10036_v2 = vsel %vm2026_vm15, %v8389_v19, %v2035_v49  ;;  %vm2028_vm14 = vcmp.gt.f32.partialorder %v8391_v28, 0.0  ;;  %v2037_v41 = vmul.f32 %v8391_v28, %v10033_v7 }
 0x57a   : > { %2054 = vrot.lane.b32.xlu1 %v10036_v2, %s13757_s26  ;;  %v2038_v20 = vmul.f32 %v8392_v46, %v10033_v7  ;;  %vm2029_vm15 = vcmp.gt.f32.partialorder %v8392_v46, 0.0 }
 0x57b   : > { %v10041_v44 = vsel %vm2028_vm14, %v8391_v28, %v2037_v41  ;;  %vm2027_vm14 = vcmp.gt.f32.partialorder %v8390_v54, 0.0 }
 0x57c   : > { %v2017_v11 = vpop.f32.mrb[12].mxu1  ;;  %2056 = vrot.lane.b32.xlu0 %v10041_v44, %s13757_s26  ;;  %v10063_v52 = vsel %vm2027_vm14, %v8390_v54, %v2036_v27  ;;  %v10067_v26 = vsel %vm2029_vm15, %v8392_v46, %v2038_v20 }
 0x57d   : > { %v2019_v12 = vpop.f32.mrb[13].mxu1  ;;  %v8393_v55 = vadd.f32 %v2017_v11, %v1876_v61 }
 0x57e   : > { %v2021_v40 = vpop.f32.mrb[14].mxu1  ;;  %2106 = vrot.lane.b32.xlu1 %v10036_v2, %s13755_s2  ;;  %v8394_v8 = vadd.f32 %v2019_v12, %v1876_v61 }
 0x57f   : > { %v2023_v45 = vpop.f32.mrb[15].mxu1  ;;  %v8395_v60 = vadd.f32 %v2021_v40, %v1881_v25  ;;  %v2039_v58 = vmul.f32 %v8393_v55, %v10033_v7  ;;  %vm2030_vm14 = vcmp.gt.f32.partialorder %v8393_v55, 0.0 }
 0x580   : > { %2108 = vrot.lane.b32.xlu0 %v10041_v44, %s13755_s2  ;;  %v8396_v29 = vadd.f32 %v2023_v45, %v1881_v25  ;;  %v2040_v21 = vmul.f32 %v8394_v8, %v10033_v7 }
 0x581   : > { %v2041_v57 = vmul.f32 %v8395_v60, %v10033_v7  ;;  %vm2032_vm15 = vcmp.gt.f32.partialorder %v8395_v60, 0.0  ;;  %v10089_v15 = vsel %vm2030_vm14, %v8393_v55, %v2039_v58  ;;  %vm2031_vm14 = vcmp.gt.f32.partialorder %v8394_v8, 0.0 }
 0x582   : > { %2158 = vrot.lane.b32.xlu1 %v10036_v2, %s13753_s13  ;;  %v2042_v42 = vmul.f32 %v8396_v29, %v10033_v7  ;;  %v10111_v14 = vsel %vm2031_vm14, %v8394_v8, %v2040_v21  ;;  %v2130_v21 = vld [vmem:[#allocation11 + $0x1] ss:$8 sm:$0x3]  ;;  %vm10543_vm14 = vmpackc.low %vm8972_vm9, %vm960_vm1  ;;  %vm13833_vm9 = vcmask 588800  }
 0x583   : > { %v10093_v23 = vsel %vm2032_vm15, %v8395_v60, %v2041_v57  ;;  %vm2033_vm15 = vcmp.gt.f32.partialorder %v8396_v29, 0.0 }
 0x584   : > { %2160 = vrot.lane.b32.xlu0 %v10041_v44, %s13753_s13  ;;  %v10115_v24 = vsel %vm2033_vm15, %v8396_v29, %v2042_v42  ;;  %vm13834_vm15 = vmmov %vm13833_vm9 }
 0x586   : > { %2210 = vrot.lane.b32.xlu1 %v10036_v2, %s13751_s4 }
 0x588   : > { %2212 = vrot.lane.b32.xlu0 %v10041_v44, %s13751_s4 }
 0x58a   : > { %2270 = vrot.lane.b32.xlu1 %v10036_v2, %s13749_s24 }
 0x58c   : > { %2272 = vrot.lane.b32.xlu0 %v10041_v44, %s13749_s24 }
 0x58e   : > { %2062 = vrot.lane.b32.xlu1 %v10063_v52, %s13757_s26 }
 0x590   : > { %2064 = vrot.lane.b32.xlu0 %v10067_v26, %s13757_s26 }
 0x592   : > { %2114 = vrot.lane.b32.xlu1 %v10063_v52, %s13755_s2 }
 0x594   : > { %2116 = vrot.lane.b32.xlu0 %v10067_v26, %s13755_s2 }
 0x596   : > { %2166 = vrot.lane.b32.xlu1 %v10063_v52, %s13753_s13 }
 0x598   : > { %2168 = vrot.lane.b32.xlu0 %v10067_v26, %s13753_s13 }
 0x59a   : > { %2218 = vrot.lane.b32.xlu1 %v10063_v52, %s13751_s4 }
 0x59c   : > { %2220 = vrot.lane.b32.xlu0 %v10067_v26, %s13751_s4 }
 0x59e   : > { %2278 = vrot.lane.b32.xlu1 %v10063_v52, %s13749_s24 }
 0x5a0   : > { %2280 = vrot.lane.b32.xlu0 %v10067_v26, %s13749_s24 }
 0x5a2   : > { %2058 = vrot.lane.b32.xlu1 %v10089_v15, %s13757_s26 }
 0x5a4   : > { %2060 = vrot.lane.b32.xlu0 %v10093_v23, %s13757_s26 }
 0x5a6   : > { %2110 = vrot.lane.b32.xlu1 %v10089_v15, %s13755_s2 }
 0x5a8   : > { %2112 = vrot.lane.b32.xlu0 %v10093_v23, %s13755_s2 }
 0x5aa   : > { %2162 = vrot.lane.b32.xlu1 %v10089_v15, %s13753_s13 }
 0x5ac   : > { %2164 = vrot.lane.b32.xlu0 %v10093_v23, %s13753_s13 }
 0x5ae   : > { %2214 = vrot.lane.b32.xlu1 %v10089_v15, %s13751_s4 }
 0x5b0   : > { %2216 = vrot.lane.b32.xlu0 %v10093_v23, %s13751_s4 }
 0x5b2   : > { %2066 = vrot.lane.b32.xlu1 %v10111_v14, %s13757_s26 }
 0x5b4   : > { %2068 = vrot.lane.b32.xlu0 %v10115_v24, %s13757_s26 }
 0x5b6   : > { %2274 = vrot.lane.b32.xlu1 %v10089_v15, %s13749_s24 }
 0x5b8   : > { %2276 = vrot.lane.b32.xlu0 %v10093_v23, %s13749_s24 }
 0x5ba   : > { %2118 = vrot.lane.b32.xlu1 %v10111_v14, %s13755_s2 }
 0x5bc   : > { %2120 = vrot.lane.b32.xlu0 %v10115_v24, %s13755_s2 }
 0x5be   : > { %2170 = vrot.lane.b32.xlu1 %v10111_v14, %s13753_s13 }
 0x5c0   : > { %2324 = vrot.lane.b32.xlu0 %v10041_v44, %s13746_s12 }
 0x5c2   : > { %2222 = vrot.lane.b32.xlu1 %v10111_v14, %s13751_s4 }
 0x5c4   : > { %2172 = vrot.lane.b32.xlu0 %v10115_v24, %s13753_s13 }
 0x5c6   : > { %2282 = vrot.lane.b32.xlu1 %v10111_v14, %s13749_s24 }
 0x5c8   : > { %2332 = vrot.lane.b32.xlu0 %v10067_v26, %s13746_s12 }
 0x5ca   : > { %2322 = vrot.lane.b32.xlu1 %v10036_v2, %s13746_s12 }
 0x5cc   : > { %2224 = vrot.lane.b32.xlu0 %v10115_v24, %s13751_s4 }
 0x5ce   : > { %2330 = vrot.lane.b32.xlu1 %v10063_v52, %s13746_s12 }
 0x5d0   : > { %2328 = vrot.lane.b32.xlu0 %v10093_v23, %s13746_s12 }
 0x5d2   : > { %2326 = vrot.lane.b32.xlu1 %v10089_v15, %s13746_s12 }
 0x5d4   : > { %2376 = vrot.lane.b32.xlu0 %v10041_v44, %s13742_s17 }
 0x5d6   : > { %2334 = vrot.lane.b32.xlu1 %v10111_v14, %s13746_s12 }
 0x5d8   : > { %2384 = vrot.lane.b32.xlu0 %v10067_v26, %s13742_s17 }
 0x5da   : > { %2374 = vrot.lane.b32.xlu1 %v10036_v2, %s13742_s17 }
 0x5dc   : > { %2284 = vrot.lane.b32.xlu0 %v10115_v24, %s13749_s24 }
 0x5de   : > { %2382 = vrot.lane.b32.xlu1 %v10063_v52, %s13742_s17 }
 0x5e0   : > { %2380 = vrot.lane.b32.xlu0 %v10093_v23, %s13742_s17 }
 0x5e2   : > { %2378 = vrot.lane.b32.xlu1 %v10089_v15, %s13742_s17 }
 0x5e4   : > { %2336 = vrot.lane.b32.xlu0 %v10115_v24, %s13746_s12 }
 0x5e6   : > { %2386 = vrot.lane.b32.xlu1 %v10111_v14, %s13742_s17 }
 0x5e8   : > { %2428 = vrot.lane.b32.xlu0 %v10041_v44, %s13744_s22 }
 0x5ea   : > { %2426 = vrot.lane.b32.xlu1 %v10036_v2, %s13744_s22 }
 0x5ec   : > { %v2055_v16 = vpop.permute.xlu1 %2054  ;;  %2388 = vrot.lane.b32.xlu0 %v10115_v24, %s13742_s17 }
 0x5ee   : > { %2434 = vrot.lane.b32.xlu1 %v10063_v52, %s13744_s22  ;;  %v2057_v34 = vpop.permute.xlu0 %2056 }
 0x5f0   : > { %v10184_v35 = vpop.permute.xlu1 %2106  ;;  %2436 = vrot.lane.b32.xlu0 %v10067_v26, %s13744_s22 }
 0x5f2   : > { %2430 = vrot.lane.b32.xlu1 %v10089_v15, %s13744_s22  ;;  %v2109_v62 = vpop.permute.xlu0 %2108 }
 0x5f4   : > { %v10190_v0 = vpop.permute.xlu1 %2158  ;;  %2432 = vrot.lane.b32.xlu0 %v10093_v23, %s13744_s22 }
 0x5f6   : > { %2438 = vrot.lane.b32.xlu1 %v10111_v14, %s13744_s22  ;;  %v10196_v22 = vpop.permute.xlu0 %2160 }
 0x5f8   : > { %v10201_v51 = vpop.permute.xlu1 %2210  ;;  %2440 = vrot.lane.b32.xlu0 %v10115_v24, %s13744_s22 }
 0x5fa   : > { %2588 = vperm.xlu1 %8575, %v2053_v53   ;;  %v10205_v10 = vpop.permute.xlu0 %2212 }
 0x5fc   : > { %v10207_v31 = vpop.permute.xlu1 %2270 }
 0x5fe   : > { %v10209_v36 = vpop.permute.xlu0 %2272 }
 0x600   : > { %v2063_v3 = vpop.permute.xlu1 %2062 }
 0x601   : > { %v2070_v38 = vsel %vm980_vm6, %v2055_v16, %v2063_v3  ;;  %v2074_v7 = vsel %vm980_vm6, %v2063_v3, %v2055_v16  ;;  %v2135_v3 = vrot.slane %v2130_v21, %v9469_v37 }
 0x602   : > { %v2065_v19 = vpop.permute.xlu0 %2064  ;;  %v2090_v30 = vmul.f32 %v2083_v48, %v2074_v7  ;;  %v2091_v49 = vmul.f32 %v2087_v50, %v2070_v38 }
 0x603   : > { %v2071_v17 = vsel %vm980_vm6, %v2057_v34, %v2065_v19  ;;  %v2075_v18 = vsel %vm980_vm6, %v2065_v19, %v2057_v34  ;;  %v2139_v34 = vrot.slane %v2130_v21, %v9379_v9 }
 0x604   : > { %v2092_v28 = vmul.f32 %v2083_v48, %v2075_v18  ;;  %v2093_v33 = vmul.f32 %v2087_v50, %v2071_v17  ;;  %v2115_v41 = vpop.permute.xlu1 %2114 }
 0x605   : > { %v2122_v38 = vsel %vm1003_vm3, %v10184_v35, %v2115_v41 }
 0x606   : > { %v2550_v11 = vpack.c.bf16 %v2092_v28, %v2090_v30  ;;  %v2117_v12 = vpop.permute.xlu0 %2116  ;;  %v2551_v40 = vpack.c.bf16 %v2093_v33, %v2091_v49  ;;  %v2143_v21 = vmul.f32 %v2139_v34, %v2122_v38 }
 0x607   : > { %v2123_v4 = vsel %vm1003_vm3, %v2109_v62, %v2117_v12  ;;  %v2127_v19 = vsel %vm1003_vm3, %v2117_v12, %v2109_v62  ;;  %v2182_v62 = vld [vmem:[#allocation11 + $0x2] ss:$8 sm:$0x3] }
 0x608   : > { %v10221_v45 = vpop.permute.xlu1 %2166  ;;  %2604 = vmatprep.subr.bf16.mxu1 %v2551_v40  ;;  %v2145_v17 = vmul.f32 %v2139_v34, %v2123_v4  ;;  %v2187_v38 = vrot.slane %v2182_v62, %v9469_v37 }
 0x609   : > { %2605 = vmatpush1.bf16.msra.mxu1 %v2550_v11 }
 0x60a   : > { %v2169_v54 = vpop.permute.xlu0 %2168 }
 0x60c   : > { %v10223_v46 = vpop.permute.xlu1 %2218 }
 0x60e   : > { %v10225_v27 = vpop.permute.xlu0 %2220 }
 0x610   : > { %v10227_v20 = vpop.permute.xlu1 %2278 }
 0x612   : > { %v10229_v61 = vpop.permute.xlu0 %2280 }
 0x614   : > { %v2059_v55 = vpop.permute.xlu1 %2058 }
 0x616   : > { %v2061_v25 = vpop.permute.xlu0 %2060 }
 0x618   : > { %v2111_v60 = vpop.permute.xlu1 %2110 }
 0x61a   : > { %v2113_v58 = vpop.permute.xlu0 %2112 }
 0x61c   : > { %v10231_v57 = vpop.permute.xlu1 %2162 }
 0x61e   : > { %v10233_v8 = vpop.permute.xlu0 %2164 }
 0x620   : > { %v10235_v29 = vpop.permute.xlu1 %2214 }
 0x622   : > { %v10237_v42 = vpop.permute.xlu0 %2216 }
 0x624   : > { %v2067_v16 = vpop.permute.xlu1 %2066 }
 0x625   : > { %v2072_v53 = vsel %vm980_vm6, %v2059_v55, %v2067_v16  ;;  %v2076_v32 = vsel %vm980_vm6, %v2067_v16, %v2059_v55  ;;  %v2126_v55 = vsel %vm1003_vm3, %v2115_v41, %v10184_v35  ;;  %v2144_v16 = vmul.f32 %v2135_v3, %v2127_v19 }
 0x626   : > { %v2069_v7 = vpop.permute.xlu0 %2068  ;;  %v2094_v49 = vmul.f32 %v2083_v48, %v2076_v32  ;;  %v2095_v28 = vmul.f32 %v2087_v50, %v2072_v53  ;;  %v2142_v56 = vmul.f32 %v2135_v3, %v2126_v55  ;;  %v2191_v53 = vrot.slane %v2182_v62, %v9379_v9 }
 0x627   : > { %v2073_v18 = vsel %vm980_vm6, %v2061_v25, %v2069_v7  ;;  %v2077_v30 = vsel %vm980_vm6, %v2069_v7, %v2061_v25  ;;  %v2175_v25 = vsel %vm1027_vm4, %v10196_v22, %v2169_v54  ;;  %v2174_v7 = vsel %vm1027_vm4, %v10190_v0, %v10221_v45 }
 0x628   : > { %v2096_v33 = vmul.f32 %v2083_v48, %v2077_v30  ;;  %v2097_v11 = vmul.f32 %v2087_v50, %v2073_v18  ;;  %v10256_v40 = vpop.permute.xlu1 %2274  ;;  %v2555_v50 = vpack.c.bf16 %v2145_v17, %v2143_v21  ;;  %v2554_v32 = vpack.c.bf16 %v2144_v16, %v2142_v56 }
 0x629   : > { %v2179_v19 = vsel %vm1027_vm4, %v2169_v54, %v10196_v22  ;;  %v2197_v17 = vmul.f32 %v2191_v53, %v2175_v25  ;;  %v2195_v55 = vmul.f32 %v2191_v53, %v2174_v7  ;;  %v2234_v54 = vld [vmem:[#allocation11 + $0x3] ss:$8 sm:$0x3] }
 0x62a   : > { %v2552_v12 = vpack.c.bf16 %v2096_v33, %v2094_v49  ;;  %v10261_v4 = vpop.permute.xlu0 %2276  ;;  %v2553_v5 = vpack.c.bf16 %v2097_v11, %v2095_v28  ;;  %v2178_v11 = vsel %vm1027_vm4, %v10221_v45, %v10190_v0  ;;  %v2196_v22 = vmul.f32 %v2187_v38, %v2179_v19 }
 0x62b   : > { %v2243_v25 = vrot.slane %v2234_v54, %v9379_v9 }
 0x62c   : > { %v2119_v48 = vpop.permute.xlu1 %2118  ;;  %2606 = vmatprep.subr.bf16.mxu1 %v2553_v5 }
 0x62d   : > { %v2124_v35 = vsel %vm1003_vm3, %v2111_v60, %v2119_v48  ;;  %v2128_v41 = vsel %vm1003_vm3, %v2119_v48, %v2111_v60  ;;  %2607 = vmatpush1.bf16.msra.mxu1 %v2552_v12  ;;  %v2194_v12 = vmul.f32 %v2187_v38, %v2178_v11 }
 0x62e   : > { %2608 = vmatprep.subr.bf16.mxu1 %v2555_v50  ;;  %v2121_v5 = vpop.permute.xlu0 %2120  ;;  %v2146_v60 = vmul.f32 %v2135_v3, %v2128_v41  ;;  %v2147_v30 = vmul.f32 %v2139_v34, %v2124_v35  ;;  %v2226_v50 = vsel %vm1051_vm5, %v10201_v51, %v10223_v46  ;;  %v2231_v41 = vsel %vm1051_vm5, %v10225_v27, %v10205_v10 }
 0x62f   : > { %v2125_v18 = vsel %vm1003_vm3, %v2113_v58, %v2121_v5  ;;  %v2129_v56 = vsel %vm1003_vm3, %v2121_v5, %v2113_v58  ;;  %v2227_v58 = vsel %vm1051_vm5, %v10205_v10, %v10225_v27  ;;  %v2558_v48 = vpack.c.bf16 %v2196_v22, %v2194_v12 }
 0x630   : > { %v2148_v49 = vmul.f32 %v2135_v3, %v2129_v56  ;;  %v2149_v28 = vmul.f32 %v2139_v34, %v2125_v18  ;;  %v2171_v33 = vpop.permute.xlu1 %2170  ;;  %v2559_v3 = vpack.c.bf16 %v2197_v17, %v2195_v55  ;;  %v2230_v10 = vsel %vm1051_vm5, %v10223_v46, %v10201_v51 }
 0x631   : > { %2609 = vmatpush1.bf16.msra.mxu1 %v2554_v32  ;;  %v2176_v0 = vsel %vm1027_vm4, %v10231_v57, %v2171_v33  ;;  %v2180_v45 = vsel %vm1027_vm4, %v2171_v33, %v10231_v57  ;;  %v2249_v32 = vmul.f32 %v2243_v25, %v2227_v58  ;;  %v2247_v27 = vmul.f32 %v2243_v25, %v2226_v50 }
 0x632   : > { %v2556_v21 = vpack.c.bf16 %v2148_v49, %v2146_v60  ;;  %v10287_v16 = vpop.permute.xlu0 %2324  ;;  %v2557_v62 = vpack.c.bf16 %v2149_v28, %v2147_v30  ;;  %v2198_v5 = vmul.f32 %v2187_v38, %v2180_v45  ;;  %v2199_v19 = vmul.f32 %v2191_v53, %v2176_v0  ;;  %v2294_v45 = vld [vmem:[#allocation11 + $0x5] ss:$8 sm:$0x3] }
 0x633   : > { %v2239_v60 = vrot.slane %v2234_v54, %v9469_v37  ;;  %v2563_v11 = vpack.c.bf16 %v2249_v32, %v2247_v27  ;;  %v2567_v50 = vpack.c.bf16 %v10067_v26, %v10063_v52  ;;  %v2287_v52 = vsel %vm1077_vm7, %v10209_v36, %v10229_v61 }
 0x634   : > { %v2223_v34 = vpop.permute.xlu1 %2222  ;;  %2610 = vmatprep.subr.bf16.mxu1 %v2557_v62  ;;  %v2566_v26 = vpack.c.bf16 %v10041_v44, %v10036_v2  ;;  %v2299_v32 = vrot.slane %v2294_v45, %v9469_v37  ;;  %v2346_v44 = vld [vmem:[#allocation11 + $0x6] ss:$8 sm:$0x3] }
 0x635   : > { %2611 = vmatpush1.bf16.msra.mxu1 %v2556_v21  ;;  %v2248_v33 = vmul.f32 %v2239_v60, %v2231_v41  ;;  %v2232_v55 = vsel %vm1051_vm5, %v2223_v34, %v10235_v29  ;;  %v2290_v41 = vsel %vm1077_vm7, %v10227_v20, %v10207_v31 }
 0x636   : > { %2612 = vmatprep.subr.bf16.mxu1 %v2559_v3  ;;  %v2173_v35 = vpop.permute.xlu0 %2172  ;;  %v2250_v21 = vmul.f32 %v2239_v60, %v2232_v55 }
 0x637   : > { %v2177_v7 = vsel %vm1027_vm4, %v10233_v8, %v2173_v35  ;;  %v2181_v57 = vsel %vm1027_vm4, %v2173_v35, %v10233_v8 }
 0x638   : > { %v2200_v17 = vmul.f32 %v2187_v38, %v2181_v57  ;;  %v2201_v18 = vmul.f32 %v2191_v53, %v2177_v7  ;;  %v2283_v56 = vpop.permute.xlu1 %2282  ;;  %v2246_v38 = vmul.f32 %v2239_v60, %v2230_v10  ;;  %v2228_v53 = vsel %vm1051_vm5, %v10235_v29, %v2223_v34 }
 0x639   : > { %2613 = vmatpush1.bf16.msra.mxu1 %v2558_v48  ;;  %v2251_v62 = vmul.f32 %v2243_v25, %v2228_v53  ;;  %v2288_v2 = vsel %vm1077_vm7, %v10256_v40, %v2283_v56 }
 0x63a   : > { %v2560_v30 = vpack.c.bf16 %v2200_v17, %v2198_v5  ;;  %v10319_v49 = vpop.permute.xlu0 %2332  ;;  %v2561_v28 = vpack.c.bf16 %v2201_v18, %v2199_v19  ;;  %v2562_v46 = vpack.c.bf16 %v2248_v33, %v2246_v38  ;;  %v2569_v5 = vpack.c.bf16 %v10115_v24, %v10111_v14 }
 0x63b   : > { %v2286_v19 = vsel %vm1077_vm7, %v10207_v31, %v10227_v20  ;;  %v2308_v18 = vmul.f32 %v2299_v32, %v2287_v52  ;;  %v2292_v31 = vsel %vm1077_vm7, %v2283_v56, %v10256_v40  ;;  %v2310_v27 = vmul.f32 %v2299_v32, %v2288_v2 }
 0x63c   : > { %v2323_v8 = vpop.permute.xlu1 %2322  ;;  %2614 = vmatprep.subr.bf16.mxu1 %v2561_v28  ;;  %v2355_v28 = vrot.slane %v2346_v44, %v9379_v9 }
 0x63d   : > { %2615 = vmatpush1.bf16.msra.mxu1 %v2560_v30  ;;  %v2351_v30 = vrot.slane %v2346_v44, %v9469_v37 }
 0x63e   : > { %2616 = vmatprep.subr.bf16.mxu1 %v2563_v11  ;;  %v2225_v51 = vpop.permute.xlu0 %2224 }
 0x63f   : > { %v2229_v22 = vsel %vm1051_vm5, %v10237_v42, %v2225_v51  ;;  %v2233_v54 = vsel %vm1051_vm5, %v2225_v51, %v10237_v42  ;;  %v2291_v42 = vsel %vm1077_vm7, %v10229_v61, %v10209_v36  ;;  %v2568_v61 = vpack.c.bf16 %v10093_v23, %v10089_v15 }
 0x640   : > { %v2252_v12 = vmul.f32 %v2239_v60, %v2233_v54  ;;  %v2253_v58 = vmul.f32 %v2243_v25, %v2229_v22  ;;  %v2331_v3 = vpop.permute.xlu1 %2330  ;;  %v2303_v25 = vrot.slane %v2294_v45, %v9379_v9  ;;  %v2306_v60 = vmul.f32 %v2299_v32, %v2286_v19 }
 0x641   : > { %2617 = vmatpush1.bf16.msra.mxu1 %v2562_v46  ;;  %v2342_v20 = vsel %vm1101_vm8, %v2331_v3, %v2323_v8  ;;  %v2343_v15 = vsel %vm1101_vm8, %v10319_v49, %v10287_v16  ;;  %v2338_v23 = vsel %vm1101_vm8, %v2323_v8, %v2331_v3  ;;  %v2339_v46 = vsel %vm1101_vm8, %v10287_v16, %v10319_v49 }
 0x642   : > { %v2564_v0 = vpack.c.bf16 %v2252_v12, %v2250_v21  ;;  %v10333_v29 = vpop.permute.xlu0 %2328  ;;  %v2565_v34 = vpack.c.bf16 %v2253_v58, %v2251_v62  ;;  %v2309_v7 = vmul.f32 %v2303_v25, %v2291_v42  ;;  %v2307_v17 = vmul.f32 %v2303_v25, %v2290_v41 }
 0x643   : > { %v2570_v10 = vpack.c.bf16 %v2308_v18, %v2306_v60  ;;  %v2311_v11 = vmul.f32 %v2303_v25, %v2292_v31  ;;  %v2359_v38 = vmul.f32 %v2355_v28, %v2342_v20  ;;  %v2361_v8 = vmul.f32 %v2355_v28, %v2343_v15 }
 0x644   : > { %v2327_v48 = vpop.permute.xlu1 %2326  ;;  %2618 = vmatprep.subr.bf16.mxu1 %v2565_v34  ;;  %v2571_v24 = vpack.c.bf16 %v2309_v7, %v2307_v17  ;;  %v2358_v22 = vmul.f32 %v2351_v30, %v2338_v23  ;;  %v2360_v58 = vmul.f32 %v2351_v30, %v2339_v46 }
 0x645   : > { %2619 = vmatpush1.bf16.msra.mxu1 %v2564_v0  ;;  %v2575_v34 = vpack.c.bf16 %v2361_v8, %v2359_v38 }
 0x646   : > { %2620 = vmatprep.subr.bf16.mxu1 %v2567_v50  ;;  %v10342_v35 = vpop.permute.xlu0 %2376  ;;  %v2574_v49 = vpack.c.bf16 %v2360_v58, %v2358_v22 }
 0x648   : > { %v2335_v57 = vpop.permute.xlu1 %2334 }
 0x649   : > { %2621 = vmatpush1.bf16.msra.mxu1 %v2566_v26  ;;  %v2340_v12 = vsel %vm1101_vm8, %v2327_v48, %v2335_v57  ;;  %v2344_v3 = vsel %vm1101_vm8, %v2335_v57, %v2327_v48 }
 0x64a   : > { %2622 = vmatprep.subr.bf16.mxu1 %v2569_v5  ;;  %v2385_v36 = vpop.permute.xlu0 %2384  ;;  %v2362_v45 = vmul.f32 %v2351_v30, %v2340_v12 }
 0x64b   : > { %v2395_v41 = vsel %vm1125_vm11, %v2385_v36, %v10342_v35  ;;  %v2391_v17 = vsel %vm1125_vm11, %v10342_v35, %v2385_v36 }
 0x64c   : > { %v2375_v14 = vpop.permute.xlu1 %2374 }
 0x64d   : > { %2623 = vmatpush1.bf16.msra.mxu1 %v2568_v61 }
 0x64e   : > { %2624 = vmatprep.subr.bf16.mxu1 %v2571_v24  ;;  %v2285_v33 = vpop.permute.xlu0 %2284 }
 0x64f   : > { %v2289_v40 = vsel %vm1077_vm7, %v10261_v4, %v2285_v33  ;;  %v2293_v56 = vsel %vm1077_vm7, %v2285_v33, %v10261_v4  ;;  %v2398_v4 = vld [vmem:[#allocation11 + $0x7] ss:$8 sm:$0x3] }
 0x650   : > { %v2312_v53 = vmul.f32 %v2299_v32, %v2289_v40  ;;  %v2313_v55 = vmul.f32 %v2303_v25, %v2293_v56  ;;  %v2383_v51 = vpop.permute.xlu1 %2382  ;;  %v2407_v50 = vrot.slane %v2398_v4, %v9379_v9  ;;  %v2363_v25 = vmul.f32 %v2355_v28, %v2344_v3 }
 0x651   : > { %2625 = vmatpush1.bf16.msra.mxu1 %v2570_v10  ;;  %v2394_v16 = vsel %vm1125_vm11, %v2383_v51, %v2375_v14  ;;  %v2390_v26 = vsel %vm1125_vm11, %v2375_v14, %v2383_v51  ;;  %v2403_v19 = vrot.slane %v2398_v4, %v9469_v37 }
 0x652   : > { %v2572_v54 = vpack.c.bf16 %v2312_v53, %v2310_v27  ;;  %v2381_v21 = vpop.permute.xlu0 %2380  ;;  %v2573_v62 = vpack.c.bf16 %v2313_v55, %v2311_v11  ;;  %v2411_v32 = vmul.f32 %v2407_v50, %v2394_v16  ;;  %v2413_v18 = vmul.f32 %v2407_v50, %v2395_v41 }
 0x653   : > { %v2410_v60 = vmul.f32 %v2403_v19, %v2390_v26  ;;  %v2412_v31 = vmul.f32 %v2403_v19, %v2391_v17 }
 0x654   : > { %v2379_v0 = vpop.permute.xlu1 %2378  ;;  %2626 = vmatprep.subr.bf16.mxu1 %v2573_v62  ;;  %v2579_v14 = vpack.c.bf16 %v2413_v18, %v2411_v32 }
 0x655   : > { %2627 = vmatpush1.bf16.msra.mxu1 %v2572_v54  ;;  %v2578_v36 = vpack.c.bf16 %v2412_v31, %v2410_v60  ;;  %v8222_v54 = vcombine.low %v10170_v59, %v10170_v59  ;;  %v13826_v59 = vmov 0  }
 0x656   : > { %2628 = vmatprep.subr.bf16.mxu1 %v2575_v34  ;;  %v2337_v42 = vpop.permute.xlu0 %2336 }
 0x657   : > { %v2341_v48 = vsel %vm1101_vm8, %v10333_v29, %v2337_v42  ;;  %v2345_v52 = vsel %vm1101_vm8, %v2337_v42, %v10333_v29  ;;  %v2450_v29 = vld [vmem:[#allocation11 + $0x10] ss:$8 sm:$0x3] }
 0x658   : > { %v2364_v7 = vmul.f32 %v2351_v30, %v2341_v48  ;;  %v2365_v57 = vmul.f32 %v2355_v28, %v2345_v52  ;;  %v2387_v5 = vpop.permute.xlu1 %2386  ;;  %v2455_v35 = vrot.slane %v2450_v29, %v9469_v37  ;;  %v2459_v33 = vrot.slane %v2450_v29, %v9379_v9 }
 0x659   : > { %2629 = vmatpush1.bf16.msra.mxu1 %v2574_v49  ;;  %v2392_v20 = vsel %vm1125_vm11, %v2379_v0, %v2387_v5  ;;  %v2396_v10 = vsel %vm1125_vm11, %v2387_v5, %v2379_v0 }
 0x65a   : > { %v2576_v2 = vpack.c.bf16 %v2364_v7, %v2362_v45  ;;  %v2429_v44 = vpop.permute.xlu0 %2428  ;;  %v2577_v61 = vpack.c.bf16 %v2365_v57, %v2363_v25  ;;  %v2414_v15 = vmul.f32 %v2403_v19, %v2392_v20  ;;  %v2415_v23 = vmul.f32 %v2407_v50, %v2396_v10  ;;  %v8636_v57 = vld [vmem:[%s13711_s10 + $0x8] ss:$0 sps:$4 sm:$0x77]  }
 0x65c   : > { %v2427_v24 = vpop.permute.xlu1 %2426  ;;  %2630 = vmatprep.subr.bf16.mxu1 %v2577_v61 }
 0x65d   : > { %2631 = vmatpush1.bf16.msra.mxu1 %v2576_v2 }
 0x65e   : > { %2632 = vmatprep.subr.bf16.mxu1 %v2579_v14  ;;  %v2389_v27 = vpop.permute.xlu0 %2388 }
 0x65f   : > { %v2393_v30 = vsel %vm1125_vm11, %v2381_v21, %v2389_v27  ;;  %v2397_v28 = vsel %vm1125_vm11, %v2389_v27, %v2381_v21 }
 0x660   : > { %v2416_v40 = vmul.f32 %v2403_v19, %v2393_v30  ;;  %v2417_v56 = vmul.f32 %v2407_v50, %v2397_v28  ;;  %v2435_v11 = vpop.permute.xlu1 %2434 }
 0x661   : > { %v2442_v38 = vsel %vm1149_vm12, %v2427_v24, %v2435_v11  ;;  %v2446_v53 = vsel %vm1149_vm12, %v2435_v11, %v2427_v24  ;;  %2633 = vmatpush1.bf16.msra.mxu1 %v2578_v36  ;;  %v2753_v11 = vld [vmem:[%s13828_s21] ss:$8 sm:$0x3] }
 0x662   : > { %v2580_v55 = vpack.c.bf16 %v2416_v40, %v2414_v15  ;;  %v2437_v51 = vpop.permute.xlu0 %2436  ;;  %v2581_v46 = vpack.c.bf16 %v2417_v56, %v2415_v23  ;;  %v2462_v21 = vmul.f32 %v2455_v35, %v2442_v38  ;;  %v2463_v62 = vmul.f32 %v2459_v33, %v2446_v53  ;;  %v2744_v15 = vld [vmem:[%s13827_s6 + $0x8] sm:$0xff]  ;;  %v2745_v23 = vld [vmem:[%s13827_s6 + $0x10] sm:$0xff]  ;;  %v2746_v40 = vld [vmem:[%s13827_s6 + $0x18] sm:$0xff] }
 0x663   : > { %v2443_v8 = vsel %vm1149_vm12, %v2429_v44, %v2437_v51  ;;  %v2447_v22 = vsel %vm1149_vm12, %v2437_v51, %v2429_v44  ;;  %v8226_v38 = vld [vmem:[%s13828_s21 + $0x1] ss:$8 sm:$0x3]  ;;  %v2762_v51 = vrot.slane %v2753_v11, %v9379_v9 }
 0x664   : > { %v2464_v12 = vmul.f32 %v2455_v35, %v2443_v8  ;;  %v2465_v4 = vmul.f32 %v2459_v33, %v2447_v22  ;;  %v2431_v58 = vpop.permute.xlu1 %2430  ;;  %2634 = vmatprep.subr.bf16.mxu1 %v2581_v46  ;;  %v2781_v46 = vrot.slane %v8226_v38, %v9469_v37  ;;  %v2785_v8 = vrot.slane %v8226_v38, %v9379_v9  ;;  %v8231_v38 = vld [vmem:[%s13828_s21 + $0x7] ss:$8 sm:$0x3] }
 0x665   : > { %2635 = vmatpush1.bf16.msra.mxu1 %v2580_v55  ;;  %v2758_v55 = vrot.slane %v2753_v11, %v9469_v37  ;;  %v13829_v11 = vmov 0 }
 0x666   : > { %v2582_v3 = vpack.c.bf16 %v2464_v12, %v2462_v21  ;;  %v2433_v0 = vpop.permute.xlu0 %2432  ;;  %v2583_v34 = vpack.c.bf16 %v2465_v4, %v2463_v62  ;;  %v13830_v11 = vsel %vm10543_vm14, 4294967295, %v13829_v11 }
 0x667   : > { %13831 = vst [vmem:[#allocation34_spill] sm:$0xff] %v13830_v11 }
 0x668   : > { %v2439_v16 = vpop.permute.xlu1 %2438  ;;  %2637 = vmatmul.mubr.bf16.vlgmr.msra.gmra.mrb[16].mxu1 %v8222_v54  ;;  %2645 = vmatprep.subr.bf16.mxu1 %v2583_v34 }
 0x669   : > { %v2444_v49 = vsel %vm1149_vm12, %v2431_v58, %v2439_v16  ;;  %v2448_v45 = vsel %vm1149_vm12, %v2439_v16, %v2431_v58  ;;  %2646 = vmatpush1.bf16.msra.mxu1 %v2582_v3  ;;  %2677 = vmatprep.mubr.bf16.mxu1 %v13826_v59 }
 0x66a   : > { %v2441_v50 = vpop.permute.xlu0 %2440  ;;  %v2466_v41 = vmul.f32 %v2455_v35, %v2444_v49  ;;  %v2467_v48 = vmul.f32 %v2459_v33, %v2448_v45  ;;  %v8227_v49 = vld [vmem:[%s13828_s21 + $0x2] ss:$8 sm:$0x3]  ;;  %v8228_v45 = vld [vmem:[%s13828_s21 + $0x3] ss:$8 sm:$0x3] }
 0x66b   : > { %v2445_v42 = vsel %vm1149_vm12, %v2433_v0, %v2441_v50  ;;  %v2449_v25 = vsel %vm1149_vm12, %v2441_v50, %v2433_v0 }
 0x66c   : > { %v2468_v52 = vmul.f32 %v2455_v35, %v2445_v42  ;;  %v2469_v26 = vmul.f32 %v2459_v33, %v2449_v25  ;;  %v2743_v33 = vld [vmem:[%s13827_s6] sm:$0xff] }
 0x66e   : > { %v2584_v32 = vpack.c.bf16 %v2468_v52, %v2466_v41  ;;  %v2585_v7 = vpack.c.bf16 %v2469_v26, %v2467_v48  ;;  %v2804_v41 = vrot.slane %v8227_v49, %v9469_v37  ;;  %v2808_v48 = vrot.slane %v8227_v49, %v9379_v9 }
 0x66f   : > { %v2827_v52 = vrot.slane %v8228_v45, %v9469_v37  ;;  %v2831_v26 = vrot.slane %v8228_v45, %v9379_v9 }
 0x670   : > { %2647 = vmatprep.subr.bf16.mxu1 %v2585_v7 }
 0x671   : > { %2648 = vmatpush1.bf16.msra.mxu1 %v2584_v32  ;;  %v8229_v32 = vld [vmem:[%s13828_s21 + $0x5] ss:$8 sm:$0x3] }
 0x674   : > { %8225 = vmatmul.mubr.msk.bf16.vlgmr.msra.gmra.mrb[16].mxu1 %vm1913_vm2, %v8636_v57 }
 0x675   : > { %3034 = vmatprep.mubr.bf16.mxu1 %v13826_v59 }
 0x679   : > { %v2589_v5 = vpop.permute.xlu1 %2588 }
 0x747   : > { %v2679_v19 = vpop.f32.mrb[16].mxu1 }
 0x748   : > { %v10445_v17 = vadd.f32 %v2679_v19, %v2589_v5  ;;  %v2681_v18 = vpop.f32.mrb[17].mxu1 }
 0x749   : > { %v10447_v2 = vadd.f32 %v2681_v18, %v2589_v5  ;;  %v2683_v44 = vpop.f32.mrb[18].mxu1 }
 0x74a   : > { %v2684_v61 = vpop.f32.mrb[19].mxu1  ;;  %v2686_v29 = vpack.c.bf16 %v10445_v17, %v10445_v17 }
 0x74b   : > { %v2687_v60 = vpack.c.bf16 %v10447_v2, %v10447_v2  ;;  %v2852_v61 = vrot.slane %v8229_v32, %v9469_v37 }
 0x74d   : > { %2720 = vmatprep.mubr.bf16.mxu0 %v2687_v60  ;;  %v2856_v60 = vrot.slane %v8229_v32, %v9379_v9 }
 0x74e   : > { %2721 = vmatmul.mubr.bf16.vlgmr.msra.gmra.mrb[4].mxu0 %v2686_v29 }
 0x821   : > { %v2722_v24 = vpop.f32.mrb[4].mxu0 }
 0x822   : > { %v2731_v14 = vrot.slane %v2722_v24, 3  ;;  %v2724_v31 = vpop.f32.mrb[5].mxu0 }
 0x823   : > { %v2732_v20 = vrot.slane %v2724_v31, 3  ;;  %v2726_v10 = vpop.f32.mrb[6].mxu0 }
 0x824   : > { %v10455_v27 = vsel %vm957_vm0, %v9475_v39, %v2731_v14  ;;  %v2727_v35 = vpop.f32.mrb[7].mxu0 }
 0x825   : > { %v2737_v36 = vsel %vm960_vm1, %v10455_v27, 0.0  ;;  %v10461_v30 = vsel %vm957_vm0, %v9396_v13, %v2732_v20 }
 0x826   : > { %v2738_v28 = vsel %vm960_vm1, %v10461_v30, 0.0  ;;  %2747 = vrot.lane.b32.xlu0 %v2737_v36, %s13757_s26 }
 0x827   : > { %2749 = vrot.lane.b32.xlu1 %v2738_v28, %s13757_s26 }
 0x82a   : > { %2769 = vrot.lane.b32.xlu0 %v2737_v36, %s13755_s2 }
 0x82b   : > { %2771 = vrot.lane.b32.xlu1 %v2738_v28, %s13755_s2 }
 0x82e   : > { %2792 = vrot.lane.b32.xlu0 %v2737_v36, %s13753_s13 }
 0x82f   : > { %2794 = vrot.lane.b32.xlu1 %v2738_v28, %s13753_s13 }
 0x832   : > { %2815 = vrot.lane.b32.xlu0 %v2737_v36, %s13751_s4 }
 0x833   : > { %2817 = vrot.lane.b32.xlu1 %v2738_v28, %s13751_s4 }
 0x836   : > { %2840 = vrot.lane.b32.xlu0 %v2737_v36, %s13749_s24 }
 0x837   : > { %2842 = vrot.lane.b32.xlu1 %v2738_v28, %s13749_s24 }
 0x83a   : > { %2863 = vrot.lane.b32.xlu0 %v2737_v36, %s13746_s12 }
 0x83b   : > { %2865 = vrot.lane.b32.xlu1 %v2738_v28, %s13746_s12  ;;  %s13835_s12 = smov 113  }
 0x83e   : > { %2886 = vrot.lane.b32.xlu0 %v2737_v36, %s13742_s17 }
 0x83f   : > { %2888 = vrot.lane.b32.xlu1 %v2738_v28, %s13742_s17  ;;  %s13836_s17 = smov 112  }
 0x842   : > { %2909 = vrot.lane.b32.xlu0 %v2737_v36, %s13744_s22 }
 0x843   : > { %2911 = vrot.lane.b32.xlu1 %v2738_v28, %s13744_s22  ;;  %s13837_s22 = smov 111  }
 0x846   : > { %2962 = vperm.xlu0 %8574, %v2743_v33  }
 0x847   : > { %2967 = vperm.xlu1 %8575, %v2744_v15  }
 0x84a   : > { %2972 = vperm.xlu0 %8574, %v2745_v23  }
 0x84b   : > { %2977 = vperm.xlu1 %8575, %v2746_v40  }
 0x898   : > { %v2748_v56 = vpop.permute.xlu0 %2747 }
 0x899   : > { %v2750_v53 = vpop.permute.xlu1 %2749 }
 0x89a   : > { %v2751_v22 = vsel %vm980_vm6, %v2748_v56, %v2750_v53  ;;  %v2752_v54 = vsel %vm980_vm6, %v2750_v53, %v2748_v56  ;;  %v8230_v56 = vld [vmem:[%s13828_s21 + $0x6] ss:$8 sm:$0x3] }
 0x89b   : > { %v2765_v58 = vmul.f32 %v2758_v55, %v2752_v54  ;;  %v2766_v3 = vmul.f32 %v2762_v51, %v2751_v22  ;;  %v2898_v22 = vrot.slane %v8231_v38, %v9469_v37  ;;  %v2902_v54 = vrot.slane %v8231_v38, %v9379_v9 }
 0x89c   : > { %v2770_v21 = vpop.permute.xlu0 %2769 }
 0x89d   : > { %v2772_v62 = vpop.permute.xlu1 %2771 }
 0x89e   : > { %v2773_v12 = vsel %vm1003_vm3, %v2770_v21, %v2772_v62  ;;  %v2774_v4 = vsel %vm1003_vm3, %v2772_v62, %v2770_v21  ;;  %v8232_v21 = vld [vmem:[%s13828_s21 + $0x10] ss:$8 sm:$0x3] }
 0x89f   : > { %v2788_v0 = vmul.f32 %v2781_v46, %v2774_v4  ;;  %v2789_v34 = vmul.f32 %v2785_v8, %v2773_v12  ;;  %v2875_v46 = vrot.slane %v8230_v56, %v9469_v37  ;;  %v2879_v8 = vrot.slane %v8230_v56, %v9379_v9 }
 0x8a0   : > { %v2793_v16 = vpop.permute.xlu0 %2792 }
 0x8a1   : > { %v2950_v50 = vpack.c.bf16 %v2788_v0, %v2765_v58  ;;  %v2795_v42 = vpop.permute.xlu1 %2794  ;;  %v2951_v25 = vpack.c.bf16 %v2789_v34, %v2766_v3  ;;  %v2921_v3 = vrot.slane %v8232_v21, %v9469_v37  ;;  %v2925_v0 = vrot.slane %v8232_v21, %v9379_v9 }
 0x8a2   : > { %v2796_v7 = vsel %vm1027_vm4, %v2793_v16, %v2795_v42  ;;  %v2797_v57 = vsel %vm1027_vm4, %v2795_v42, %v2793_v16 }
 0x8a3   : > { %3002 = vmatprep.subr.bf16.mxu1 %v2951_v25  ;;  %v2811_v29 = vmul.f32 %v2804_v41, %v2797_v57  ;;  %v2812_v24 = vmul.f32 %v2808_v48, %v2796_v7 }
 0x8a4   : > { %v2816_v5 = vpop.permute.xlu0 %2815  ;;  %3003 = vmatpush1.bf16.msra.mxu1 %v2950_v50 }
 0x8a5   : > { %v2818_v19 = vpop.permute.xlu1 %2817 }
 0x8a6   : > { %v2819_v18 = vsel %vm1051_vm5, %v2816_v5, %v2818_v19  ;;  %v2820_v44 = vsel %vm1051_vm5, %v2818_v19, %v2816_v5  ;;  %v8637_v19 = vld [vmem:[%s13832_s0] sm:$0xff]  }
 0x8a7   : > { %v2834_v14 = vmul.f32 %v2827_v52, %v2820_v44  ;;  %v2835_v31 = vmul.f32 %v2831_v26, %v2819_v18  ;;  %v8638_v18 = vld [vmem:[%s13832_s0 + $0x8] sm:$0xff]  }
 0x8a8   : > { %v2841_v20 = vpop.permute.xlu0 %2840 }
 0x8a9   : > { %v2952_v10 = vpack.c.bf16 %v2834_v14, %v2811_v29  ;;  %v2843_v35 = vpop.permute.xlu1 %2842  ;;  %v2953_v36 = vpack.c.bf16 %v2835_v31, %v2812_v24 }
 0x8aa   : > { %v2844_v28 = vsel %vm1077_vm7, %v2841_v20, %v2843_v35  ;;  %v2845_v33 = vsel %vm1077_vm7, %v2843_v35, %v2841_v20 }
 0x8ab   : > { %v2859_v15 = vmul.f32 %v2852_v61, %v2844_v28  ;;  %v2860_v23 = vmul.f32 %v2856_v60, %v2845_v33  ;;  %3004 = vmatprep.subr.bf16.mxu1 %v2953_v36  ;;  %v10588_v60 = vstv %s8175_s16  ;;  %s13843_s16 = sld [smem:[#allocation47_spill]] }
 0x8ac   : > { %v2864_v40 = vpop.permute.xlu0 %2863  ;;  %3005 = vmatpush1.bf16.msra.mxu1 %v2952_v10 }
 0x8ad   : > { %v8372_v53 = vpack.c.bf16 %v2860_v23, %v10461_v30  ;;  %v8375_v55 = vpack.c.bf16 %v2859_v15, %v10455_v27  ;;  %v2866_v51 = vpop.permute.xlu1 %2865 }
 0x8ae   : > { %v2867_v30 = vsel %vm1101_vm8, %v2864_v40, %v2866_v51  ;;  %v2868_v27 = vsel %vm1101_vm8, %v2866_v51, %v2864_v40 }
 0x8af   : > { %8373 = vmatprep.subr.msk.bf16.mxu1 %vm10543_vm14, %v8372_v53  ;;  %v2882_v34 = vmul.f32 %v2875_v46, %v2867_v30  ;;  %v2883_v16 = vmul.f32 %v2879_v8, %v2868_v27 }
 0x8b0   : > { %v2887_v62 = vpop.permute.xlu0 %2886  ;;  %8376 = vmatpush1.bf16.msk.msra.mxu1 %vm10543_vm14, %v8375_v55 }
 0x8b1   : > { %v2889_v12 = vpop.permute.xlu1 %2888 }
 0x8b2   : > { %v2890_v4 = vsel %vm1125_vm11, %v2887_v62, %v2889_v12  ;;  %v2891_v58 = vsel %vm1125_vm11, %v2889_v12, %v2887_v62 }
 0x8b3   : > { %v2905_v49 = vmul.f32 %v2898_v22, %v2890_v4  ;;  %v2906_v45 = vmul.f32 %v2902_v54, %v2891_v58 }
 0x8b4   : > { %v2910_v50 = vpop.permute.xlu0 %2909 }
 0x8b5   : > { %v2956_v42 = vpack.c.bf16 %v2905_v49, %v2882_v34  ;;  %v2912_v25 = vpop.permute.xlu1 %2911  ;;  %v2957_v41 = vpack.c.bf16 %v2906_v45, %v2883_v16  ;;  %v8641_v45 = vld [vmem:[#allocation14 + $0x4] ss:$12 sps:$4 sm:$0xff]  }
 0x8b6   : > { %v2913_v48 = vsel %vm1149_vm12, %v2910_v50, %v2912_v25  ;;  %v2914_v52 = vsel %vm1149_vm12, %v2912_v25, %v2910_v50  ;;  %3712 = vmatprep.mubr.bf16.mxu0 %v8641_v45  ;;  %v8238_v45 = vld [vmem:[%s13828_s21 + $0x1] ss:$8 sm:$0x3] }
 0x8b7   : > { %v2928_v26 = vmul.f32 %v2921_v3, %v2913_v48  ;;  %v2929_v32 = vmul.f32 %v2925_v0, %v2914_v52  ;;  %3008 = vmatprep.subr.bf16.mxu1 %v2957_v41 }
 0x8b8   : > { %3009 = vmatpush1.bf16.msra.mxu1 %v2956_v42 }
 0x8b9   : > { %v2958_v7 = vpack.c.bf16 %v2928_v26, %v2928_v26  ;;  %v2959_v57 = vpack.c.bf16 %v2929_v32, %v2929_v32  ;;  %v3088_v26 = vld [vmem:[%s13838_s25] sm:$0xff] }
 0x8bb   : > { %8235 = vmatprep.subr.msk.bf16.mxu1 %vm13748_vm13, %v2959_v57  ;;  %v2997_v5 = vsel %vm13748_vm13, %v2958_v7, 0  ;;  %v3089_v7 = vld [vmem:[%s13838_s25 + $0x8] sm:$0xff] }
 0x8bc   : > { %3011 = vmatpush1.bf16.msra.mxu1 %v2997_v5  ;;  %v3090_v5 = vld [vmem:[%s13838_s25 + $0x10] sm:$0xff] }
 0x8bf   : > { %8236 = vmatmul.mubr.msk.bf16.vlgmr.msra.gmra.mrb[20].mxu1 %vm13833_vm9, %v8637_v19 }
 0x8c0   : > { %3044 = vmatprep.mubr.bf16.mxu1 %v13826_v59 }
 0x8c5   : > { %v2963_v44 = vpop.permute.xlu0 %2962 }
 0x8c6   : > { %v2968_v14 = vpop.permute.xlu1 %2967 }
 0x8c7   : > { %8237 = vmatmul.mubr.msk.bf16.gmra.mrb[24].mxu1 %vm13834_vm15, %v8638_v18  ;;  %v3116_v18 = vld [vmem:[%s13828_s21] ss:$8 sm:$0x3] }
 0x8c9   : > { %v2973_v22 = vpop.permute.xlu0 %2972 }
 0x8ca   : > { %v2978_v21 = vpop.permute.xlu1 %2977 }
 0x992   : > { %v3036_v61 = vpop.f32.mrb[20].mxu1 }
 0x993   : > { %v3037_v29 = vadd.f32 %v3036_v61, %v2963_v44  ;;  %v3038_v24 = vpop.f32.mrb[21].mxu1 }
 0x994   : > { %v3040_v31 = vpop.f32.mrb[22].mxu1  ;;  %v3039_v38 = vadd.f32 %v3038_v24, %v2963_v44  ;;  %v3091_v44 = vld [vmem:[%s13838_s25 + $0x18] sm:$0xff] }
 0x995   : > { %vm3055_vm13 = vcmp.gt.f32.partialorder %v3037_v29, 0.0  ;;  %v3064_v20 = vmul.f32 %v10588_v60, %v3037_v29  ;;  %v3041_v10 = vadd.f32 %v3040_v31, %v2968_v14  ;;  %v3042_v35 = vpop.f32.mrb[23].mxu1 }
 0x996   : > { %v3043_v53 = vadd.f32 %v3042_v35, %v2968_v14  ;;  %v3065_v55 = vmul.f32 %v10588_v60, %v3039_v38 }
 0x997   : > { %v10591_v36 = vsel %vm3055_vm13, %v3037_v29, %v3064_v20  ;;  %vm3057_vm9 = vcmp.gt.f32.partialorder %v3041_v10, 0.0  ;;  %v3066_v28 = vmul.f32 %v10588_v60, %v3041_v10  ;;  %vm3056_vm13 = vcmp.gt.f32.partialorder %v3039_v38, 0.0 }
 0x998   : > { %3092 = vrot.lane.b32.xlu0 %v10591_v36, %s13757_s26  ;;  %v3067_v51 = vmul.f32 %v10588_v60, %v3043_v53  ;;  %vm3058_vm15 = vcmp.gt.f32.partialorder %v3043_v53, 0.0  ;;  %v10618_v46 = vsel %vm3056_vm13, %v3039_v38, %v3065_v55  ;;  %v3125_v29 = vrot.slane %v3116_v18, %v9379_v9 }
 0x999   : > { %v10596_v33 = vsel %vm3057_vm9, %v3041_v10, %v3066_v28 }
 0x99a   : > { %v3046_v15 = vpop.f32.mrb[24].mxu1  ;;  %3094 = vrot.lane.b32.xlu1 %v10596_v33, %s13757_s26  ;;  %v10622_v8 = vsel %vm3058_vm15, %v3043_v53, %v3067_v51 }
 0x99b   : > { %v3048_v23 = vpop.f32.mrb[25].mxu1  ;;  %v3047_v54 = vadd.f32 %v3046_v15, %v2973_v22 }
 0x99c   : > { %v3050_v40 = vpop.f32.mrb[26].mxu1  ;;  %3144 = vrot.lane.b32.xlu0 %v10591_v36, %s13755_s2  ;;  %v3049_v58 = vadd.f32 %v3048_v23, %v2973_v22 }
 0x99d   : > { %v3052_v56 = vpop.f32.mrb[27].mxu1  ;;  %v3051_v30 = vadd.f32 %v3050_v40, %v2978_v21  ;;  %v3068_v27 = vmul.f32 %v10588_v60, %v3047_v54  ;;  %vm3059_vm9 = vcmp.gt.f32.partialorder %v3047_v54, 0.0 }
 0x99e   : > { %3146 = vrot.lane.b32.xlu1 %v10596_v33, %s13755_s2  ;;  %v3053_v3 = vadd.f32 %v3052_v56, %v2978_v21  ;;  %v3069_v0 = vmul.f32 %v10588_v60, %v3049_v58  ;;  %vm3060_vm15 = vcmp.gt.f32.partialorder %v3049_v58, 0.0 }
 0x99f   : > { %v3070_v62 = vmul.f32 %v10588_v60, %v3051_v30  ;;  %vm3061_vm13 = vcmp.gt.f32.partialorder %v3051_v30, 0.0  ;;  %v10640_v12 = vsel %vm3059_vm9, %v3047_v54, %v3068_v27 }
 0x9a0   : > { %3196 = vrot.lane.b32.xlu0 %v10591_v36, %s13753_s13  ;;  %v3071_v34 = vmul.f32 %v10588_v60, %v3053_v3  ;;  %vm3062_vm9 = vcmp.gt.f32.partialorder %v3053_v3, 0.0  ;;  %v10662_v16 = vsel %vm3060_vm15, %v3049_v58, %v3069_v0  ;;  %v3121_v60 = vrot.slane %v3116_v18, %v9469_v37 }
 0x9a1   : > { %v10644_v4 = vsel %vm3061_vm13, %v3051_v30, %v3070_v62 }
 0x9a2   : > { %3198 = vrot.lane.b32.xlu1 %v10596_v33, %s13753_s13  ;;  %v10666_v49 = vsel %vm3062_vm9, %v3053_v3, %v3071_v34 }
 0x9a4   : > { %3248 = vrot.lane.b32.xlu0 %v10591_v36, %s13751_s4 }
 0x9a6   : > { %3250 = vrot.lane.b32.xlu1 %v10596_v33, %s13751_s4 }
 0x9a8   : > { %3308 = vrot.lane.b32.xlu0 %v10591_v36, %s13749_s24 }
 0x9aa   : > { %3310 = vrot.lane.b32.xlu1 %v10596_v33, %s13749_s24 }
 0x9ac   : > { %3100 = vrot.lane.b32.xlu0 %v10618_v46, %s13757_s26 }
 0x9ae   : > { %3102 = vrot.lane.b32.xlu1 %v10622_v8, %s13757_s26 }
 0x9b0   : > { %3152 = vrot.lane.b32.xlu0 %v10618_v46, %s13755_s2 }
 0x9b2   : > { %3154 = vrot.lane.b32.xlu1 %v10622_v8, %s13755_s2 }
 0x9b4   : > { %3204 = vrot.lane.b32.xlu0 %v10618_v46, %s13753_s13 }
 0x9b6   : > { %3206 = vrot.lane.b32.xlu1 %v10622_v8, %s13753_s13 }
 0x9b8   : > { %3256 = vrot.lane.b32.xlu0 %v10618_v46, %s13751_s4 }
 0x9ba   : > { %3258 = vrot.lane.b32.xlu1 %v10622_v8, %s13751_s4 }
 0x9bc   : > { %3096 = vrot.lane.b32.xlu0 %v10640_v12, %s13757_s26 }
 0x9be   : > { %3098 = vrot.lane.b32.xlu1 %v10644_v4, %s13757_s26 }
 0x9c0   : > { %3148 = vrot.lane.b32.xlu0 %v10640_v12, %s13755_s2 }
 0x9c2   : > { %3150 = vrot.lane.b32.xlu1 %v10644_v4, %s13755_s2 }
 0x9c4   : > { %3200 = vrot.lane.b32.xlu0 %v10640_v12, %s13753_s13 }
 0x9c6   : > { %3202 = vrot.lane.b32.xlu1 %v10644_v4, %s13753_s13 }
 0x9c8   : > { %3252 = vrot.lane.b32.xlu0 %v10640_v12, %s13751_s4 }
 0x9ca   : > { %3254 = vrot.lane.b32.xlu1 %v10644_v4, %s13751_s4 }
 0x9cc   : > { %3104 = vrot.lane.b32.xlu0 %v10662_v16, %s13757_s26 }
 0x9ce   : > { %3106 = vrot.lane.b32.xlu1 %v10666_v49, %s13757_s26 }
 0x9d0   : > { %3316 = vrot.lane.b32.xlu0 %v10618_v46, %s13749_s24 }
 0x9d2   : > { %3318 = vrot.lane.b32.xlu1 %v10622_v8, %s13749_s24 }
 0x9d4   : > { %3156 = vrot.lane.b32.xlu0 %v10662_v16, %s13755_s2 }
 0x9d6   : > { %3158 = vrot.lane.b32.xlu1 %v10666_v49, %s13755_s2  ;;  %s13840_s2 = smov 15  }
 0x9d8   : > { %3208 = vrot.lane.b32.xlu0 %v10662_v16, %s13753_s13 }
 0x9da   : > { %3314 = vrot.lane.b32.xlu1 %v10644_v4, %s13749_s24 }
 0x9dc   : > { %3260 = vrot.lane.b32.xlu0 %v10662_v16, %s13751_s4 }
 0x9de   : > { %3210 = vrot.lane.b32.xlu1 %v10666_v49, %s13753_s13  ;;  %s13841_s13 = smov 1  }
 0x9e0   : > { %3312 = vrot.lane.b32.xlu0 %v10640_v12, %s13749_s24 }
 0x9e2   : > { %3362 = vrot.lane.b32.xlu1 %v10596_v33, %s13835_s12 }
 0x9e4   : > { %3320 = vrot.lane.b32.xlu0 %v10662_v16, %s13749_s24 }
 0x9e6   : > { %3262 = vrot.lane.b32.xlu1 %v10666_v49, %s13751_s4  ;;  %s13842_s4 = smov 127  }
 0x9e8   : > { %3360 = vrot.lane.b32.xlu0 %v10591_v36, %s13835_s12 }
 0x9ea   : > { %3370 = vrot.lane.b32.xlu1 %v10622_v8, %s13835_s12 }
 0x9ec   : > { %3368 = vrot.lane.b32.xlu0 %v10618_v46, %s13835_s12 }
 0x9ee   : > { %3366 = vrot.lane.b32.xlu1 %v10644_v4, %s13835_s12 }
 0x9f0   : > { %3364 = vrot.lane.b32.xlu0 %v10640_v12, %s13835_s12 }
 0x9f2   : > { %3414 = vrot.lane.b32.xlu1 %v10596_v33, %s13836_s17 }
 0x9f4   : > { %3372 = vrot.lane.b32.xlu0 %v10662_v16, %s13835_s12 }
 0x9f6   : > { %3322 = vrot.lane.b32.xlu1 %v10666_v49, %s13749_s24  ;;  %s13873_s24 = sld [smem:[#allocation49_spill]] }
 0x9f8   : > { %3412 = vrot.lane.b32.xlu0 %v10591_v36, %s13836_s17 }
 0x9fa   : > { %3422 = vrot.lane.b32.xlu1 %v10622_v8, %s13836_s17 }
 0x9fc   : > { %3420 = vrot.lane.b32.xlu0 %v10618_v46, %s13836_s17 }
 0x9fe   : > { %3374 = vrot.lane.b32.xlu1 %v10666_v49, %s13835_s12 }
 0xa00   : > { %3416 = vrot.lane.b32.xlu0 %v10640_v12, %s13836_s17 }
 0xa02   : > { %3418 = vrot.lane.b32.xlu1 %v10644_v4, %s13836_s17 }
 0xa04   : > { %3424 = vrot.lane.b32.xlu0 %v10662_v16, %s13836_s17 }
 0xa06   : > { %3426 = vrot.lane.b32.xlu1 %v10666_v49, %s13836_s17 }
 0xa08   : > { %3464 = vrot.lane.b32.xlu0 %v10591_v36, %s13837_s22 }
 0xa0a   : > { %v3093_v50 = vpop.permute.xlu0 %3092  ;;  %3466 = vrot.lane.b32.xlu1 %v10596_v33, %s13837_s22 }
 0xa0c   : > { %3472 = vrot.lane.b32.xlu0 %v10618_v46, %s13837_s22  ;;  %v3095_v42 = vpop.permute.xlu1 %3094 }
 0xa0e   : > { %v10732_v25 = vpop.permute.xlu0 %3144  ;;  %3474 = vrot.lane.b32.xlu1 %v10622_v8, %s13837_s22 }
 0xa10   : > { %3468 = vrot.lane.b32.xlu0 %v10640_v12, %s13837_s22  ;;  %v3147_v41 = vpop.permute.xlu1 %3146 }
 0xa12   : > { %v10738_v48 = vpop.permute.xlu0 %3196  ;;  %3470 = vrot.lane.b32.xlu1 %v10644_v4, %s13837_s22 }
 0xa14   : > { %3476 = vrot.lane.b32.xlu0 %v10662_v16, %s13837_s22  ;;  %v10744_v52 = vpop.permute.xlu1 %3198 }
 0xa16   : > { %v10749_v32 = vpop.permute.xlu0 %3248  ;;  %3478 = vrot.lane.b32.xlu1 %v10666_v49, %s13837_s22 }
 0xa18   : > { %3626 = vperm.xlu0 %8574, %v3088_v26   ;;  %v10756_v57 = vpop.permute.xlu1 %3250 }
 0xa1a   : > { %v10761_v19 = vpop.permute.xlu0 %3308  ;;  %3631 = vperm.xlu1 %8575, %v3089_v7   ;;  %v3177_v7 = vrot.slane %v8238_v45, %v9379_v9 }
 0xa1c   : > { %3636 = vperm.xlu0 %8574, %v3090_v5   ;;  %v10769_v61 = vpop.permute.xlu1 %3310 }
 0xa1e   : > { %v3101_v24 = vpop.permute.xlu0 %3100  ;;  %3641 = vperm.xlu1 %8575, %v3091_v44   ;;  %v3173_v44 = vrot.slane %v8238_v45, %v9469_v37 }
 0xa1f   : > { %v3108_v14 = vsel %vm980_vm6, %v3093_v50, %v3101_v24  ;;  %v3112_v31 = vsel %vm980_vm6, %v3101_v24, %v3093_v50 }
 0xa20   : > { %v3103_v20 = vpop.permute.xlu1 %3102  ;;  %v3128_v28 = vmul.f32 %v3121_v60, %v3112_v31  ;;  %v3129_v15 = vmul.f32 %v3125_v29, %v3108_v14 }
 0xa21   : > { %v3109_v10 = vsel %vm980_vm6, %v3095_v42, %v3103_v20  ;;  %v3113_v35 = vsel %vm980_vm6, %v3103_v20, %v3095_v42 }
 0xa22   : > { %v3130_v23 = vmul.f32 %v3121_v60, %v3113_v35  ;;  %v3131_v40 = vmul.f32 %v3125_v29, %v3109_v10  ;;  %v3153_v56 = vpop.permute.xlu0 %3152 }
 0xa23   : > { %v3160_v24 = vsel %vm1003_vm3, %v10732_v25, %v3153_v56 }
 0xa24   : > { %v3588_v38 = vpack.c.bf16 %v3130_v23, %v3128_v28  ;;  %v3155_v53 = vpop.permute.xlu1 %3154  ;;  %v3589_v55 = vpack.c.bf16 %v3131_v40, %v3129_v15 }
 0xa25   : > { %v3161_v42 = vsel %vm1003_vm3, %v3147_v41, %v3155_v53  ;;  %v3165_v31 = vsel %vm1003_vm3, %v3155_v53, %v3147_v41  ;;  %v8239_v41 = vld [vmem:[%s13828_s21 + $0x2] ss:$8 sm:$0x3] }
 0xa26   : > { %v10781_v51 = vpop.permute.xlu0 %3204  ;;  %3680 = vmatprep.subr.bf16.mxu0 %v3589_v55  ;;  %v3183_v20 = vmul.f32 %v3177_v7, %v3161_v42  ;;  %v3164_v55 = vsel %vm1003_vm3, %v3153_v56, %v10732_v25  ;;  %v3182_v45 = vmul.f32 %v3173_v44, %v3165_v31  ;;  %v3229_v25 = vrot.slane %v8239_v41, %v9379_v9 }
 0xa27   : > { %3681 = vmatpush1.bf16.msra.mxu0 %v3588_v38  ;;  %v3212_v31 = vsel %vm1027_vm4, %v10738_v48, %v10781_v51 }
 0xa28   : > { %v3207_v22 = vpop.permute.xlu1 %3206 }
 0xa2a   : > { %v10783_v54 = vpop.permute.xlu0 %3256 }
 0xa2c   : > { %v10785_v21 = vpop.permute.xlu1 %3258 }
 0xa2e   : > { %v3097_v30 = vpop.permute.xlu0 %3096 }
 0xa30   : > { %v3099_v27 = vpop.permute.xlu1 %3098 }
 0xa32   : > { %v3149_v62 = vpop.permute.xlu0 %3148 }
 0xa34   : > { %v3151_v58 = vpop.permute.xlu1 %3150 }
 0xa36   : > { %v10787_v3 = vpop.permute.xlu0 %3200 }
 0xa38   : > { %v10789_v0 = vpop.permute.xlu1 %3202 }
 0xa3a   : > { %v10791_v34 = vpop.permute.xlu0 %3252 }
 0xa3c   : > { %v10796_v50 = vpop.permute.xlu1 %3254 }
 0xa3e   : > { %v3105_v26 = vpop.permute.xlu0 %3104 }
 0xa3f   : > { %v3110_v5 = vsel %vm980_vm6, %v3097_v30, %v3105_v26  ;;  %v3114_v18 = vsel %vm980_vm6, %v3105_v26, %v3097_v30  ;;  %v3181_v30 = vmul.f32 %v3177_v7, %v3160_v24  ;;  %v3180_v26 = vmul.f32 %v3173_v44, %v3164_v55 }
 0xa40   : > { %v3107_v14 = vpop.permute.xlu1 %3106  ;;  %v3132_v28 = vmul.f32 %v3121_v60, %v3114_v18  ;;  %v3133_v15 = vmul.f32 %v3125_v29, %v3110_v5 }
 0xa41   : > { %v3111_v10 = vsel %vm980_vm6, %v3099_v27, %v3107_v14  ;;  %v3115_v35 = vsel %vm980_vm6, %v3107_v14, %v3099_v27  ;;  %v3593_v5 = vpack.c.bf16 %v3183_v20, %v3181_v30  ;;  %v3592_v24 = vpack.c.bf16 %v3182_v45, %v3180_v26 }
 0xa42   : > { %v3134_v23 = vmul.f32 %v3121_v60, %v3115_v35  ;;  %v3135_v40 = vmul.f32 %v3125_v29, %v3111_v10  ;;  %v10815_v38 = vpop.permute.xlu0 %3316  ;;  %v3213_v60 = vsel %vm1027_vm4, %v10744_v52, %v3207_v22  ;;  %v3225_v14 = vrot.slane %v8239_v41, %v9469_v37 }
 0xa43   : > { %v3217_v20 = vsel %vm1027_vm4, %v3207_v22, %v10744_v52  ;;  %v3235_v35 = vmul.f32 %v3229_v25, %v3213_v60  ;;  %v3216_v45 = vsel %vm1027_vm4, %v10781_v51, %v10738_v48  ;;  %v3233_v41 = vmul.f32 %v3229_v25, %v3212_v31  ;;  %v8240_v22 = vld [vmem:[%s13828_s21 + $0x3] ss:$8 sm:$0x3] }
 0xa44   : > { %v3590_v53 = vpack.c.bf16 %v3134_v23, %v3132_v28  ;;  %v10823_v42 = vpop.permute.xlu1 %3318  ;;  %v3591_v27 = vpack.c.bf16 %v3135_v40, %v3133_v15  ;;  %v3234_v52 = vmul.f32 %v3225_v14, %v3217_v20  ;;  %v3232_v26 = vmul.f32 %v3225_v14, %v3216_v45 }
 0xa45   : > { %v3597_v48 = vpack.c.bf16 %v3235_v35, %v3233_v41  ;;  %v3281_v51 = vrot.slane %v8240_v22, %v9379_v9 }
 0xa46   : > { %v3157_v29 = vpop.permute.xlu0 %3156  ;;  %3682 = vmatprep.subr.bf16.mxu0 %v3591_v27 }
 0xa47   : > { %v3162_v56 = vsel %vm1003_vm3, %v3149_v62, %v3157_v29  ;;  %v3166_v18 = vsel %vm1003_vm3, %v3157_v29, %v3149_v62  ;;  %3683 = vmatpush1.bf16.msra.mxu0 %v3590_v53 }
 0xa48   : > { %3684 = vmatprep.subr.bf16.mxu0 %v3593_v5  ;;  %v3159_v10 = vpop.permute.xlu1 %3158  ;;  %v3184_v15 = vmul.f32 %v3173_v44, %v3166_v18  ;;  %v3185_v23 = vmul.f32 %v3177_v7, %v3162_v56  ;;  %v3596_v5 = vpack.c.bf16 %v3234_v52, %v3232_v26  ;;  %v3264_v56 = vsel %vm1051_vm5, %v10749_v32, %v10783_v54 }
 0xa49   : > { %v3163_v28 = vsel %vm1003_vm3, %v3151_v58, %v3159_v10  ;;  %v3167_v62 = vsel %vm1003_vm3, %v3159_v10, %v3151_v58 }
 0xa4a   : > { %v3186_v40 = vmul.f32 %v3173_v44, %v3167_v62  ;;  %v3187_v55 = vmul.f32 %v3177_v7, %v3163_v28  ;;  %v3209_v30 = vpop.permute.xlu0 %3208  ;;  %v3265_v7 = vsel %vm1051_vm5, %v10756_v57, %v10785_v21 }
 0xa4b   : > { %3685 = vmatpush1.bf16.msra.mxu0 %v3592_v24  ;;  %v3214_v60 = vsel %vm1027_vm4, %v10787_v3, %v3209_v30  ;;  %v3218_v29 = vsel %vm1027_vm4, %v3209_v30, %v10787_v3  ;;  %v3269_v24 = vsel %vm1051_vm5, %v10785_v21, %v10756_v57  ;;  %v3287_v31 = vmul.f32 %v3281_v51, %v3265_v7 }
 0xa4c   : > { %v3594_v53 = vpack.c.bf16 %v3186_v40, %v3184_v15  ;;  %v10852_v27 = vpop.permute.xlu1 %3314  ;;  %v3595_v58 = vpack.c.bf16 %v3187_v55, %v3185_v23  ;;  %v3236_v20 = vmul.f32 %v3225_v14, %v3218_v29  ;;  %v3237_v35 = vmul.f32 %v3229_v25, %v3214_v60 }
 0xa4d   : > { %v3277_v23 = vrot.slane %v8240_v22, %v9469_v37  ;;  %v3268_v57 = vsel %vm1051_vm5, %v10783_v54, %v10749_v32  ;;  %v3285_v21 = vmul.f32 %v3281_v51, %v3264_v56 }
 0xa4e   : > { %v3261_v44 = vpop.permute.xlu0 %3260  ;;  %3686 = vmatprep.subr.bf16.mxu0 %v3595_v58 }
 0xa4f   : > { %3687 = vmatpush1.bf16.msra.mxu0 %v3594_v53  ;;  %v3286_v45 = vmul.f32 %v3277_v23, %v3269_v24  ;;  %v3601_v41 = vpack.c.bf16 %v3287_v31, %v3285_v21  ;;  %v3270_v52 = vsel %vm1051_vm5, %v3261_v44, %v10791_v34  ;;  %v3328_v31 = vsel %vm1077_vm7, %v10815_v38, %v10761_v19 }
 0xa50   : > { %3688 = vmatprep.subr.bf16.mxu0 %v3597_v48  ;;  %v3211_v18 = vpop.permute.xlu1 %3210  ;;  %v3288_v58 = vmul.f32 %v3277_v23, %v3270_v52 }
 0xa51   : > { %v3215_v10 = vsel %vm1027_vm4, %v10789_v0, %v3211_v18  ;;  %v3219_v3 = vsel %vm1027_vm4, %v3211_v18, %v10789_v0  ;;  %v3605_v18 = vpack.c.bf16 %v10622_v8, %v10618_v46  ;;  %v3325_v46 = vsel %vm1077_vm7, %v10769_v61, %v10823_v42 }
 0xa52   : > { %v3238_v28 = vmul.f32 %v3225_v14, %v3219_v3  ;;  %v3239_v62 = vmul.f32 %v3229_v25, %v3215_v10  ;;  %v3313_v15 = vpop.permute.xlu0 %3312  ;;  %v3284_v14 = vmul.f32 %v3277_v23, %v3268_v57  ;;  %v3266_v25 = vsel %vm1051_vm5, %v10791_v34, %v3261_v44 }
 0xa53   : > { %3689 = vmatpush1.bf16.msra.mxu0 %v3596_v5  ;;  %v3289_v26 = vmul.f32 %v3281_v51, %v3266_v25  ;;  %v8241_v5 = vld [vmem:[%s13828_s21 + $0x5] ss:$8 sm:$0x3]  ;;  %v3604_v8 = vpack.c.bf16 %v10596_v33, %v10591_v36  ;;  %v8242_v33 = vld [vmem:[%s13828_s21 + $0x6] ss:$8 sm:$0x3] }
 0xa54   : > { %v3598_v40 = vpack.c.bf16 %v3238_v28, %v3236_v20  ;;  %v10884_v55 = vpop.permute.xlu1 %3362  ;;  %v3599_v30 = vpack.c.bf16 %v3239_v62, %v3237_v35  ;;  %v3600_v54 = vpack.c.bf16 %v3286_v45, %v3284_v14  ;;  %v3337_v10 = vrot.slane %v8241_v5, %v9469_v37 }
 0xa55   : > { %v3607_v35 = vpack.c.bf16 %v10666_v49, %v10662_v16  ;;  %v3324_v28 = vsel %vm1077_vm7, %v10761_v19, %v10815_v38  ;;  %v3606_v16 = vpack.c.bf16 %v10644_v4, %v10640_v12  ;;  %v3393_v45 = vrot.slane %v8242_v33, %v9379_v9 }
 0xa56   : > { %v3321_v0 = vpop.permute.xlu0 %3320  ;;  %3690 = vmatprep.subr.bf16.mxu0 %v3599_v30  ;;  %v3344_v49 = vmul.f32 %v3337_v10, %v3324_v28  ;;  %v3389_v30 = vrot.slane %v8242_v33, %v9469_v37 }
 0xa57   : > { %3691 = vmatpush1.bf16.msra.mxu0 %v3598_v40  ;;  %v3326_v36 = vsel %vm1077_vm7, %v3313_v15, %v3321_v0  ;;  %v3330_v19 = vsel %vm1077_vm7, %v3321_v0, %v3313_v15 }
 0xa58   : > { %3692 = vmatprep.subr.bf16.mxu0 %v3601_v41  ;;  %v3263_v32 = vpop.permute.xlu1 %3262  ;;  %v3348_v40 = vmul.f32 %v3337_v10, %v3326_v36 }
 0xa59   : > { %v3267_v22 = vsel %vm1051_vm5, %v10796_v50, %v3263_v32  ;;  %v3271_v53 = vsel %vm1051_vm5, %v3263_v32, %v10796_v50  ;;  %v3329_v50 = vsel %vm1077_vm7, %v10823_v42, %v10769_v61 }
 0xa5a   : > { %v3290_v7 = vmul.f32 %v3277_v23, %v3271_v53  ;;  %v3291_v48 = vmul.f32 %v3281_v51, %v3267_v22  ;;  %v3361_v60 = vpop.permute.xlu0 %3360  ;;  %v3341_v51 = vrot.slane %v8241_v5, %v9379_v9  ;;  %v3346_v23 = vmul.f32 %v3337_v10, %v3325_v46 }
 0xa5b   : > { %3693 = vmatpush1.bf16.msra.mxu0 %v3600_v54 }
 0xa5c   : > { %v3602_v29 = vpack.c.bf16 %v3290_v7, %v3288_v58  ;;  %v3371_v34 = vpop.permute.xlu1 %3370  ;;  %v3603_v44 = vpack.c.bf16 %v3291_v48, %v3289_v26  ;;  %v3347_v3 = vmul.f32 %v3341_v51, %v3329_v50  ;;  %v3345_v62 = vmul.f32 %v3341_v51, %v3328_v31 }
 0xa5d   : > { %v3608_v21 = vpack.c.bf16 %v3346_v23, %v3344_v49  ;;  %v3381_v12 = vsel %vm1101_vm8, %v3371_v34, %v10884_v55  ;;  %v3349_v14 = vmul.f32 %v3341_v51, %v3330_v19  ;;  %v3377_v22 = vsel %vm1101_vm8, %v10884_v55, %v3371_v34 }
 0xa5e   : > { %v3369_v56 = vpop.permute.xlu0 %3368  ;;  %3694 = vmatprep.subr.bf16.mxu0 %v3603_v44  ;;  %v3609_v57 = vpack.c.bf16 %v3347_v3, %v3345_v62  ;;  %v3399_v53 = vmul.f32 %v3393_v45, %v3381_v12 }
 0xa5f   : > { %3695 = vmatpush1.bf16.msra.mxu0 %v3602_v29  ;;  %v3380_v38 = vsel %vm1101_vm8, %v3369_v56, %v3361_v60  ;;  %v3376_v4 = vsel %vm1101_vm8, %v3361_v60, %v3369_v56  ;;  %v3398_v29 = vmul.f32 %v3389_v30, %v3377_v22 }
 0xa60   : > { %3696 = vmatprep.subr.bf16.mxu0 %v3605_v18  ;;  %v10908_v24 = vpop.permute.xlu1 %3366  ;;  %v3397_v25 = vmul.f32 %v3393_v45, %v3380_v38  ;;  %v3396_v58 = vmul.f32 %v3389_v30, %v3376_v4 }
 0xa62   : > { %v3365_v20 = vpop.permute.xlu0 %3364  ;;  %v3613_v55 = vpack.c.bf16 %v3399_v53, %v3397_v25  ;;  %v3612_v56 = vpack.c.bf16 %v3398_v29, %v3396_v58  ;;  %v8244_v25 = vld [vmem:[%s13828_s21 + $0x10] ss:$8 sm:$0x3] }
 0xa63   : > { %3697 = vmatpush1.bf16.msra.mxu0 %v3604_v8  ;;  %v3493_v22 = vrot.slane %v8244_v25, %v9469_v37  ;;  %v3497_v53 = vrot.slane %v8244_v25, %v9379_v9 }
 0xa64   : > { %3698 = vmatprep.subr.bf16.mxu0 %v3607_v35  ;;  %v3415_v61 = vpop.permute.xlu1 %3414 }
 0xa66   : > { %v3373_v42 = vpop.permute.xlu0 %3372 }
 0xa67   : > { %3699 = vmatpush1.bf16.msra.mxu0 %v3606_v16  ;;  %v3378_v60 = vsel %vm1101_vm8, %v3365_v20, %v3373_v42  ;;  %v3382_v44 = vsel %vm1101_vm8, %v3373_v42, %v3365_v20 }
 0xa68   : > { %3700 = vmatprep.subr.bf16.mxu0 %v3609_v57  ;;  %v3323_v41 = vpop.permute.xlu1 %3322  ;;  %v3400_v18 = vmul.f32 %v3389_v30, %v3378_v60  ;;  %v3401_v31 = vmul.f32 %v3393_v45, %v3382_v44  ;;  %v8642_v60 = vld [vmem:[#allocation14 + $0x1c] ss:$12 sps:$4 sm:$0xff]  }
 0xa69   : > { %v3327_v15 = vsel %vm1077_vm7, %v10852_v27, %v3323_v41  ;;  %v3331_v0 = vsel %vm1077_vm7, %v3323_v41, %v10852_v27  ;;  %v8243_v27 = vld [vmem:[%s13828_s21 + $0x7] ss:$8 sm:$0x3] }
 0xa6a   : > { %v3350_v52 = vmul.f32 %v3337_v10, %v3327_v15  ;;  %v3351_v32 = vmul.f32 %v3341_v51, %v3331_v0  ;;  %v3413_v54 = vpop.permute.xlu0 %3412  ;;  %v3445_v50 = vrot.slane %v8243_v27, %v9379_v9  ;;  %v3441_v23 = vrot.slane %v8243_v27, %v9469_v37 }
 0xa6b   : > { %3701 = vmatpush1.bf16.msra.mxu0 %v3608_v21 }
 0xa6c   : > { %v3610_v26 = vpack.c.bf16 %v3350_v52, %v3348_v40  ;;  %v3423_v7 = vpop.permute.xlu1 %3422  ;;  %v3611_v48 = vpack.c.bf16 %v3351_v32, %v3349_v14 }
 0xa6d   : > { %v3433_v46 = vsel %vm1125_vm11, %v3423_v7, %v3415_v61  ;;  %v3429_v36 = vsel %vm1125_vm11, %v3415_v61, %v3423_v7 }
 0xa6e   : > { %v3421_v5 = vpop.permute.xlu0 %3420  ;;  %3702 = vmatprep.subr.bf16.mxu0 %v3611_v48  ;;  %v3451_v33 = vmul.f32 %v3445_v50, %v3433_v46  ;;  %v3450_v38 = vmul.f32 %v3441_v23, %v3429_v36 }
 0xa6f   : > { %v3432_v34 = vsel %vm1125_vm11, %v3421_v5, %v3413_v54  ;;  %3703 = vmatpush1.bf16.msra.mxu0 %v3610_v26  ;;  %v3428_v3 = vsel %vm1125_vm11, %v3413_v54, %v3421_v5  ;;  %v8639_v26 = vld [vmem:[#allocation14] ss:$12 sps:$4 sm:$0xff]  }
 0xa70   : > { %3704 = vmatprep.subr.bf16.mxu0 %v3613_v55  ;;  %v3375_v51 = vpop.permute.xlu1 %3374  ;;  %v3449_v20 = vmul.f32 %v3445_v50, %v3432_v34  ;;  %v3448_v57 = vmul.f32 %v3441_v23, %v3428_v3 }
 0xa71   : > { %v3379_v8 = vsel %vm1101_vm8, %v10908_v24, %v3375_v51  ;;  %v3383_v10 = vsel %vm1101_vm8, %v3375_v51, %v10908_v24 }
 0xa72   : > { %v3402_v35 = vmul.f32 %v3389_v30, %v3379_v8  ;;  %v3403_v28 = vmul.f32 %v3393_v45, %v3383_v10  ;;  %v3417_v62 = vpop.permute.xlu0 %3416  ;;  %v3617_v24 = vpack.c.bf16 %v3451_v33, %v3449_v20  ;;  %v3616_v45 = vpack.c.bf16 %v3450_v38, %v3448_v57  ;;  %v8644_v8 = vld [vmem:[#allocation14 + $0x18] ss:$12 sps:$4 sm:$0xff]   ;;  %v8646_v57 = vld [vmem:[#allocation14 + $0x20] ss:$12 sps:$4 sm:$0xff]  }
 0xa73   : > { %3705 = vmatpush1.bf16.msra.mxu0 %v3612_v56  ;;  %v11011_v38 = vstv %s8176_s23 }
 0xa74   : > { %v3614_v16 = vpack.c.bf16 %v3402_v35, %v3400_v18  ;;  %v3419_v49 = vpop.permute.xlu1 %3418  ;;  %v3615_v42 = vpack.c.bf16 %v3403_v28, %v3401_v31 }
 0xa76   : > { %v3425_v19 = vpop.permute.xlu0 %3424  ;;  %3706 = vmatprep.subr.bf16.mxu0 %v3615_v42  ;;  %v8645_v42 = vld [vmem:[#allocation14 + $0x8] ss:$12 sps:$4 sm:$0xff]  }
 0xa77   : > { %v3430_v21 = vsel %vm1125_vm11, %v3417_v62, %v3425_v19  ;;  %v3434_v40 = vsel %vm1125_vm11, %v3425_v19, %v3417_v62  ;;  %3707 = vmatpush1.bf16.msra.mxu0 %v3614_v16 }
 0xa78   : > { %3708 = vmatprep.subr.bf16.mxu0 %v3617_v24  ;;  %v3427_v30 = vpop.permute.xlu1 %3426  ;;  %v3452_v12 = vmul.f32 %v3441_v23, %v3430_v21  ;;  %v3453_v4 = vmul.f32 %v3445_v50, %v3434_v40 }
 0xa79   : > { %v3431_v61 = vsel %vm1125_vm11, %v3419_v49, %v3427_v30  ;;  %v3435_v41 = vsel %vm1125_vm11, %v3427_v30, %v3419_v49 }
 0xa7a   : > { %v3454_v15 = vmul.f32 %v3441_v23, %v3431_v61  ;;  %v3455_v0 = vmul.f32 %v3445_v50, %v3435_v41  ;;  %v3465_v14 = vpop.permute.xlu0 %3464 }
 0xa7b   : > { %3709 = vmatpush1.bf16.msra.mxu0 %v3616_v45 }
 0xa7c   : > { %v3618_v52 = vpack.c.bf16 %v3454_v15, %v3452_v12  ;;  %v3467_v32 = vpop.permute.xlu1 %3466  ;;  %v3619_v54 = vpack.c.bf16 %v3455_v0, %v3453_v4 }
 0xa7e   : > { %v3473_v58 = vpop.permute.xlu0 %3472  ;;  %3710 = vmatprep.subr.bf16.mxu0 %v3619_v54 }
 0xa7f   : > { %v3480_v7 = vsel %vm1149_vm12, %v3465_v14, %v3473_v58  ;;  %v3484_v48 = vsel %vm1149_vm12, %v3473_v58, %v3465_v14  ;;  %3711 = vmatpush1.bf16.msra.mxu0 %v3618_v52 }
 0xa80   : > { %v3475_v27 = vpop.permute.xlu1 %3474  ;;  %v3500_v5 = vmul.f32 %v3493_v22, %v3480_v7  ;;  %v3501_v55 = vmul.f32 %v3497_v53, %v3484_v48 }
 0xa81   : > { %v3481_v29 = vsel %vm1149_vm12, %v3467_v32, %v3475_v27  ;;  %v3485_v44 = vsel %vm1149_vm12, %v3475_v27, %v3467_v32 }
 0xa82   : > { %v3502_v34 = vmul.f32 %v3493_v22, %v3481_v29  ;;  %v3503_v56 = vmul.f32 %v3497_v53, %v3485_v44  ;;  %v3469_v18 = vpop.permute.xlu0 %3468  ;;  %3713 = vmatmul.mubr.bf16.vlgmr.msra.gmra.mrb[8].mxu0 %v8639_v26 }
 0xa83   : > { %3722 = vmatprep.mubr.bf16.mxu0 %v8642_v60 }
 0xa84   : > { %v3620_v50 = vpack.c.bf16 %v3502_v34, %v3500_v5  ;;  %v3471_v51 = vpop.permute.xlu1 %3470  ;;  %v3621_v31 = vpack.c.bf16 %v3503_v56, %v3501_v55 }
 0xa86   : > { %v3477_v46 = vpop.permute.xlu0 %3476  ;;  %3733 = vmatprep.subr.bf16.mxu0 %v3621_v31 }
 0xa87   : > { %v3482_v10 = vsel %vm1149_vm12, %v3469_v18, %v3477_v46  ;;  %v3486_v3 = vsel %vm1149_vm12, %v3477_v46, %v3469_v18  ;;  %3734 = vmatpush1.bf16.msra.mxu0 %v3620_v50 }
 0xa88   : > { %v3479_v20 = vpop.permute.xlu1 %3478  ;;  %v3504_v62 = vmul.f32 %v3493_v22, %v3482_v10  ;;  %v3505_v23 = vmul.f32 %v3497_v53, %v3486_v3 }
 0xa89   : > { %v3483_v35 = vsel %vm1149_vm12, %v3471_v51, %v3479_v20  ;;  %v3487_v28 = vsel %vm1149_vm12, %v3479_v20, %v3471_v51 }
 0xa8a   : > { %v3506_v36 = vmul.f32 %v3493_v22, %v3483_v35  ;;  %v3507_v33 = vmul.f32 %v3497_v53, %v3487_v28  ;;  %3723 = vmatmul.mubr.bf16.gmra.mrb[12].mxu0 %v8644_v8  ;;  %v11152_v8 = vld [vmem:[%s13843_s16] sm:$0x77] }
 0xa8b   : > { %3765 = vmatprep.mubr.bf16.mxu0 %v13826_v59  ;;  %v8261_v10 = vcombine.high %v11152_v8, %v11152_v8 }
 0xa8c   : > { %v3622_v16 = vpack.c.bf16 %v3506_v36, %v3504_v62  ;;  %v3623_v49 = vpack.c.bf16 %v3507_v33, %v3505_v23  ;;  %v3813_v36 = vld [vmem:[%s13844_s5] sm:$0x1f] }
 0xa8d   : > { %4396 = vmatprep.mubr.bf16.mxu1 %v8261_v10 }
 0xa8e   : > { %3735 = vmatprep.subr.bf16.mxu0 %v3623_v49 }
 0xa8f   : > { %3736 = vmatpush1.bf16.msra.mxu0 %v3622_v16 }
 0xa92   : > { %8251 = vmatmul.mubr.msk.bf16.vlgmr.msra.gmra.mrb[8].mxu0 %vm1913_vm2, %v8645_v42  ;;  %v3838_v42 = vld [vmem:[%s13828_s21] ss:$8 sm:$0x3] }
 0xa93   : > { %3775 = vmatprep.mubr.bf16.mxu0 %v13826_v59 }
 0xa97   : > { %v3627_v19 = vpop.permute.xlu0 %3626 }
 0xa99   : > { %v3632_v30 = vpop.permute.xlu1 %3631 }
 0xa9a   : > { %8252 = vmatmul.mubr.msk.bf16.gmra.mrb[12].mxu0 %vm1913_vm2, %v8646_v57 }
 0xa9b   : > { %4805 = vmatprep.mubr.bf16.mxu0 %v13826_v59  ;;  %v3637_v48 = vpop.permute.xlu0 %3636 }
 0xa9d   : > { %v3642_v27 = vpop.permute.xlu1 %3641 }
 0xb65   : > { %v3767_v24 = vpop.f32.mrb[8].mxu0 }
 0xb66   : > { %v8399_v21 = vadd.f32 %v3767_v24, %v3627_v19  ;;  %v3769_v40 = vpop.f32.mrb[9].mxu0  ;;  %v3847_v24 = vrot.slane %v3838_v42, %v9379_v9 }
 0xb67   : > { %v3771_v45 = vpop.f32.mrb[10].mxu0  ;;  %v8400_v54 = vadd.f32 %v3769_v40, %v3627_v19  ;;  %v3843_v19 = vrot.slane %v3838_v42, %v9469_v37 }
 0xb68   : > { %vm3786_vm13 = vcmp.gt.f32.partialorder %v8399_v21, 0.0  ;;  %v3795_v61 = vmul.f32 %v8399_v21, %v11011_v38  ;;  %v8401_v41 = vadd.f32 %v3771_v45, %v3632_v30  ;;  %v3773_v12 = vpop.f32.mrb[11].mxu0 }
 0xb69   : > { %v8402_v22 = vadd.f32 %v3773_v12, %v3632_v30  ;;  %v3796_v53 = vmul.f32 %v8400_v54, %v11011_v38  ;;  %vm3787_vm9 = vcmp.gt.f32.partialorder %v8400_v54, 0.0 }
 0xb6a   : > { %v11014_v4 = vsel %vm3786_vm13, %v8399_v21, %v3795_v61  ;;  %vm3788_vm15 = vcmp.gt.f32.partialorder %v8401_v41, 0.0  ;;  %v3797_v15 = vmul.f32 %v8401_v41, %v11011_v38 }
 0xb6b   : > { %3814 = vrot.lane.b32.xlu0 %v11014_v4, %s13757_s26  ;;  %v3798_v58 = vmul.f32 %v8402_v22, %v11011_v38  ;;  %vm3789_vm13 = vcmp.gt.f32.partialorder %v8402_v22, 0.0  ;;  %v11041_v26 = vsel %vm3787_vm9, %v8400_v54, %v3796_v53 }
 0xb6c   : > { %v11019_v0 = vsel %vm3788_vm15, %v8401_v41, %v3797_v15 }
 0xb6d   : > { %v3777_v14 = vpop.f32.mrb[12].mxu0  ;;  %3816 = vrot.lane.b32.xlu1 %v11019_v0, %s13757_s26  ;;  %v11045_v7 = vsel %vm3789_vm13, %v8402_v22, %v3798_v58 }
 0xb6e   : > { %v3779_v25 = vpop.f32.mrb[13].mxu0  ;;  %v8403_v60 = vadd.f32 %v3777_v14, %v3637_v48 }
 0xb6f   : > { %v3781_v52 = vpop.f32.mrb[14].mxu0  ;;  %3866 = vrot.lane.b32.xlu0 %v11014_v4, %s13839_s20  ;;  %v8404_v56 = vadd.f32 %v3779_v25, %v3637_v48 }
 0xb70   : > { %v3783_v32 = vpop.f32.mrb[15].mxu0  ;;  %v8405_v29 = vadd.f32 %v3781_v52, %v3642_v27  ;;  %v3799_v44 = vmul.f32 %v8403_v60, %v11011_v38  ;;  %vm3790_vm15 = vcmp.gt.f32.partialorder %v8403_v60, 0.0 }
 0xb71   : > { %3868 = vrot.lane.b32.xlu1 %v11019_v0, %s13839_s20  ;;  %v8406_v18 = vadd.f32 %v3783_v32, %v3642_v27  ;;  %v3800_v50 = vmul.f32 %v8404_v56, %v11011_v38  ;;  %vm3791_vm13 = vcmp.gt.f32.partialorder %v8404_v56, 0.0 }
 0xb72   : > { %v3801_v5 = vmul.f32 %v8405_v29, %v11011_v38  ;;  %vm3792_vm9 = vcmp.gt.f32.partialorder %v8405_v29, 0.0  ;;  %v11067_v55 = vsel %vm3790_vm15, %v8403_v60, %v3799_v44 }
 0xb73   : > { %3918 = vrot.lane.b32.xlu0 %v11014_v4, %s13840_s2  ;;  %v3802_v51 = vmul.f32 %v8406_v18, %v11011_v38  ;;  %vm3793_vm15 = vcmp.gt.f32.partialorder %v8406_v18, 0.0  ;;  %v11093_v31 = vsel %vm3791_vm13, %v8404_v56, %v3800_v50 }
 0xb74   : > { %v11071_v34 = vsel %vm3792_vm9, %v8405_v29, %v3801_v5  ;;  %vm13847_vm9 = vcmask 1046528  }
 0xb75   : > { %3920 = vrot.lane.b32.xlu1 %v11019_v0, %s13840_s2  ;;  %v11097_v46 = vsel %vm3793_vm15, %v8406_v18, %v3802_v51  ;;  %vm13849_vm13 = vmmov %vm13847_vm9 }
 0xb77   : > { %3970 = vrot.lane.b32.xlu0 %v11014_v4, %s13841_s13 }
 0xb79   : > { %3972 = vrot.lane.b32.xlu1 %v11019_v0, %s13841_s13 }
 0xb7b   : > { %4030 = vrot.lane.b32.xlu0 %v11014_v4, %s13842_s4 }
 0xb7d   : > { %4032 = vrot.lane.b32.xlu1 %v11019_v0, %s13842_s4 }
 0xb7f   : > { %3822 = vrot.lane.b32.xlu0 %v11041_v26, %s13757_s26 }
 0xb81   : > { %3824 = vrot.lane.b32.xlu1 %v11045_v7, %s13757_s26 }
 0xb83   : > { %3874 = vrot.lane.b32.xlu0 %v11041_v26, %s13839_s20 }
 0xb85   : > { %3876 = vrot.lane.b32.xlu1 %v11045_v7, %s13839_s20 }
 0xb87   : > { %3926 = vrot.lane.b32.xlu0 %v11041_v26, %s13840_s2 }
 0xb89   : > { %3928 = vrot.lane.b32.xlu1 %v11045_v7, %s13840_s2 }
 0xb8b   : > { %3978 = vrot.lane.b32.xlu0 %v11041_v26, %s13841_s13 }
 0xb8d   : > { %3980 = vrot.lane.b32.xlu1 %v11045_v7, %s13841_s13 }
 0xb8f   : > { %4038 = vrot.lane.b32.xlu0 %v11041_v26, %s13842_s4 }
 0xb91   : > { %4040 = vrot.lane.b32.xlu1 %v11045_v7, %s13842_s4 }
 0xb93   : > { %3818 = vrot.lane.b32.xlu0 %v11067_v55, %s13757_s26 }
 0xb95   : > { %3820 = vrot.lane.b32.xlu1 %v11071_v34, %s13757_s26 }
 0xb97   : > { %3870 = vrot.lane.b32.xlu0 %v11067_v55, %s13839_s20 }
 0xb99   : > { %3872 = vrot.lane.b32.xlu1 %v11071_v34, %s13839_s20 }
 0xb9b   : > { %3922 = vrot.lane.b32.xlu0 %v11067_v55, %s13840_s2 }
 0xb9d   : > { %3924 = vrot.lane.b32.xlu1 %v11071_v34, %s13840_s2 }
 0xb9f   : > { %3974 = vrot.lane.b32.xlu0 %v11067_v55, %s13841_s13 }
 0xba1   : > { %3976 = vrot.lane.b32.xlu1 %v11071_v34, %s13841_s13 }
 0xba3   : > { %4034 = vrot.lane.b32.xlu0 %v11067_v55, %s13842_s4 }
 0xba5   : > { %4036 = vrot.lane.b32.xlu1 %v11071_v34, %s13842_s4 }
 0xba7   : > { %3826 = vrot.lane.b32.xlu0 %v11093_v31, %s13757_s26 }
 0xba9   : > { %3828 = vrot.lane.b32.xlu1 %v11097_v46, %s13757_s26 }
 0xbab   : > { %4082 = vrot.lane.b32.xlu0 %v11014_v4, %s13835_s12 }
 0xbad   : > { %4084 = vrot.lane.b32.xlu1 %v11019_v0, %s13835_s12 }
 0xbaf   : > { %3878 = vrot.lane.b32.xlu0 %v11093_v31, %s13839_s20 }
 0xbb1   : > { %3880 = vrot.lane.b32.xlu1 %v11097_v46, %s13839_s20 }
 0xbb3   : > { %3930 = vrot.lane.b32.xlu0 %v11093_v31, %s13840_s2 }
 0xbb5   : > { %4092 = vrot.lane.b32.xlu1 %v11045_v7, %s13835_s12 }
 0xbb7   : > { %3982 = vrot.lane.b32.xlu0 %v11093_v31, %s13841_s13 }
 0xbb9   : > { %3932 = vrot.lane.b32.xlu1 %v11097_v46, %s13840_s2 }
 0xbbb   : > { %4042 = vrot.lane.b32.xlu0 %v11093_v31, %s13842_s4 }
 0xbbd   : > { %4088 = vrot.lane.b32.xlu1 %v11071_v34, %s13835_s12 }
 0xbbf   : > { %4090 = vrot.lane.b32.xlu0 %v11041_v26, %s13835_s12 }
 0xbc1   : > { %3984 = vrot.lane.b32.xlu1 %v11097_v46, %s13841_s13 }
 0xbc3   : > { %4086 = vrot.lane.b32.xlu0 %v11067_v55, %s13835_s12 }
 0xbc5   : > { %4136 = vrot.lane.b32.xlu1 %v11019_v0, %s13836_s17 }
 0xbc7   : > { %4094 = vrot.lane.b32.xlu0 %v11093_v31, %s13835_s12 }
 0xbc9   : > { %4144 = vrot.lane.b32.xlu1 %v11045_v7, %s13836_s17 }
 0xbcb   : > { %4134 = vrot.lane.b32.xlu0 %v11014_v4, %s13836_s17 }
 0xbcd   : > { %4140 = vrot.lane.b32.xlu1 %v11071_v34, %s13836_s17 }
 0xbcf   : > { %4142 = vrot.lane.b32.xlu0 %v11041_v26, %s13836_s17 }
 0xbd1   : > { %4044 = vrot.lane.b32.xlu1 %v11097_v46, %s13842_s4 }
 0xbd3   : > { %4138 = vrot.lane.b32.xlu0 %v11067_v55, %s13836_s17 }
 0xbd5   : > { %4188 = vrot.lane.b32.xlu1 %v11019_v0, %s13837_s22 }
 0xbd7   : > { %4146 = vrot.lane.b32.xlu0 %v11093_v31, %s13836_s17 }
 0xbd9   : > { %4096 = vrot.lane.b32.xlu1 %v11097_v46, %s13835_s12 }
 0xbdb   : > { %4186 = vrot.lane.b32.xlu0 %v11014_v4, %s13837_s22 }
 0xbdd   : > { %4196 = vrot.lane.b32.xlu1 %v11045_v7, %s13837_s22  ;;  %v3815_v3 = vpop.permute.xlu0 %3814 }
 0xbdf   : > { %v3817_v20 = vpop.permute.xlu1 %3816  ;;  %4194 = vrot.lane.b32.xlu0 %v11041_v26, %s13837_s22 }
 0xbe1   : > { %4148 = vrot.lane.b32.xlu1 %v11097_v46, %s13836_s17  ;;  %v11164_v35 = vpop.permute.xlu0 %3866 }
 0xbe3   : > { %v3869_v28 = vpop.permute.xlu1 %3868  ;;  %4190 = vrot.lane.b32.xlu0 %v11067_v55, %s13837_s22 }
 0xbe5   : > { %4192 = vrot.lane.b32.xlu1 %v11071_v34, %s13837_s22  ;;  %v11170_v62 = vpop.permute.xlu0 %3918 }
 0xbe7   : > { %v11172_v23 = vpop.permute.xlu1 %3920  ;;  %4198 = vrot.lane.b32.xlu0 %v11093_v31, %s13837_s22 }
 0xbe9   : > { %4200 = vrot.lane.b32.xlu1 %v11097_v46, %s13837_s22  ;;  %v11181_v33 = vpop.permute.xlu0 %3970 }
 0xbeb   : > { %v11183_v16 = vpop.permute.xlu1 %3972  ;;  %4348 = vperm.xlu0 %8574, %v3813_v36  }
 0xbed   : > { %v11185_v49 = vpop.permute.xlu0 %4030 }
 0xbef   : > { %v11190_v57 = vpop.permute.xlu1 %4032 }
 0xbf1   : > { %v3823_v38 = vpop.permute.xlu0 %3822 }
 0xbf2   : > { %v3830_v21 = vsel %vm980_vm6, %v3815_v3, %v3823_v38  ;;  %v3834_v40 = vsel %vm980_vm6, %v3823_v38, %v3815_v3 }
 0xbf3   : > { %v3825_v30 = vpop.permute.xlu1 %3824  ;;  %v3850_v41 = vmul.f32 %v3843_v19, %v3834_v40  ;;  %v3851_v12 = vmul.f32 %v3847_v24, %v3830_v21 }
 0xbf4   : > { %v3831_v45 = vsel %vm980_vm6, %v3817_v20, %v3825_v30  ;;  %v3835_v61 = vsel %vm980_vm6, %v3825_v30, %v3817_v20  ;;  %v8253_v20 = vld [vmem:[%s13828_s21 + $0x1] ss:$8 sm:$0x3] }
 0xbf5   : > { %v3852_v15 = vmul.f32 %v3843_v19, %v3835_v61  ;;  %v3853_v14 = vmul.f32 %v3847_v24, %v3831_v45  ;;  %v3875_v25 = vpop.permute.xlu0 %3874  ;;  %v3899_v21 = vrot.slane %v8253_v20, %v9379_v9  ;;  %v3895_v45 = vrot.slane %v8253_v20, %v9469_v37 }
 0xbf6   : > { %v3882_v61 = vsel %vm1003_vm3, %v11164_v35, %v3875_v25  ;;  %v3886_v11 = vsel %vm1003_vm3, %v3875_v25, %v11164_v35 }
 0xbf7   : > { %v4310_v52 = vpack.c.bf16 %v3852_v15, %v3850_v41  ;;  %v3877_v32 = vpop.permute.xlu1 %3876  ;;  %v4311_v54 = vpack.c.bf16 %v3853_v14, %v3851_v12  ;;  %v3903_v1 = vmul.f32 %v3899_v21, %v3882_v61 }
 0xbf8   : > { %v3883_v42 = vsel %vm1003_vm3, %v3869_v28, %v3877_v32  ;;  %v3887_v12 = vsel %vm1003_vm3, %v3877_v32, %v3869_v28  ;;  %v8254_v28 = vld [vmem:[%s13828_s21 + $0x2] ss:$8 sm:$0x3] }
 0xbf9   : > { %4364 = vmatprep.subr.bf16.mxu1 %v4311_v54  ;;  %v11202_v22 = vpop.permute.xlu0 %3926  ;;  %v3905_v15 = vmul.f32 %v3899_v21, %v3883_v42  ;;  %v3904_v47 = vmul.f32 %v3895_v45, %v3887_v12  ;;  %v3951_v35 = vrot.slane %v8254_v28, %v9379_v9 }
 0xbfa   : > { %4365 = vmatpush1.bf16.msra.mxu1 %v4310_v52 }
 0xbfb   : > { %v3929_v53 = vpop.permute.xlu1 %3928 }
 0xbfd   : > { %v11204_v58 = vpop.permute.xlu0 %3978 }
 0xbff   : > { %v11206_v48 = vpop.permute.xlu1 %3980 }
 0xc01   : > { %v11208_v60 = vpop.permute.xlu0 %4038 }
 0xc03   : > { %v11210_v27 = vpop.permute.xlu1 %4040 }
 0xc05   : > { %v3819_v29 = vpop.permute.xlu0 %3818 }
 0xc07   : > { %v3821_v44 = vpop.permute.xlu1 %3820 }
 0xc09   : > { %v3871_v5 = vpop.permute.xlu0 %3870 }
 0xc0b   : > { %v3873_v56 = vpop.permute.xlu1 %3872 }
 0xc0d   : > { %v11212_v18 = vpop.permute.xlu0 %3922 }
 0xc0f   : > { %v11214_v50 = vpop.permute.xlu1 %3924 }
 0xc11   : > { %v11216_v51 = vpop.permute.xlu0 %3974 }
 0xc13   : > { %v11218_v10 = vpop.permute.xlu1 %3976 }
 0xc15   : > { %v11220_v3 = vpop.permute.xlu0 %4034 }
 0xc17   : > { %v11225_v36 = vpop.permute.xlu1 %4036 }
 0xc19   : > { %v3827_v38 = vpop.permute.xlu0 %3826 }
 0xc1a   : > { %v3832_v40 = vsel %vm980_vm6, %v3819_v29, %v3827_v38  ;;  %v3836_v30 = vsel %vm980_vm6, %v3827_v38, %v3819_v29 }
 0xc1b   : > { %v3829_v41 = vpop.permute.xlu1 %3828  ;;  %v3854_v54 = vmul.f32 %v3843_v19, %v3836_v30  ;;  %v3855_v6 = vmul.f32 %v3847_v24, %v3832_v40  ;;  %v3902_v30 = vmul.f32 %v3895_v45, %v3886_v11  ;;  %v4315_v40 = vpack.c.bf16 %v3905_v15, %v3903_v1 }
 0xc1c   : > { %v3833_v14 = vsel %vm980_vm6, %v3821_v44, %v3829_v41  ;;  %v3837_v52 = vsel %vm980_vm6, %v3829_v41, %v3821_v44  ;;  %v3934_v11 = vsel %vm1027_vm4, %v11170_v62, %v11202_v22  ;;  %v3939_v1 = vsel %vm1027_vm4, %v3929_v53, %v11172_v23 }
 0xc1d   : > { %v3856_v29 = vmul.f32 %v3843_v19, %v3837_v52  ;;  %v3857_v38 = vmul.f32 %v3847_v24, %v3833_v14  ;;  %v11244_v20 = vpop.permute.xlu0 %4082  ;;  %v3935_v19 = vsel %vm1027_vm4, %v11172_v23, %v3929_v53  ;;  %v4314_v41 = vpack.c.bf16 %v3904_v47, %v3902_v30  ;;  %v8255_v53 = vld [vmem:[%s13828_s21 + $0x3] ss:$8 sm:$0x3] }
 0xc1e   : > { %v3957_v15 = vmul.f32 %v3951_v35, %v3935_v19 }
 0xc1f   : > { %v4312_v32 = vpack.c.bf16 %v3856_v29, %v3854_v54  ;;  %v11252_v42 = vpop.permute.xlu1 %4084  ;;  %v4313_v44 = vpack.c.bf16 %v3857_v38, %v3855_v6  ;;  %v3947_v6 = vrot.slane %v8254_v28, %v9469_v37  ;;  %v3938_v28 = vsel %vm1027_vm4, %v11202_v22, %v11170_v62 }
 0xc20   : > { %v4003_v22 = vrot.slane %v8255_v53, %v9379_v9 }
 0xc21   : > { %4366 = vmatprep.subr.bf16.mxu1 %v4313_v44  ;;  %v3879_v24 = vpop.permute.xlu0 %3878  ;;  %v3956_v23 = vmul.f32 %v3947_v6, %v3939_v1  ;;  %v3954_v19 = vmul.f32 %v3947_v6, %v3938_v28 }
 0xc22   : > { %v3884_v25 = vsel %vm1003_vm3, %v3871_v5, %v3879_v24  ;;  %v3888_v61 = vsel %vm1003_vm3, %v3879_v24, %v3871_v5  ;;  %4367 = vmatpush1.bf16.msra.mxu1 %v4312_v32  ;;  %v3955_v32 = vmul.f32 %v3951_v35, %v3934_v11  ;;  %v3991_v11 = vsel %vm1051_vm5, %v11206_v48, %v11183_v16 }
 0xc23   : > { %v3881_v12 = vpop.permute.xlu1 %3880  ;;  %4368 = vmatprep.subr.bf16.mxu1 %v4315_v40  ;;  %v3906_v5 = vmul.f32 %v3895_v45, %v3888_v61  ;;  %v3907_v52 = vmul.f32 %v3899_v21, %v3884_v25  ;;  %v4318_v25 = vpack.c.bf16 %v3956_v23, %v3954_v19  ;;  %v3986_v61 = vsel %vm1051_vm5, %v11181_v33, %v11204_v58 }
 0xc24   : > { %v3885_v14 = vsel %vm1003_vm3, %v3873_v56, %v3881_v12  ;;  %v3889_v47 = vsel %vm1003_vm3, %v3881_v12, %v3873_v56  ;;  %v4319_v62 = vpack.c.bf16 %v3957_v15, %v3955_v32 }
 0xc25   : > { %v3908_v54 = vmul.f32 %v3895_v45, %v3889_v47  ;;  %v3909_v29 = vmul.f32 %v3899_v21, %v3885_v14  ;;  %v3931_v38 = vpop.permute.xlu0 %3930  ;;  %v3987_v21 = vsel %vm1051_vm5, %v11183_v16, %v11206_v48  ;;  %v3990_v16 = vsel %vm1051_vm5, %v11204_v58, %v11181_v33 }
 0xc26   : > { %4369 = vmatpush1.bf16.msra.mxu1 %v4314_v41  ;;  %v3936_v24 = vsel %vm1027_vm4, %v11212_v18, %v3931_v38  ;;  %v3940_v40 = vsel %vm1027_vm4, %v3931_v38, %v11212_v18  ;;  %v4009_v12 = vmul.f32 %v4003_v22, %v3987_v21  ;;  %v4007_v48 = vmul.f32 %v4003_v22, %v3986_v61  ;;  %v8256_v61 = vld [vmem:[%s13828_s21 + $0x5] ss:$8 sm:$0x3] }
 0xc27   : > { %v4316_v44 = vpack.c.bf16 %v3908_v54, %v3906_v5  ;;  %v11281_v30 = vpop.permute.xlu1 %4092  ;;  %v4317_v56 = vpack.c.bf16 %v3909_v29, %v3907_v52  ;;  %v3958_v15 = vmul.f32 %v3947_v6, %v3940_v40  ;;  %v3959_v14 = vmul.f32 %v3951_v35, %v3936_v24 }
 0xc28   : > { %v3999_v54 = vrot.slane %v8255_v53, %v9469_v37  ;;  %v4323_v23 = vpack.c.bf16 %v4009_v12, %v4007_v48 }
 0xc29   : > { %4370 = vmatprep.subr.bf16.mxu1 %v4317_v56  ;;  %v3983_v45 = vpop.permute.xlu0 %3982 }
 0xc2a   : > { %4371 = vmatpush1.bf16.msra.mxu1 %v4316_v44  ;;  %v4008_v32 = vmul.f32 %v3999_v54, %v3991_v11  ;;  %v3992_v53 = vsel %vm1051_vm5, %v3983_v45, %v11216_v51  ;;  %v4063_v11 = vrot.slane %v8256_v61, %v9379_v9 }
 0xc2b   : > { %v3933_v41 = vpop.permute.xlu1 %3932  ;;  %4372 = vmatprep.subr.bf16.mxu1 %v4319_v62  ;;  %v4010_v19 = vmul.f32 %v3999_v54, %v3992_v53 }
 0xc2c   : > { %v3937_v1 = vsel %vm1027_vm4, %v11214_v50, %v3933_v41  ;;  %v3941_v18 = vsel %vm1027_vm4, %v3933_v41, %v11214_v50 }
 0xc2d   : > { %v3960_v47 = vmul.f32 %v3947_v6, %v3941_v18  ;;  %v3961_v5 = vmul.f32 %v3951_v35, %v3937_v1  ;;  %v4043_v52 = vpop.permute.xlu0 %4042  ;;  %v4006_v6 = vmul.f32 %v3999_v54, %v3990_v16  ;;  %v3988_v35 = vsel %vm1051_vm5, %v11216_v51, %v3983_v45 }
 0xc2e   : > { %4373 = vmatpush1.bf16.msra.mxu1 %v4318_v25  ;;  %v4011_v21 = vmul.f32 %v4003_v22, %v3988_v35  ;;  %v4050_v1 = vsel %vm1077_vm7, %v11208_v60, %v11185_v49  ;;  %v4059_v18 = vrot.slane %v8256_v61, %v9469_v37 }
 0xc2f   : > { %v4320_v29 = vpack.c.bf16 %v3960_v47, %v3958_v15  ;;  %v11313_v38 = vpop.permute.xlu1 %4088  ;;  %v4321_v28 = vpack.c.bf16 %v3961_v5, %v3959_v14  ;;  %v4322_v58 = vpack.c.bf16 %v4008_v32, %v4006_v6  ;;  %v4329_v47 = vpack.c.bf16 %v11097_v46, %v11093_v31 }
 0xc30   : > { %v4046_v5 = vsel %vm1077_vm7, %v11185_v49, %v11208_v60  ;;  %v4048_v31 = vsel %vm1077_vm7, %v11220_v3, %v4043_v52  ;;  %v4052_v60 = vsel %vm1077_vm7, %v4043_v52, %v11220_v3 }
 0xc31   : > { %4374 = vmatprep.subr.bf16.mxu1 %v4321_v28  ;;  %v4091_v50 = vpop.permute.xlu0 %4090  ;;  %v4071_v35 = vmul.f32 %v4063_v11, %v4052_v60 }
 0xc32   : > { %4375 = vmatpush1.bf16.msra.mxu1 %v4320_v29  ;;  %v4098_v3 = vsel %vm1101_vm8, %v11244_v20, %v4091_v50 }
 0xc33   : > { %v3985_v33 = vpop.permute.xlu1 %3984  ;;  %4376 = vmatprep.subr.bf16.mxu1 %v4323_v23  ;;  %v4070_v23 = vmul.f32 %v4059_v18, %v4048_v31 }
 0xc34   : > { %v3989_v44 = vsel %vm1051_vm5, %v11218_v10, %v3985_v33  ;;  %v3993_v56 = vsel %vm1051_vm5, %v3985_v33, %v11218_v10  ;;  %v4327_v10 = vpack.c.bf16 %v11045_v7, %v11041_v26  ;;  %v4047_v26 = vsel %vm1077_vm7, %v11190_v57, %v11210_v27 }
 0xc35   : > { %v4012_v62 = vmul.f32 %v3999_v54, %v3993_v56  ;;  %v4013_v24 = vmul.f32 %v4003_v22, %v3989_v44  ;;  %v11327_v40 = vpop.permute.xlu0 %4086  ;;  %v4051_v22 = vsel %vm1077_vm7, %v11210_v27, %v11190_v57  ;;  %v4326_v7 = vpack.c.bf16 %v11019_v0, %v11014_v4  ;;  %v8257_v4 = vld [vmem:[%s13828_s21 + $0x6] ss:$8 sm:$0x3] }
 0xc36   : > { %4377 = vmatpush1.bf16.msra.mxu1 %v4322_v58  ;;  %v4069_v15 = vmul.f32 %v4063_v11, %v4051_v22  ;;  %v4067_v54 = vmul.f32 %v4063_v11, %v4050_v1  ;;  %v4068_v16 = vmul.f32 %v4059_v18, %v4047_v26  ;;  %v4328_v0 = vpack.c.bf16 %v11071_v34, %v11067_v55 }
 0xc37   : > { %v4324_v51 = vpack.c.bf16 %v4012_v62, %v4010_v19  ;;  %v11329_v45 = vpop.permute.xlu1 %4136  ;;  %v4325_v25 = vpack.c.bf16 %v4013_v24, %v4011_v21  ;;  %v4066_v57 = vmul.f32 %v4059_v18, %v4046_v5  ;;  %v4102_v27 = vsel %vm1101_vm8, %v4091_v50, %v11244_v20  ;;  %v8258_v24 = vld [vmem:[%s13828_s21 + $0x7] ss:$8 sm:$0x3] }
 0xc38   : > { %v4331_v49 = vpack.c.bf16 %v4069_v15, %v4067_v54  ;;  %v4111_v28 = vrot.slane %v8257_v4, %v9469_v37  ;;  %v4115_v55 = vrot.slane %v8257_v4, %v9379_v9  ;;  %v4103_v34 = vsel %vm1101_vm8, %v11281_v30, %v11252_v42 }
 0xc39   : > { %4378 = vmatprep.subr.bf16.mxu1 %v4325_v25  ;;  %v4095_v41 = vpop.permute.xlu0 %4094  ;;  %v4330_v29 = vpack.c.bf16 %v4068_v16, %v4066_v57  ;;  %v4099_v56 = vsel %vm1101_vm8, %v11252_v42, %v11281_v30  ;;  %v4167_v1 = vrot.slane %v8258_v24, %v9379_v9 }
 0xc3a   : > { %4379 = vmatpush1.bf16.msra.mxu1 %v4324_v51  ;;  %v4119_v53 = vmul.f32 %v4115_v55, %v4102_v27  ;;  %v4121_v20 = vmul.f32 %v4115_v55, %v4103_v34  ;;  %v4118_v50 = vmul.f32 %v4111_v28, %v4098_v3  ;;  %v4120_v51 = vmul.f32 %v4111_v28, %v4099_v56 }
 0xc3b   : > { %v11341_v12 = vpop.permute.xlu1 %4144  ;;  %4380 = vmatprep.subr.bf16.mxu1 %v4327_v10  ;;  %v4104_v42 = vsel %vm1101_vm8, %v4095_v41, %v11327_v40 }
 0xc3c   : > { %v4335_v61 = vpack.c.bf16 %v4121_v20, %v4119_v53  ;;  %v4334_v10 = vpack.c.bf16 %v4120_v51, %v4118_v50  ;;  %v4123_v15 = vmul.f32 %v4115_v55, %v4104_v42  ;;  %v4151_v4 = vsel %vm1125_vm11, %v11329_v45, %v11341_v12 }
 0xc3d   : > { %v4135_v14 = vpop.permute.xlu0 %4134 }
 0xc3e   : > { %4381 = vmatpush1.bf16.msra.mxu1 %v4326_v7  ;;  %v4155_v7 = vsel %vm1125_vm11, %v11341_v12, %v11329_v45 }
 0xc3f   : > { %v11360_v48 = vpop.permute.xlu1 %4140  ;;  %4382 = vmatprep.subr.bf16.mxu1 %v4329_v47 }
 0xc41   : > { %v4143_v46 = vpop.permute.xlu0 %4142 }
 0xc42   : > { %4383 = vmatpush1.bf16.msra.mxu1 %v4328_v0  ;;  %v4154_v30 = vsel %vm1125_vm11, %v4143_v46, %v4135_v14 }
 0xc43   : > { %v4045_v32 = vpop.permute.xlu1 %4044  ;;  %4384 = vmatprep.subr.bf16.mxu1 %v4331_v49  ;;  %v4171_v47 = vmul.f32 %v4167_v1, %v4154_v30 }
 0xc44   : > { %v4049_v52 = vsel %vm1077_vm7, %v11225_v36, %v4045_v32  ;;  %v4053_v6 = vsel %vm1077_vm7, %v4045_v32, %v11225_v36  ;;  %v4100_v36 = vsel %vm1101_vm8, %v11327_v40, %v4095_v41  ;;  %v4150_v40 = vsel %vm1125_vm11, %v4135_v14, %v4143_v46 }
 0xc45   : > { %v4072_v33 = vmul.f32 %v4059_v18, %v4049_v52  ;;  %v4073_v58 = vmul.f32 %v4063_v11, %v4053_v6  ;;  %v4139_v44 = vpop.permute.xlu0 %4138  ;;  %v4122_v22 = vmul.f32 %v4111_v28, %v4100_v36  ;;  %v4163_v11 = vrot.slane %v8258_v24, %v9469_v37 }
 0xc46   : > { %4385 = vmatpush1.bf16.msra.mxu1 %v4330_v29  ;;  %v4173_v14 = vmul.f32 %v4167_v1, %v4155_v7 }
 0xc47   : > { %v4332_v19 = vpack.c.bf16 %v4072_v33, %v4070_v23  ;;  %v4189_v21 = vpop.permute.xlu1 %4188  ;;  %v4333_v62 = vpack.c.bf16 %v4073_v58, %v4071_v35  ;;  %v4170_v0 = vmul.f32 %v4163_v11, %v4150_v40  ;;  %v4172_v60 = vmul.f32 %v4163_v11, %v4151_v4  ;;  %v11495_v4 = vld [vmem:[%s13704_s3 + $0x20] ss:$8 sps:$4 sm:$0xff]  }
 0xc48   : > { %v4339_v45 = vpack.c.bf16 %v4173_v14, %v4171_v47  ;;  %v11471_v47 = vld [vmem:[%s13704_s3] ss:$8 sps:$4 sm:$0xff]   ;;  %v11501_v14 = vld [vmem:[%s13704_s3 + $0x34] ss:$8 sps:$4 sm:$0xff]  }
 0xc49   : > { %v4147_v25 = vpop.permute.xlu0 %4146  ;;  %4386 = vmatprep.subr.bf16.mxu1 %v4333_v62 }
 0xc4a   : > { %4387 = vmatpush1.bf16.msra.mxu1 %v4332_v19  ;;  %v4152_v49 = vsel %vm1125_vm11, %v4139_v44, %v4147_v25  ;;  %v4156_v27 = vsel %vm1125_vm11, %v4147_v25, %v4139_v44  ;;  %v8260_v25 = vcombine.low %v11152_v8, %v11152_v8 }
 0xc4b   : > { %v4097_v26 = vpop.permute.xlu1 %4096  ;;  %4388 = vmatprep.subr.bf16.mxu1 %v4335_v61  ;;  %v4175_v23 = vmul.f32 %v4167_v1, %v4156_v27  ;;  %v11549_v27 = vld [vmem:[%s13704_s3 + $0x74] ss:$8 sps:$4 sm:$0xff]  }
 0xc4c   : > { %v4101_v41 = vsel %vm1101_vm8, %v11313_v38, %v4097_v26  ;;  %v4105_v18 = vsel %vm1101_vm8, %v4097_v26, %v11313_v38  ;;  %v8259_v38 = vld [vmem:[%s13828_s21 + $0x10] ss:$8 sm:$0x3] }
 0xc4d   : > { %v4124_v5 = vmul.f32 %v4111_v28, %v4101_v41  ;;  %v4125_v54 = vmul.f32 %v4115_v55, %v4105_v18  ;;  %v4187_v16 = vpop.permute.xlu0 %4186  ;;  %v4338_v28 = vpack.c.bf16 %v4172_v60, %v4170_v0  ;;  %v4174_v55 = vmul.f32 %v4163_v11, %v4152_v49  ;;  %v8649_v18 = vld [vmem:[%s13843_s16 + $0x8] ss:$0 sps:$4 sm:$0x77]   ;;  %v11507_v0 = vld [vmem:[%s13704_s3 + $0x30] ss:$8 sps:$4 sm:$0xff]  }
 0xc4e   : > { %4389 = vmatpush1.bf16.msra.mxu1 %v4334_v10  ;;  %v4219_v34 = vrot.slane %v8259_v38, %v9379_v9  ;;  %v4215_v56 = vrot.slane %v8259_v38, %v9469_v37  ;;  %v11531_v49 = vld [vmem:[%s13704_s3 + $0x50] ss:$8 sps:$4 sm:$0xff]   ;;  %v11537_v38 = vld [vmem:[%s13704_s3 + $0x64] ss:$8 sps:$4 sm:$0xff]   ;;  %v11543_v60 = vld [vmem:[%s13704_s3 + $0x60] ss:$8 sps:$4 sm:$0xff]  }
 0xc4f   : > { %v4336_v57 = vpack.c.bf16 %v4124_v5, %v4122_v22  ;;  %v4197_v31 = vpop.permute.xlu1 %4196  ;;  %v4337_v46 = vpack.c.bf16 %v4125_v54, %v4123_v15  ;;  %v11464_v15 = vld [vmem:[%s13704_s3 + $0x4] ss:$8 sps:$4 sm:$0xff]   ;;  %v11477_v5 = vld [vmem:[%s13704_s3 + $0x14] ss:$8 sps:$4 sm:$0xff]   ;;  %v11483_v54 = vld [vmem:[%s13704_s3 + $0x10] ss:$8 sps:$4 sm:$0xff]  }
 0xc50   : > { %v4207_v3 = vsel %vm1149_vm12, %v4197_v31, %v4189_v21  ;;  %v4203_v20 = vsel %vm1149_vm12, %v4189_v21, %v4197_v31  ;;  %v11519_v31 = vld [vmem:[%s13704_s3 + $0x40] ss:$8 sps:$4 sm:$0xff]  }
 0xc51   : > { %v4195_v29 = vpop.permute.xlu0 %4194  ;;  %4390 = vmatprep.subr.bf16.mxu1 %v4337_v46  ;;  %v4225_v50 = vmul.f32 %v4219_v34, %v4207_v3  ;;  %v4224_v61 = vmul.f32 %v4215_v56, %v4203_v20  ;;  %v11525_v46 = vld [vmem:[%s13704_s3 + $0x54] ss:$8 sps:$4 sm:$0xff]   ;;  %v8699_v3 = vld [vmem:[%s13704_s3 + $0xb0] ss:$8 sps:$4 sm:$0xff]  }
 0xc52   : > { %v4206_v12 = vsel %vm1149_vm12, %v4195_v29, %v4187_v16  ;;  %4391 = vmatpush1.bf16.msra.mxu1 %v4336_v57  ;;  %v4202_v35 = vsel %vm1149_vm12, %v4187_v16, %v4195_v29  ;;  %v11489_v16 = vld [vmem:[%s13704_s3 + $0x24] ss:$8 sps:$4 sm:$0xff]   ;;  %v11555_v29 = vld [vmem:[%s13704_s3 + $0x70] ss:$8 sps:$4 sm:$0xff]  }
 0xc53   : > { %v4149_v32 = vpop.permute.xlu1 %4148  ;;  %4392 = vmatprep.subr.bf16.mxu1 %v4339_v45  ;;  %v4223_v53 = vmul.f32 %v4219_v34, %v4206_v12  ;;  %v4222_v24 = vmul.f32 %v4215_v56, %v4202_v35  ;;  %v11513_v57 = vld [vmem:[%s13704_s3 + $0x44] ss:$8 sps:$4 sm:$0xff]   ;;  %v11567_v12 = vld [vmem:[%s13704_s3 + $0x80] ss:$8 sps:$4 sm:$0xff]   ;;  %v8702_v35 = vld [vmem:[%s13704_s3 + $0xd4] ss:$8 sps:$4 sm:$0xff]  }
 0xc54   : > { %v4153_v52 = vsel %vm1125_vm11, %v11360_v48, %v4149_v32  ;;  %v4157_v6 = vsel %vm1125_vm11, %v4149_v32, %v11360_v48  ;;  %v11561_v45 = vld [vmem:[%s13704_s3 + $0x84] ss:$8 sps:$4 sm:$0xff]   ;;  %v11591_v32 = vld [vmem:[%s13704_s3 + $0xa0] ss:$8 sps:$4 sm:$0xff]  }
 0xc55   : > { %v4176_v33 = vmul.f32 %v4163_v11, %v4153_v52  ;;  %v4177_v58 = vmul.f32 %v4167_v1, %v4157_v6  ;;  %v4191_v44 = vpop.permute.xlu0 %4190  ;;  %v4343_v48 = vpack.c.bf16 %v4225_v50, %v4223_v53  ;;  %v4342_v10 = vpack.c.bf16 %v4224_v61, %v4222_v24  ;;  %v8700_v52 = vld [vmem:[%s13704_s3 + $0xc4] ss:$8 sps:$4 sm:$0xff]   ;;  %v8701_v6 = vld [vmem:[%s13704_s3 + $0xc0] ss:$8 sps:$4 sm:$0xff]   ;;  %v8703_v53 = vld [vmem:[%s13704_s3 + $0xd0] ss:$8 sps:$4 sm:$0xff]  }
 0xc56   : > { %4393 = vmatpush1.bf16.msra.mxu1 %v4338_v28  ;;  %v11573_v28 = vld [vmem:[%s13704_s3 + $0x94] ss:$8 sps:$4 sm:$0xff]  }
 0xc57   : > { %v4340_v19 = vpack.c.bf16 %v4176_v33, %v4174_v55  ;;  %v4193_v62 = vpop.permute.xlu1 %4192  ;;  %v4341_v36 = vpack.c.bf16 %v4177_v58, %v4175_v23  ;;  %v11579_v55 = vld [vmem:[%s13704_s3 + $0x90] ss:$8 sps:$4 sm:$0xff]   ;;  %v8698_v23 = vld [vmem:[%s13704_s3 + $0xb4] ss:$8 sps:$4 sm:$0xff]   ;;  %v8704_v33 = vld [vmem:[%s13704_s3 + $0xe4] ss:$8 sps:$4 sm:$0xff]  }
 0xc58   : > { %v8705_v58 = vld [vmem:[%s13704_s3 + $0xe0] ss:$8 sps:$4 sm:$0xff]  }
 0xc59   : > { %v4199_v51 = vpop.permute.xlu0 %4198  ;;  %4394 = vmatprep.subr.bf16.mxu1 %v4341_v36 }
 0xc5a   : > { %v4204_v42 = vsel %vm1149_vm12, %v4191_v44, %v4199_v51  ;;  %v4208_v30 = vsel %vm1149_vm12, %v4199_v51, %v4191_v44  ;;  %4395 = vmatpush1.bf16.msra.mxu1 %v4340_v19  ;;  %v8706_v44 = vld [vmem:[%s13704_s3 + $0xf4] ss:$8 sps:$4 sm:$0xff]  }
 0xc5b   : > { %v4201_v21 = vpop.permute.xlu1 %4200  ;;  %4405 = vmatprep.subr.bf16.mxu1 %v4343_v48  ;;  %v4226_v1 = vmul.f32 %v4215_v56, %v4204_v42  ;;  %v4227_v26 = vmul.f32 %v4219_v34, %v4208_v30 }
 0xc5c   : > { %v4205_v22 = vsel %vm1149_vm12, %v4193_v62, %v4201_v21  ;;  %v4209_v11 = vsel %vm1149_vm12, %v4201_v21, %v4193_v62 }
 0xc5d   : > { %v4228_v8 = vmul.f32 %v4215_v56, %v4205_v22  ;;  %v4229_v7 = vmul.f32 %v4219_v34, %v4209_v11  ;;  %4397 = vmatmul.mubr.bf16.vlgmr.msra.gmra.mrb[28].mxu1 %v8260_v25  ;;  %v11585_v34 = vld [vmem:[%s13704_s3 + $0xa4] ss:$8 sps:$4 sm:$0xff]   ;;  %v8707_v56 = vld [vmem:[%s13704_s3 + $0xf0] ss:$8 sps:$4 sm:$0xff]  }
 0xc5e   : > { %4406 = vmatpush1.bf16.msra.mxu1 %v4342_v10  ;;  %4437 = vmatprep.mubr.bf16.mxu1 %v13826_v59 }
 0xc5f   : > { %v4344_v40 = vpack.c.bf16 %v4228_v8, %v4226_v1  ;;  %v4345_v41 = vpack.c.bf16 %v4229_v7, %v4227_v26 }
 0xc61   : > { %4407 = vmatprep.subr.bf16.mxu1 %v4345_v41 }
 0xc62   : > { %4408 = vmatpush1.bf16.msra.mxu1 %v4344_v40 }
 0xc63   : > { %4462 = vmatprep.subr.bf16.mxu1 %v11464_v15 }
 0xc65   : > { %8263 = vmatmul.mubr.msk.bf16.vlgmr.msra.gmra.mrb[32].mxu1 %vm1913_vm2, %v8649_v18 }
 0xc6a   : > { %v4349_v36 = vpop.permute.xlu0 %4348 }
 0xc6b   : > { %4463 = vmatpush1.bf16.xpose.msra.mxu1 %v11471_v47 }
 0xc6c   : > { %4464 = vmatprep.subr.bf16.mxu1 %v11477_v5 }
 0xc73   : > { %4465 = vmatpush1.bf16.xpose.msra.mxu1 %v11483_v54 }
 0xc74   : > { %4466 = vmatprep.subr.bf16.mxu1 %v11489_v16 }
 0xc7b   : > { %4467 = vmatpush1.bf16.xpose.msra.mxu1 %v11495_v4 }
 0xc7c   : > { %4468 = vmatprep.subr.bf16.mxu1 %v11501_v14 }
 0xc83   : > { %4469 = vmatpush1.bf16.xpose.msra.mxu1 %v11507_v0 }
 0xc84   : > { %4470 = vmatprep.subr.bf16.mxu1 %v11513_v57 }
 0xc8b   : > { %4471 = vmatpush1.bf16.xpose.msra.mxu1 %v11519_v31 }
 0xc8c   : > { %4472 = vmatprep.subr.bf16.mxu1 %v11525_v46 }
 0xc93   : > { %4473 = vmatpush1.bf16.xpose.msra.mxu1 %v11531_v49 }
 0xc94   : > { %4474 = vmatprep.subr.bf16.mxu1 %v11537_v38 }
 0xc9b   : > { %4475 = vmatpush1.bf16.xpose.msra.mxu1 %v11543_v60 }
 0xc9c   : > { %4476 = vmatprep.subr.bf16.mxu1 %v11549_v27 }
 0xca3   : > { %4477 = vmatpush1.bf16.xpose.msra.mxu1 %v11555_v29 }
 0xca4   : > { %4478 = vmatprep.subr.bf16.mxu1 %v11561_v45 }
 0xcab   : > { %4479 = vmatpush1.bf16.xpose.msra.mxu1 %v11567_v12 }
 0xcac   : > { %4480 = vmatprep.subr.bf16.mxu1 %v11573_v28 }
 0xcb3   : > { %4481 = vmatpush1.bf16.xpose.msra.mxu1 %v11579_v55 }
 0xcb4   : > { %4482 = vmatprep.subr.bf16.mxu1 %v11585_v34 }
 0xcbb   : > { %4483 = vmatpush1.bf16.xpose.msra.mxu1 %v11591_v32 }
 0xcbc   : > { %4484 = vmatprep.subr.bf16.mxu1 %v8698_v23 }
 0xcc3   : > { %4485 = vmatpush1.bf16.xpose.msra.mxu1 %v8699_v3 }
 0xcc4   : > { %4486 = vmatprep.subr.bf16.mxu1 %v8700_v52 }
 0xccb   : > { %4487 = vmatpush1.bf16.xpose.msra.mxu1 %v8701_v6 }
 0xccc   : > { %4488 = vmatprep.subr.bf16.mxu1 %v8702_v35 }
 0xcd3   : > { %4489 = vmatpush1.bf16.xpose.msra.mxu1 %v8703_v53 }
 0xcd4   : > { %4490 = vmatprep.subr.bf16.mxu1 %v8704_v33 }
 0xcdb   : > { %4491 = vmatpush1.bf16.xpose.msra.mxu1 %v8705_v58 }
 0xcdc   : > { %4492 = vmatprep.subr.bf16.mxu1 %v8706_v44 }
 0xce3   : > { %4493 = vmatpush1.bf16.xpose.msra.mxu1 %v8707_v56 }
 0xce4   : > { %6223 = vmatprep.subr.bf16.mxu1 %v11464_v15 }
 0xd30   : > { %v4398_v20 = vpop.f32.mrb[28].mxu1 }
 0xd31   : > { %v4400_v50 = vpop.f32.mrb[29].mxu1  ;;  %v4399_v24 = vadd.f32 %v4398_v20, %v4349_v36 }
 0xd32   : > { %v4402_v19 = vpop.f32.mrb[30].mxu1  ;;  %v4401_v51 = vadd.f32 %v4400_v50, %v4349_v36  ;;  %v4621_v36 = vld [vmem:[#allocation11 + $0x5] ss:$8 sm:$0x3] }
 0xd33   : > { %v4403_v62 = vpop.f32.mrb[31].mxu1 }
 0xd38   : > { %v4439_v48 = vpop.f32.mrb[32].mxu1 }
 0xd39   : > { %v4440_v25 = vadd.f32 %v4439_v48, %v4399_v24  ;;  %v4441_v61 = vpop.f32.mrb[33].mxu1 }
 0xd3a   : > { %v4442_v42 = vadd.f32 %v4441_v61, %v4401_v51  ;;  %v4443_v30 = vpop.f32.mrb[34].mxu1 }
 0xd3b   : > { %v11626_v21 = vadd.f32 %v4440_v25, %v9475_v39  ;;  %v4444_v10 = vpop.f32.mrb[35].mxu1  ;;  %v4626_v30 = vrot.slane %v4621_v36, %v9469_v37 }
 0xd3c   : > { %v11629_v22 = vadd.f32 %v4442_v42, %v9396_v13  ;;  %v4630_v10 = vrot.slane %v4621_v36, %v9379_v9 }
 0xd3d   : > { %13845 = vst [vmem:[#allocation35_spill] sm:$0xff] %v11626_v21  ;;  %v4452_v11 = vpack.c.bf16 %v11626_v21, %v11626_v21 }
 0xd3e   : > { %13846 = vst [vmem:[#allocation36_spill] sm:$0xff] %v11629_v22  ;;  %v4453_v1 = vpack.c.bf16 %v11629_v22, %v11629_v22 }
 0xd3f   : > { %v4455_v8 = vshrl.u32 %v4452_v11, 16 }
 0xd40   : > { %v4458_v26 = vshrl.u32 %v4453_v1, 16 }
 0xd42   : > { %4494 = vmatprep.mubr.bf16.mxu1 %v4458_v26 }
 0xd43   : > { %4495 = vmatmul.mubr.bf16.vlgmr.msra.gmra.mrb[36].mxu1 %v4455_v8 }
 0xd44   : > { %6224 = vmatpush1.bf16.msra.mxu1 %v11471_v47 }
 0xd45   : > { %6225 = vmatprep.subr.bf16.mxu1 %v11477_v5 }
 0xd48   : > { %6226 = vmatpush1.bf16.msra.mxu1 %v11483_v54 }
 0xd49   : > { %6227 = vmatprep.subr.bf16.mxu1 %v11489_v16  ;;  %v13848_v16 = vld [vmem:[#allocation32_spill] sm:$0xff] }
 0xd4c   : > { %6228 = vmatpush1.bf16.msra.mxu1 %v11495_v4 }
 0xd4d   : > { %6229 = vmatprep.subr.bf16.mxu1 %v11501_v14 }
 0xd50   : > { %6230 = vmatpush1.bf16.msra.mxu1 %v11507_v0  ;;  %v8271_v0 = vld [vmem:[%s13708_s7 + $0x38] sm:$0xff] }
 0xd51   : > { %6231 = vmatprep.subr.bf16.mxu1 %v11513_v57 }
 0xd54   : > { %6232 = vmatpush1.bf16.msra.mxu1 %v11519_v31  ;;  %v4531_v31 = vld [vmem:[#allocation11] ss:$8 sm:$0x3] }
 0xd55   : > { %6233 = vmatprep.subr.bf16.mxu1 %v11525_v46  ;;  %v4553_v46 = vld [vmem:[#allocation11 + $0x1] ss:$8 sm:$0x3] }
 0xd58   : > { %6234 = vmatpush1.bf16.msra.mxu1 %v11531_v49 }
 0xd59   : > { %6235 = vmatprep.subr.bf16.mxu1 %v11537_v38  ;;  %v4536_v38 = vrot.slane %v4531_v31, %v9469_v37 }
 0xd5c   : > { %6236 = vmatpush1.bf16.msra.mxu1 %v11543_v60  ;;  %v4540_v60 = vrot.slane %v4531_v31, %v9379_v9 }
 0xd5d   : > { %6237 = vmatprep.subr.bf16.mxu1 %v11549_v27  ;;  %v4558_v27 = vrot.slane %v4553_v46, %v9469_v37 }
 0xd60   : > { %6238 = vmatpush1.bf16.msra.mxu1 %v11555_v29  ;;  %v4562_v29 = vrot.slane %v4553_v46, %v9379_v9 }
 0xd61   : > { %6239 = vmatprep.subr.bf16.mxu1 %v11561_v45 }
 0xd64   : > { %6240 = vmatpush1.bf16.msra.mxu1 %v11567_v12 }
 0xd65   : > { %6241 = vmatprep.subr.bf16.mxu1 %v11573_v28 }
 0xd68   : > { %6242 = vmatpush1.bf16.msra.mxu1 %v11579_v55 }
 0xd69   : > { %6243 = vmatprep.subr.bf16.mxu1 %v11585_v34 }
 0xd6c   : > { %6244 = vmatpush1.bf16.msra.mxu1 %v11591_v32 }
 0xd6d   : > { %6245 = vmatprep.subr.bf16.mxu1 %v8698_v23 }
 0xd70   : > { %6246 = vmatpush1.bf16.msra.mxu1 %v8699_v3 }
 0xd71   : > { %6247 = vmatprep.subr.bf16.mxu1 %v8700_v52 }
 0xd74   : > { %6248 = vmatpush1.bf16.msra.mxu1 %v8701_v6 }
 0xd75   : > { %6249 = vmatprep.subr.bf16.mxu1 %v8702_v35 }
 0xd78   : > { %6250 = vmatpush1.bf16.msra.mxu1 %v8703_v53  ;;  %v4575_v53 = vld [vmem:[#allocation11 + $0x2] ss:$8 sm:$0x3] }
 0xd79   : > { %6251 = vmatprep.subr.bf16.mxu1 %v8704_v33  ;;  %v4597_v33 = vld [vmem:[#allocation11 + $0x3] ss:$8 sm:$0x3]  ;;  %v4580_v20 = vrot.slane %v4575_v53, %v9469_v37  ;;  %v4584_v50 = vrot.slane %v4575_v53, %v9379_v9 }
 0xd7a   : > { %v4602_v19 = vrot.slane %v4597_v33, %v9469_v37  ;;  %v4606_v62 = vrot.slane %v4597_v33, %v9379_v9 }
 0xd7c   : > { %6252 = vmatpush1.bf16.msra.mxu1 %v8705_v58 }
 0xd7d   : > { %6253 = vmatprep.subr.bf16.mxu1 %v8706_v44 }
 0xd80   : > { %6254 = vmatpush1.bf16.msra.mxu1 %v8707_v56 }
 0xe16   : > { %v4496_v13 = vpop.f32.mrb[36].mxu1 }
 0xe17   : > { %v4505_v39 = vrot.slane %v4496_v13, 3  ;;  %v4498_v7 = vpop.f32.mrb[37].mxu1 }
 0xe18   : > { %v4506_v40 = vrot.slane %v4498_v7, 3  ;;  %v4500_v41 = vpop.f32.mrb[38].mxu1 }
 0xe19   : > { %v4509_v18 = vsel %vm957_vm0, %v10445_v17, %v4505_v39  ;;  %v4501_v15 = vpop.f32.mrb[39].mxu1  ;;  %v8269_v17 = vld [vmem:[%s13708_s7 + $0x28] sm:$0xff] }
 0xe1a   : > { %v11660_v47 = vsel %vm960_vm1, %v4509_v18, %v9491_v43  ;;  %v4510_v5 = vsel %vm957_vm0, %v10447_v2, %v4506_v40  ;;  %v8268_v43 = vld [vmem:[%s13708_s7 + $0x20] sm:$0xff]  ;;  %v8270_v2 = vld [vmem:[%s13708_s7 + $0x30] sm:$0xff] }
 0xe1b   : > { %v4513_v54 = vsel %vm13847_vm9, %v11660_v47, 0.0  ;;  %v11668_v4 = vsel %vm960_vm1, %v4510_v5, %v13848_v16  ;;  %v4643_v16 = vld [vmem:[#allocation11 + $0x6] ss:$8 sm:$0x3]  ;;  %vm13854_vm9 = vcmask 588800  }
 0xe1c   : > { %v4514_v14 = vsel %vm13849_vm13, %v11668_v4, 0.0  ;;  %4525 = vrot.lane.b32.xlu1 %v4513_v54, %s13850_s28  ;;  %vm13855_vm13 = vmmov %vm13854_vm9 }
 0xe1d   : > { %4527 = vrot.lane.b32.xlu0 %v4514_v14, %s13850_s28 }
 0xe20   : > { %4547 = vrot.lane.b32.xlu1 %v4513_v54, %s13839_s20 }
 0xe21   : > { %4549 = vrot.lane.b32.xlu0 %v4514_v14, %s13839_s20 }
 0xe24   : > { %4569 = vrot.lane.b32.xlu1 %v4513_v54, %s13840_s2 }
 0xe25   : > { %4571 = vrot.lane.b32.xlu0 %v4514_v14, %s13840_s2 }
 0xe28   : > { %4591 = vrot.lane.b32.xlu1 %v4513_v54, %s13841_s13 }
 0xe29   : > { %4593 = vrot.lane.b32.xlu0 %v4514_v14, %s13841_s13 }
 0xe2c   : > { %4615 = vrot.lane.b32.xlu1 %v4513_v54, %s13842_s4 }
 0xe2d   : > { %4617 = vrot.lane.b32.xlu0 %v4514_v14, %s13842_s4 }
 0xe30   : > { %4637 = vrot.lane.b32.xlu1 %v4513_v54, %s13835_s12 }
 0xe31   : > { %4639 = vrot.lane.b32.xlu0 %v4514_v14, %s13835_s12 }
 0xe34   : > { %4659 = vrot.lane.b32.xlu1 %v4513_v54, %s13836_s17 }
 0xe35   : > { %4661 = vrot.lane.b32.xlu0 %v4514_v14, %s13836_s17 }
 0xe38   : > { %4681 = vrot.lane.b32.xlu1 %v4513_v54, %s13837_s22 }
 0xe39   : > { %4683 = vrot.lane.b32.xlu0 %v4514_v14, %s13837_s22  ;;  %v4665_v14 = vld [vmem:[#allocation11 + $0x7] ss:$8 sm:$0x3] }
 0xe3a   : > { %v4670_v46 = vrot.slane %v4665_v14, %v9469_v37 }
 0xe3c   : > { %4733 = vperm.xlu1 %8575, %v8268_v43  }
 0xe3d   : > { %4738 = vperm.xlu0 %8574, %v8269_v17  }
 0xe40   : > { %4743 = vperm.xlu1 %8575, %v8270_v2  }
 0xe41   : > { %4748 = vperm.xlu0 %8574, %v8271_v0   ;;  %v4648_v0 = vrot.slane %v4643_v16, %v9469_v37 }
 0xe8e   : > { %v4526_v57 = vpop.permute.xlu1 %4525 }
 0xe8f   : > { %v4528_v49 = vpop.permute.xlu0 %4527 }
 0xe90   : > { %v4529_v45 = vsel %vm980_vm6, %v4526_v57, %v4528_v49  ;;  %v4530_v12 = vsel %vm980_vm6, %v4528_v49, %v4526_v57  ;;  %v4652_v57 = vrot.slane %v4643_v16, %v9379_v9  ;;  %v4674_v49 = vrot.slane %v4665_v14, %v9379_v9 }
 0xe91   : > { %v4543_v23 = vmul.f32 %v4536_v38, %v4530_v12  ;;  %v4544_v3 = vmul.f32 %v4540_v60, %v4529_v45  ;;  %v4687_v38 = vld [vmem:[#allocation11 + $0x10] ss:$8 sm:$0x3] }
 0xe92   : > { %v4548_v28 = vpop.permute.xlu1 %4547  ;;  %v4692_v12 = vrot.slane %v4687_v38, %v9469_v37 }
 0xe93   : > { %v4550_v55 = vpop.permute.xlu0 %4549 }
 0xe94   : > { %v4551_v34 = vsel %vm1003_vm3, %v4548_v28, %v4550_v55  ;;  %v4552_v32 = vsel %vm1003_vm3, %v4550_v55, %v4548_v28  ;;  %v4696_v28 = vrot.slane %v4687_v38, %v9379_v9 }
 0xe95   : > { %v4565_v52 = vmul.f32 %v4558_v27, %v4552_v32  ;;  %v4566_v6 = vmul.f32 %v4562_v29, %v4551_v34 }
 0xe96   : > { %v4570_v35 = vpop.permute.xlu1 %4569 }
 0xe97   : > { %v4721_v58 = vpack.c.bf16 %v4565_v52, %v4543_v23  ;;  %v4572_v44 = vpop.permute.xlu0 %4571  ;;  %v4722_v56 = vpack.c.bf16 %v4566_v6, %v4544_v3 }
 0xe98   : > { %v4573_v24 = vsel %vm1027_vm4, %v4570_v35, %v4572_v44  ;;  %v4574_v51 = vsel %vm1027_vm4, %v4572_v44, %v4570_v35 }
 0xe99   : > { %4773 = vmatprep.subr.bf16.mxu0 %v4722_v56  ;;  %v4587_v11 = vmul.f32 %v4580_v20, %v4574_v51  ;;  %v4588_v1 = vmul.f32 %v4584_v50, %v4573_v24  ;;  %v11759_v51 = vstv %s8264_s15  ;;  %s8267_s15 = sld [smem:[#allocation4 + $0x7]] }
 0xe9a   : > { %v4592_v48 = vpop.permute.xlu1 %4591  ;;  %4774 = vmatpush1.bf16.msra.mxu0 %v4721_v58 }
 0xe9b   : > { %v4594_v25 = vpop.permute.xlu0 %4593 }
 0xe9c   : > { %v4595_v61 = vsel %vm1051_vm5, %v4592_v48, %v4594_v25  ;;  %v4596_v42 = vsel %vm1051_vm5, %v4594_v25, %v4592_v48 }
 0xe9d   : > { %v4609_v26 = vmul.f32 %v4602_v19, %v4596_v42  ;;  %v4610_v8 = vmul.f32 %v4606_v62, %v4595_v61  ;;  %v8650_v19 = vld [vmem:[#allocation12 + $0x10] sm:$0xff]   ;;  %v8651_v62 = vld [vmem:[#allocation12 + $0x18] sm:$0xff]  }
 0xe9e   : > { %v4616_v13 = vpop.permute.xlu1 %4615 }
 0xe9f   : > { %v4723_v39 = vpack.c.bf16 %v4609_v26, %v4587_v11  ;;  %v4618_v7 = vpop.permute.xlu0 %4617  ;;  %v4724_v40 = vpack.c.bf16 %v4610_v8, %v4588_v1 }
 0xea0   : > { %v4619_v41 = vsel %vm1077_vm7, %v4616_v13, %v4618_v7  ;;  %v4620_v18 = vsel %vm1077_vm7, %v4618_v7, %v4616_v13 }
 0xea1   : > { %v4633_v15 = vmul.f32 %v4626_v30, %v4619_v41  ;;  %v4634_v5 = vmul.f32 %v4630_v10, %v4620_v18  ;;  %4775 = vmatprep.subr.bf16.mxu0 %v4724_v40 }
 0xea2   : > { %v4638_v54 = vpop.permute.xlu1 %4637  ;;  %4776 = vmatpush1.bf16.msra.mxu0 %v4723_v39 }
 0xea3   : > { %v8378_v43 = vpack.c.bf16 %v4634_v5, %v11668_v4  ;;  %v8381_v17 = vpack.c.bf16 %v4633_v15, %v11660_v47  ;;  %v4640_v2 = vpop.permute.xlu0 %4639 }
 0xea4   : > { %v4641_v60 = vsel %vm1101_vm8, %v4638_v54, %v4640_v2  ;;  %v4642_v4 = vsel %vm1101_vm8, %v4640_v2, %v4638_v54 }
 0xea5   : > { %8379 = vmatprep.subr.msk.bf16.mxu0 %vm9584_vm10, %v8378_v43  ;;  %v4655_v55 = vmul.f32 %v4648_v0, %v4641_v60  ;;  %v4656_v34 = vmul.f32 %v4652_v57, %v4642_v4 }
 0xea6   : > { %v4660_v47 = vpop.permute.xlu1 %4659  ;;  %8382 = vmatpush1.bf16.msk.msra.mxu0 %vm9584_vm10, %v8381_v17  ;;  %vm13852_vm10 = vcmask 1043456  }
 0xea7   : > { %v4662_v27 = vpop.permute.xlu0 %4661  ;;  %vm13853_vm15 = vmmov %vm13852_vm10 }
 0xea8   : > { %v4663_v29 = vsel %vm1125_vm11, %v4660_v47, %v4662_v27  ;;  %v4664_v45 = vsel %vm1125_vm11, %v4662_v27, %v4660_v47 }
 0xea9   : > { %v4677_v32 = vmul.f32 %v4670_v46, %v4663_v29  ;;  %v4678_v23 = vmul.f32 %v4674_v49, %v4664_v45  ;;  %v8654_v29 = vld [vmem:[%s13709_s8 + $0x34] ss:$12 sps:$4 sm:$0xff]  }
 0xeaa   : > { %v4682_v3 = vpop.permute.xlu1 %4681 }
 0xeab   : > { %v4727_v52 = vpack.c.bf16 %v4677_v32, %v4655_v55  ;;  %v4684_v6 = vpop.permute.xlu0 %4683  ;;  %v4728_v35 = vpack.c.bf16 %v4678_v23, %v4656_v34  ;;  %v8285_v23 = vld [vmem:[%s13710_s9 + $0x20] sm:$0xff] }
 0xeac   : > { %v4685_v53 = vsel %vm1149_vm12, %v4682_v3, %v4684_v6  ;;  %v4686_v33 = vsel %vm1149_vm12, %v4684_v6, %v4682_v3 }
 0xead   : > { %v4699_v58 = vmul.f32 %v4692_v12, %v4685_v53  ;;  %v4700_v44 = vmul.f32 %v4696_v28, %v4686_v33  ;;  %4779 = vmatprep.subr.bf16.mxu0 %v4728_v35  ;;  %v8287_v35 = vld [vmem:[%s13710_s9 + $0x30] sm:$0xff] }
 0xeae   : > { %4780 = vmatpush1.bf16.msra.mxu0 %v4727_v52  ;;  %v8286_v52 = vld [vmem:[%s13710_s9 + $0x28] sm:$0xff] }
 0xeaf   : > { %v4729_v56 = vpack.c.bf16 %v4699_v58, %v4699_v58  ;;  %v4730_v20 = vpack.c.bf16 %v4700_v44, %v4700_v44  ;;  %v4889_v33 = vld [vmem:[#allocation11] ss:$8 sm:$0x3]  ;;  %v8288_v58 = vld [vmem:[%s13710_s9 + $0x38] sm:$0xff] }
 0xeb1   : > { %8274 = vmatprep.subr.msk.bf16.mxu0 %vm13852_vm10, %v4730_v20  ;;  %v4768_v50 = vsel %vm13853_vm15, %v4729_v56, 0  ;;  %v4894_v56 = vrot.slane %v4889_v33, %v9469_v37  ;;  %v4898_v20 = vrot.slane %v4889_v33, %v9379_v9 }
 0xeb2   : > { %4782 = vmatpush1.bf16.msra.mxu0 %v4768_v50 }
 0xeb5   : > { %8275 = vmatmul.mubr.msk.bf16.vlgmr.msra.gmra.mrb[16].mxu0 %vm13854_vm9, %v8650_v19 }
 0xeb6   : > { %4815 = vmatprep.mubr.bf16.mxu0 %v13826_v59 }
 0xebb   : > { %v4734_v36 = vpop.permute.xlu1 %4733 }
 0xebc   : > { %v4739_v61 = vpop.permute.xlu0 %4738 }
 0xebd   : > { %8276 = vmatmul.mubr.msk.bf16.gmra.mrb[20].mxu0 %vm13855_vm13, %v8651_v62 }
 0xebe   : > { %5485 = vmatprep.mubr.bf16.mxu0 %v8654_v29 }
 0xebf   : > { %v4744_v14 = vpop.permute.xlu1 %4743 }
 0xec0   : > { %v4749_v17 = vpop.permute.xlu0 %4748 }
 0xf88   : > { %v4807_v24 = vpop.f32.mrb[16].mxu0 }
 0xf89   : > { %v4808_v48 = vadd.f32 %v4807_v24, %v4734_v36  ;;  %v4809_v25 = vpop.f32.mrb[17].mxu0 }
 0xf8a   : > { %v4811_v42 = vpop.f32.mrb[18].mxu0  ;;  %v4810_v41 = vadd.f32 %v4809_v25, %v4734_v36 }
 0xf8b   : > { %vm4826_vm10 = vcmp.gt.f32.partialorder %v4808_v48, 0.0  ;;  %v4835_v30 = vmul.f32 %v11759_v51, %v4808_v48  ;;  %v4812_v10 = vadd.f32 %v4811_v42, %v4739_v61  ;;  %v4813_v11 = vpop.f32.mrb[19].mxu0 }
 0xf8c   : > { %v4814_v18 = vadd.f32 %v4813_v11, %v4739_v61  ;;  %v4836_v15 = vmul.f32 %v11759_v51, %v4810_v41  ;;  %vm4827_vm9 = vcmp.gt.f32.partialorder %v4810_v41, 0.0 }
 0xf8d   : > { %v11762_v1 = vsel %vm4826_vm10, %v4808_v48, %v4835_v30  ;;  %vm4828_vm15 = vcmp.gt.f32.partialorder %v4812_v10, 0.0  ;;  %v4837_v26 = vmul.f32 %v11759_v51, %v4812_v10 }
 0xf8e   : > { %4865 = vrot.lane.b32.xlu1 %v11762_v1, %s13850_s28  ;;  %v4838_v5 = vmul.f32 %v11759_v51, %v4814_v18  ;;  %vm4829_vm13 = vcmp.gt.f32.partialorder %v4814_v18, 0.0  ;;  %v11789_v54 = vsel %vm4827_vm9, %v4810_v41, %v4836_v15 }
 0xf8f   : > { %v11767_v8 = vsel %vm4828_vm15, %v4812_v10, %v4837_v26 }
 0xf90   : > { %v4817_v13 = vpop.f32.mrb[20].mxu0  ;;  %4867 = vrot.lane.b32.xlu0 %v11767_v8, %s13850_s28  ;;  %v11793_v16 = vsel %vm4829_vm13, %v4814_v18, %v4838_v5 }
 0xf91   : > { %v4819_v39 = vpop.f32.mrb[21].mxu0  ;;  %v4818_v43 = vadd.f32 %v4817_v13, %v4744_v14 }
 0xf92   : > { %v4821_v7 = vpop.f32.mrb[22].mxu0  ;;  %4917 = vrot.lane.b32.xlu1 %v11762_v1, %s13839_s20  ;;  %v4820_v49 = vadd.f32 %v4819_v39, %v4744_v14 }
 0xf93   : > { %v4823_v40 = vpop.f32.mrb[23].mxu0  ;;  %v4822_v2 = vadd.f32 %v4821_v7, %v4749_v17  ;;  %v4839_v0 = vmul.f32 %v11759_v51, %v4818_v43  ;;  %vm4830_vm10 = vcmp.gt.f32.partialorder %v4818_v43, 0.0 }
 0xf94   : > { %4919 = vrot.lane.b32.xlu0 %v11767_v8, %s13839_s20  ;;  %v4824_v38 = vadd.f32 %v4823_v40, %v4749_v17  ;;  %v4840_v60 = vmul.f32 %v11759_v51, %v4820_v49  ;;  %vm4831_vm9 = vcmp.gt.f32.partialorder %v4820_v49, 0.0 }
 0xf95   : > { %v4841_v57 = vmul.f32 %v11759_v51, %v4822_v2  ;;  %vm4832_vm15 = vcmp.gt.f32.partialorder %v4822_v2, 0.0  ;;  %v11811_v31 = vsel %vm4830_vm10, %v4818_v43, %v4839_v0 }
 0xf96   : > { %4969 = vrot.lane.b32.xlu1 %v11762_v1, %s13840_s2  ;;  %v4842_v4 = vmul.f32 %v11759_v51, %v4824_v38  ;;  %vm4833_vm13 = vcmp.gt.f32.partialorder %v4824_v38, 0.0  ;;  %v11833_v47 = vsel %vm4831_vm9, %v4820_v49, %v4840_v60 }
 0xf97   : > { %v11815_v46 = vsel %vm4832_vm15, %v4822_v2, %v4841_v57  ;;  %v4941_v2 = vld [vmem:[#allocation11 + $0x1] ss:$8 sm:$0x3] }
 0xf98   : > { %4971 = vrot.lane.b32.xlu0 %v11767_v8, %s13840_s2  ;;  %v11837_v27 = vsel %vm4833_vm13, %v4824_v38, %v4842_v4  ;;  %v4950_v38 = vrot.slane %v4941_v2, %v9379_v9  ;;  %v4946_v29 = vrot.slane %v4941_v2, %v9469_v37 }
 0xf9a   : > { %5021 = vrot.lane.b32.xlu1 %v11762_v1, %s13841_s13 }
 0xf9c   : > { %5023 = vrot.lane.b32.xlu0 %v11767_v8, %s13841_s13 }
 0xf9e   : > { %5081 = vrot.lane.b32.xlu1 %v11762_v1, %s13842_s4 }
 0xfa0   : > { %5083 = vrot.lane.b32.xlu0 %v11767_v8, %s13842_s4 }
 0xfa2   : > { %4873 = vrot.lane.b32.xlu1 %v11789_v54, %s13850_s28 }
 0xfa4   : > { %4875 = vrot.lane.b32.xlu0 %v11793_v16, %s13850_s28 }
 0xfa6   : > { %4925 = vrot.lane.b32.xlu1 %v11789_v54, %s13839_s20 }
 0xfa8   : > { %4927 = vrot.lane.b32.xlu0 %v11793_v16, %s13839_s20 }
 0xfaa   : > { %4977 = vrot.lane.b32.xlu1 %v11789_v54, %s13840_s2 }
 0xfac   : > { %4979 = vrot.lane.b32.xlu0 %v11793_v16, %s13840_s2 }
 0xfae   : > { %5029 = vrot.lane.b32.xlu1 %v11789_v54, %s13841_s13 }
 0xfb0   : > { %5031 = vrot.lane.b32.xlu0 %v11793_v16, %s13841_s13 }
 0xfb2   : > { %4869 = vrot.lane.b32.xlu1 %v11811_v31, %s13850_s28 }
 0xfb4   : > { %4871 = vrot.lane.b32.xlu0 %v11815_v46, %s13850_s28 }
 0xfb6   : > { %4921 = vrot.lane.b32.xlu1 %v11811_v31, %s13839_s20 }
 0xfb8   : > { %4923 = vrot.lane.b32.xlu0 %v11815_v46, %s13839_s20 }
 0xfba   : > { %4973 = vrot.lane.b32.xlu1 %v11811_v31, %s13840_s2 }
 0xfbc   : > { %4975 = vrot.lane.b32.xlu0 %v11815_v46, %s13840_s2 }
 0xfbe   : > { %5025 = vrot.lane.b32.xlu1 %v11811_v31, %s13841_s13 }
 0xfc0   : > { %5027 = vrot.lane.b32.xlu0 %v11815_v46, %s13841_s13 }
 0xfc2   : > { %4877 = vrot.lane.b32.xlu1 %v11833_v47, %s13850_s28 }
 0xfc4   : > { %4879 = vrot.lane.b32.xlu0 %v11837_v27, %s13850_s28 }
 0xfc6   : > { %5089 = vrot.lane.b32.xlu1 %v11789_v54, %s13842_s4 }
 0xfc8   : > { %5091 = vrot.lane.b32.xlu0 %v11793_v16, %s13842_s4 }
 0xfca   : > { %4929 = vrot.lane.b32.xlu1 %v11833_v47, %s13839_s20 }
 0xfcc   : > { %4931 = vrot.lane.b32.xlu0 %v11837_v27, %s13839_s20 }
 0xfce   : > { %4981 = vrot.lane.b32.xlu1 %v11833_v47, %s13840_s2 }
 0xfd0   : > { %5087 = vrot.lane.b32.xlu0 %v11815_v46, %s13842_s4 }
 0xfd2   : > { %5033 = vrot.lane.b32.xlu1 %v11833_v47, %s13841_s13 }
 0xfd4   : > { %4983 = vrot.lane.b32.xlu0 %v11837_v27, %s13840_s2 }
 0xfd6   : > { %5085 = vrot.lane.b32.xlu1 %v11811_v31, %s13842_s4 }
 0xfd8   : > { %5135 = vrot.lane.b32.xlu0 %v11767_v8, %s13835_s12 }
 0xfda   : > { %5093 = vrot.lane.b32.xlu1 %v11833_v47, %s13842_s4 }
 0xfdc   : > { %5035 = vrot.lane.b32.xlu0 %v11837_v27, %s13841_s13 }
 0xfde   : > { %5133 = vrot.lane.b32.xlu1 %v11762_v1, %s13835_s12 }
 0xfe0   : > { %5143 = vrot.lane.b32.xlu0 %v11793_v16, %s13835_s12 }
 0xfe2   : > { %5141 = vrot.lane.b32.xlu1 %v11789_v54, %s13835_s12 }
 0xfe4   : > { %5139 = vrot.lane.b32.xlu0 %v11815_v46, %s13835_s12 }
 0xfe6   : > { %5137 = vrot.lane.b32.xlu1 %v11811_v31, %s13835_s12 }
 0xfe8   : > { %5187 = vrot.lane.b32.xlu0 %v11767_v8, %s13836_s17 }
 0xfea   : > { %5145 = vrot.lane.b32.xlu1 %v11833_v47, %s13835_s12 }
 0xfec   : > { %5095 = vrot.lane.b32.xlu0 %v11837_v27, %s13842_s4 }
 0xfee   : > { %5185 = vrot.lane.b32.xlu1 %v11762_v1, %s13836_s17 }
 0xff0   : > { %5195 = vrot.lane.b32.xlu0 %v11793_v16, %s13836_s17 }
 0xff2   : > { %5193 = vrot.lane.b32.xlu1 %v11789_v54, %s13836_s17 }
 0xff4   : > { %5147 = vrot.lane.b32.xlu0 %v11837_v27, %s13835_s12 }
 0xff6   : > { %5189 = vrot.lane.b32.xlu1 %v11811_v31, %s13836_s17 }
 0xff8   : > { %5191 = vrot.lane.b32.xlu0 %v11815_v46, %s13836_s17 }
 0xffa   : > { %5197 = vrot.lane.b32.xlu1 %v11833_v47, %s13836_s17 }
 0xffc   : > { %5199 = vrot.lane.b32.xlu0 %v11837_v27, %s13836_s17 }
 0xffe   : > { %5237 = vrot.lane.b32.xlu1 %v11762_v1, %s13837_s22 }
0x1000   : > { %v4866_v45 = vpop.permute.xlu1 %4865  ;;  %5239 = vrot.lane.b32.xlu0 %v11767_v8, %s13837_s22 }
0x1002   : > { %5245 = vrot.lane.b32.xlu1 %v11789_v54, %s13837_s22  ;;  %v4868_v12 = vpop.permute.xlu0 %4867 }
0x1004   : > { %v11906_v28 = vpop.permute.xlu1 %4917  ;;  %5247 = vrot.lane.b32.xlu0 %v11793_v16, %s13837_s22 }
0x1006   : > { %5241 = vrot.lane.b32.xlu1 %v11811_v31, %s13837_s22  ;;  %v4920_v55 = vpop.permute.xlu0 %4919 }
0x1008   : > { %v11912_v34 = vpop.permute.xlu1 %4969  ;;  %5243 = vrot.lane.b32.xlu0 %v11815_v46, %s13837_s22 }
0x100a   : > { %5249 = vrot.lane.b32.xlu1 %v11833_v47, %s13837_s22  ;;  %v11918_v32 = vpop.permute.xlu0 %4971 }
0x100c   : > { %v11923_v3 = vpop.permute.xlu1 %5021  ;;  %5251 = vrot.lane.b32.xlu0 %v11837_v27, %s13837_s22 }
0x100e   : > { %5399 = vperm.xlu1 %8575, %v8285_v23   ;;  %v11930_v6 = vpop.permute.xlu0 %5023 }
0x1010   : > { %v11935_v53 = vpop.permute.xlu1 %5081  ;;  %5404 = vperm.xlu0 %8574, %v8286_v52  }
0x1012   : > { %5409 = vperm.xlu1 %8575, %v8287_v35   ;;  %v11940_v44 = vpop.permute.xlu0 %5083 }
0x1014   : > { %v4874_v50 = vpop.permute.xlu1 %4873  ;;  %5414 = vperm.xlu0 %8574, %v8288_v58  }
0x1015   : > { %v4881_v19 = vsel %vm980_vm6, %v4866_v45, %v4874_v50  ;;  %v4885_v62 = vsel %vm980_vm6, %v4874_v50, %v4866_v45 }
0x1016   : > { %v4876_v36 = vpop.permute.xlu0 %4875  ;;  %v4901_v48 = vmul.f32 %v4894_v56, %v4885_v62  ;;  %v4902_v25 = vmul.f32 %v4898_v20, %v4881_v19 }
0x1017   : > { %v4882_v24 = vsel %vm980_vm6, %v4868_v12, %v4876_v36  ;;  %v4886_v51 = vsel %vm980_vm6, %v4876_v36, %v4868_v12 }
0x1018   : > { %v4903_v61 = vmul.f32 %v4894_v56, %v4886_v51  ;;  %v4904_v42 = vmul.f32 %v4898_v20, %v4882_v24  ;;  %v4926_v30 = vpop.permute.xlu1 %4925 }
0x1019   : > { %v4933_v45 = vsel %vm1003_vm3, %v11906_v28, %v4926_v30  ;;  %v4937_v24 = vsel %vm1003_vm3, %v4926_v30, %v11906_v28 }
0x101a   : > { %v5361_v10 = vpack.c.bf16 %v4903_v61, %v4901_v48  ;;  %v4928_v11 = vpop.permute.xlu0 %4927  ;;  %v5362_v26 = vpack.c.bf16 %v4904_v42, %v4902_v25  ;;  %v4954_v51 = vmul.f32 %v4950_v38, %v4933_v45 }
0x101b   : > { %v4934_v57 = vsel %vm1003_vm3, %v4920_v55, %v4928_v11  ;;  %v4938_v23 = vsel %vm1003_vm3, %v4928_v11, %v4920_v55  ;;  %v4993_v55 = vld [vmem:[#allocation11 + $0x2] ss:$8 sm:$0x3] }
0x101c   : > { %v11952_v13 = vpop.permute.xlu1 %4977  ;;  %5453 = vmatprep.subr.bf16.mxu0 %v5362_v26  ;;  %v4956_v52 = vmul.f32 %v4950_v38, %v4934_v57  ;;  %v4955_v48 = vmul.f32 %v4946_v29, %v4938_v23  ;;  %v5002_v26 = vrot.slane %v4993_v55, %v9379_v9 }
0x101d   : > { %5454 = vmatpush1.bf16.msra.mxu0 %v5361_v10  ;;  %v4953_v10 = vmul.f32 %v4946_v29, %v4937_v24  ;;  %v4985_v2 = vsel %vm1027_vm4, %v11912_v34, %v11952_v13 }
0x101e   : > { %v4980_v39 = vpop.permute.xlu0 %4979 }
0x101f   : > { %v4986_v11 = vsel %vm1027_vm4, %v11918_v32, %v4980_v39 }
0x1020   : > { %v11954_v7 = vpop.permute.xlu1 %5029 }
0x1022   : > { %v11956_v40 = vpop.permute.xlu0 %5031 }
0x1024   : > { %v4870_v41 = vpop.permute.xlu1 %4869 }
0x1026   : > { %v4872_v18 = vpop.permute.xlu0 %4871 }
0x1028   : > { %v4922_v15 = vpop.permute.xlu1 %4921 }
0x102a   : > { %v4924_v5 = vpop.permute.xlu0 %4923 }
0x102c   : > { %v11958_v14 = vpop.permute.xlu1 %4973 }
0x102e   : > { %v11960_v43 = vpop.permute.xlu0 %4975 }
0x1030   : > { %v11962_v17 = vpop.permute.xlu1 %5025 }
0x1032   : > { %v11964_v0 = vpop.permute.xlu0 %5027 }
0x1034   : > { %v4878_v49 = vpop.permute.xlu1 %4877 }
0x1035   : > { %v4883_v60 = vsel %vm980_vm6, %v4870_v41, %v4878_v49  ;;  %v4887_v4 = vsel %vm980_vm6, %v4878_v49, %v4870_v41  ;;  %v5365_v41 = vpack.c.bf16 %v4955_v48, %v4953_v10  ;;  %v4990_v49 = vsel %vm1027_vm4, %v4980_v39, %v11918_v32  ;;  %v5045_v39 = vld [vmem:[#allocation11 + $0x3] ss:$8 sm:$0x3] }
0x1036   : > { %v4880_v12 = vpop.permute.xlu0 %4879  ;;  %v4905_v58 = vmul.f32 %v4894_v56, %v4887_v4  ;;  %v4906_v50 = vmul.f32 %v4898_v20, %v4883_v60  ;;  %v5008_v60 = vmul.f32 %v5002_v26, %v4986_v11 }
0x1037   : > { %v4884_v35 = vsel %vm980_vm6, %v4872_v18, %v4880_v12  ;;  %v4888_v33 = vsel %vm980_vm6, %v4880_v12, %v4872_v18  ;;  %v4998_v18 = vrot.slane %v4993_v55, %v9469_v37  ;;  %v5037_v55 = vsel %vm1051_vm5, %v11923_v3, %v11954_v7 }
0x1038   : > { %v4907_v19 = vmul.f32 %v4894_v56, %v4888_v33  ;;  %v4908_v62 = vmul.f32 %v4898_v20, %v4884_v35  ;;  %v11983_v36 = vpop.permute.xlu1 %5089  ;;  %v5366_v20 = vpack.c.bf16 %v4956_v52, %v4954_v51  ;;  %v4989_v33 = vsel %vm1027_vm4, %v11952_v13, %v11912_v34 }
0x1039   : > { %v5007_v32 = vmul.f32 %v4998_v18, %v4990_v49  ;;  %v5005_v24 = vmul.f32 %v4998_v18, %v4989_v33  ;;  %v5054_v51 = vrot.slane %v5045_v39, %v9379_v9 }
0x103a   : > { %v5363_v25 = vpack.c.bf16 %v4907_v19, %v4905_v58  ;;  %v11988_v61 = vpop.permute.xlu0 %5091  ;;  %v5364_v42 = vpack.c.bf16 %v4908_v62, %v4906_v50  ;;  %v5006_v58 = vmul.f32 %v5002_v26, %v4985_v2  ;;  %v5050_v2 = vrot.slane %v5045_v39, %v9469_v37 }
0x103b   : > { %v5369_v48 = vpack.c.bf16 %v5007_v32, %v5005_v24 }
0x103c   : > { %v4930_v56 = vpop.permute.xlu1 %4929  ;;  %5455 = vmatprep.subr.bf16.mxu0 %v5364_v42  ;;  %v5042_v42 = vsel %vm1051_vm5, %v11956_v40, %v11930_v6 }
0x103d   : > { %v4935_v28 = vsel %vm1003_vm3, %v4922_v15, %v4930_v56  ;;  %v4939_v30 = vsel %vm1003_vm3, %v4930_v56, %v4922_v15  ;;  %5456 = vmatpush1.bf16.msra.mxu0 %v5363_v25 }
0x103e   : > { %5457 = vmatprep.subr.bf16.mxu0 %v5366_v20  ;;  %v4932_v57 = vpop.permute.xlu0 %4931  ;;  %v4957_v45 = vmul.f32 %v4946_v29, %v4939_v30  ;;  %v4958_v12 = vmul.f32 %v4950_v38, %v4935_v28 }
0x103f   : > { %v4936_v4 = vsel %vm1003_vm3, %v4924_v5, %v4932_v57  ;;  %v4940_v15 = vsel %vm1003_vm3, %v4932_v57, %v4924_v5  ;;  %v5038_v5 = vsel %vm1051_vm5, %v11930_v6, %v11956_v40  ;;  %v5041_v6 = vsel %vm1051_vm5, %v11954_v7, %v11923_v3 }
0x1040   : > { %v4959_v23 = vmul.f32 %v4946_v29, %v4940_v15  ;;  %v4960_v52 = vmul.f32 %v4950_v38, %v4936_v4  ;;  %v4982_v35 = vpop.permute.xlu1 %4981  ;;  %v5370_v29 = vpack.c.bf16 %v5008_v60, %v5006_v58  ;;  %v5060_v10 = vmul.f32 %v5054_v51, %v5038_v5 }
0x1041   : > { %5458 = vmatpush1.bf16.msra.mxu0 %v5365_v41  ;;  %v4987_v34 = vsel %vm1027_vm4, %v11958_v14, %v4982_v35  ;;  %v4991_v13 = vsel %vm1027_vm4, %v4982_v35, %v11958_v14  ;;  %v5058_v40 = vmul.f32 %v5054_v51, %v5037_v55  ;;  %v5059_v4 = vmul.f32 %v5050_v2, %v5042_v42 }
0x1042   : > { %v5367_v50 = vpack.c.bf16 %v4959_v23, %v4957_v45  ;;  %v12014_v19 = vpop.permute.xlu0 %5087  ;;  %v5368_v62 = vpack.c.bf16 %v4960_v52, %v4958_v12  ;;  %v5009_v56 = vmul.f32 %v4998_v18, %v4991_v13  ;;  %v5010_v20 = vmul.f32 %v5002_v26, %v4987_v34 }
0x1043   : > { %v5374_v15 = vpack.c.bf16 %v5060_v10, %v5058_v40  ;;  %v5378_v5 = vpack.c.bf16 %v11793_v16, %v11789_v54  ;;  %v5098_v54 = vsel %vm1077_vm7, %v11940_v44, %v11988_v61  ;;  %v5377_v16 = vpack.c.bf16 %v11767_v8, %v11762_v1  ;;  %v5157_v8 = vld [vmem:[#allocation11 + $0x6] ss:$8 sm:$0x3] }
0x1044   : > { %v5034_v38 = vpop.permute.xlu1 %5033  ;;  %5459 = vmatprep.subr.bf16.mxu0 %v5368_v62  ;;  %v5105_v62 = vld [vmem:[#allocation11 + $0x5] ss:$8 sm:$0x3]  ;;  %v5380_v55 = vpack.c.bf16 %v11837_v27, %v11833_v47 }
0x1045   : > { %5460 = vmatpush1.bf16.msra.mxu0 %v5367_v50  ;;  %v5043_v45 = vsel %vm1051_vm5, %v5034_v38, %v11962_v17  ;;  %v5110_v34 = vrot.slane %v5105_v62, %v9469_v37 }
0x1046   : > { %5461 = vmatprep.subr.bf16.mxu0 %v5370_v29  ;;  %v4984_v25 = vpop.permute.xlu0 %4983  ;;  %v5061_v52 = vmul.f32 %v5050_v2, %v5043_v45 }
0x1047   : > { %v4988_v11 = vsel %vm1027_vm4, %v11960_v43, %v4984_v25  ;;  %v4992_v14 = vsel %vm1027_vm4, %v4984_v25, %v11960_v43  ;;  %v5097_v25 = vsel %vm1077_vm7, %v11935_v53, %v11983_v36  ;;  %v5119_v10 = vmul.f32 %v5110_v34, %v5098_v54 }
0x1048   : > { %v5011_v28 = vmul.f32 %v4998_v18, %v4992_v14  ;;  %v5012_v30 = vmul.f32 %v5002_v26, %v4988_v11  ;;  %v5086_v41 = vpop.permute.xlu1 %5085  ;;  %v5057_v18 = vmul.f32 %v5050_v2, %v5041_v6  ;;  %v5039_v26 = vsel %vm1051_vm5, %v11962_v17, %v5034_v38 }
0x1049   : > { %5462 = vmatpush1.bf16.msra.mxu0 %v5369_v48  ;;  %v5062_v35 = vmul.f32 %v5054_v51, %v5039_v26  ;;  %v5114_v38 = vrot.slane %v5105_v62, %v9379_v9  ;;  %v5117_v11 = vmul.f32 %v5110_v34, %v5097_v25 }
0x104a   : > { %v5371_v57 = vpack.c.bf16 %v5011_v28, %v5009_v56  ;;  %v12046_v49 = vpop.permute.xlu0 %5135  ;;  %v5372_v60 = vpack.c.bf16 %v5012_v30, %v5010_v20  ;;  %v5373_v7 = vpack.c.bf16 %v5059_v4, %v5057_v18  ;;  %v5162_v20 = vrot.slane %v5157_v8, %v9469_v37 }
0x104b   : > { %v5166_v28 = vrot.slane %v5157_v8, %v9379_v9 }
0x104c   : > { %v5094_v43 = vpop.permute.xlu1 %5093  ;;  %5463 = vmatprep.subr.bf16.mxu0 %v5372_v60 }
0x104d   : > { %5464 = vmatpush1.bf16.msra.mxu0 %v5371_v57  ;;  %v5099_v1 = vsel %vm1077_vm7, %v5086_v41, %v5094_v43  ;;  %v5103_v27 = vsel %vm1077_vm7, %v5094_v43, %v5086_v41 }
0x104e   : > { %5465 = vmatprep.subr.bf16.mxu0 %v5374_v15  ;;  %v5036_v3 = vpop.permute.xlu0 %5035  ;;  %v5121_v56 = vmul.f32 %v5110_v34, %v5099_v1  ;;  %v5122_v6 = vmul.f32 %v5114_v38, %v5103_v27 }
0x104f   : > { %v5040_v12 = vsel %vm1051_vm5, %v11964_v0, %v5036_v3  ;;  %v5044_v23 = vsel %vm1051_vm5, %v5036_v3, %v11964_v0  ;;  %v5102_v0 = vsel %vm1077_vm7, %v11988_v61, %v11940_v44  ;;  %v5379_v61 = vpack.c.bf16 %v11815_v46, %v11811_v31 }
0x1050   : > { %v5063_v33 = vmul.f32 %v5050_v2, %v5044_v23  ;;  %v5064_v58 = vmul.f32 %v5054_v51, %v5040_v12  ;;  %v5134_v32 = vpop.permute.xlu1 %5133  ;;  %v5101_v51 = vsel %vm1077_vm7, %v11983_v36, %v11935_v53  ;;  %v5120_v13 = vmul.f32 %v5114_v38, %v5102_v0  ;;  %v5209_v12 = vld [vmem:[#allocation11 + $0x7] ss:$8 sm:$0x3] }
0x1051   : > { %5466 = vmatpush1.bf16.msra.mxu0 %v5373_v7  ;;  %v5118_v42 = vmul.f32 %v5114_v38, %v5101_v51  ;;  %v5381_v36 = vpack.c.bf16 %v5119_v10, %v5117_v11 }
0x1052   : > { %v5375_v39 = vpack.c.bf16 %v5063_v33, %v5061_v52  ;;  %v5144_v17 = vpop.permute.xlu0 %5143  ;;  %v5376_v50 = vpack.c.bf16 %v5064_v58, %v5062_v35 }
0x1053   : > { %v5382_v47 = vpack.c.bf16 %v5120_v13, %v5118_v42  ;;  %v5154_v31 = vsel %vm1101_vm8, %v5144_v17, %v12046_v49  ;;  %v5150_v43 = vsel %vm1101_vm8, %v12046_v49, %v5144_v17 }
0x1054   : > { %v5142_v24 = vpop.permute.xlu1 %5141  ;;  %5467 = vmatprep.subr.bf16.mxu0 %v5376_v50  ;;  %v5172_v15 = vmul.f32 %v5166_v28, %v5154_v31 }
0x1055   : > { %5468 = vmatpush1.bf16.msra.mxu0 %v5375_v39  ;;  %v5153_v53 = vsel %vm1101_vm8, %v5142_v24, %v5134_v32  ;;  %v5149_v46 = vsel %vm1101_vm8, %v5134_v32, %v5142_v24  ;;  %v5218_v32 = vrot.slane %v5209_v12, %v9379_v9 }
0x1056   : > { %5469 = vmatprep.subr.bf16.mxu0 %v5378_v5  ;;  %v12067_v29 = vpop.permute.xlu0 %5139  ;;  %v5170_v40 = vmul.f32 %v5166_v28, %v5153_v53  ;;  %v5169_v18 = vmul.f32 %v5162_v20, %v5149_v46 }
0x1058   : > { %v5138_v48 = vpop.permute.xlu1 %5137  ;;  %v5386_v35 = vpack.c.bf16 %v5172_v15, %v5170_v40  ;;  %v8652_v40 = vld [vmem:[%s13709_s8 + $0x30] ss:$12 sps:$4 sm:$0xff]  }
0x1059   : > { %5470 = vmatpush1.bf16.msra.mxu0 %v5377_v16  ;;  %v5214_v16 = vrot.slane %v5209_v12, %v9469_v37 }
0x105a   : > { %5471 = vmatprep.subr.bf16.mxu0 %v5380_v55  ;;  %v5188_v44 = vpop.permute.xlu0 %5187 }
0x105c   : > { %v5146_v14 = vpop.permute.xlu1 %5145 }
0x105d   : > { %5472 = vmatpush1.bf16.msra.mxu0 %v5379_v61  ;;  %v5151_v7 = vsel %vm1101_vm8, %v5138_v48, %v5146_v14  ;;  %v5155_v23 = vsel %vm1101_vm8, %v5146_v14, %v5138_v48 }
0x105e   : > { %5473 = vmatprep.subr.bf16.mxu0 %v5382_v47  ;;  %v5096_v30 = vpop.permute.xlu0 %5095  ;;  %v5173_v58 = vmul.f32 %v5162_v20, %v5151_v7  ;;  %v5174_v17 = vmul.f32 %v5166_v28, %v5155_v23 }
0x105f   : > { %v5100_v41 = vsel %vm1077_vm7, %v12014_v19, %v5096_v30  ;;  %v5104_v2 = vsel %vm1077_vm7, %v5096_v30, %v12014_v19  ;;  %v5171_v19 = vmul.f32 %v5162_v20, %v5150_v43 }
0x1060   : > { %v5123_v57 = vmul.f32 %v5110_v34, %v5100_v41  ;;  %v5124_v60 = vmul.f32 %v5114_v38, %v5104_v2  ;;  %v5186_v4 = vpop.permute.xlu1 %5185 }
0x1061   : > { %5474 = vmatpush1.bf16.msra.mxu0 %v5381_v36  ;;  %v5385_v33 = vpack.c.bf16 %v5171_v19, %v5169_v18 }
0x1062   : > { %v5383_v26 = vpack.c.bf16 %v5123_v57, %v5121_v56  ;;  %v5196_v45 = vpop.permute.xlu0 %5195  ;;  %v5384_v3 = vpack.c.bf16 %v5124_v60, %v5122_v6 }
0x1063   : > { %v5206_v50 = vsel %vm1125_vm11, %v5196_v45, %v5188_v44  ;;  %v5202_v34 = vsel %vm1125_vm11, %v5188_v44, %v5196_v45 }
0x1064   : > { %v5194_v52 = vpop.permute.xlu1 %5193  ;;  %5475 = vmatprep.subr.bf16.mxu0 %v5384_v3  ;;  %v5224_v13 = vmul.f32 %v5218_v32, %v5206_v50  ;;  %v5223_v1 = vmul.f32 %v5214_v16, %v5202_v34 }
0x1065   : > { %v5205_v49 = vsel %vm1125_vm11, %v5194_v52, %v5186_v4  ;;  %5476 = vmatpush1.bf16.msra.mxu0 %v5383_v26  ;;  %v5201_v5 = vsel %vm1125_vm11, %v5186_v4, %v5194_v52  ;;  %v8655_v4 = vld [vmem:[%s13709_s8 + $0x4c] ss:$12 sps:$4 sm:$0xff]  }
0x1066   : > { %5477 = vmatprep.subr.bf16.mxu0 %v5386_v35  ;;  %v5148_v39 = vpop.permute.xlu0 %5147  ;;  %v5222_v0 = vmul.f32 %v5218_v32, %v5205_v49  ;;  %v5221_v42 = vmul.f32 %v5214_v16, %v5201_v5  ;;  %v8657_v49 = vld [vmem:[%s13709_s8 + $0x48] ss:$12 sps:$4 sm:$0xff]  }
0x1067   : > { %v5152_v62 = vsel %vm1101_vm8, %v12067_v29, %v5148_v39  ;;  %v5156_v24 = vsel %vm1101_vm8, %v5148_v39, %v12067_v29 }
0x1068   : > { %v5175_v38 = vmul.f32 %v5162_v20, %v5152_v62  ;;  %v5176_v51 = vmul.f32 %v5166_v28, %v5156_v24  ;;  %v5190_v54 = vpop.permute.xlu1 %5189  ;;  %v5390_v29 = vpack.c.bf16 %v5224_v13, %v5222_v0  ;;  %v5389_v14 = vpack.c.bf16 %v5223_v1, %v5221_v42  ;;  %v5261_v28 = vld [vmem:[#allocation11 + $0x10] ss:$8 sm:$0x3] }
0x1069   : > { %5478 = vmatpush1.bf16.msra.mxu0 %v5385_v33  ;;  %v5266_v41 = vrot.slane %v5261_v28, %v9469_v37  ;;  %v5270_v2 = vrot.slane %v5261_v28, %v9379_v9  ;;  %v12175_v13 = vstv %s8265_s30 }
0x106a   : > { %v5387_v48 = vpack.c.bf16 %v5175_v38, %v5173_v58  ;;  %v5192_v55 = vpop.permute.xlu0 %5191  ;;  %v5388_v25 = vpack.c.bf16 %v5176_v51, %v5174_v17  ;;  %v8658_v51 = vld [vmem:[%s13709_s8 + $0x38] ss:$12 sps:$4 sm:$0xff]  }
0x106c   : > { %v5198_v10 = vpop.permute.xlu1 %5197  ;;  %5479 = vmatprep.subr.bf16.mxu0 %v5388_v25 }
0x106d   : > { %v5203_v8 = vsel %vm1125_vm11, %v5190_v54, %v5198_v10  ;;  %v5207_v61 = vsel %vm1125_vm11, %v5198_v10, %v5190_v54  ;;  %5480 = vmatpush1.bf16.msra.mxu0 %v5387_v48  ;;  %v8659_v54 = vld [vmem:[%s13709_s8 + $0x50] ss:$12 sps:$4 sm:$0xff]  }
0x106e   : > { %5481 = vmatprep.subr.bf16.mxu0 %v5390_v29  ;;  %v5200_v11 = vpop.permute.xlu0 %5199  ;;  %v5225_v27 = vmul.f32 %v5214_v16, %v5203_v8  ;;  %v5226_v53 = vmul.f32 %v5218_v32, %v5207_v61 }
0x106f   : > { %v5204_v44 = vsel %vm1125_vm11, %v5192_v55, %v5200_v11  ;;  %v5208_v47 = vsel %vm1125_vm11, %v5200_v11, %v5192_v55 }
0x1070   : > { %v5227_v36 = vmul.f32 %v5214_v16, %v5204_v44  ;;  %v5228_v56 = vmul.f32 %v5218_v32, %v5208_v47  ;;  %v5238_v20 = vpop.permute.xlu1 %5237 }
0x1071   : > { %5482 = vmatpush1.bf16.msra.mxu0 %v5389_v14 }
0x1072   : > { %v5391_v30 = vpack.c.bf16 %v5227_v36, %v5225_v27  ;;  %v5240_v31 = vpop.permute.xlu0 %5239  ;;  %v5392_v46 = vpack.c.bf16 %v5228_v56, %v5226_v53 }
0x1074   : > { %v5246_v6 = vpop.permute.xlu1 %5245  ;;  %5483 = vmatprep.subr.bf16.mxu0 %v5392_v46 }
0x1075   : > { %v5253_v57 = vsel %vm1149_vm12, %v5238_v20, %v5246_v6  ;;  %v5257_v60 = vsel %vm1149_vm12, %v5246_v6, %v5238_v20  ;;  %5484 = vmatpush1.bf16.msra.mxu0 %v5391_v30 }
0x1076   : > { %v5248_v43 = vpop.permute.xlu0 %5247  ;;  %v5273_v26 = vmul.f32 %v5266_v41, %v5253_v57  ;;  %v5274_v45 = vmul.f32 %v5270_v2, %v5257_v60 }
0x1077   : > { %v5254_v15 = vsel %vm1149_vm12, %v5240_v31, %v5248_v43  ;;  %v5258_v18 = vsel %vm1149_vm12, %v5248_v43, %v5240_v31 }
0x1078   : > { %v5275_v3 = vmul.f32 %v5266_v41, %v5254_v15  ;;  %v5276_v7 = vmul.f32 %v5270_v2, %v5258_v18  ;;  %v5242_v12 = vpop.permute.xlu1 %5241  ;;  %5486 = vmatmul.mubr.bf16.vlgmr.msra.gmra.mrb[24].mxu0 %v8652_v40 }
0x1079   : > { %5495 = vmatprep.mubr.bf16.mxu0 %v8655_v4 }
0x107a   : > { %v5393_v19 = vpack.c.bf16 %v5275_v3, %v5273_v26  ;;  %v5244_v23 = vpop.permute.xlu0 %5243  ;;  %v5394_v52 = vpack.c.bf16 %v5276_v7, %v5274_v45  ;;  %v12312_v3 = vld [vmem:[%s13711_s10 + $0xc] sm:$0x77] }
0x107b   : > { %v8301_v7 = vcombine.high %v12312_v3, %v12312_v3 }
0x107c   : > { %v5250_v35 = vpop.permute.xlu1 %5249  ;;  %5506 = vmatprep.subr.bf16.mxu0 %v5394_v52 }
0x107d   : > { %v5255_v33 = vsel %vm1149_vm12, %v5242_v12, %v5250_v35  ;;  %v5259_v58 = vsel %vm1149_vm12, %v5250_v35, %v5242_v12  ;;  %5507 = vmatpush1.bf16.msra.mxu0 %v5393_v19 }
0x107e   : > { %v5252_v32 = vpop.permute.xlu0 %5251  ;;  %v5277_v50 = vmul.f32 %v5266_v41, %v5255_v33  ;;  %v5278_v62 = vmul.f32 %v5270_v2, %v5259_v58  ;;  %v8299_v33 = vld [vmem:[%s13712_s11 + $0x8] sm:$0x1f] }
0x107f   : > { %v5256_v39 = vsel %vm1149_vm12, %v5244_v23, %v5252_v32  ;;  %v5260_v17 = vsel %vm1149_vm12, %v5252_v32, %v5244_v23 }
0x1080   : > { %v5279_v24 = vmul.f32 %v5266_v41, %v5256_v39  ;;  %v5280_v5 = vmul.f32 %v5270_v2, %v5260_v17  ;;  %5496 = vmatmul.mubr.bf16.gmra.mrb[28].mxu0 %v8657_v49  ;;  %v5613_v17 = vld [vmem:[#allocation11] ss:$8 sm:$0x3] }
0x1081   : > { %5538 = vmatprep.mubr.bf16.mxu0 %v13826_v59 }
0x1082   : > { %v5395_v0 = vpack.c.bf16 %v5279_v24, %v5277_v50  ;;  %v5396_v38 = vpack.c.bf16 %v5280_v5, %v5278_v62  ;;  %v5618_v62 = vrot.slane %v5613_v17, %v9469_v37  ;;  %v5622_v24 = vrot.slane %v5613_v17, %v9379_v9 }
0x1084   : > { %5508 = vmatprep.subr.bf16.mxu0 %v5396_v38 }
0x1085   : > { %5509 = vmatpush1.bf16.msra.mxu0 %v5395_v0 }
0x1088   : > { %8295 = vmatmul.mubr.msk.bf16.vlgmr.msra.gmra.mrb[24].mxu0 %vm1913_vm2, %v8658_v51 }
0x1089   : > { %5548 = vmatprep.mubr.bf16.mxu0 %v13826_v59 }
0x108d   : > { %v5400_v16 = vpop.permute.xlu1 %5399 }
0x108f   : > { %v5405_v25 = vpop.permute.xlu0 %5404 }
0x1090   : > { %8296 = vmatmul.mubr.msk.bf16.gmra.mrb[28].mxu0 %vm1913_vm2, %v8659_v54 }
0x1091   : > { %v5410_v31 = vpop.permute.xlu1 %5409  ;;  %6171 = vmatprep.mubr.bf16.mxu0 %v8301_v7 }
0x1093   : > { %v5415_v41 = vpop.permute.xlu0 %5414 }
0x115b   : > { %v5540_v34 = vpop.f32.mrb[24].mxu0 }
0x115c   : > { %v8407_v48 = vadd.f32 %v5540_v34, %v5400_v16  ;;  %v5542_v55 = vpop.f32.mrb[25].mxu0 }
0x115d   : > { %v5544_v42 = vpop.f32.mrb[26].mxu0  ;;  %v8408_v53 = vadd.f32 %v5542_v55, %v5400_v16 }
0x115e   : > { %vm5559_vm10 = vcmp.gt.f32.partialorder %v8407_v48, 0.0  ;;  %v5568_v10 = vmul.f32 %v8407_v48, %v12175_v13  ;;  %v8409_v29 = vadd.f32 %v5544_v42, %v5405_v25  ;;  %v5546_v1 = vpop.f32.mrb[27].mxu0 }
0x115f   : > { %v8410_v36 = vadd.f32 %v5546_v1, %v5405_v25  ;;  %v5569_v56 = vmul.f32 %v8408_v53, %v12175_v13  ;;  %vm5560_vm9 = vcmp.gt.f32.partialorder %v8408_v53, 0.0 }
0x1160   : > { %v12178_v8 = vsel %vm5559_vm10, %v8407_v48, %v5568_v10  ;;  %vm5561_vm15 = vcmp.gt.f32.partialorder %v8409_v29, 0.0  ;;  %v5570_v61 = vmul.f32 %v8409_v29, %v12175_v13 }
0x1161   : > { %5589 = vrot.lane.b32.xlu1 %v12178_v8, %s13850_s28  ;;  %v5571_v20 = vmul.f32 %v8410_v36, %v12175_v13  ;;  %vm5562_vm13 = vcmp.gt.f32.partialorder %v8410_v36, 0.0  ;;  %v12205_v28 = vsel %vm5560_vm9, %v8408_v53, %v5569_v56 }
0x1162   : > { %v12183_v11 = vsel %vm5561_vm15, %v8409_v29, %v5570_v61 }
0x1163   : > { %v5550_v14 = vpop.f32.mrb[28].mxu0  ;;  %5591 = vrot.lane.b32.xlu0 %v12183_v11, %s13850_s28  ;;  %v12209_v30 = vsel %vm5562_vm13, %v8410_v36, %v5571_v20 }
0x1164   : > { %v5552_v44 = vpop.f32.mrb[29].mxu0  ;;  %v8411_v46 = vadd.f32 %v5550_v14, %v5410_v31 }
0x1165   : > { %v5554_v47 = vpop.f32.mrb[30].mxu0  ;;  %5641 = vrot.lane.b32.xlu1 %v12178_v8, %s13839_s20  ;;  %v8412_v4 = vadd.f32 %v5552_v44, %v5410_v31 }
0x1166   : > { %v5556_v27 = vpop.f32.mrb[31].mxu0  ;;  %v8413_v2 = vadd.f32 %v5554_v47, %v5415_v41  ;;  %v5572_v6 = vmul.f32 %v8411_v46, %v12175_v13  ;;  %vm5563_vm10 = vcmp.gt.f32.partialorder %v8411_v46, 0.0 }
0x1167   : > { %5643 = vrot.lane.b32.xlu0 %v12183_v11, %s13839_s20  ;;  %v8414_v43 = vadd.f32 %v5556_v27, %v5415_v41  ;;  %v5573_v15 = vmul.f32 %v8412_v4, %v12175_v13  ;;  %vm5564_vm9 = vcmp.gt.f32.partialorder %v8412_v4, 0.0 }
0x1168   : > { %v5574_v40 = vmul.f32 %v8413_v2, %v12175_v13  ;;  %vm5565_vm15 = vcmp.gt.f32.partialorder %v8413_v2, 0.0  ;;  %v12231_v57 = vsel %vm5563_vm10, %v8411_v46, %v5572_v6 }
0x1169   : > { %5693 = vrot.lane.b32.xlu1 %v12178_v8, %s13840_s2  ;;  %v5575_v18 = vmul.f32 %v8414_v43, %v12175_v13  ;;  %vm5566_vm13 = vcmp.gt.f32.partialorder %v8414_v43, 0.0  ;;  %v12253_v26 = vsel %vm5564_vm9, %v8412_v4, %v5573_v15 }
0x116a   : > { %v12235_v60 = vsel %vm5565_vm15, %v8413_v2, %v5574_v40  ;;  %v5665_v2 = vld [vmem:[#allocation11 + $0x1] ss:$8 sm:$0x3] }
0x116b   : > { %5695 = vrot.lane.b32.xlu0 %v12183_v11, %s13840_s2  ;;  %v12257_v45 = vsel %vm5566_vm13, %v8414_v43, %v5575_v18  ;;  %v5674_v43 = vrot.slane %v5665_v2, %v9379_v9  ;;  %v5670_v7 = vrot.slane %v5665_v2, %v9469_v37 }
0x116d   : > { %5745 = vrot.lane.b32.xlu1 %v12178_v8, %s13841_s13 }
0x116f   : > { %5747 = vrot.lane.b32.xlu0 %v12183_v11, %s13841_s13 }
0x1171   : > { %5805 = vrot.lane.b32.xlu1 %v12178_v8, %s13842_s4 }
0x1173   : > { %5807 = vrot.lane.b32.xlu0 %v12183_v11, %s13842_s4 }
0x1175   : > { %5597 = vrot.lane.b32.xlu1 %v12205_v28, %s13850_s28 }
0x1177   : > { %5599 = vrot.lane.b32.xlu0 %v12209_v30, %s13850_s28 }
0x1179   : > { %5649 = vrot.lane.b32.xlu1 %v12205_v28, %s13839_s20 }
0x117b   : > { %5651 = vrot.lane.b32.xlu0 %v12209_v30, %s13839_s20 }
0x117d   : > { %5701 = vrot.lane.b32.xlu1 %v12205_v28, %s13840_s2 }
0x117f   : > { %5703 = vrot.lane.b32.xlu0 %v12209_v30, %s13840_s2 }
0x1181   : > { %5753 = vrot.lane.b32.xlu1 %v12205_v28, %s13841_s13 }
0x1183   : > { %5755 = vrot.lane.b32.xlu0 %v12209_v30, %s13841_s13 }
0x1185   : > { %5813 = vrot.lane.b32.xlu1 %v12205_v28, %s13842_s4 }
0x1187   : > { %5815 = vrot.lane.b32.xlu0 %v12209_v30, %s13842_s4 }
0x1189   : > { %5593 = vrot.lane.b32.xlu1 %v12231_v57, %s13850_s28 }
0x118b   : > { %5595 = vrot.lane.b32.xlu0 %v12235_v60, %s13850_s28 }
0x118d   : > { %5645 = vrot.lane.b32.xlu1 %v12231_v57, %s13839_s20 }
0x118f   : > { %5647 = vrot.lane.b32.xlu0 %v12235_v60, %s13839_s20 }
0x1191   : > { %5697 = vrot.lane.b32.xlu1 %v12231_v57, %s13840_s2 }
0x1193   : > { %5699 = vrot.lane.b32.xlu0 %v12235_v60, %s13840_s2 }
0x1195   : > { %5749 = vrot.lane.b32.xlu1 %v12231_v57, %s13841_s13 }
0x1197   : > { %5751 = vrot.lane.b32.xlu0 %v12235_v60, %s13841_s13 }
0x1199   : > { %5601 = vrot.lane.b32.xlu1 %v12253_v26, %s13850_s28 }
0x119b   : > { %5603 = vrot.lane.b32.xlu0 %v12257_v45, %s13850_s28 }
0x119d   : > { %5809 = vrot.lane.b32.xlu1 %v12231_v57, %s13842_s4 }
0x119f   : > { %5811 = vrot.lane.b32.xlu0 %v12235_v60, %s13842_s4 }
0x11a1   : > { %5653 = vrot.lane.b32.xlu1 %v12253_v26, %s13839_s20 }
0x11a3   : > { %5655 = vrot.lane.b32.xlu0 %v12257_v45, %s13839_s20 }
0x11a5   : > { %5705 = vrot.lane.b32.xlu1 %v12253_v26, %s13840_s2 }
0x11a7   : > { %5859 = vrot.lane.b32.xlu0 %v12183_v11, %s13835_s12 }
0x11a9   : > { %5757 = vrot.lane.b32.xlu1 %v12253_v26, %s13841_s13 }
0x11ab   : > { %5707 = vrot.lane.b32.xlu0 %v12257_v45, %s13840_s2 }
0x11ad   : > { %5817 = vrot.lane.b32.xlu1 %v12253_v26, %s13842_s4 }
0x11af   : > { %5867 = vrot.lane.b32.xlu0 %v12209_v30, %s13835_s12 }
0x11b1   : > { %5857 = vrot.lane.b32.xlu1 %v12178_v8, %s13835_s12 }
0x11b3   : > { %5759 = vrot.lane.b32.xlu0 %v12257_v45, %s13841_s13 }
0x11b5   : > { %5865 = vrot.lane.b32.xlu1 %v12205_v28, %s13835_s12 }
0x11b7   : > { %5863 = vrot.lane.b32.xlu0 %v12235_v60, %s13835_s12 }
0x11b9   : > { %5861 = vrot.lane.b32.xlu1 %v12231_v57, %s13835_s12 }
0x11bb   : > { %5911 = vrot.lane.b32.xlu0 %v12183_v11, %s13836_s17 }
0x11bd   : > { %5869 = vrot.lane.b32.xlu1 %v12253_v26, %s13835_s12 }
0x11bf   : > { %5919 = vrot.lane.b32.xlu0 %v12209_v30, %s13836_s17 }
0x11c1   : > { %5909 = vrot.lane.b32.xlu1 %v12178_v8, %s13836_s17 }
0x11c3   : > { %5819 = vrot.lane.b32.xlu0 %v12257_v45, %s13842_s4 }
0x11c5   : > { %5917 = vrot.lane.b32.xlu1 %v12205_v28, %s13836_s17 }
0x11c7   : > { %5915 = vrot.lane.b32.xlu0 %v12235_v60, %s13836_s17 }
0x11c9   : > { %5913 = vrot.lane.b32.xlu1 %v12231_v57, %s13836_s17 }
0x11cb   : > { %5871 = vrot.lane.b32.xlu0 %v12257_v45, %s13835_s12 }
0x11cd   : > { %5921 = vrot.lane.b32.xlu1 %v12253_v26, %s13836_s17 }
0x11cf   : > { %5963 = vrot.lane.b32.xlu0 %v12183_v11, %s13837_s22 }
0x11d1   : > { %5961 = vrot.lane.b32.xlu1 %v12178_v8, %s13837_s22 }
0x11d3   : > { %v5590_v12 = vpop.permute.xlu1 %5589  ;;  %5923 = vrot.lane.b32.xlu0 %v12257_v45, %s13836_s17 }
0x11d5   : > { %5969 = vrot.lane.b32.xlu1 %v12205_v28, %s13837_s22  ;;  %v5592_v19 = vpop.permute.xlu0 %5591 }
0x11d7   : > { %v12326_v23 = vpop.permute.xlu1 %5641  ;;  %5971 = vrot.lane.b32.xlu0 %v12209_v30, %s13837_s22 }
0x11d9   : > { %5965 = vrot.lane.b32.xlu1 %v12231_v57, %s13837_s22  ;;  %v5644_v52 = vpop.permute.xlu0 %5643 }
0x11db   : > { %v12332_v35 = vpop.permute.xlu1 %5693  ;;  %5967 = vrot.lane.b32.xlu0 %v12235_v60, %s13837_s22 }
0x11dd   : > { %5973 = vrot.lane.b32.xlu1 %v12253_v26, %s13837_s22  ;;  %v12338_v49 = vpop.permute.xlu0 %5695 }
0x11df   : > { %v12343_v58 = vpop.permute.xlu1 %5745  ;;  %5975 = vrot.lane.b32.xlu0 %v12257_v45, %s13837_s22 }
0x11e1   : > { %6123 = vperm.xlu1 %8575, %v8299_v33   ;;  %v12347_v32 = vpop.permute.xlu0 %5747 }
0x11e3   : > { %v12349_v39 = vpop.permute.xlu1 %5805 }
0x11e5   : > { %v12351_v50 = vpop.permute.xlu0 %5807 }
0x11e7   : > { %v5598_v5 = vpop.permute.xlu1 %5597 }
0x11e8   : > { %v5605_v0 = vsel %vm980_vm6, %v5590_v12, %v5598_v5  ;;  %v5609_v38 = vsel %vm980_vm6, %v5598_v5, %v5590_v12 }
0x11e9   : > { %v5600_v51 = vpop.permute.xlu0 %5599  ;;  %v5625_v34 = vmul.f32 %v5618_v62, %v5609_v38  ;;  %v5626_v13 = vmul.f32 %v5622_v24, %v5605_v0 }
0x11ea   : > { %v5606_v54 = vsel %vm980_vm6, %v5592_v19, %v5600_v51  ;;  %v5610_v16 = vsel %vm980_vm6, %v5600_v51, %v5592_v19 }
0x11eb   : > { %v5627_v48 = vmul.f32 %v5618_v62, %v5610_v16  ;;  %v5628_v55 = vmul.f32 %v5622_v24, %v5606_v54  ;;  %v5650_v25 = vpop.permute.xlu1 %5649 }
0x11ec   : > { %v5657_v12 = vsel %vm1003_vm3, %v12326_v23, %v5650_v25 }
0x11ed   : > { %v6085_v42 = vpack.c.bf16 %v5627_v48, %v5625_v34  ;;  %v5652_v10 = vpop.permute.xlu0 %5651  ;;  %v6086_v29 = vpack.c.bf16 %v5628_v55, %v5626_v13  ;;  %v5661_v13 = vsel %vm1003_vm3, %v5650_v25, %v12326_v23  ;;  %v5678_v48 = vmul.f32 %v5674_v43, %v5657_v12 }
0x11ee   : > { %v5658_v40 = vsel %vm1003_vm3, %v5644_v52, %v5652_v10  ;;  %v5662_v33 = vsel %vm1003_vm3, %v5652_v10, %v5644_v52  ;;  %v5717_v52 = vld [vmem:[#allocation11 + $0x2] ss:$8 sm:$0x3] }
0x11ef   : > { %v12363_v1 = vpop.permute.xlu1 %5701  ;;  %6139 = vmatprep.subr.bf16.mxu0 %v6086_v29  ;;  %v5680_v17 = vmul.f32 %v5674_v43, %v5658_v40  ;;  %v5679_v55 = vmul.f32 %v5670_v7, %v5662_v33  ;;  %v5726_v2 = vrot.slane %v5717_v52, %v9379_v9 }
0x11f0   : > { %6140 = vmatpush1.bf16.msra.mxu0 %v6085_v42 }
0x11f1   : > { %v5704_v61 = vpop.permute.xlu0 %5703 }
0x11f2   : > { %v5714_v12 = vsel %vm1027_vm4, %v5704_v61, %v12338_v49 }
0x11f3   : > { %v12365_v14 = vpop.permute.xlu1 %5753 }
0x11f5   : > { %v12367_v44 = vpop.permute.xlu0 %5755 }
0x11f7   : > { %v12369_v47 = vpop.permute.xlu1 %5813 }
0x11f9   : > { %v12371_v27 = vpop.permute.xlu0 %5815 }
0x11fb   : > { %v5594_v53 = vpop.permute.xlu1 %5593 }
0x11fd   : > { %v5596_v36 = vpop.permute.xlu0 %5595 }
0x11ff   : > { %v5646_v56 = vpop.permute.xlu1 %5645 }
0x1201   : > { %v5648_v20 = vpop.permute.xlu0 %5647 }
0x1203   : > { %v12373_v31 = vpop.permute.xlu1 %5697 }
0x1205   : > { %v12375_v46 = vpop.permute.xlu0 %5699 }
0x1207   : > { %v12377_v41 = vpop.permute.xlu1 %5749 }
0x1209   : > { %v12379_v6 = vpop.permute.xlu0 %5751 }
0x120b   : > { %v5602_v4 = vpop.permute.xlu1 %5601 }
0x120c   : > { %v5607_v15 = vsel %vm980_vm6, %v5594_v53, %v5602_v4  ;;  %v5611_v18 = vsel %vm980_vm6, %v5602_v4, %v5594_v53  ;;  %v5677_v53 = vmul.f32 %v5670_v7, %v5661_v13  ;;  %v5722_v4 = vrot.slane %v5717_v52, %v9469_v37 }
0x120d   : > { %v5604_v19 = vpop.permute.xlu0 %5603  ;;  %v5629_v38 = vmul.f32 %v5618_v62, %v5611_v18  ;;  %v5630_v51 = vmul.f32 %v5622_v24, %v5607_v15  ;;  %v5709_v15 = vsel %vm1027_vm4, %v12332_v35, %v12363_v1 }
0x120e   : > { %v5608_v5 = vsel %vm980_vm6, %v5596_v36, %v5604_v19  ;;  %v5612_v0 = vsel %vm980_vm6, %v5604_v19, %v5596_v36  ;;  %v5710_v36 = vsel %vm1027_vm4, %v12338_v49, %v5704_v61  ;;  %v6089_v40 = vpack.c.bf16 %v5679_v55, %v5677_v53  ;;  %v5769_v61 = vld [vmem:[#allocation11 + $0x3] ss:$8 sm:$0x3] }
0x120f   : > { %v5631_v54 = vmul.f32 %v5618_v62, %v5612_v0  ;;  %v5632_v16 = vmul.f32 %v5622_v24, %v5608_v5  ;;  %v12398_v34 = vpop.permute.xlu1 %5809  ;;  %v6090_v24 = vpack.c.bf16 %v5680_v17, %v5678_v48  ;;  %v5732_v19 = vmul.f32 %v5726_v2, %v5710_v36 }
0x1210   : > { %v5731_v49 = vmul.f32 %v5722_v4, %v5714_v12  ;;  %v5761_v53 = vsel %vm1051_vm5, %v12343_v58, %v12365_v14 }
0x1211   : > { %v6087_v42 = vpack.c.bf16 %v5631_v54, %v5629_v38  ;;  %v12403_v10 = vpop.permute.xlu0 %5811  ;;  %v6088_v29 = vpack.c.bf16 %v5632_v16, %v5630_v51  ;;  %v5713_v54 = vsel %vm1027_vm4, %v12363_v1, %v12332_v35  ;;  %v5730_v16 = vmul.f32 %v5726_v2, %v5709_v15 }
0x1212   : > { %v5729_v52 = vmul.f32 %v5722_v4, %v5713_v54 }
0x1213   : > { %v5654_v62 = vpop.permute.xlu1 %5653  ;;  %6141 = vmatprep.subr.bf16.mxu0 %v6088_v29 }
0x1214   : > { %v5659_v23 = vsel %vm1003_vm3, %v5646_v56, %v5654_v62  ;;  %v5663_v25 = vsel %vm1003_vm3, %v5654_v62, %v5646_v56  ;;  %6142 = vmatpush1.bf16.msra.mxu0 %v6087_v42  ;;  %v5778_v42 = vrot.slane %v5769_v61, %v9379_v9  ;;  %v6093_v29 = vpack.c.bf16 %v5731_v49, %v5729_v52 }
0x1215   : > { %6143 = vmatprep.subr.bf16.mxu0 %v6090_v24  ;;  %v5656_v18 = vpop.permute.xlu0 %5655  ;;  %v5681_v17 = vmul.f32 %v5670_v7, %v5663_v25  ;;  %v5682_v5 = vmul.f32 %v5674_v43, %v5659_v23  ;;  %v5766_v62 = vsel %vm1051_vm5, %v12367_v44, %v12347_v32 }
0x1216   : > { %v5660_v33 = vsel %vm1003_vm3, %v5648_v20, %v5656_v18  ;;  %v5664_v56 = vsel %vm1003_vm3, %v5656_v18, %v5648_v20  ;;  %v5762_v20 = vsel %vm1051_vm5, %v12347_v32, %v12367_v44  ;;  %v5765_v32 = vsel %vm1051_vm5, %v12365_v14, %v12343_v58 }
0x1217   : > { %v5683_v0 = vmul.f32 %v5670_v7, %v5664_v56  ;;  %v5684_v38 = vmul.f32 %v5674_v43, %v5660_v33  ;;  %v5706_v51 = vpop.permute.xlu1 %5705  ;;  %v6094_v7 = vpack.c.bf16 %v5732_v19, %v5730_v16  ;;  %v5784_v24 = vmul.f32 %v5778_v42, %v5762_v20 }
0x1218   : > { %6144 = vmatpush1.bf16.msra.mxu0 %v6089_v40  ;;  %v5711_v35 = vsel %vm1027_vm4, %v12373_v31, %v5706_v51  ;;  %v5715_v1 = vsel %vm1027_vm4, %v5706_v51, %v12373_v31  ;;  %v5774_v19 = vrot.slane %v5769_v61, %v9469_v37  ;;  %v5782_v44 = vmul.f32 %v5778_v42, %v5761_v53 }
0x1219   : > { %v6091_v13 = vpack.c.bf16 %v5683_v0, %v5681_v17  ;;  %v12429_v48 = vpop.permute.xlu0 %5859  ;;  %v6092_v55 = vpack.c.bf16 %v5684_v38, %v5682_v5  ;;  %v5733_v25 = vmul.f32 %v5722_v4, %v5715_v1  ;;  %v5734_v40 = vmul.f32 %v5726_v2, %v5711_v35 }
0x121a   : > { %v5783_v5 = vmul.f32 %v5774_v19, %v5766_v62  ;;  %v6098_v0 = vpack.c.bf16 %v5784_v24, %v5782_v44  ;;  %v6102_v35 = vpack.c.bf16 %v12209_v30, %v12205_v28  ;;  %v5822_v28 = vsel %vm1077_vm7, %v12351_v50, %v12371_v27 }
0x121b   : > { %v5758_v43 = vpop.permute.xlu1 %5757  ;;  %6145 = vmatprep.subr.bf16.mxu0 %v6092_v55  ;;  %v6101_v30 = vpack.c.bf16 %v12183_v11, %v12178_v8  ;;  %v6104_v24 = vpack.c.bf16 %v12257_v45, %v12253_v26  ;;  %v5881_v11 = vld [vmem:[#allocation11 + $0x6] ss:$8 sm:$0x3] }
0x121c   : > { %6146 = vmatpush1.bf16.msra.mxu0 %v6091_v13  ;;  %v5767_v38 = vsel %vm1051_vm5, %v5758_v43, %v12377_v41 }
0x121d   : > { %6147 = vmatprep.subr.bf16.mxu0 %v6094_v7  ;;  %v5708_v36 = vpop.permute.xlu0 %5707  ;;  %v5785_v16 = vmul.f32 %v5774_v19, %v5767_v38 }
0x121e   : > { %v5712_v23 = vsel %vm1027_vm4, %v12375_v46, %v5708_v36  ;;  %v5716_v31 = vsel %vm1027_vm4, %v5708_v36, %v12375_v46 }
0x121f   : > { %v5735_v15 = vmul.f32 %v5722_v4, %v5716_v31  ;;  %v5736_v18 = vmul.f32 %v5726_v2, %v5712_v23  ;;  %v5818_v12 = vpop.permute.xlu1 %5817  ;;  %v5781_v4 = vmul.f32 %v5774_v19, %v5765_v32  ;;  %v5763_v2 = vsel %vm1051_vm5, %v12377_v41, %v5758_v43  ;;  %v5829_v43 = vld [vmem:[#allocation11 + $0x5] ss:$8 sm:$0x3] }
0x1220   : > { %6148 = vmatpush1.bf16.msra.mxu0 %v6093_v29  ;;  %v5786_v49 = vmul.f32 %v5778_v42, %v5763_v2  ;;  %v5825_v29 = vsel %vm1077_vm7, %v12369_v47, %v12349_v39  ;;  %v5834_v53 = vrot.slane %v5829_v43, %v9469_v37  ;;  %v5821_v23 = vsel %vm1077_vm7, %v12349_v39, %v12369_v47 }
0x1221   : > { %v6095_v33 = vpack.c.bf16 %v5735_v15, %v5733_v25  ;;  %v12461_v56 = vpop.permute.xlu0 %5867  ;;  %v6096_v17 = vpack.c.bf16 %v5736_v18, %v5734_v40  ;;  %v6097_v14 = vpack.c.bf16 %v5783_v5, %v5781_v4  ;;  %v5823_v8 = vsel %vm1077_vm7, %v12398_v34, %v5818_v12 }
0x1222   : > { %v5843_v25 = vmul.f32 %v5834_v53, %v5822_v28  ;;  %v5841_v40 = vmul.f32 %v5834_v53, %v5821_v23  ;;  %v5827_v39 = vsel %vm1077_vm7, %v5818_v12, %v12398_v34  ;;  %v5845_v18 = vmul.f32 %v5834_v53, %v5823_v8 }
0x1223   : > { %v5858_v46 = vpop.permute.xlu1 %5857  ;;  %6149 = vmatprep.subr.bf16.mxu0 %v6096_v17  ;;  %v5890_v32 = vrot.slane %v5881_v11, %v9379_v9  ;;  %v5874_v2 = vsel %vm1101_vm8, %v12429_v48, %v12461_v56 }
0x1224   : > { %6150 = vmatpush1.bf16.msra.mxu0 %v6095_v33  ;;  %v6105_v15 = vpack.c.bf16 %v5843_v25, %v5841_v40 }
0x1225   : > { %6151 = vmatprep.subr.bf16.mxu0 %v6098_v0  ;;  %v5760_v58 = vpop.permute.xlu0 %5759 }
0x1226   : > { %v5764_v51 = vsel %vm1051_vm5, %v12379_v6, %v5760_v58  ;;  %v5768_v54 = vsel %vm1051_vm5, %v5760_v58, %v12379_v6  ;;  %v5826_v6 = vsel %vm1077_vm7, %v12371_v27, %v12351_v50  ;;  %v6103_v27 = vpack.c.bf16 %v12235_v60, %v12231_v57 }
0x1227   : > { %v5787_v61 = vmul.f32 %v5774_v19, %v5768_v54  ;;  %v5788_v13 = vmul.f32 %v5778_v42, %v5764_v51  ;;  %v5866_v55 = vpop.permute.xlu1 %5865  ;;  %v5838_v42 = vrot.slane %v5829_v43, %v9379_v9  ;;  %v5886_v19 = vrot.slane %v5881_v11, %v9469_v37 }
0x1228   : > { %6152 = vmatpush1.bf16.msra.mxu0 %v6097_v14  ;;  %v5877_v47 = vsel %vm1101_vm8, %v5866_v55, %v5858_v46  ;;  %v5878_v57 = vsel %vm1101_vm8, %v12461_v56, %v12429_v48  ;;  %v5873_v60 = vsel %vm1101_vm8, %v5858_v46, %v5866_v55 }
0x1229   : > { %v6099_v52 = vpack.c.bf16 %v5787_v61, %v5785_v16  ;;  %v12475_v41 = vpop.permute.xlu0 %5863  ;;  %v6100_v20 = vpack.c.bf16 %v5788_v13, %v5786_v49  ;;  %v5844_v36 = vmul.f32 %v5838_v42, %v5826_v6  ;;  %v5842_v31 = vmul.f32 %v5838_v42, %v5825_v29 }
0x122a   : > { %v5846_v33 = vmul.f32 %v5838_v42, %v5827_v39  ;;  %v5894_v17 = vmul.f32 %v5890_v32, %v5877_v47  ;;  %v5896_v46 = vmul.f32 %v5890_v32, %v5878_v57  ;;  %v5893_v38 = vmul.f32 %v5886_v19, %v5873_v60 }
0x122b   : > { %v5862_v7 = vpop.permute.xlu1 %5861  ;;  %6153 = vmatprep.subr.bf16.mxu0 %v6100_v20  ;;  %v6106_v45 = vpack.c.bf16 %v5844_v36, %v5842_v31  ;;  %v5895_v16 = vmul.f32 %v5886_v19, %v5874_v2  ;;  %v8300_v2 = vcombine.low %v12312_v3, %v12312_v3 }
0x122c   : > { %6154 = vmatpush1.bf16.msra.mxu0 %v6099_v52  ;;  %v6110_v13 = vpack.c.bf16 %v5896_v46, %v5894_v17 }
0x122d   : > { %6155 = vmatprep.subr.bf16.mxu0 %v6102_v35  ;;  %v12484_v1 = vpop.permute.xlu0 %5911  ;;  %v6109_v56 = vpack.c.bf16 %v5895_v16, %v5893_v38 }
0x122f   : > { %v5870_v62 = vpop.permute.xlu1 %5869 }
0x1230   : > { %6156 = vmatpush1.bf16.msra.mxu0 %v6101_v30  ;;  %v5875_v54 = vsel %vm1101_vm8, %v5862_v7, %v5870_v62  ;;  %v5879_v49 = vsel %vm1101_vm8, %v5870_v62, %v5862_v7 }
0x1231   : > { %6157 = vmatprep.subr.bf16.mxu0 %v6104_v24  ;;  %v5920_v50 = vpop.permute.xlu0 %5919  ;;  %v5897_v55 = vmul.f32 %v5886_v19, %v5875_v54  ;;  %v5898_v43 = vmul.f32 %v5890_v32, %v5879_v49 }
0x1232   : > { %v5930_v35 = vsel %vm1125_vm11, %v5920_v50, %v12484_v1  ;;  %v5926_v62 = vsel %vm1125_vm11, %v12484_v1, %v5920_v50 }
0x1233   : > { %v5910_v26 = vpop.permute.xlu1 %5909 }
0x1234   : > { %6158 = vmatpush1.bf16.msra.mxu0 %v6103_v27 }
0x1235   : > { %6159 = vmatprep.subr.bf16.mxu0 %v6106_v45  ;;  %v5820_v44 = vpop.permute.xlu0 %5819 }
0x1236   : > { %v5824_v34 = vsel %vm1077_vm7, %v12403_v10, %v5820_v44  ;;  %v5828_v12 = vsel %vm1077_vm7, %v5820_v44, %v12403_v10  ;;  %v5933_v10 = vld [vmem:[#allocation11 + $0x7] ss:$8 sm:$0x3] }
0x1237   : > { %v5847_v5 = vmul.f32 %v5834_v53, %v5824_v34  ;;  %v5848_v0 = vmul.f32 %v5838_v42, %v5828_v12  ;;  %v5918_v4 = vpop.permute.xlu1 %5917  ;;  %v5942_v52 = vrot.slane %v5933_v10, %v9379_v9  ;;  %v5938_v36 = vrot.slane %v5933_v10, %v9469_v37 }
0x1238   : > { %6160 = vmatpush1.bf16.msra.mxu0 %v6105_v15  ;;  %v5929_v48 = vsel %vm1125_vm11, %v5918_v4, %v5910_v26  ;;  %v5925_v42 = vsel %vm1125_vm11, %v5910_v26, %v5918_v4 }
0x1239   : > { %v6107_v58 = vpack.c.bf16 %v5847_v5, %v5845_v18  ;;  %v5916_v14 = vpop.permute.xlu0 %5915  ;;  %v6108_v51 = vpack.c.bf16 %v5848_v0, %v5846_v33  ;;  %v5946_v29 = vmul.f32 %v5942_v52, %v5929_v48  ;;  %v5948_v24 = vmul.f32 %v5942_v52, %v5930_v35 }
0x123a   : > { %v5945_v8 = vmul.f32 %v5938_v36, %v5925_v42  ;;  %v5947_v40 = vmul.f32 %v5938_v36, %v5926_v62 }
0x123b   : > { %v5914_v61 = vpop.permute.xlu1 %5913  ;;  %6161 = vmatprep.subr.bf16.mxu0 %v6108_v51  ;;  %v6114_v27 = vpack.c.bf16 %v5948_v24, %v5946_v29 }
0x123c   : > { %6162 = vmatpush1.bf16.msra.mxu0 %v6107_v58  ;;  %v6113_v50 = vpack.c.bf16 %v5947_v40, %v5945_v8 }
0x123d   : > { %6163 = vmatprep.subr.bf16.mxu0 %v6110_v13  ;;  %v5872_v20 = vpop.permute.xlu0 %5871 }
0x123e   : > { %v5876_v7 = vsel %vm1101_vm8, %v12475_v41, %v5872_v20  ;;  %v5880_v6 = vsel %vm1101_vm8, %v5872_v20, %v12475_v41  ;;  %v5985_v41 = vld [vmem:[#allocation11 + $0x10] ss:$8 sm:$0x3] }
0x123f   : > { %v5899_v28 = vmul.f32 %v5886_v19, %v5876_v7  ;;  %v5900_v30 = vmul.f32 %v5890_v32, %v5880_v6  ;;  %v5922_v53 = vpop.permute.xlu1 %5921  ;;  %v5990_v1 = vrot.slane %v5985_v41, %v9469_v37  ;;  %v5994_v18 = vrot.slane %v5985_v41, %v9379_v9  ;;  %v8662_v6 = vld [vmem:[%s13711_s10 + $0x14] ss:$0 sps:$4 sm:$0x77]  }
0x1240   : > { %6164 = vmatpush1.bf16.msra.mxu0 %v6109_v56  ;;  %v5927_v26 = vsel %vm1125_vm11, %v5914_v61, %v5922_v53  ;;  %v5931_v45 = vsel %vm1125_vm11, %v5922_v53, %v5914_v61 }
0x1241   : > { %v6111_v23 = vpack.c.bf16 %v5899_v28, %v5897_v55  ;;  %v5964_v31 = vpop.permute.xlu0 %5963  ;;  %v6112_v25 = vpack.c.bf16 %v5900_v30, %v5898_v43  ;;  %v5949_v19 = vmul.f32 %v5938_v36, %v5927_v26  ;;  %v5950_v32 = vmul.f32 %v5942_v52, %v5931_v45 }
0x1243   : > { %v5962_v11 = vpop.permute.xlu1 %5961  ;;  %6165 = vmatprep.subr.bf16.mxu0 %v6112_v25 }
0x1244   : > { %6166 = vmatpush1.bf16.msra.mxu0 %v6111_v23 }
0x1245   : > { %6167 = vmatprep.subr.bf16.mxu0 %v6114_v27  ;;  %v5924_v39 = vpop.permute.xlu0 %5923 }
0x1246   : > { %v5928_v47 = vsel %vm1125_vm11, %v5916_v14, %v5924_v39  ;;  %v5932_v15 = vsel %vm1125_vm11, %v5924_v39, %v5916_v14 }
0x1247   : > { %v5951_v44 = vmul.f32 %v5938_v36, %v5928_v47  ;;  %v5952_v57 = vmul.f32 %v5942_v52, %v5932_v15  ;;  %v5970_v60 = vpop.permute.xlu1 %5969  ;;  %v8310_v47 = vld [vmem:[%s13827_s6 + $0x30] sm:$0xff]  ;;  %v8311_v15 = vld [vmem:[%s13827_s6 + $0x38] sm:$0xff] }
0x1248   : > { %v5977_v34 = vsel %vm1149_vm12, %v5962_v11, %v5970_v60  ;;  %v5981_v12 = vsel %vm1149_vm12, %v5970_v60, %v5962_v11  ;;  %6168 = vmatpush1.bf16.msra.mxu0 %v6113_v50  ;;  %v8309_v50 = vld [vmem:[%s13827_s6 + $0x28] sm:$0xff] }
0x1249   : > { %v6115_v33 = vpack.c.bf16 %v5951_v44, %v5949_v19  ;;  %v5972_v17 = vpop.permute.xlu0 %5971  ;;  %v6116_v5 = vpack.c.bf16 %v5952_v57, %v5950_v32  ;;  %v5997_v46 = vmul.f32 %v5990_v1, %v5977_v34  ;;  %v5998_v38 = vmul.f32 %v5994_v18, %v5981_v12  ;;  %v6290_v19 = vld [vmem:[%s13828_s21] ss:$8 sm:$0x3]  ;;  %v8312_v32 = vld [vmem:[%s13828_s21 + $0x1] ss:$8 sm:$0x3] }
0x124a   : > { %v5978_v0 = vsel %vm1149_vm12, %v5964_v31, %v5972_v17  ;;  %v5982_v4 = vsel %vm1149_vm12, %v5972_v17, %v5964_v31  ;;  %v6295_v57 = vrot.slane %v6290_v19, %v9469_v37  ;;  %v6299_v60 = vrot.slane %v6290_v19, %v9379_v9 }
0x124b   : > { %v5999_v58 = vmul.f32 %v5990_v1, %v5978_v0  ;;  %v6000_v14 = vmul.f32 %v5994_v18, %v5982_v4  ;;  %v5966_v51 = vpop.permute.xlu1 %5965  ;;  %6169 = vmatprep.subr.bf16.mxu0 %v6116_v5  ;;  %v6317_v34 = vrot.slane %v8312_v32, %v9469_v37  ;;  %v6321_v12 = vrot.slane %v8312_v32, %v9379_v9 }
0x124c   : > { %6170 = vmatpush1.bf16.msra.mxu0 %v6115_v33 }
0x124d   : > { %v6117_v54 = vpack.c.bf16 %v5999_v58, %v5997_v46  ;;  %v5968_v10 = vpop.permute.xlu0 %5967  ;;  %v6118_v16 = vpack.c.bf16 %v6000_v14, %v5998_v38 }
0x124f   : > { %v5974_v49 = vpop.permute.xlu1 %5973  ;;  %6172 = vmatmul.mubr.bf16.vlgmr.msra.gmra.mrb[32].mxu0 %v8300_v2  ;;  %6180 = vmatprep.subr.bf16.mxu0 %v6118_v16 }
0x1250   : > { %v5979_v61 = vsel %vm1149_vm12, %v5966_v51, %v5974_v49  ;;  %v5983_v13 = vsel %vm1149_vm12, %v5974_v49, %v5966_v51  ;;  %6181 = vmatpush1.bf16.msra.mxu0 %v6117_v54  ;;  %6212 = vmatprep.mubr.bf16.mxu0 %v13826_v59  ;;  %v8313_v54 = vld [vmem:[%s13828_s21 + $0x2] ss:$8 sm:$0x3] }
0x1251   : > { %v5976_v3 = vpop.permute.xlu0 %5975  ;;  %v6001_v55 = vmul.f32 %v5990_v1, %v5979_v61  ;;  %v6002_v52 = vmul.f32 %v5994_v18, %v5983_v13  ;;  %v6339_v13 = vrot.slane %v8313_v54, %v9469_v37 }
0x1252   : > { %v5980_v48 = vsel %vm1149_vm12, %v5968_v10, %v5976_v3  ;;  %v5984_v56 = vsel %vm1149_vm12, %v5976_v3, %v5968_v10  ;;  %v8314_v10 = vld [vmem:[%s13828_s21 + $0x3] ss:$8 sm:$0x3]  ;;  %v6343_v3 = vrot.slane %v8313_v54, %v9379_v9 }
0x1253   : > { %v6003_v20 = vmul.f32 %v5990_v1, %v5980_v48  ;;  %v6004_v43 = vmul.f32 %v5994_v18, %v5984_v56  ;;  %v8308_v1 = vld [vmem:[%s13827_s6 + $0x20] sm:$0xff]  ;;  %v6361_v48 = vrot.slane %v8314_v10, %v9469_v37  ;;  %v6365_v56 = vrot.slane %v8314_v10, %v9379_v9 }
0x1255   : > { %v6119_v35 = vpack.c.bf16 %v6003_v20, %v6001_v55  ;;  %v6120_v7 = vpack.c.bf16 %v6004_v43, %v6002_v52  ;;  %v8315_v55 = vld [vmem:[%s13828_s21 + $0x5] ss:$8 sm:$0x3] }
0x1257   : > { %6182 = vmatprep.subr.bf16.mxu0 %v6120_v7 }
0x1258   : > { %6183 = vmatpush1.bf16.msra.mxu0 %v6119_v35 }
0x125b   : > { %8303 = vmatmul.mubr.msk.bf16.vlgmr.msra.gmra.mrb[32].mxu0 %vm1913_vm2, %v8662_v6 }
0x125c   : > { %6564 = vmatprep.mubr.bf16.mxu0 %v13826_v59 }
0x1260   : > { %v6124_v42 = vpop.permute.xlu1 %6123 }
0x132e   : > { %v6214_v29 = vpop.f32.mrb[32].mxu0 }
0x132f   : > { %v8415_v28 = vadd.f32 %v6214_v29, %v6124_v42  ;;  %v6216_v30 = vpop.f32.mrb[33].mxu0  ;;  %v6389_v29 = vrot.slane %v8315_v55, %v9379_v9 }
0x1330   : > { %v8416_v53 = vadd.f32 %v6216_v30, %v6124_v42  ;;  %v6218_v36 = vpop.f32.mrb[34].mxu0  ;;  %v6385_v42 = vrot.slane %v8315_v55, %v9469_v37 }
0x1331   : > { %v6219_v62 = vpop.f32.mrb[35].mxu0  ;;  %v6221_v23 = vpack.c.bf16 %v8415_v28, %v8415_v28 }
0x1332   : > { %v6222_v24 = vpack.c.bf16 %v8416_v53, %v8416_v53 }
0x1334   : > { %6255 = vmatprep.mubr.bf16.mxu1 %v6222_v24 }
0x1335   : > { %6256 = vmatmul.mubr.bf16.vlgmr.msra.gmra.mrb[40].mxu1 %v6221_v23 }
0x1408   : > { %v6257_v31 = vpop.f32.mrb[40].mxu1 }
0x1409   : > { %v6266_v25 = vrot.slane %v6257_v31, 3  ;;  %v6259_v8 = vpop.f32.mrb[41].mxu1 }
0x140a   : > { %v6267_v41 = vrot.slane %v6259_v8, 3  ;;  %v6261_v11 = vpop.f32.mrb[42].mxu1 }
0x140b   : > { %v12589_v27 = vsel %vm957_vm0, %v11626_v21, %v6266_v25  ;;  %v6262_v40 = vpop.f32.mrb[43].mxu1 }
0x140c   : > { %v6272_v26 = vsel %vm960_vm1, %v12589_v27, 0.0  ;;  %v12595_v45 = vsel %vm957_vm0, %v11629_v22, %v6267_v41  ;;  %vm13857_vm0 = vcmask 1043456  }
0x140d   : > { %v6273_v39 = vsel %vm960_vm1, %v12595_v45, 0.0  ;;  %6284 = vrot.lane.b32.xlu0 %v6272_v26, %s13850_s28  ;;  %vm13858_vm1 = vmmov %vm13857_vm0 }
0x140e   : > { %6286 = vrot.lane.b32.xlu1 %v6273_v39, %s13850_s28 }
0x1411   : > { %6306 = vrot.lane.b32.xlu0 %v6272_v26, %s13839_s20 }
0x1412   : > { %6308 = vrot.lane.b32.xlu1 %v6273_v39, %s13839_s20 }
0x1415   : > { %6328 = vrot.lane.b32.xlu0 %v6272_v26, %s13840_s2 }
0x1416   : > { %6330 = vrot.lane.b32.xlu1 %v6273_v39, %s13840_s2 }
0x1419   : > { %6350 = vrot.lane.b32.xlu0 %v6272_v26, %s13841_s13 }
0x141a   : > { %6352 = vrot.lane.b32.xlu1 %v6273_v39, %s13841_s13 }
0x141d   : > { %6374 = vrot.lane.b32.xlu0 %v6272_v26, %s13842_s4 }
0x141e   : > { %6376 = vrot.lane.b32.xlu1 %v6273_v39, %s13842_s4 }
0x1421   : > { %6396 = vrot.lane.b32.xlu0 %v6272_v26, %s13835_s12 }
0x1422   : > { %6398 = vrot.lane.b32.xlu1 %v6273_v39, %s13835_s12 }
0x1425   : > { %6418 = vrot.lane.b32.xlu0 %v6272_v26, %s13836_s17 }
0x1426   : > { %6420 = vrot.lane.b32.xlu1 %v6273_v39, %s13836_s17 }
0x1429   : > { %6440 = vrot.lane.b32.xlu0 %v6272_v26, %s13837_s22  ;;  %v8316_v26 = vld [vmem:[%s13828_s21 + $0x6] ss:$8 sm:$0x3] }
0x142a   : > { %6442 = vrot.lane.b32.xlu1 %v6273_v39, %s13837_s22  ;;  %v8317_v39 = vld [vmem:[%s13828_s21 + $0x7] ss:$8 sm:$0x3] }
0x142b   : > { %v6429_v32 = vrot.slane %v8317_v39, %v9469_v37 }
0x142d   : > { %6492 = vperm.xlu0 %8574, %v8308_v1  }
0x142e   : > { %6497 = vperm.xlu1 %8575, %v8309_v50  }
0x1431   : > { %6502 = vperm.xlu0 %8574, %v8310_v47  }
0x1432   : > { %6507 = vperm.xlu1 %8575, %v8311_v15   ;;  %v6407_v15 = vrot.slane %v8316_v26, %v9469_v37 }
0x147f   : > { %v6285_v18 = vpop.permute.xlu0 %6284 }
0x1480   : > { %v6287_v44 = vpop.permute.xlu1 %6286 }
0x1481   : > { %v6288_v33 = vsel %vm980_vm6, %v6285_v18, %v6287_v44  ;;  %v6289_v17 = vsel %vm980_vm6, %v6287_v44, %v6285_v18  ;;  %v6411_v18 = vrot.slane %v8316_v26, %v9379_v9  ;;  %v6433_v44 = vrot.slane %v8317_v39, %v9379_v9 }
0x1482   : > { %v6302_v46 = vmul.f32 %v6295_v57, %v6289_v17  ;;  %v6303_v38 = vmul.f32 %v6299_v60, %v6288_v33  ;;  %v8318_v57 = vld [vmem:[%s13828_s21 + $0x10] ss:$8 sm:$0x3] }
0x1483   : > { %v6307_v5 = vpop.permute.xlu0 %6306  ;;  %v6451_v17 = vrot.slane %v8318_v57, %v9469_v37 }
0x1484   : > { %v6309_v0 = vpop.permute.xlu1 %6308 }
0x1485   : > { %v6310_v4 = vsel %vm1003_vm3, %v6307_v5, %v6309_v0  ;;  %v6311_v2 = vsel %vm1003_vm3, %v6309_v0, %v6307_v5  ;;  %v6455_v5 = vrot.slane %v8318_v57, %v9379_v9 }
0x1486   : > { %v6324_v58 = vmul.f32 %v6317_v34, %v6311_v2  ;;  %v6325_v14 = vmul.f32 %v6321_v12, %v6310_v4 }
0x1487   : > { %v6329_v51 = vpop.permute.xlu0 %6328 }
0x1488   : > { %v6480_v16 = vpack.c.bf16 %v6324_v58, %v6302_v46  ;;  %v6331_v49 = vpop.permute.xlu1 %6330  ;;  %v6481_v61 = vpack.c.bf16 %v6325_v14, %v6303_v38 }
0x1489   : > { %v6332_v52 = vsel %vm1027_vm4, %v6329_v51, %v6331_v49  ;;  %v6333_v20 = vsel %vm1027_vm4, %v6331_v49, %v6329_v51 }
0x148a   : > { %6532 = vmatprep.subr.bf16.mxu0 %v6481_v61  ;;  %v6346_v28 = vmul.f32 %v6339_v13, %v6333_v20  ;;  %v6347_v30 = vmul.f32 %v6343_v3, %v6332_v52  ;;  %v12716_v20 = vstv %s8266_s27  ;;  %s8020_s27 = sshll.u32 %s686_s18, 4  ;;  %s13659_s27 = int_to_ptr.vmem [resolvable:$true] %s8020_s27 }
0x148b   : > { %v6351_v43 = vpop.permute.xlu0 %6350  ;;  %6533 = vmatpush1.bf16.msra.mxu0 %v6480_v16  ;;  %s8867_s19 = scalar_lea.vmem %s13659_s27, 32 }
0x148c   : > { %v6353_v35 = vpop.permute.xlu1 %6352  ;;  %p8868_p4 = scmp.ne.s32.totalorder %s13659_s27, %s8867_s19 }
0x148d   : > { %v6354_v7 = vsel %vm1051_vm5, %v6351_v43, %v6353_v35  ;;  %v6355_v6 = vsel %vm1051_vm5, %v6353_v35, %v6351_v43 }
0x148e   : > { %v6368_v53 = vmul.f32 %v6361_v48, %v6355_v6  ;;  %v6369_v36 = vmul.f32 %v6365_v56, %v6354_v7  ;;  %v8663_v48 = vld [vmem:[%s13832_s0 + $0x10] sm:$0xff]   ;;  %v8664_v56 = vld [vmem:[%s13832_s0 + $0x18] sm:$0xff]  }
0x148f   : > { %v6375_v62 = vpop.permute.xlu0 %6374 }
0x1490   : > { %v6482_v24 = vpack.c.bf16 %v6368_v53, %v6346_v28  ;;  %v6377_v23 = vpop.permute.xlu1 %6376  ;;  %v6483_v31 = vpack.c.bf16 %v6369_v36, %v6347_v30 }
0x1491   : > { %v6378_v25 = vsel %vm1077_vm7, %v6375_v62, %v6377_v23  ;;  %v6379_v8 = vsel %vm1077_vm7, %v6377_v23, %v6375_v62 }
0x1492   : > { %v6392_v41 = vmul.f32 %v6385_v42, %v6378_v25  ;;  %v6393_v11 = vmul.f32 %v6389_v29, %v6379_v8  ;;  %6534 = vmatprep.subr.bf16.mxu0 %v6483_v31 }
0x1493   : > { %v6397_v40 = vpop.permute.xlu0 %6396  ;;  %6535 = vmatpush1.bf16.msra.mxu0 %v6482_v24 }
0x1494   : > { %v8384_v1 = vpack.c.bf16 %v6393_v11, %v12595_v45  ;;  %v8387_v50 = vpack.c.bf16 %v6392_v41, %v12589_v27  ;;  %v6399_v47 = vpop.permute.xlu1 %6398 }
0x1495   : > { %v6400_v45 = vsel %vm1101_vm8, %v6397_v40, %v6399_v47  ;;  %v6401_v27 = vsel %vm1101_vm8, %v6399_v47, %v6397_v40 }
0x1496   : > { %8385 = vmatprep.subr.msk.bf16.mxu0 %vm10543_vm14, %v8384_v1  ;;  %v6414_v0 = vmul.f32 %v6407_v15, %v6400_v45  ;;  %v6415_v4 = vmul.f32 %v6411_v18, %v6401_v27 }
0x1497   : > { %v6419_v60 = vpop.permute.xlu0 %6418  ;;  %8388 = vmatpush1.bf16.msk.msra.mxu0 %vm10543_vm14, %v8387_v50  ;;  %vm13859_vm14 = vcmask 588800  }
0x1498   : > { %v6421_v34 = vpop.permute.xlu1 %6420  ;;  %vm13860_vm10 = vmmov %vm13859_vm14 }
0x1499   : > { %v6422_v12 = vsel %vm1125_vm11, %v6419_v60, %v6421_v34  ;;  %v6423_v33 = vsel %vm1125_vm11, %v6421_v34, %v6419_v60 }
0x149a   : > { %v6436_v2 = vmul.f32 %v6429_v32, %v6422_v12  ;;  %v6437_v46 = vmul.f32 %v6433_v44, %v6423_v33  ;;  %v8667_v12 = vld [vmem:[#allocation14 + $0x34] ss:$12 sps:$4 sm:$0xff]  }
0x149b   : > { %v6441_v38 = vpop.permute.xlu0 %6440  ;;  %7244 = vmatprep.mubr.bf16.mxu1 %v8667_v12 }
0x149c   : > { %v6486_v58 = vpack.c.bf16 %v6436_v2, %v6414_v0  ;;  %v6443_v14 = vpop.permute.xlu1 %6442  ;;  %v6487_v51 = vpack.c.bf16 %v6437_v46, %v6415_v4  ;;  %v8324_v46 = vld [vmem:[%s13838_s25 + $0x20] sm:$0xff] }
0x149d   : > { %v6444_v54 = vsel %vm1149_vm12, %v6441_v38, %v6443_v14  ;;  %v6445_v10 = vsel %vm1149_vm12, %v6443_v14, %v6441_v38 }
0x149e   : > { %v6458_v16 = vmul.f32 %v6451_v17, %v6444_v54  ;;  %v6459_v49 = vmul.f32 %v6455_v5, %v6445_v10  ;;  %6538 = vmatprep.subr.bf16.mxu0 %v6487_v51  ;;  %v8326_v51 = vld [vmem:[%s13838_s25 + $0x30] sm:$0xff]  ;;  %v6648_v10 = vld [vmem:[%s13828_s21] ss:$8 sm:$0x3] }
0x149f   : > { %6539 = vmatpush1.bf16.msra.mxu0 %v6486_v58  ;;  %v8325_v58 = vld [vmem:[%s13838_s25 + $0x28] sm:$0xff] }
0x14a0   : > { %v6488_v61 = vpack.c.bf16 %v6458_v16, %v6458_v16  ;;  %v6489_v13 = vpack.c.bf16 %v6459_v49, %v6459_v49  ;;  %v8327_v16 = vld [vmem:[%s13838_s25 + $0x38] sm:$0xff] }
0x14a2   : > { %8321 = vmatprep.subr.msk.bf16.mxu0 %vm13857_vm0, %v6489_v13  ;;  %v6527_v3 = vsel %vm13858_vm1, %v6488_v61, 0  ;;  %v6653_v61 = vrot.slane %v6648_v10, %v9469_v37  ;;  %v6657_v13 = vrot.slane %v6648_v10, %v9379_v9 }
0x14a3   : > { %6541 = vmatpush1.bf16.msra.mxu0 %v6527_v3 }
0x14a6   : > { %8322 = vmatmul.mubr.msk.bf16.vlgmr.msra.gmra.mrb[36].mxu0 %vm13859_vm14, %v8663_v48 }
0x14a7   : > { %6574 = vmatprep.mubr.bf16.mxu0 %v13826_v59 }
0x14ac   : > { %v6493_v55 = vpop.permute.xlu0 %6492 }
0x14ad   : > { %v6498_v7 = vpop.permute.xlu1 %6497 }
0x14ae   : > { %8323 = vmatmul.mubr.msk.bf16.gmra.mrb[40].mxu0 %vm13860_vm10, %v8664_v56 }
0x14b0   : > { %v6503_v39 = vpop.permute.xlu0 %6502 }
0x14b1   : > { %v6508_v50 = vpop.permute.xlu1 %6507 }
0x1579   : > { %v6566_v52 = vpop.f32.mrb[36].mxu0 }
0x157a   : > { %v6567_v43 = vadd.f32 %v6566_v52, %v6493_v55  ;;  %v6568_v35 = vpop.f32.mrb[37].mxu0 }
0x157b   : > { %v6570_v6 = vpop.f32.mrb[38].mxu0  ;;  %v6569_v25 = vadd.f32 %v6568_v35, %v6493_v55 }
0x157c   : > { %vm6585_vm15 = vcmp.gt.f32.partialorder %v6567_v43, 0.0  ;;  %v6594_v42 = vmul.f32 %v12716_v20, %v6567_v43  ;;  %v6571_v29 = vadd.f32 %v6570_v6, %v6498_v7  ;;  %v6572_v28 = vpop.f32.mrb[39].mxu0 }
0x157d   : > { %v6573_v8 = vadd.f32 %v6572_v28, %v6498_v7  ;;  %v6595_v41 = vmul.f32 %v12716_v20, %v6569_v25  ;;  %vm6586_vm13 = vcmp.gt.f32.partialorder %v6569_v25, 0.0 }
0x157e   : > { %v12719_v30 = vsel %vm6585_vm15, %v6567_v43, %v6594_v42  ;;  %vm6587_vm9 = vcmp.gt.f32.partialorder %v6571_v29, 0.0  ;;  %v6596_v53 = vmul.f32 %v12716_v20, %v6571_v29 }
0x157f   : > { %6624 = vrot.lane.b32.xlu0 %v12719_v30, %s13850_s28  ;;  %v6597_v11 = vmul.f32 %v12716_v20, %v6573_v8  ;;  %vm6588_vm0 = vcmp.gt.f32.partialorder %v6573_v8, 0.0  ;;  %v12746_v40 = vsel %vm6586_vm13, %v6569_v25, %v6595_v41 }
0x1580   : > { %v12724_v36 = vsel %vm6587_vm9, %v6571_v29, %v6596_v53 }
0x1581   : > { %v6576_v62 = vpop.f32.mrb[40].mxu0  ;;  %6626 = vrot.lane.b32.xlu1 %v12724_v36, %s13850_s28  ;;  %v12750_v26 = vsel %vm6588_vm0, %v6573_v8, %v6597_v11 }
0x1582   : > { %v6578_v24 = vpop.f32.mrb[41].mxu0  ;;  %v6577_v1 = vadd.f32 %v6576_v62, %v6503_v39 }
0x1583   : > { %v6580_v23 = vpop.f32.mrb[42].mxu0  ;;  %6676 = vrot.lane.b32.xlu0 %v12719_v30, %s13839_s20  ;;  %v6579_v44 = vadd.f32 %v6578_v24, %v6503_v39 }
0x1584   : > { %v6582_v31 = vpop.f32.mrb[43].mxu0  ;;  %v6581_v47 = vadd.f32 %v6580_v23, %v6508_v50  ;;  %v6598_v15 = vmul.f32 %v12716_v20, %v6577_v1  ;;  %vm6589_vm1 = vcmp.gt.f32.partialorder %v6577_v1, 0.0 }
0x1585   : > { %6678 = vrot.lane.b32.xlu1 %v12724_v36, %s13839_s20  ;;  %v6583_v57 = vadd.f32 %v6582_v31, %v6508_v50  ;;  %v6599_v45 = vmul.f32 %v12716_v20, %v6579_v44  ;;  %vm6590_vm10 = vcmp.gt.f32.partialorder %v6579_v44, 0.0 }
0x1586   : > { %v6600_v18 = vmul.f32 %v12716_v20, %v6581_v47  ;;  %vm6591_vm14 = vcmp.gt.f32.partialorder %v6581_v47, 0.0  ;;  %v12768_v19 = vsel %vm6589_vm1, %v6577_v1, %v6598_v15 }
0x1587   : > { %6728 = vrot.lane.b32.xlu0 %v12719_v30, %s13840_s2  ;;  %v6601_v27 = vmul.f32 %v12716_v20, %v6583_v57  ;;  %vm6592_vm15 = vcmp.gt.f32.partialorder %v6583_v57, 0.0  ;;  %v12790_v60 = vsel %vm6590_vm10, %v6579_v44, %v6599_v45 }
0x1588   : > { %v12772_v32 = vsel %vm6591_vm14, %v6581_v47, %v6600_v18  ;;  %v8328_v47 = vld [vmem:[%s13828_s21 + $0x1] ss:$8 sm:$0x3] }
0x1589   : > { %6730 = vrot.lane.b32.xlu1 %v12724_v36, %s13840_s2  ;;  %v12794_v34 = vsel %vm6592_vm15, %v6583_v57, %v6601_v27  ;;  %v6709_v57 = vrot.slane %v8328_v47, %v9379_v9  ;;  %v6705_v12 = vrot.slane %v8328_v47, %v9469_v37 }
0x158b   : > { %6780 = vrot.lane.b32.xlu0 %v12719_v30, %s13841_s13 }
0x158d   : > { %6782 = vrot.lane.b32.xlu1 %v12724_v36, %s13841_s13 }
0x158f   : > { %6840 = vrot.lane.b32.xlu0 %v12719_v30, %s13842_s4 }
0x1591   : > { %6842 = vrot.lane.b32.xlu1 %v12724_v36, %s13842_s4 }
0x1593   : > { %6632 = vrot.lane.b32.xlu0 %v12746_v40, %s13850_s28 }
0x1595   : > { %6634 = vrot.lane.b32.xlu1 %v12750_v26, %s13850_s28 }
0x1597   : > { %6684 = vrot.lane.b32.xlu0 %v12746_v40, %s13839_s20 }
0x1599   : > { %6686 = vrot.lane.b32.xlu1 %v12750_v26, %s13839_s20 }
0x159b   : > { %6736 = vrot.lane.b32.xlu0 %v12746_v40, %s13840_s2 }
0x159d   : > { %6738 = vrot.lane.b32.xlu1 %v12750_v26, %s13840_s2 }
0x159f   : > { %6788 = vrot.lane.b32.xlu0 %v12746_v40, %s13841_s13 }
0x15a1   : > { %6790 = vrot.lane.b32.xlu1 %v12750_v26, %s13841_s13 }
0x15a3   : > { %6628 = vrot.lane.b32.xlu0 %v12768_v19, %s13850_s28 }
0x15a5   : > { %6630 = vrot.lane.b32.xlu1 %v12772_v32, %s13850_s28 }
0x15a7   : > { %6680 = vrot.lane.b32.xlu0 %v12768_v19, %s13839_s20 }
0x15a9   : > { %6682 = vrot.lane.b32.xlu1 %v12772_v32, %s13839_s20 }
0x15ab   : > { %6732 = vrot.lane.b32.xlu0 %v12768_v19, %s13840_s2 }
0x15ad   : > { %6734 = vrot.lane.b32.xlu1 %v12772_v32, %s13840_s2 }
0x15af   : > { %6784 = vrot.lane.b32.xlu0 %v12768_v19, %s13841_s13 }
0x15b1   : > { %6786 = vrot.lane.b32.xlu1 %v12772_v32, %s13841_s13 }
0x15b3   : > { %6636 = vrot.lane.b32.xlu0 %v12790_v60, %s13850_s28 }
0x15b5   : > { %6638 = vrot.lane.b32.xlu1 %v12794_v34, %s13850_s28 }
0x15b7   : > { %6848 = vrot.lane.b32.xlu0 %v12746_v40, %s13842_s4 }
0x15b9   : > { %6850 = vrot.lane.b32.xlu1 %v12750_v26, %s13842_s4 }
0x15bb   : > { %6688 = vrot.lane.b32.xlu0 %v12790_v60, %s13839_s20 }
0x15bd   : > { %6690 = vrot.lane.b32.xlu1 %v12794_v34, %s13839_s20 }
0x15bf   : > { %6740 = vrot.lane.b32.xlu0 %v12790_v60, %s13840_s2 }
0x15c1   : > { %6846 = vrot.lane.b32.xlu1 %v12772_v32, %s13842_s4 }
0x15c3   : > { %6792 = vrot.lane.b32.xlu0 %v12790_v60, %s13841_s13 }
0x15c5   : > { %6742 = vrot.lane.b32.xlu1 %v12794_v34, %s13840_s2 }
0x15c7   : > { %6844 = vrot.lane.b32.xlu0 %v12768_v19, %s13842_s4 }
0x15c9   : > { %6894 = vrot.lane.b32.xlu1 %v12724_v36, %s13835_s12 }
0x15cb   : > { %6852 = vrot.lane.b32.xlu0 %v12790_v60, %s13842_s4 }
0x15cd   : > { %6794 = vrot.lane.b32.xlu1 %v12794_v34, %s13841_s13 }
0x15cf   : > { %6892 = vrot.lane.b32.xlu0 %v12719_v30, %s13835_s12 }
0x15d1   : > { %6902 = vrot.lane.b32.xlu1 %v12750_v26, %s13835_s12 }
0x15d3   : > { %6900 = vrot.lane.b32.xlu0 %v12746_v40, %s13835_s12 }
0x15d5   : > { %6898 = vrot.lane.b32.xlu1 %v12772_v32, %s13835_s12 }
0x15d7   : > { %6896 = vrot.lane.b32.xlu0 %v12768_v19, %s13835_s12 }
0x15d9   : > { %6946 = vrot.lane.b32.xlu1 %v12724_v36, %s13836_s17 }
0x15db   : > { %6904 = vrot.lane.b32.xlu0 %v12790_v60, %s13835_s12 }
0x15dd   : > { %6854 = vrot.lane.b32.xlu1 %v12794_v34, %s13842_s4 }
0x15df   : > { %6944 = vrot.lane.b32.xlu0 %v12719_v30, %s13836_s17 }
0x15e1   : > { %6954 = vrot.lane.b32.xlu1 %v12750_v26, %s13836_s17 }
0x15e3   : > { %6952 = vrot.lane.b32.xlu0 %v12746_v40, %s13836_s17 }
0x15e5   : > { %6906 = vrot.lane.b32.xlu1 %v12794_v34, %s13835_s12 }
0x15e7   : > { %6948 = vrot.lane.b32.xlu0 %v12768_v19, %s13836_s17 }
0x15e9   : > { %6950 = vrot.lane.b32.xlu1 %v12772_v32, %s13836_s17 }
0x15eb   : > { %6956 = vrot.lane.b32.xlu0 %v12790_v60, %s13836_s17 }
0x15ed   : > { %6958 = vrot.lane.b32.xlu1 %v12794_v34, %s13836_s17 }
0x15ef   : > { %6996 = vrot.lane.b32.xlu0 %v12719_v30, %s13837_s22 }
0x15f1   : > { %v6625_v33 = vpop.permute.xlu0 %6624  ;;  %6998 = vrot.lane.b32.xlu1 %v12724_v36, %s13837_s22 }
0x15f3   : > { %7004 = vrot.lane.b32.xlu0 %v12746_v40, %s13837_s22  ;;  %v6627_v17 = vpop.permute.xlu1 %6626 }
0x15f5   : > { %v12860_v5 = vpop.permute.xlu0 %6676  ;;  %7006 = vrot.lane.b32.xlu1 %v12750_v26, %s13837_s22 }
0x15f7   : > { %7000 = vrot.lane.b32.xlu0 %v12768_v19, %s13837_s22  ;;  %v6679_v0 = vpop.permute.xlu1 %6678 }
0x15f9   : > { %v12866_v4 = vpop.permute.xlu0 %6728  ;;  %7002 = vrot.lane.b32.xlu1 %v12772_v32, %s13837_s22 }
0x15fb   : > { %7008 = vrot.lane.b32.xlu0 %v12790_v60, %s13837_s22  ;;  %v12872_v2 = vpop.permute.xlu1 %6730 }
0x15fd   : > { %v12877_v38 = vpop.permute.xlu0 %6780  ;;  %7010 = vrot.lane.b32.xlu1 %v12794_v34, %s13837_s22 }
0x15ff   : > { %7158 = vperm.xlu0 %8574, %v8324_v46   ;;  %v12884_v14 = vpop.permute.xlu1 %6782 }
0x1601   : > { %v12889_v54 = vpop.permute.xlu0 %6840  ;;  %7163 = vperm.xlu1 %8575, %v8325_v58  }
0x1603   : > { %7168 = vperm.xlu0 %8574, %v8326_v51   ;;  %v12897_v49 = vpop.permute.xlu1 %6842 }
0x1605   : > { %v6633_v3 = vpop.permute.xlu0 %6632  ;;  %7173 = vperm.xlu1 %8575, %v8327_v16  }
0x1606   : > { %v6640_v48 = vsel %vm980_vm6, %v6625_v33, %v6633_v3  ;;  %v6644_v56 = vsel %vm980_vm6, %v6633_v3, %v6625_v33 }
0x1607   : > { %v6635_v55 = vpop.permute.xlu1 %6634  ;;  %v6660_v43 = vmul.f32 %v6653_v61, %v6644_v56  ;;  %v6661_v35 = vmul.f32 %v6657_v13, %v6640_v48 }
0x1608   : > { %v6641_v52 = vsel %vm980_vm6, %v6627_v17, %v6635_v55  ;;  %v6645_v20 = vsel %vm980_vm6, %v6635_v55, %v6627_v17 }
0x1609   : > { %v6662_v7 = vmul.f32 %v6653_v61, %v6645_v20  ;;  %v6663_v6 = vmul.f32 %v6657_v13, %v6641_v52  ;;  %v6685_v42 = vpop.permute.xlu0 %6684 }
0x160a   : > { %v6692_v33 = vsel %vm1003_vm3, %v12860_v5, %v6685_v42  ;;  %v6696_v52 = vsel %vm1003_vm3, %v6685_v42, %v12860_v5 }
0x160b   : > { %v7120_v29 = vpack.c.bf16 %v6662_v7, %v6660_v43  ;;  %v6687_v28 = vpop.permute.xlu1 %6686  ;;  %v7121_v53 = vpack.c.bf16 %v6663_v6, %v6661_v35  ;;  %v6713_v20 = vmul.f32 %v6709_v57, %v6692_v33 }
0x160c   : > { %v6693_v18 = vsel %vm1003_vm3, %v6679_v0, %v6687_v28  ;;  %v6697_v46 = vsel %vm1003_vm3, %v6687_v28, %v6679_v0  ;;  %v8329_v0 = vld [vmem:[%s13828_s21 + $0x2] ss:$8 sm:$0x3] }
0x160d   : > { %v12909_v62 = vpop.permute.xlu0 %6736  ;;  %7212 = vmatprep.subr.bf16.mxu1 %v7121_v53  ;;  %v6715_v58 = vmul.f32 %v6709_v57, %v6693_v18  ;;  %v6714_v43 = vmul.f32 %v6705_v12, %v6697_v46  ;;  %v6761_v5 = vrot.slane %v8329_v0, %v9379_v9 }
0x160e   : > { %7213 = vmatpush1.bf16.msra.mxu1 %v7120_v29  ;;  %v6712_v29 = vmul.f32 %v6705_v12, %v6696_v52  ;;  %v6744_v47 = vsel %vm1027_vm4, %v12866_v4, %v12909_v62 }
0x160f   : > { %v6739_v24 = vpop.permute.xlu1 %6738  ;;  %v7125_v28 = vpack.c.bf16 %v6715_v58, %v6713_v20 }
0x1611   : > { %v12911_v23 = vpop.permute.xlu0 %6788 }
0x1613   : > { %v12913_v31 = vpop.permute.xlu1 %6790 }
0x1615   : > { %v6629_v25 = vpop.permute.xlu0 %6628 }
0x1617   : > { %v6631_v8 = vpop.permute.xlu1 %6630 }
0x1619   : > { %v6681_v41 = vpop.permute.xlu0 %6680 }
0x161b   : > { %v6683_v11 = vpop.permute.xlu1 %6682 }
0x161d   : > { %v12915_v39 = vpop.permute.xlu0 %6732 }
0x161f   : > { %v12917_v1 = vpop.permute.xlu1 %6734 }
0x1621   : > { %v12919_v50 = vpop.permute.xlu0 %6784 }
0x1623   : > { %v12924_v15 = vpop.permute.xlu1 %6786 }
0x1625   : > { %v6637_v44 = vpop.permute.xlu0 %6636 }
0x1626   : > { %v6642_v45 = vsel %vm980_vm6, %v6629_v25, %v6637_v44  ;;  %v6646_v27 = vsel %vm980_vm6, %v6637_v44, %v6629_v25  ;;  %v7124_v25 = vpack.c.bf16 %v6714_v43, %v6712_v29  ;;  %v6749_v44 = vsel %vm1027_vm4, %v6739_v24, %v12872_v2 }
0x1627   : > { %v6639_v17 = vpop.permute.xlu1 %6638  ;;  %v6664_v16 = vmul.f32 %v6653_v61, %v6646_v27  ;;  %v6665_v3 = vmul.f32 %v6657_v13, %v6642_v45 }
0x1628   : > { %v6643_v51 = vsel %vm980_vm6, %v6631_v8, %v6639_v17  ;;  %v6647_v10 = vsel %vm980_vm6, %v6639_v17, %v6631_v8  ;;  %v6757_v8 = vrot.slane %v8329_v0, %v9469_v37  ;;  %v6796_v0 = vsel %vm1051_vm5, %v12877_v38, %v12911_v23 }
0x1629   : > { %v6666_v48 = vmul.f32 %v6653_v61, %v6647_v10  ;;  %v6667_v56 = vmul.f32 %v6657_v13, %v6643_v51  ;;  %v12943_v55 = vpop.permute.xlu0 %6848  ;;  %v6745_v61 = vsel %vm1027_vm4, %v12872_v2, %v6739_v24  ;;  %v6748_v10 = vsel %vm1027_vm4, %v12909_v62, %v12866_v4  ;;  %v8330_v24 = vld [vmem:[%s13828_s21 + $0x3] ss:$8 sm:$0x3] }
0x162a   : > { %v6767_v45 = vmul.f32 %v6761_v5, %v6745_v61  ;;  %v6766_v2 = vmul.f32 %v6757_v8, %v6749_v44  ;;  %v6813_v62 = vrot.slane %v8330_v24, %v9379_v9 }
0x162b   : > { %v7122_v35 = vpack.c.bf16 %v6666_v48, %v6664_v16  ;;  %v12951_v7 = vpop.permute.xlu1 %6850  ;;  %v7123_v6 = vpack.c.bf16 %v6667_v56, %v6665_v3  ;;  %v6765_v16 = vmul.f32 %v6761_v5, %v6744_v47  ;;  %v6764_v56 = vmul.f32 %v6757_v8, %v6748_v10 }
0x162c   : > { %v6809_v47 = vrot.slane %v8330_v24, %v9469_v37 }
0x162d   : > { %v6689_v13 = vpop.permute.xlu0 %6688  ;;  %7214 = vmatprep.subr.bf16.mxu1 %v7123_v6  ;;  %v7129_v4 = vpack.c.bf16 %v6767_v45, %v6765_v16  ;;  %v7128_v43 = vpack.c.bf16 %v6766_v2, %v6764_v56  ;;  %v6801_v6 = vsel %vm1051_vm5, %v12913_v31, %v12884_v14 }
0x162e   : > { %v6694_v42 = vsel %vm1003_vm3, %v6681_v41, %v6689_v13  ;;  %v6698_v53 = vsel %vm1003_vm3, %v6689_v13, %v6681_v41  ;;  %7215 = vmatpush1.bf16.msra.mxu1 %v7122_v35 }
0x162f   : > { %7216 = vmatprep.subr.bf16.mxu1 %v7125_v28  ;;  %v6691_v18 = vpop.permute.xlu1 %6690  ;;  %v6716_v33 = vmul.f32 %v6705_v12, %v6698_v53  ;;  %v6717_v17 = vmul.f32 %v6709_v57, %v6694_v42 }
0x1630   : > { %v6695_v27 = vsel %vm1003_vm3, %v6683_v11, %v6691_v18  ;;  %v6699_v41 = vsel %vm1003_vm3, %v6691_v18, %v6683_v11 }
0x1631   : > { %v6718_v46 = vmul.f32 %v6705_v12, %v6699_v41  ;;  %v6719_v58 = vmul.f32 %v6709_v57, %v6695_v27  ;;  %v6741_v51 = vpop.permute.xlu0 %6740  ;;  %v6797_v57 = vsel %vm1051_vm5, %v12884_v14, %v12913_v31  ;;  %v6800_v14 = vsel %vm1051_vm5, %v12911_v23, %v12877_v38 }
0x1632   : > { %7217 = vmatpush1.bf16.msra.mxu1 %v7124_v25  ;;  %v6746_v52 = vsel %vm1027_vm4, %v12915_v39, %v6741_v51  ;;  %v6750_v20 = vsel %vm1027_vm4, %v6741_v51, %v12915_v39  ;;  %v6819_v29 = vmul.f32 %v6813_v62, %v6797_v57  ;;  %v6817_v31 = vmul.f32 %v6813_v62, %v6796_v0 }
0x1633   : > { %v7126_v3 = vpack.c.bf16 %v6718_v46, %v6716_v33  ;;  %v12980_v48 = vpop.permute.xlu1 %6846  ;;  %v7127_v11 = vpack.c.bf16 %v6719_v58, %v6717_v17  ;;  %v6768_v13 = vmul.f32 %v6757_v8, %v6750_v20  ;;  %v6769_v28 = vmul.f32 %v6761_v5, %v6746_v52 }
0x1634   : > { %v6818_v27 = vmul.f32 %v6809_v47, %v6801_v6  ;;  %v7133_v41 = vpack.c.bf16 %v6819_v29, %v6817_v31  ;;  %v7137_v57 = vpack.c.bf16 %v12750_v26, %v12746_v40  ;;  %v6857_v40 = vsel %vm1077_vm7, %v12897_v49, %v12951_v7 }
0x1635   : > { %v6793_v12 = vpop.permute.xlu0 %6792  ;;  %7218 = vmatprep.subr.bf16.mxu1 %v7127_v11  ;;  %v8331_v11 = vld [vmem:[%s13828_s21 + $0x5] ss:$8 sm:$0x3]  ;;  %v7136_v26 = vpack.c.bf16 %v12724_v36, %v12719_v30  ;;  %v7139_v0 = vpack.c.bf16 %v12794_v34, %v12790_v60  ;;  %v8332_v36 = vld [vmem:[%s13828_s21 + $0x6] ss:$8 sm:$0x3]  ;;  %v7138_v60 = vpack.c.bf16 %v12772_v32, %v12768_v19 }
0x1636   : > { %7219 = vmatpush1.bf16.msra.mxu1 %v7126_v3  ;;  %v6802_v33 = vsel %vm1051_vm5, %v6793_v12, %v12919_v50  ;;  %v6869_v52 = vrot.slane %v8331_v11, %v9469_v37 }
0x1637   : > { %7220 = vmatprep.subr.bf16.mxu1 %v7129_v4  ;;  %v6743_v35 = vpop.permute.xlu1 %6742  ;;  %v6820_v58 = vmul.f32 %v6809_v47, %v6802_v33 }
0x1638   : > { %v6747_v61 = vsel %vm1027_vm4, %v12917_v1, %v6743_v35  ;;  %v6751_v39 = vsel %vm1027_vm4, %v6743_v35, %v12917_v1  ;;  %v6856_v35 = vsel %vm1077_vm7, %v12889_v54, %v12943_v55  ;;  %v6878_v29 = vmul.f32 %v6869_v52, %v6857_v40 }
0x1639   : > { %v6770_v42 = vmul.f32 %v6757_v8, %v6751_v39  ;;  %v6771_v53 = vmul.f32 %v6761_v5, %v6747_v61  ;;  %v6845_v25 = vpop.permute.xlu0 %6844  ;;  %v6816_v8 = vmul.f32 %v6809_v47, %v6800_v14  ;;  %v6798_v5 = vsel %vm1051_vm5, %v12919_v50, %v6793_v12 }
0x163a   : > { %7221 = vmatpush1.bf16.msra.mxu1 %v7128_v43  ;;  %v6821_v51 = vmul.f32 %v6813_v62, %v6798_v5  ;;  %v6873_v12 = vrot.slane %v8331_v11, %v9379_v9  ;;  %v6876_v34 = vmul.f32 %v6869_v52, %v6856_v35 }
0x163b   : > { %v7130_v18 = vpack.c.bf16 %v6770_v42, %v6768_v13  ;;  %v13012_v44 = vpop.permute.xlu1 %6894  ;;  %v7131_v45 = vpack.c.bf16 %v6771_v53, %v6769_v28  ;;  %v7132_v23 = vpack.c.bf16 %v6818_v27, %v6816_v8  ;;  %v6921_v28 = vrot.slane %v8332_v36, %v9469_v37 }
0x163c   : > { %v7140_v39 = vpack.c.bf16 %v6878_v29, %v6876_v34  ;;  %v6925_v42 = vrot.slane %v8332_v36, %v9379_v9 }
0x163d   : > { %v6853_v1 = vpop.permute.xlu0 %6852  ;;  %7222 = vmatprep.subr.bf16.mxu1 %v7131_v45 }
0x163e   : > { %7223 = vmatpush1.bf16.msra.mxu1 %v7130_v18  ;;  %v6858_v30 = vsel %vm1077_vm7, %v6845_v25, %v6853_v1 }
0x163f   : > { %7224 = vmatprep.subr.bf16.mxu1 %v7133_v41  ;;  %v6795_v38 = vpop.permute.xlu1 %6794  ;;  %v6880_v13 = vmul.f32 %v6869_v52, %v6858_v30 }
0x1640   : > { %v6799_v17 = vsel %vm1051_vm5, %v12924_v15, %v6795_v38  ;;  %v6803_v46 = vsel %vm1051_vm5, %v6795_v38, %v12924_v15  ;;  %v6861_v15 = vsel %vm1077_vm7, %v12951_v7, %v12897_v49 }
0x1641   : > { %v6822_v10 = vmul.f32 %v6809_v47, %v6803_v46  ;;  %v6823_v16 = vmul.f32 %v6813_v62, %v6799_v17  ;;  %v6893_v2 = vpop.permute.xlu0 %6892  ;;  %v6860_v62 = vsel %vm1077_vm7, %v12943_v55, %v12889_v54  ;;  %v6879_v20 = vmul.f32 %v6873_v12, %v6861_v15 }
0x1642   : > { %7225 = vmatpush1.bf16.msra.mxu1 %v7132_v23  ;;  %v6877_v6 = vmul.f32 %v6873_v12, %v6860_v62  ;;  %v6862_v54 = vsel %vm1077_vm7, %v6853_v1, %v6845_v25 }
0x1643   : > { %v7134_v24 = vpack.c.bf16 %v6822_v10, %v6820_v58  ;;  %v6903_v50 = vpop.permute.xlu1 %6902  ;;  %v7135_v3 = vpack.c.bf16 %v6823_v16, %v6821_v51  ;;  %v6881_v14 = vmul.f32 %v6873_v12, %v6862_v54 }
0x1644   : > { %v7141_v61 = vpack.c.bf16 %v6879_v20, %v6877_v6  ;;  %v6913_v19 = vsel %vm1101_vm8, %v6903_v50, %v13012_v44  ;;  %v6909_v1 = vsel %vm1101_vm8, %v13012_v44, %v6903_v50 }
0x1645   : > { %v6901_v56 = vpop.permute.xlu0 %6900  ;;  %7226 = vmatprep.subr.bf16.mxu1 %v7135_v3  ;;  %v6931_v41 = vmul.f32 %v6925_v42, %v6913_v19  ;;  %v6930_v17 = vmul.f32 %v6921_v28, %v6909_v1 }
0x1646   : > { %7227 = vmatpush1.bf16.msra.mxu1 %v7134_v24  ;;  %v6912_v55 = vsel %vm1101_vm8, %v6901_v56, %v6893_v2  ;;  %v6908_v32 = vsel %vm1101_vm8, %v6893_v2, %v6901_v56 }
0x1647   : > { %7228 = vmatprep.subr.bf16.mxu1 %v7137_v57  ;;  %v13036_v4 = vpop.permute.xlu1 %6898  ;;  %v6929_v31 = vmul.f32 %v6925_v42, %v6912_v55  ;;  %v6928_v8 = vmul.f32 %v6921_v28, %v6908_v32 }
0x1649   : > { %v6897_v43 = vpop.permute.xlu0 %6896  ;;  %v7145_v44 = vpack.c.bf16 %v6931_v41, %v6929_v31  ;;  %v7144_v10 = vpack.c.bf16 %v6930_v17, %v6928_v8  ;;  %v8665_v31 = vld [vmem:[#allocation14 + $0x30] ss:$12 sps:$4 sm:$0xff]  }
0x164a   : > { %7229 = vmatpush1.bf16.msra.mxu1 %v7136_v26 }
0x164b   : > { %7230 = vmatprep.subr.bf16.mxu1 %v7139_v0  ;;  %v6947_v49 = vpop.permute.xlu1 %6946 }
0x164d   : > { %v6905_v7 = vpop.permute.xlu0 %6904 }
0x164e   : > { %7231 = vmatpush1.bf16.msra.mxu1 %v7138_v60  ;;  %v6910_v23 = vsel %vm1101_vm8, %v6897_v43, %v6905_v7  ;;  %v6914_v46 = vsel %vm1101_vm8, %v6905_v7, %v6897_v43 }
0x164f   : > { %7232 = vmatprep.subr.bf16.mxu1 %v7141_v61  ;;  %v6855_v53 = vpop.permute.xlu1 %6854  ;;  %v6932_v16 = vmul.f32 %v6921_v28, %v6910_v23  ;;  %v6933_v50 = vmul.f32 %v6925_v42, %v6914_v46 }
0x1650   : > { %v6859_v25 = vsel %vm1077_vm7, %v12980_v48, %v6855_v53  ;;  %v6863_v47 = vsel %vm1077_vm7, %v6855_v53, %v12980_v48  ;;  %v8333_v48 = vld [vmem:[%s13828_s21 + $0x7] ss:$8 sm:$0x3] }
0x1651   : > { %v6882_v18 = vmul.f32 %v6869_v52, %v6859_v25  ;;  %v6883_v45 = vmul.f32 %v6873_v12, %v6863_v47  ;;  %v6945_v27 = vpop.permute.xlu0 %6944  ;;  %v6977_v2 = vrot.slane %v8333_v48, %v9379_v9  ;;  %v6973_v26 = vrot.slane %v8333_v48, %v9469_v37 }
0x1652   : > { %7233 = vmatpush1.bf16.msra.mxu1 %v7140_v39 }
0x1653   : > { %v7142_v5 = vpack.c.bf16 %v6882_v18, %v6880_v13  ;;  %v6955_v33 = vpop.permute.xlu1 %6954  ;;  %v7143_v38 = vpack.c.bf16 %v6883_v45, %v6881_v14 }
0x1654   : > { %v6965_v3 = vsel %vm1125_vm11, %v6955_v33, %v6947_v49  ;;  %v6961_v52 = vsel %vm1125_vm11, %v6947_v49, %v6955_v33 }
0x1655   : > { %v6953_v58 = vpop.permute.xlu0 %6952  ;;  %7234 = vmatprep.subr.bf16.mxu1 %v7143_v38  ;;  %v6983_v20 = vmul.f32 %v6977_v2, %v6965_v3  ;;  %v6982_v30 = vmul.f32 %v6973_v26, %v6961_v52 }
0x1656   : > { %v6964_v51 = vsel %vm1125_vm11, %v6953_v58, %v6945_v27  ;;  %7235 = vmatpush1.bf16.msra.mxu1 %v7142_v5  ;;  %v6960_v57 = vsel %vm1125_vm11, %v6945_v27, %v6953_v58  ;;  %v8668_v27 = vld [vmem:[#allocation14 + $0x4c] ss:$12 sps:$4 sm:$0xff]  }
0x1657   : > { %7236 = vmatprep.subr.bf16.mxu1 %v7145_v44  ;;  %v6907_v24 = vpop.permute.xlu1 %6906  ;;  %v6981_v15 = vmul.f32 %v6977_v2, %v6964_v51  ;;  %v6980_v6 = vmul.f32 %v6973_v26, %v6960_v57  ;;  %v8670_v51 = vld [vmem:[#allocation14 + $0x48] ss:$12 sps:$4 sm:$0xff]  }
0x1658   : > { %v6911_v11 = vsel %vm1101_vm8, %v13036_v4, %v6907_v24  ;;  %v6915_v56 = vsel %vm1101_vm8, %v6907_v24, %v13036_v4 }
0x1659   : > { %v6934_v12 = vmul.f32 %v6921_v28, %v6911_v11  ;;  %v6935_v62 = vmul.f32 %v6925_v42, %v6915_v56  ;;  %v6949_v40 = vpop.permute.xlu0 %6948  ;;  %v7149_v4 = vpack.c.bf16 %v6983_v20, %v6981_v15  ;;  %v7148_v7 = vpack.c.bf16 %v6982_v30, %v6980_v6  ;;  %v8334_v42 = vld [vmem:[%s13828_s21 + $0x10] ss:$8 sm:$0x3] }
0x165a   : > { %7237 = vmatpush1.bf16.msra.mxu1 %v7144_v10  ;;  %v7025_v25 = vrot.slane %v8334_v42, %v9469_v37  ;;  %v7029_v47 = vrot.slane %v8334_v42, %v9379_v9  ;;  %v13138_v20 = vstv %s8267_s15 }
0x165b   : > { %v7146_v43 = vpack.c.bf16 %v6934_v12, %v6932_v16  ;;  %v6951_v0 = vpop.permute.xlu1 %6950  ;;  %v7147_v35 = vpack.c.bf16 %v6935_v62, %v6933_v50  ;;  %v8671_v62 = vld [vmem:[#allocation14 + $0x38] ss:$12 sps:$4 sm:$0xff]  }
0x165d   : > { %v6957_v29 = vpop.permute.xlu0 %6956  ;;  %7238 = vmatprep.subr.bf16.mxu1 %v7147_v35 }
0x165e   : > { %v6962_v36 = vsel %vm1125_vm11, %v6949_v40, %v6957_v29  ;;  %v6966_v60 = vsel %vm1125_vm11, %v6957_v29, %v6949_v40  ;;  %7239 = vmatpush1.bf16.msra.mxu1 %v7146_v43  ;;  %v8672_v40 = vld [vmem:[#allocation14 + $0x50] ss:$12 sps:$4 sm:$0xff]  }
0x165f   : > { %7240 = vmatprep.subr.bf16.mxu1 %v7149_v4  ;;  %v6959_v34 = vpop.permute.xlu1 %6958  ;;  %v6984_v54 = vmul.f32 %v6973_v26, %v6962_v36  ;;  %v6985_v55 = vmul.f32 %v6977_v2, %v6966_v60 }
0x1660   : > { %v6963_v49 = vsel %vm1125_vm11, %v6951_v0, %v6959_v34  ;;  %v6967_v61 = vsel %vm1125_vm11, %v6959_v34, %v6951_v0 }
0x1661   : > { %v6986_v39 = vmul.f32 %v6973_v26, %v6963_v49  ;;  %v6987_v13 = vmul.f32 %v6977_v2, %v6967_v61  ;;  %v6997_v28 = vpop.permute.xlu0 %6996 }
0x1662   : > { %7241 = vmatpush1.bf16.msra.mxu1 %v7148_v7 }
0x1663   : > { %v7150_v53 = vpack.c.bf16 %v6986_v39, %v6984_v54  ;;  %v6999_v19 = vpop.permute.xlu1 %6998  ;;  %v7151_v32 = vpack.c.bf16 %v6987_v13, %v6985_v55 }
0x1665   : > { %v7005_v14 = vpop.permute.xlu0 %7004  ;;  %7242 = vmatprep.subr.bf16.mxu1 %v7151_v32 }
0x1666   : > { %v7012_v18 = vsel %vm1149_vm12, %v6997_v28, %v7005_v14  ;;  %v7016_v45 = vsel %vm1149_vm12, %v7005_v14, %v6997_v28  ;;  %7243 = vmatpush1.bf16.msra.mxu1 %v7150_v53 }
0x1667   : > { %v7007_v1 = vpop.permute.xlu1 %7006  ;;  %v7032_v5 = vmul.f32 %v7025_v25, %v7012_v18  ;;  %v7033_v33 = vmul.f32 %v7029_v47, %v7016_v45 }
0x1668   : > { %v7013_v41 = vsel %vm1149_vm12, %v6999_v19, %v7007_v1  ;;  %v7017_v8 = vsel %vm1149_vm12, %v7007_v1, %v6999_v19 }
0x1669   : > { %v7034_v38 = vmul.f32 %v7025_v25, %v7013_v41  ;;  %v7035_v23 = vmul.f32 %v7029_v47, %v7017_v8  ;;  %v7001_v48 = vpop.permute.xlu0 %7000  ;;  %7245 = vmatmul.mubr.bf16.vlgmr.msra.gmra.mrb[44].mxu1 %v8665_v31 }
0x166a   : > { %7254 = vmatprep.mubr.bf16.mxu1 %v8668_v27 }
0x166b   : > { %v7152_v17 = vpack.c.bf16 %v7034_v38, %v7032_v5  ;;  %v7003_v46 = vpop.permute.xlu1 %7002  ;;  %v7153_v58 = vpack.c.bf16 %v7035_v23, %v7033_v33  ;;  %v13279_v38 = vld [vmem:[%s13843_s16 + $0xc] sm:$0x77] }
0x166c   : > { %v8354_v23 = vcombine.high %v13279_v38, %v13279_v38 }
0x166d   : > { %v7009_v44 = vpop.permute.xlu0 %7008  ;;  %7265 = vmatprep.subr.bf16.mxu1 %v7153_v58 }
0x166e   : > { %v7014_v10 = vsel %vm1149_vm12, %v7001_v48, %v7009_v44  ;;  %v7018_v16 = vsel %vm1149_vm12, %v7009_v44, %v7001_v48  ;;  %7266 = vmatpush1.bf16.msra.mxu1 %v7152_v17  ;;  %7930 = vmatprep.mubr.bf16.mxu0 %v8354_v23 }
0x166f   : > { %v7011_v2 = vpop.permute.xlu1 %7010  ;;  %v7036_v3 = vmul.f32 %v7025_v25, %v7014_v10  ;;  %v7037_v11 = vmul.f32 %v7029_v47, %v7018_v16  ;;  %v8345_v10 = vld [vmem:[%s13844_s5 + $0x8] sm:$0x1f] }
0x1670   : > { %v7015_v24 = vsel %vm1149_vm12, %v7003_v46, %v7011_v2  ;;  %v7019_v50 = vsel %vm1149_vm12, %v7011_v2, %v7003_v46 }
0x1671   : > { %v7038_v56 = vmul.f32 %v7025_v25, %v7015_v24  ;;  %v7039_v57 = vmul.f32 %v7029_v47, %v7019_v50  ;;  %7255 = vmatmul.mubr.bf16.gmra.mrb[48].mxu1 %v8670_v51  ;;  %v7372_v50 = vld [vmem:[%s13828_s21] ss:$8 sm:$0x3] }
0x1672   : > { %7297 = vmatprep.mubr.bf16.mxu1 %v13826_v59 }
0x1673   : > { %v7154_v15 = vpack.c.bf16 %v7038_v56, %v7036_v3  ;;  %v7155_v12 = vpack.c.bf16 %v7039_v57, %v7037_v11  ;;  %v13314_v11 = vrot.slane %v7372_v50, %v9469_v37  ;;  %v13317_v56 = vrot.slane %v7372_v50, %v9379_v9 }
0x1675   : > { %7267 = vmatprep.subr.bf16.mxu1 %v7155_v12 }
0x1676   : > { %7268 = vmatpush1.bf16.msra.mxu1 %v7154_v15 }
0x1679   : > { %8341 = vmatmul.mubr.msk.bf16.vlgmr.msra.gmra.mrb[44].mxu1 %vm1913_vm2, %v8671_v62 }
0x167a   : > { %7307 = vmatprep.mubr.bf16.mxu1 %v13826_v59 }
0x167e   : > { %v7159_v26 = vpop.permute.xlu0 %7158 }
0x1680   : > { %v7164_v35 = vpop.permute.xlu1 %7163 }
0x1681   : > { %8342 = vmatmul.mubr.msk.bf16.gmra.mrb[48].mxu1 %vm1913_vm2, %v8672_v40 }
0x1682   : > { %v7169_v19 = vpop.permute.xlu0 %7168 }
0x1684   : > { %v7174_v25 = vpop.permute.xlu1 %7173 }
0x174c   : > { %v7299_v52 = vpop.f32.mrb[44].mxu1 }
0x174d   : > { %v8417_v43 = vadd.f32 %v7299_v52, %v7159_v26  ;;  %v7301_v0 = vpop.f32.mrb[45].mxu1 }
0x174e   : > { %v7303_v6 = vpop.f32.mrb[46].mxu1  ;;  %v8418_v55 = vadd.f32 %v7301_v0, %v7159_v26 }
0x174f   : > { %vm7318_vm9 = vcmp.gt.f32.partialorder %v8417_v43, 0.0  ;;  %v7327_v29 = vmul.f32 %v8417_v43, %v13138_v20  ;;  %v8419_v4 = vadd.f32 %v7303_v6, %v7164_v35  ;;  %v7305_v30 = vpop.f32.mrb[47].mxu1  ;;  %v13336_v6 = vld [vmem:[%s13828_s21 + $0x2] ss:$8 sm:$0x3] }
0x1750   : > { %v8420_v39 = vadd.f32 %v7305_v30, %v7164_v35  ;;  %v7328_v13 = vmul.f32 %v8418_v55, %v13138_v20  ;;  %vm7319_vm0 = vcmp.gt.f32.partialorder %v8418_v55, 0.0 }
0x1751   : > { %v13141_v36 = vsel %vm7318_vm9, %v8417_v43, %v7327_v29  ;;  %vm7320_vm13 = vcmp.gt.f32.partialorder %v8419_v4, 0.0  ;;  %v7329_v60 = vmul.f32 %v8419_v4, %v13138_v20 }
0x1752   : > { %7348 = vrot.lane.b32.xlu0 %v13141_v36, %s13850_s28  ;;  %v7330_v28 = vmul.f32 %v8420_v39, %v13138_v20  ;;  %vm7321_vm1 = vcmp.gt.f32.partialorder %v8420_v39, 0.0  ;;  %v13168_v42 = vsel %vm7319_vm0, %v8418_v55, %v7328_v13 }
0x1753   : > { %v13146_v34 = vsel %vm7320_vm13, %v8419_v4, %v7329_v60  ;;  %v13340_v60 = vrot.slane %v13336_v6, %v9469_v37 }
0x1754   : > { %v7309_v7 = vpop.f32.mrb[48].mxu1  ;;  %7350 = vrot.lane.b32.xlu1 %v13146_v34, %s13850_s28  ;;  %v13172_v53 = vsel %vm7321_vm1, %v8420_v39, %v7330_v28 }
0x1755   : > { %v7311_v49 = vpop.f32.mrb[49].mxu1  ;;  %v8421_v32 = vadd.f32 %v7309_v7, %v7169_v19 }
0x1756   : > { %v7313_v61 = vpop.f32.mrb[50].mxu1  ;;  %7400 = vrot.lane.b32.xlu0 %v13141_v36, %s13839_s20  ;;  %v8422_v27 = vadd.f32 %v7311_v49, %v7169_v19 }
0x1757   : > { %v7315_v54 = vpop.f32.mrb[51].mxu1  ;;  %v8423_v47 = vadd.f32 %v7313_v61, %v7174_v25  ;;  %v7331_v14 = vmul.f32 %v8421_v32, %v13138_v20  ;;  %vm7322_vm14 = vcmp.gt.f32.partialorder %v8421_v32, 0.0  ;;  %v8348_v61 = vld [vmem:[%s13828_s21 + $0x3] ss:$8 sm:$0x3] }
0x1758   : > { %7402 = vrot.lane.b32.xlu1 %v13146_v34, %s13839_s20  ;;  %v8424_v1 = vadd.f32 %v7315_v54, %v7174_v25  ;;  %v7332_v41 = vmul.f32 %v8422_v27, %v13138_v20  ;;  %vm7323_vm15 = vcmp.gt.f32.partialorder %v8422_v27, 0.0  ;;  %v13364_v28 = vrot.slane %v8348_v61, %v9469_v37  ;;  %v8349_v25 = vld [vmem:[%s13828_s21 + $0x5] ss:$8 sm:$0x3] }
0x1759   : > { %v7333_v31 = vmul.f32 %v8423_v47, %v13138_v20  ;;  %vm7324_vm10 = vcmp.gt.f32.partialorder %v8423_v47, 0.0  ;;  %v13194_v18 = vsel %vm7322_vm14, %v8421_v32, %v7331_v14  ;;  %v13367_v19 = vrot.slane %v8348_v61, %v9379_v9 }
0x175a   : > { %7452 = vrot.lane.b32.xlu0 %v13141_v36, %s13840_s2  ;;  %v7334_v8 = vmul.f32 %v8424_v1, %v13138_v20  ;;  %vm7325_vm9 = vcmp.gt.f32.partialorder %v8424_v1, 0.0  ;;  %v13220_v5 = vsel %vm7323_vm15, %v8422_v27, %v7332_v41  ;;  %v13386_v23 = vrot.slane %v8349_v25, %v9379_v9 }
0x175b   : > { %v13198_v45 = vsel %vm7324_vm10, %v8423_v47, %v7333_v31 }
0x175c   : > { %7454 = vrot.lane.b32.xlu1 %v13146_v34, %s13840_s2  ;;  %v13224_v33 = vsel %vm7325_vm9, %v8424_v1, %v7334_v8  ;;  %v13383_v8 = vrot.slane %v8349_v25, %v9469_v37 }
0x175e   : > { %7504 = vrot.lane.b32.xlu0 %v13141_v36, %s13841_s13 }
0x1760   : > { %7506 = vrot.lane.b32.xlu1 %v13146_v34, %s13841_s13 }
0x1762   : > { %7564 = vrot.lane.b32.xlu0 %v13141_v36, %s13842_s4 }
0x1764   : > { %7566 = vrot.lane.b32.xlu1 %v13146_v34, %s13842_s4 }
0x1766   : > { %7356 = vrot.lane.b32.xlu0 %v13168_v42, %s13850_s28 }
0x1768   : > { %7358 = vrot.lane.b32.xlu1 %v13172_v53, %s13850_s28 }
0x176a   : > { %7408 = vrot.lane.b32.xlu0 %v13168_v42, %s13839_s20 }
0x176c   : > { %7410 = vrot.lane.b32.xlu1 %v13172_v53, %s13839_s20 }
0x176e   : > { %7460 = vrot.lane.b32.xlu0 %v13168_v42, %s13840_s2 }
0x1770   : > { %7462 = vrot.lane.b32.xlu1 %v13172_v53, %s13840_s2 }
0x1772   : > { %7512 = vrot.lane.b32.xlu0 %v13168_v42, %s13841_s13 }
0x1774   : > { %7514 = vrot.lane.b32.xlu1 %v13172_v53, %s13841_s13 }
0x1776   : > { %7572 = vrot.lane.b32.xlu0 %v13168_v42, %s13842_s4 }
0x1778   : > { %7574 = vrot.lane.b32.xlu1 %v13172_v53, %s13842_s4 }
0x177a   : > { %7352 = vrot.lane.b32.xlu0 %v13194_v18, %s13850_s28 }
0x177c   : > { %7354 = vrot.lane.b32.xlu1 %v13198_v45, %s13850_s28 }
0x177e   : > { %7404 = vrot.lane.b32.xlu0 %v13194_v18, %s13839_s20 }
0x1780   : > { %7406 = vrot.lane.b32.xlu1 %v13198_v45, %s13839_s20 }
0x1782   : > { %7456 = vrot.lane.b32.xlu0 %v13194_v18, %s13840_s2 }
0x1784   : > { %7458 = vrot.lane.b32.xlu1 %v13198_v45, %s13840_s2 }
0x1786   : > { %7508 = vrot.lane.b32.xlu0 %v13194_v18, %s13841_s13 }
0x1788   : > { %7510 = vrot.lane.b32.xlu1 %v13198_v45, %s13841_s13 }
0x178a   : > { %7568 = vrot.lane.b32.xlu0 %v13194_v18, %s13842_s4 }
0x178c   : > { %7570 = vrot.lane.b32.xlu1 %v13198_v45, %s13842_s4 }
0x178e   : > { %7360 = vrot.lane.b32.xlu0 %v13220_v5, %s13850_s28 }
0x1790   : > { %7362 = vrot.lane.b32.xlu1 %v13224_v33, %s13850_s28  ;;  %s8364_s28 = sshll.u32 %s9091_s1, 5  ;;  %s8974_s1 = smov [#allocation15]  }
0x1791   : > { %s13657_s14 = scalar_lea.hbm %s13873_s24, %s8364_s28  ;;  %s8871_s29 = sshll.u32 %s8974_s1, 4  ;;  %s8872_s29 = int_to_ptr.vmem [resolvable:$false] %s8871_s29 }
0x1792   : > { %7616 = vrot.lane.b32.xlu0 %v13141_v36, %s13835_s12  ;;  %s8873_s15 = scalar_lea.vmem %s8872_s29, 64  ;;  %p8874_p11 = scmp.lt.s32.totalorder %s13659_s27, %s8872_s29 }
0x1793   : > { %p8875_p12 = scmp.lt.s32.totalorder %s8873_s15, %s8867_s19 }
0x1794   : > { %7618 = vrot.lane.b32.xlu1 %v13146_v34, %s13835_s12 }
0x1795   : > { %p8876_p8 = por %p8875_p12, %p8874_p11 }
0x1796   : > { %7412 = vrot.lane.b32.xlu0 %v13220_v5, %s13839_s20 }
0x1798   : > { %7414 = vrot.lane.b32.xlu1 %v13224_v33, %s13839_s20 }
0x179a   : > { %7464 = vrot.lane.b32.xlu0 %v13220_v5, %s13840_s2 }
0x179c   : > { %7626 = vrot.lane.b32.xlu1 %v13172_v53, %s13835_s12 }
0x179e   : > { %7516 = vrot.lane.b32.xlu0 %v13220_v5, %s13841_s13 }
0x17a0   : > { %7466 = vrot.lane.b32.xlu1 %v13224_v33, %s13840_s2 }
0x17a2   : > { %7576 = vrot.lane.b32.xlu0 %v13220_v5, %s13842_s4 }
0x17a4   : > { %7622 = vrot.lane.b32.xlu1 %v13198_v45, %s13835_s12 }
0x17a6   : > { %7624 = vrot.lane.b32.xlu0 %v13168_v42, %s13835_s12 }
0x17a8   : > { %7518 = vrot.lane.b32.xlu1 %v13224_v33, %s13841_s13 }
0x17aa   : > { %7620 = vrot.lane.b32.xlu0 %v13194_v18, %s13835_s12 }
0x17ac   : > { %7670 = vrot.lane.b32.xlu1 %v13146_v34, %s13836_s17 }
0x17ae   : > { %7628 = vrot.lane.b32.xlu0 %v13220_v5, %s13835_s12 }
0x17b0   : > { %7678 = vrot.lane.b32.xlu1 %v13172_v53, %s13836_s17 }
0x17b2   : > { %7668 = vrot.lane.b32.xlu0 %v13141_v36, %s13836_s17 }
0x17b4   : > { %7674 = vrot.lane.b32.xlu1 %v13198_v45, %s13836_s17 }
0x17b6   : > { %7676 = vrot.lane.b32.xlu0 %v13168_v42, %s13836_s17 }
0x17b8   : > { %7578 = vrot.lane.b32.xlu1 %v13224_v33, %s13842_s4  ;;  %s13867_s4 = sld [smem:[#allocation30_spill]] }
0x17ba   : > { %7672 = vrot.lane.b32.xlu0 %v13194_v18, %s13836_s17 }
0x17bc   : > { %7722 = vrot.lane.b32.xlu1 %v13146_v34, %s13837_s22 }
0x17be   : > { %7680 = vrot.lane.b32.xlu0 %v13220_v5, %s13836_s17  ;;  %s8006_s26 = scalar_lea.sflag [#allocation6], %s13867_s4 }
0x17c0   : > { %7630 = vrot.lane.b32.xlu1 %v13224_v33, %s13835_s12 }
0x17c2   : > { %7720 = vrot.lane.b32.xlu0 %v13141_v36, %s13837_s22 }
0x17c4   : > { %7730 = vrot.lane.b32.xlu1 %v13172_v53, %s13837_s22  ;;  %v7349_v48 = vpop.permute.xlu0 %7348 }
0x17c6   : > { %v7351_v17 = vpop.permute.xlu1 %7350  ;;  %7728 = vrot.lane.b32.xlu0 %v13168_v42, %s13837_s22 }
0x17c8   : > { %7682 = vrot.lane.b32.xlu1 %v13224_v33, %s13836_s17  ;;  %v13291_v46 = vpop.permute.xlu0 %7400 }
0x17ca   : > { %v13293_v58 = vpop.permute.xlu1 %7402  ;;  %7724 = vrot.lane.b32.xlu0 %v13194_v18, %s13837_s22 }
0x17cc   : > { %7726 = vrot.lane.b32.xlu1 %v13198_v45, %s13837_s22  ;;  %v13299_v44 = vpop.permute.xlu0 %7452 }
0x17ce   : > { %v13301_v51 = vpop.permute.xlu1 %7454  ;;  %7732 = vrot.lane.b32.xlu0 %v13220_v5, %s13837_s22 }
0x17d0   : > { %7734 = vrot.lane.b32.xlu1 %v13224_v33, %s13837_s22  ;;  %v7505_v16 = vpop.permute.xlu0 %7504  ;;  %s13870_s22 = sld [smem:[#allocation28_spill]] }
0x17d2   : > { %v7507_v2 = vpop.permute.xlu1 %7506  ;;  %7882 = vperm.xlu0 %8574, %v8345_v10  }
0x17d4   : > { %v7565_v24 = vpop.permute.xlu0 %7564 }
0x17d6   : > { %v7567_v3 = vpop.permute.xlu1 %7566  ;;  %p13874_p10 = scmp.ne.s32.totalorder %s13870_s22, 0 }
0x17d8   : > { %v7357_v57 = vpop.permute.xlu0 %7356  ;;  %p8869_p0 = pnand %p8868_p4, %p13874_p10 }
0x17d9   : > { %v7364_v15 = vsel %vm980_vm6, %v7349_v48, %v7357_v57  ;;  %v7368_v12 = vsel %vm980_vm6, %v7357_v57, %v7349_v48 }
0x17da   : > { %v7359_v62 = vpop.permute.xlu1 %7358  ;;  %v7384_v52 = vmul.f32 %v13314_v11, %v7368_v12  ;;  %v7385_v20 = vmul.f32 %v13317_v56, %v7364_v15  ;;  %p8870_p2 = pneg %p8869_p0 }
0x17db   : > { %v7365_v40 = vsel %vm980_vm6, %v7351_v17, %v7359_v62  ;;  %v7369_v26 = vsel %vm980_vm6, %v7359_v62, %v7351_v17 }
0x17dc   : > { %v7386_v43 = vmul.f32 %v13314_v11, %v7369_v26  ;;  %v7387_v0 = vmul.f32 %v13317_v56, %v7365_v40  ;;  %v13331_v35 = vpop.permute.xlu0 %7408  ;;  %p8877_p13 = pnand %p8876_p8, %p8870_p2 }
0x17de   : > { %v7844_v29 = vpack.c.bf16 %v7386_v43, %v7384_v52  ;;  %v7411_v4 = vpop.permute.xlu1 %7410  ;;  %v7845_v30 = vpack.c.bf16 %v7387_v0, %v7385_v20 }
0x17e0   : > { %7898 = vmatprep.subr.bf16.mxu0 %v7845_v30  ;;  %v13342_v7 = vpop.permute.xlu0 %7460 }
0x17e1   : > { %v7472_v49 = vsel %vm1027_vm4, %v13342_v7, %v13299_v44  ;;  %7899 = vmatpush1.bf16.msra.mxu0 %v7844_v29  ;;  %v7421_v29 = vsel %vm1003_vm3, %v7411_v4, %v13293_v58 }
0x17e2   : > { %v13351_v54 = vpop.permute.xlu1 %7462  ;;  %v13358_v39 = vmul.f32 %v13340_v60, %v7472_v49 }
0x17e3   : > { %v7473_v55 = vsel %vm1027_vm4, %v13351_v54, %v13301_v51 }
0x17e4   : > { %v13361_v13 = vmul.f32 %v13340_v60, %v7473_v55  ;;  %v7513_v32 = vpop.permute.xlu0 %7512 }
0x17e5   : > { %v7520_v47 = vsel %vm1051_vm5, %v7505_v16, %v7513_v32  ;;  %v7524_v14 = vsel %vm1051_vm5, %v7513_v32, %v7505_v16 }
0x17e6   : > { %v7515_v27 = vpop.permute.xlu1 %7514  ;;  %v13389_v48 = vmul.f32 %v13364_v28, %v7524_v14  ;;  %v13392_v17 = vmul.f32 %v13367_v19, %v7520_v47 }
0x17e7   : > { %v7521_v1 = vsel %vm1051_vm5, %v7507_v2, %v7515_v27  ;;  %v7525_v41 = vsel %vm1051_vm5, %v7515_v27, %v7507_v2  ;;  %v8346_v27 = vld [vmem:[%s13828_s21 + $0x1] ss:$8 sm:$0x3] }
0x17e8   : > { %v13395_v10 = vmul.f32 %v13364_v28, %v7525_v41  ;;  %v13398_v16 = vmul.f32 %v13367_v19, %v7521_v1  ;;  %v7573_v50 = vpop.permute.xlu0 %7572  ;;  %v7417_v41 = vsel %vm1003_vm3, %v13293_v58, %v7411_v4  ;;  %v7429_v59 = vrot.slane %v8346_v27, %v9469_v37 }
0x17e9   : > { %v7580_v2 = vsel %vm1077_vm7, %v7565_v24, %v7573_v50  ;;  %v7584_v57 = vsel %vm1077_vm7, %v7573_v50, %v7565_v24  ;;  %v7420_v58 = vsel %vm1003_vm3, %v13331_v35, %v13291_v46 }
0x17ea   : > { %v7575_v12 = vpop.permute.xlu1 %7574  ;;  %v13413_v52 = vmul.f32 %v13383_v8, %v7580_v2  ;;  %v13416_v20 = vmul.f32 %v13386_v23, %v7584_v57  ;;  %v7433_v2 = vrot.slane %v8346_v27, %v9379_v9  ;;  %v7485_v27 = vrot.slane %v13336_v6, %v9379_v9 }
0x17eb   : > { %v7581_v40 = vsel %vm1077_vm7, %v7567_v3, %v7575_v12  ;;  %v7585_v26 = vsel %vm1077_vm7, %v7575_v12, %v7567_v3 }
0x17ec   : > { %v13419_v24 = vmul.f32 %v13383_v8, %v7581_v40  ;;  %v13422_v43 = vmul.f32 %v13386_v23, %v7585_v26  ;;  %v7353_v0 = vpop.permute.xlu0 %7352  ;;  %v7416_v40 = vsel %vm1003_vm3, %v13291_v46, %v13331_v35  ;;  %v7439_v3 = vmul.f32 %v7433_v2, %v7417_v41 }
0x17ed   : > { %v7437_v4 = vmul.f32 %v7433_v2, %v7416_v40 }
0x17ee   : > { %v7355_v30 = vpop.permute.xlu1 %7354 }
0x17f0   : > { %v7405_v49 = vpop.permute.xlu0 %7404 }
0x17f2   : > { %v7407_v61 = vpop.permute.xlu1 %7406 }
0x17f4   : > { %v7457_v55 = vpop.permute.xlu0 %7456 }
0x17f6   : > { %v13428_v32 = vpop.permute.xlu1 %7458 }
0x17f8   : > { %v13430_v25 = vpop.permute.xlu0 %7508 }
0x17fa   : > { %v13432_v47 = vpop.permute.xlu1 %7510 }
0x17fc   : > { %v13434_v14 = vpop.permute.xlu0 %7568 }
0x17fe   : > { %v13439_v1 = vpop.permute.xlu1 %7570 }
0x1800   : > { %v7361_v50 = vpop.permute.xlu0 %7360 }
0x1801   : > { %v7366_v57 = vsel %vm980_vm6, %v7353_v0, %v7361_v50  ;;  %v7370_v12 = vsel %vm980_vm6, %v7361_v50, %v7353_v0 }
0x1802   : > { %v7363_v26 = vpop.permute.xlu1 %7362  ;;  %v7388_v31 = vmul.f32 %v13314_v11, %v7370_v12  ;;  %v7389_v0 = vmul.f32 %v13317_v56, %v7366_v57 }
0x1803   : > { %v7367_v15 = vsel %vm980_vm6, %v7355_v30, %v7363_v26  ;;  %v7371_v62 = vsel %vm980_vm6, %v7363_v26, %v7355_v30  ;;  %v7438_v26 = vmul.f32 %v7429_v59, %v7421_v29 }
0x1804   : > { %v7390_v50 = vmul.f32 %v13314_v11, %v7371_v62  ;;  %v7391_v22 = vmul.f32 %v13317_v56, %v7367_v15  ;;  %v13464_v21 = vpop.permute.xlu0 %7616  ;;  %v7469_v11 = vsel %vm1027_vm4, %v13301_v51, %v13351_v54  ;;  %v7849_v15 = vpack.c.bf16 %v7439_v3, %v7437_v4 }
0x1805   : > { %v7436_v62 = vmul.f32 %v7429_v59, %v7420_v58 }
0x1806   : > { %v7846_v41 = vpack.c.bf16 %v7390_v50, %v7388_v31  ;;  %v13471_v30 = vpop.permute.xlu1 %7618  ;;  %v7847_v12 = vpack.c.bf16 %v7391_v22, %v7389_v0  ;;  %v7468_v22 = vsel %vm1027_vm4, %v13299_v44, %v13342_v7  ;;  %v7491_v31 = vmul.f32 %v7485_v27, %v7469_v11 }
0x1807   : > { %v7848_v54 = vpack.c.bf16 %v7438_v26, %v7436_v62  ;;  %v7489_v50 = vmul.f32 %v7485_v27, %v7468_v22 }
0x1808   : > { %7900 = vmatprep.subr.bf16.mxu0 %v7847_v12  ;;  %v7413_v56 = vpop.permute.xlu0 %7412 }
0x1809   : > { %v7418_v46 = vsel %vm1003_vm3, %v7405_v49, %v7413_v56  ;;  %v7422_v35 = vsel %vm1003_vm3, %v7413_v56, %v7405_v49  ;;  %7901 = vmatpush1.bf16.msra.mxu0 %v7846_v41  ;;  %v7853_v41 = vpack.c.bf16 %v7491_v31, %v7489_v50 }
0x180a   : > { %v7415_v51 = vpop.permute.xlu1 %7414  ;;  %7902 = vmatprep.subr.bf16.mxu0 %v7849_v15  ;;  %v7440_v3 = vmul.f32 %v7429_v59, %v7422_v35  ;;  %v7441_v57 = vmul.f32 %v7433_v2, %v7418_v46 }
0x180b   : > { %v7419_v29 = vsel %vm1003_vm3, %v7407_v61, %v7415_v51  ;;  %v7423_v6 = vsel %vm1003_vm3, %v7415_v51, %v7407_v61 }
0x180c   : > { %v7442_v40 = vmul.f32 %v7429_v59, %v7423_v6  ;;  %v7443_v49 = vmul.f32 %v7433_v2, %v7419_v29  ;;  %v7465_v0 = vpop.permute.xlu0 %7464 }
0x180d   : > { %7903 = vmatpush1.bf16.msra.mxu0 %v7848_v54  ;;  %v7470_v12 = vsel %vm1027_vm4, %v7457_v55, %v7465_v0  ;;  %v7474_v61 = vsel %vm1027_vm4, %v7465_v0, %v7457_v55  ;;  %v13861_v55 = vpack.c.bf16 %v13361_v13, %v13358_v39  ;;  %v13862_v39 = vpack.c.bf16 %v13398_v16, %v13392_v17 }
0x180e   : > { %v7850_v58 = vpack.c.bf16 %v7442_v40, %v7440_v3  ;;  %v13491_v4 = vpop.permute.xlu1 %7626  ;;  %v7851_v44 = vpack.c.bf16 %v7443_v49, %v7441_v57  ;;  %v7492_v11 = vmul.f32 %v13340_v60, %v7474_v61  ;;  %v7493_v56 = vmul.f32 %v7485_v27, %v7470_v12 }
0x180f   : > { %v13863_v17 = vpack.c.bf16 %v13395_v10, %v13389_v48  ;;  %v7863_v48 = vpack.c.bf16 %v13224_v33, %v13220_v5 }
0x1810   : > { %7904 = vmatprep.subr.bf16.mxu0 %v7851_v44  ;;  %v7517_v7 = vpop.permute.xlu0 %7516 }
0x1811   : > { %7905 = vmatpush1.bf16.msra.mxu0 %v7850_v58  ;;  %v8350_v58 = vld [vmem:[%s13828_s21 + $0x6] ss:$8 sm:$0x3] }
0x1812   : > { %v7467_v26 = vpop.permute.xlu1 %7466  ;;  %7906 = vmatprep.subr.bf16.mxu0 %v7853_v41  ;;  %v7645_v33 = vrot.slane %v8350_v58, %v9469_v37  ;;  %v7649_v44 = vrot.slane %v8350_v58, %v9379_v9 }
0x1813   : > { %v7471_v59 = vsel %vm1027_vm4, %v13428_v32, %v7467_v26  ;;  %v7475_v2 = vsel %vm1027_vm4, %v7467_v26, %v13428_v32  ;;  %v7522_v32 = vsel %vm1051_vm5, %v13430_v25, %v7517_v7 }
0x1814   : > { %v7494_v15 = vmul.f32 %v13340_v60, %v7475_v2  ;;  %v7495_v62 = vmul.f32 %v7485_v27, %v7471_v59  ;;  %v7577_v46 = vpop.permute.xlu0 %7576  ;;  %v7526_v60 = vsel %vm1051_vm5, %v7517_v7, %v13430_v25  ;;  %v7545_v6 = vmul.f32 %v13367_v19, %v7522_v32 }
0x1815   : > { %7907 = vmatpush1.bf16.msra.mxu0 %v13861_v55  ;;  %v7544_v29 = vmul.f32 %v13364_v28, %v7526_v60  ;;  %v13864_v7 = vpack.c.bf16 %v13422_v43, %v13416_v20 }
0x1816   : > { %v7854_v35 = vpack.c.bf16 %v7494_v15, %v7492_v11  ;;  %v13508_v22 = vpop.permute.xlu1 %7622  ;;  %v7855_v51 = vpack.c.bf16 %v7495_v62, %v7493_v56  ;;  %v13865_v11 = vpack.c.bf16 %v13419_v24, %v13413_v52 }
0x1818   : > { %7908 = vmatprep.subr.bf16.mxu0 %v7855_v51  ;;  %v7625_v54 = vpop.permute.xlu0 %7624 }
0x1819   : > { %7909 = vmatpush1.bf16.msra.mxu0 %v7854_v35  ;;  %v7636_v5 = vsel %vm1101_vm8, %v7625_v54, %v13464_v21  ;;  %v7632_v41 = vsel %vm1101_vm8, %v13464_v21, %v7625_v54  ;;  %v7633_v21 = vsel %vm1101_vm8, %v13471_v30, %v13491_v4 }
0x181a   : > { %v7519_v27 = vpop.permute.xlu1 %7518  ;;  %7910 = vmatprep.subr.bf16.mxu0 %v13862_v39  ;;  %v7653_v59 = vmul.f32 %v7649_v44, %v7636_v5  ;;  %v7652_v15 = vmul.f32 %v7645_v33, %v7632_v41  ;;  %v7654_v55 = vmul.f32 %v7645_v33, %v7633_v21 }
0x181b   : > { %v7523_v13 = vsel %vm1051_vm5, %v13432_v47, %v7519_v27  ;;  %v7527_v31 = vsel %vm1051_vm5, %v7519_v27, %v13432_v47  ;;  %v7861_v47 = vpack.c.bf16 %v13172_v53, %v13168_v42  ;;  %v7862_v42 = vpack.c.bf16 %v13198_v45, %v13194_v18 }
0x181c   : > { %v7546_v25 = vmul.f32 %v13364_v28, %v7527_v31  ;;  %v7547_v3 = vmul.f32 %v13367_v19, %v7523_v13  ;;  %v7621_v57 = vpop.permute.xlu0 %7620  ;;  %v7860_v28 = vpack.c.bf16 %v13146_v34, %v13141_v36  ;;  %v7582_v53 = vsel %vm1077_vm7, %v13434_v14, %v7577_v46 }
0x181d   : > { %7911 = vmatpush1.bf16.msra.mxu0 %v13863_v17  ;;  %v7586_v34 = vsel %vm1077_vm7, %v7577_v46, %v13434_v14  ;;  %v7637_v18 = vsel %vm1101_vm8, %v13491_v4, %v13471_v30  ;;  %v7604_v14 = vmul.f32 %v13383_v8, %v7582_v53  ;;  %v7868_v4 = vpack.c.bf16 %v7654_v55, %v7652_v15 }
0x181e   : > { %v7858_v16 = vpack.c.bf16 %v7546_v25, %v7544_v29  ;;  %v13532_v40 = vpop.permute.xlu1 %7670  ;;  %v7859_v49 = vpack.c.bf16 %v7547_v3, %v7545_v6  ;;  %v7605_v26 = vmul.f32 %v13386_v23, %v7586_v34  ;;  %v7655_v56 = vmul.f32 %v7649_v44, %v7637_v18 }
0x1820   : > { %7912 = vmatprep.subr.bf16.mxu0 %v7859_v49  ;;  %v7629_v0 = vpop.permute.xlu0 %7628  ;;  %v7869_v30 = vpack.c.bf16 %v7655_v56, %v7653_v59  ;;  %v8353_v56 = vcombine.low %v13279_v38, %v13279_v38 }
0x1821   : > { %7913 = vmatpush1.bf16.msra.mxu0 %v7858_v16  ;;  %v7638_v52 = vsel %vm1101_vm8, %v7629_v0, %v7621_v57 }
0x1822   : > { %v7679_v50 = vpop.permute.xlu1 %7678  ;;  %7914 = vmatprep.subr.bf16.mxu0 %v7861_v47  ;;  %v7657_v29 = vmul.f32 %v7649_v44, %v7638_v52  ;;  %v13866_v52 = vmov 0  }
0x1823   : > { %v7689_v27 = vsel %vm1125_vm11, %v7679_v50, %v13532_v40  ;;  %v7685_v17 = vsel %vm1125_vm11, %v13532_v40, %v7679_v50 }
0x1824   : > { %v7669_v19 = vpop.permute.xlu0 %7668 }
0x1825   : > { %7915 = vmatpush1.bf16.msra.mxu0 %v7860_v28 }
0x1826   : > { %v13540_v10 = vpop.permute.xlu1 %7674  ;;  %7916 = vmatprep.subr.bf16.mxu0 %v7863_v48 }
0x1828   : > { %v7677_v36 = vpop.permute.xlu0 %7676 }
0x1829   : > { %7917 = vmatpush1.bf16.msra.mxu0 %v7862_v42  ;;  %v7688_v24 = vsel %vm1125_vm11, %v7677_v36, %v7669_v19  ;;  %v7684_v39 = vsel %vm1125_vm11, %v7669_v19, %v7677_v36 }
0x182a   : > { %v7579_v45 = vpop.permute.xlu1 %7578  ;;  %7918 = vmatprep.subr.bf16.mxu0 %v13864_v7 }
0x182b   : > { %v7583_v12 = vsel %vm1077_vm7, %v13439_v1, %v7579_v45  ;;  %v7587_v61 = vsel %vm1077_vm7, %v7579_v45, %v13439_v1 }
0x182c   : > { %v7606_v20 = vmul.f32 %v13383_v8, %v7583_v12  ;;  %v7607_v43 = vmul.f32 %v13386_v23, %v7587_v61  ;;  %v7673_v2 = vpop.permute.xlu0 %7672  ;;  %v7634_v8 = vsel %vm1101_vm8, %v7621_v57, %v7629_v0  ;;  %v8351_v23 = vld [vmem:[%s13828_s21 + $0x7] ss:$8 sm:$0x3] }
0x182d   : > { %7919 = vmatpush1.bf16.msra.mxu0 %v13865_v11  ;;  %v7656_v51 = vmul.f32 %v7645_v33, %v7634_v8  ;;  %v7697_v54 = vrot.slane %v8351_v23, %v9469_v37  ;;  %v7701_v32 = vrot.slane %v8351_v23, %v9379_v9 }
0x182e   : > { %v7866_v1 = vpack.c.bf16 %v7606_v20, %v7604_v14  ;;  %v7723_v62 = vpop.permute.xlu1 %7722  ;;  %v7867_v46 = vpack.c.bf16 %v7607_v43, %v7605_v26 }
0x182f   : > { %v7705_v6 = vmul.f32 %v7701_v32, %v7688_v24  ;;  %v7707_v16 = vmul.f32 %v7701_v32, %v7689_v27  ;;  %v7704_v49 = vmul.f32 %v7697_v54, %v7684_v39  ;;  %v7706_v48 = vmul.f32 %v7697_v54, %v7685_v17 }
0x1830   : > { %v7681_v35 = vpop.permute.xlu0 %7680  ;;  %7920 = vmatprep.subr.bf16.mxu0 %v7867_v46  ;;  %v8973_v27 = vmov 1966171168  }
0x1831   : > { %7921 = vmatpush1.bf16.msra.mxu0 %v7866_v1  ;;  %v7686_v19 = vsel %vm1125_vm11, %v7673_v2, %v7681_v35  ;;  %v7690_v58 = vsel %vm1125_vm11, %v7681_v35, %v7673_v2  ;;  %v7873_v40 = vpack.c.bf16 %v7707_v16, %v7705_v6  ;;  %v7872_v53 = vpack.c.bf16 %v7706_v48, %v7704_v49  ;;  %v13868_v49 = vld [vmem:[#allocation35_spill] sm:$0xff] }
0x1832   : > { %v7631_v60 = vpop.permute.xlu1 %7630  ;;  %7922 = vmatprep.subr.bf16.mxu0 %v7869_v30  ;;  %v7708_v36 = vmul.f32 %v7697_v54, %v7686_v19  ;;  %v7986_v39 = vunpack.c.l.s4 %v8973_v27 }
0x1833   : > { %v7635_v13 = vsel %vm1101_vm8, %v13508_v22, %v7631_v60  ;;  %v7639_v31 = vsel %vm1101_vm8, %v7631_v60, %v13508_v22  ;;  %v8352_v22 = vld [vmem:[%s13828_s21 + $0x10] ss:$8 sm:$0x3] }
0x1834   : > { %v7658_v25 = vmul.f32 %v7645_v33, %v7635_v13  ;;  %v7659_v3 = vmul.f32 %v7649_v44, %v7639_v31  ;;  %v7721_v57 = vpop.permute.xlu0 %7720  ;;  %v7753_v34 = vrot.slane %v8352_v22, %v9379_v9  ;;  %v7709_v33 = vmul.f32 %v7701_v32, %v7690_v58 }
0x1835   : > { %7923 = vmatpush1.bf16.msra.mxu0 %v7868_v4  ;;  %v7749_v61 = vrot.slane %v8352_v22, %v9469_v37  ;;  %v13871_v22 = vld [vmem:[#allocation31_spill] sm:$0xff] }
0x1836   : > { %v7870_v0 = vpack.c.bf16 %v7658_v25, %v7656_v51  ;;  %v7731_v47 = vpop.permute.xlu1 %7730  ;;  %v7871_v28 = vpack.c.bf16 %v7659_v3, %v7657_v29  ;;  %v8675_v51 = vld [vmem:[%s13843_s16 + $0x14] ss:$0 sps:$4 sm:$0x77]   ;;  %v7987_v25 = vunpack.c.0.s8 %v7986_v39 }
0x1837   : > { %v7741_v44 = vsel %vm1149_vm12, %v7731_v47, %v7723_v62  ;;  %v7737_v26 = vsel %vm1149_vm12, %v7723_v62, %v7731_v47 }
0x1838   : > { %v7729_v42 = vpop.permute.xlu0 %7728  ;;  %7924 = vmatprep.subr.bf16.mxu0 %v7871_v28  ;;  %v7759_v59 = vmul.f32 %v7753_v34, %v7741_v44  ;;  %v7758_v15 = vmul.f32 %v7749_v61, %v7737_v26  ;;  %v13869_v28 = vld [vmem:[#allocation36_spill] sm:$0xff]  ;;  %v7990_v48 = vsub.s32 %v7987_v25, %v13871_v22 }
0x1839   : > { %v7740_v50 = vsel %vm1149_vm12, %v7729_v42, %v7721_v57  ;;  %7925 = vmatpush1.bf16.msra.mxu0 %v7870_v0  ;;  %v7736_v7 = vsel %vm1149_vm12, %v7721_v57, %v7729_v42 }
0x183a   : > { %v7683_v5 = vpop.permute.xlu1 %7682  ;;  %7926 = vmatprep.subr.bf16.mxu0 %v7873_v40  ;;  %v7757_v14 = vmul.f32 %v7753_v34, %v7740_v50  ;;  %v7756_v21 = vmul.f32 %v7749_v61, %v7736_v7  ;;  %v13872_v40 = vlaneseq }
0x183b   : > { %v7687_v18 = vsel %vm1125_vm11, %v13540_v10, %v7683_v5  ;;  %v7691_v45 = vsel %vm1125_vm11, %v7683_v5, %v13540_v10 }
0x183c   : > { %v7710_v41 = vmul.f32 %v7697_v54, %v7687_v18  ;;  %v7711_v9 = vmul.f32 %v7701_v32, %v7691_v45  ;;  %v7725_v12 = vpop.permute.xlu0 %7724  ;;  %v7877_v10 = vpack.c.bf16 %v7759_v59, %v7757_v14  ;;  %v7876_v46 = vpack.c.bf16 %v7758_v15, %v7756_v21 }
0x183d   : > { %7927 = vmatpush1.bf16.msra.mxu0 %v7872_v53  ;;  %vm8002_vm3 = vcmp.lt.s32.totalorder %v13872_v40, 256 }
0x183e   : > { %v7874_v20 = vpack.c.bf16 %v7710_v41, %v7708_v36  ;;  %v7727_v43 = vpop.permute.xlu1 %7726  ;;  %v7875_v2 = vpack.c.bf16 %v7711_v9, %v7709_v33 }
0x1840   : > { %v7733_v11 = vpop.permute.xlu0 %7732  ;;  %7928 = vmatprep.subr.bf16.mxu0 %v7875_v2 }
0x1841   : > { %v7738_v1 = vsel %vm1149_vm12, %v7725_v12, %v7733_v11  ;;  %v7742_v37 = vsel %vm1149_vm12, %v7733_v11, %v7725_v12  ;;  %7929 = vmatpush1.bf16.msra.mxu0 %v7874_v20 }
0x1842   : > { %v7735_v62 = vpop.permute.xlu1 %7734  ;;  %7939 = vmatprep.subr.bf16.mxu0 %v7877_v10  ;;  %v7760_v55 = vmul.f32 %v7749_v61, %v7738_v1  ;;  %v7761_v35 = vmul.f32 %v7753_v34, %v7742_v37 }
0x1843   : > { %v7739_v8 = vsel %vm1149_vm12, %v7727_v43, %v7735_v62  ;;  %v7743_v23 = vsel %vm1149_vm12, %v7735_v62, %v7727_v43 }
0x1844   : > { %v7762_v38 = vmul.f32 %v7749_v61, %v7739_v8  ;;  %v7763_v30 = vmul.f32 %v7753_v34, %v7743_v23  ;;  %7931 = vmatmul.mubr.bf16.vlgmr.msra.gmra.mrb[44].mxu0 %v8353_v56 }
0x1845   : > { %7940 = vmatpush1.bf16.msra.mxu0 %v7876_v46  ;;  %7971 = vmatprep.mubr.bf16.mxu0 %v13866_v52 }
0x1846   : > { %v7878_v24 = vpack.c.bf16 %v7762_v38, %v7760_v55  ;;  %v7879_v4 = vpack.c.bf16 %v7763_v30, %v7761_v35 }
0x1848   : > { %7941 = vmatprep.subr.bf16.mxu0 %v7879_v4 }
0x1849   : > { %7942 = vmatpush1.bf16.msra.mxu0 %v7878_v24 }
0x184c   : > { %8356 = vmatmul.mubr.msk.bf16.vlgmr.msra.gmra.mrb[48].mxu0 %vm1913_vm2, %v8675_v51 }
0x1851   : > { %v7883_v13 = vpop.permute.xlu0 %7882 }
0x1917   : > { %v7932_v63 = vpop.f32.mrb[44].mxu0 }
0x1918   : > { %v7934_v54 = vpop.f32.mrb[45].mxu0  ;;  %v7933_v31 = vadd.f32 %v7932_v63, %v7883_v13 }
0x1919   : > { %v7936_v32 = vpop.f32.mrb[46].mxu0  ;;  %v7935_v29 = vadd.f32 %v7934_v54, %v7883_v13 }
0x191a   : > { %v7937_v60 = vpop.f32.mrb[47].mxu0 }
0x191f   : > { %v7973_v6 = vpop.f32.mrb[48].mxu0 }
0x1920   : > { %v7974_v3 = vadd.f32 %v7973_v6, %v7933_v31  ;;  %v7975_v57 = vpop.f32.mrb[49].mxu0 }
0x1921   : > { %v7976_v17 = vadd.f32 %v7975_v57, %v7935_v29  ;;  %v7977_v16 = vpop.f32.mrb[50].mxu0 }
0x1922   : > { %v7980_v0 = vadd.f32 %v7974_v3, %v13868_v49  ;;  %v7978_v47 = vpop.f32.mrb[51].mxu0 }
0x1923   : > { %v7981_v19 = vadd.f32 %v7976_v17, %v13869_v28 }
0x1925   : > { %v7984_v58 = vcombine.low %v7980_v0, %v7981_v19 }
0x1927   : > { %v7991_v42 = vrot.slane %v7984_v58, %v7990_v48 }
0x1929   : > { %v7998_v50 = vrot.slane %v7991_v42, %v7990_v48 }
0x192b   : > { %8004 = vst.msk [vmem:[%s686_s18] sm:$0x3] %vm8002_vm3, %v7998_v50 }
0x192c   : > { %8880 = shalt.err (!%p8877_p13)
}
0x192d   : > { %s8881_s20 = scalar_lea.hbm %s13657_s14, 32  ;;  %s8885_s13 = scalar_lea.hbm %s13873_s24, 64 }
0x192e   : > { %p8882_p1 = scmp.ne.s32.totalorder %s13657_s14, %s8881_s20  ;;  %p8886_p7 = scmp.lt.u32.totalorder %s13657_s14, %s13873_s24 }
0x192f   : > { %p8887_p3 = scmp.lt.u32.totalorder %s8885_s13, %s8881_s20  ;;  %p8889_p4 = scmp.lt.u32.totalorder %s8881_s20, %s13657_s14 }
0x1930   : > { %p8883_p6 = pnand %p8882_p1, %p13874_p10 }
0x1931   : > { %p8888_p9 = por %p8887_p3, %p8886_p7 }
0x1932   : > { %p8884_p5 = pneg %p8883_p6 }
0x1933   : > { %p8890_p0 = por %p8889_p4, %p8888_p9 }
0x1935   : > { %p8891_p2 = pnand %p8890_p0, %p8884_p5 }
0x1937   : > { %8894 = shalt.err (!%p8891_p2)
}
0x1938   : > { %8485 = dma.vmem_to_hbm [thread:$0]  (%p13874_p10), %s13659_s27, 32, %s13657_s14, %s8006_s26  }
0x1939 PF: > { %s13875_s28 = sld [smem:[#allocation22_spill]]  ;;  %s13876_s18 = sld [smem:[#allocation29_spill]] }
0x193a   : > { %s13877_s30 = sld [smem:[#allocation25_spill]] }
0x193f   : > { %s8032_s23 = sand.u32 1, %s13875_s28   ;;  %p13878_p11 = scmp.ne.s32.totalorder %s13876_s18, 0 }
0x1940   : > { %p13879_p12 = scmp.ge.s32.totalorder %s13877_s30, 2  ;;  %s8033_s19 = scalar_lea.sflag [#allocation6], %s8032_s23 }
0x1942   : > { %p8508_p8 = pnand %p13879_p12, %p13878_p11 }
0x1944   : > { %8932 = dma.done.wait (!%p8508_p8), %s8033_s19, 32  }
0x1945   : > { %8934 = vsyncadd (!%p8508_p8), %s8033_s19, 4294967264  ;;  %s13880_s30 = sld [smem:[#allocation26_spill]]  ;;  %s13881_s27 = sld [smem:[#allocation23_spill]] }
0x1946   : > { %s13882_s28 = sld [smem:[#allocation24_spill]]  ;;  %s13883_s29 = sld [smem:[#allocation27_spill]] }
0x194b   : > { %p36_p13 = scmp.ge.s32.totalorder %s13880_s30, 4  }
0x194d   :  { %38 = sbr.rel (!%p36_p13) target bundleno = 23 (0x17), region = 193 }
0x1954   :  { %8038 = vsyncpa [#allocation5], 1 }
0x1955   :  { %8040 = vsyncpa [#allocation5 + $0x1], 1 }
0x1956   :  { %8041 = vsyncpa [#allocation10], 1 }
0x1957   :  { %8043 = vsyncpa [#allocation10 + $0x1], 1 }
0x1958   :  { %8044 = vsyncpa [#allocation13], 1 }
0x1959   :  { %8045 = vsyncpa [#allocation6], 1 }
0x195a   :  { %8047 = vsyncpa [#allocation6 + $0x1], 1 }
0x195b   :  { %8048 = vsyncpa [#allocation7], 1 }
0x195c   :  { %8050 = vsyncpa [#allocation7 + $0x1], 1 }

</bundles_post_ra>
